<compile_context>
chip_gen: v7x
topology: tpu7x:2x2x1
jax: 0.10.0
libtpu: 0.0.40
codegen_flags: <defaults>
</compile_context>

<pallas_src>
import jax
import jax.numpy as jnp
import numpy as np
from jax.experimental import pallas as pl
from jax.experimental.pallas import tpu as pltpu

CHANNELS = [16, 32, 32, 64]   # synthetic per-stage channel counts (2*c divisible by 32 groups)
GN_GROUPS = 32
GN_EPS = 1e-5


# --------------------------------------------------------------------------- tiling util
def _pick_tile(m, c2):
    """Largest divisor of m that is a multiple of 16 (bf16 sublane packing), capped so
    low-channel stages get big tiles, c2=128 stages stay register-friendly, and the grid
    has >= 2 parallel steps whenever m allows (keeps both v7x TensorCores busy)."""
    target = 1024 if c2 <= 64 else 256
    if m >= 32:
        target = min(target, m // 2)          # guarantee >= 2 grid steps
    cap = min(m, target)
    for mult in (16, 8):
        best = 0
        d = mult
        while d <= cap:
            if m % d == 0:
                best = d
            d += mult
        if best:
            return best
    return m


# ------------------------------------------------------------- stage kernel (conv + 5xSS2D)
def _stage_kernel(x_ref, wbb_ref, bbb_ref, wz_ref, bz_ref, wy_ref, by_ref,
                  wo_ref, bo_ref, facc_ref):
    # backbone 1x1 conv with block-diagonal weight -> concatenated [fA|fB], ReLU
    x = x_ref[...]                                                    # (TM, cin2) bf16
    f = jnp.dot(x, wbb_ref[...], preferred_element_type=jnp.float32) + bbb_ref[...]
    f = jnp.maximum(f, 0.0)                                           # ReLU (f32)
    fb = f.astype(jnp.bfloat16)

    # TODO(synk): real SS2D (4-direction selective scan) not reproducible without its source;
    # stand-in = out_proj(SiLU(x@Wz) * (x@Wy)).  All 5 heads fused into 3 wide matmuls.
    z = jnp.dot(fb, wz_ref[...], preferred_element_type=jnp.float32) + bz_ref[...]   # (TM,5*c2)
    y = jnp.dot(fb, wy_ref[...], preferred_element_type=jnp.float32) + by_ref[...]   # (TM,5*c2)
    g = (y * (z * jax.nn.sigmoid(z))).astype(jnp.bfloat16)            # y * SiLU(z), all heads
    acc = jnp.dot(g, wo_ref[...], preferred_element_type=jnp.float32) + bo_ref[...]  # 5-way sum

    # single merged lane-dense store: [f | acc], width 2*c2
    facc_ref[...] = jnp.concatenate([fb, acc.astype(jnp.bfloat16)], axis=-1)


def stage_fused(x, p):
    """x: (M, cin2) pooled+concatenated bf16 feature -> merged (M, 2*c2) bf16 [f_cat | acc]."""
    M, cin2 = x.shape
    c2 = p["wo"].shape[-1]
    c10 = p["wz"].shape[-1]                                           # 5*c2
    tm = _pick_tile(M, c2)
    return pl.pallas_call(
        _stage_kernel,
        grid=(M // tm,),
        in_specs=[
            pl.BlockSpec((tm, cin2), lambda i: (i, 0)),
            pl.BlockSpec((cin2, c2), lambda i: (0, 0)),
            pl.BlockSpec((1, c2), lambda i: (0, 0)),
            pl.BlockSpec((c2, c10), lambda i: (0, 0)),
            pl.BlockSpec((1, c10), lambda i: (0, 0)),
            pl.BlockSpec((c2, c10), lambda i: (0, 0)),
            pl.BlockSpec((1, c10), lambda i: (0, 0)),
            pl.BlockSpec((c10, c2), lambda i: (0, 0)),
            pl.BlockSpec((1, c2), lambda i: (0, 0)),
        ],
        out_specs=pl.BlockSpec((tm, 2 * c2), lambda i: (i, 0)),
        out_shape=jax.ShapeDtypeStruct((M, 2 * c2), jnp.bfloat16),
        compiler_params=pltpu.CompilerParams(dimension_semantics=("parallel",)),
    )(x, p["wbb"], p["bbb"], p["wz"], p["bz"], p["wy"], p["by"], p["wo"], p["bo"])


# ------------------------------------------- input_proj (1x1 conv + GN) + split/residual
def _proj_gn_kernel(facc_ref, w_ref, b_ref, gamma_ref, beta_ref, pmat_ref,
                    diff_ref, next_ref):
    facc = facc_ref[...]                                              # (HW, 2*c2) bf16
    c2 = facc.shape[-1] // 2
    f = facc[:, :c2]                                                  # [fA|fB] (bf16)
    acc = facc[:, c2:]                                                # 5-head SS2D sum (bf16)
    # 1x1 conv (bf16 matmul, f32 accumulate)
    y = jnp.dot(acc, w_ref[...], preferred_element_type=jnp.float32) + b_ref[...]
    hw = y.shape[0]
    cg = c2 // GN_GROUPS
    denom = 1.0 / float(hw * cg)
    # GroupNorm(32): two-pass (subtract-mean) statistics; group sum + broadcast via the
    # symmetric group-membership matmul (tiny (1,c2)@(c2,c2)).
    s1 = jnp.sum(y, axis=0, keepdims=True)                            # (1, c2)
    mean = jnp.dot(s1, pmat_ref[...], preferred_element_type=jnp.float32) * denom
    yc = y - mean
    s2 = jnp.sum(yc * yc, axis=0, keepdims=True)
    var = jnp.dot(s2, pmat_ref[...], preferred_element_type=jnp.float32) * denom
    fp = yc * jax.lax.rsqrt(var + GN_EPS) * gamma_ref[...] + beta_ref[...]
    # fused epilogue: residual update [inA|inB] = [fA|fB] + fp, and cdaA - cdaB
    next_ref[...] = (f.astype(jnp.float32) + fp).astype(next_ref.dtype)
    c = c2 // 2
    diff_ref[...] = (fp[:, :c] - fp[:, c:]).astype(diff_ref.dtype)


def proj_groupnorm(facc, p):
    """facc: (N, HW, 2*c2) merged [f|acc] -> (diff (N,HW,c2//2) bf16, next_in (N,HW,c2) bf16)."""
    # TODO(synk): GN statistics use one whole-HW block per sample (fine at these shapes);
    # production feature maps need an HW-tiled two-phase (accumulate stats, then normalize)
    # formulation to stay under v7x's 64 MiB VMEM.
    N, HW, c22 = facc.shape
    c2 = c22 // 2
    c = c2 // 2
    return pl.pallas_call(
        _proj_gn_kernel,
        grid=(N,),
        in_specs=[
            pl.BlockSpec((None, HW, c22), lambda n: (n, 0, 0)),
            pl.BlockSpec((c2, c2), lambda n: (0, 0)),
            pl.BlockSpec((1, c2), lambda n: (0, 0)),
            pl.BlockSpec((1, c2), lambda n: (0, 0)),
            pl.BlockSpec((1, c2), lambda n: (0, 0)),
            pl.BlockSpec((c2, c2), lambda n: (0, 0)),
        ],
        out_specs=[
            pl.BlockSpec((None, HW, c), lambda n: (n, 0, 0)),
            pl.BlockSpec((None, HW, c2), lambda n: (n, 0, 0)),
        ],
        out_shape=(
            jax.ShapeDtypeStruct((N, HW, c), jnp.bfloat16),
            jax.ShapeDtypeStruct((N, HW, c2), jnp.bfloat16),
        ),
        compiler_params=pltpu.CompilerParams(dimension_semantics=("parallel",)),
    )(facc, p["w"], p["b"], p["gamma"], p["beta"], p["pmat"])


# ---------------------------------------------------------------------- bilinear upsample
def _upsample_matrix(n_in, scale):
    """Dense interpolation matrix reproducing F.interpolate(bilinear, align_corners=False).
    All weights are dyadic fractions k/2^s -> exact in bf16."""
    n_out = n_in * scale
    o = np.arange(n_out)
    src = (o + 0.5) / scale - 0.5
    i0 = np.floor(src).astype(np.int64)
    w1 = (src - i0).astype(np.float32)
    i1 = i0 + 1
    i0c = np.clip(i0, 0, n_in - 1)
    i1c = np.clip(i1, 0, n_in - 1)
    U = np.zeros((n_out, n_in), np.float32)
    np.add.at(U, (o, i0c), 1.0 - w1)
    np.add.at(U, (o, i1c), w1)
    return U


def _up_matmul_kernel(x_ref, u_ref, o_ref):
    o_ref[...] = jnp.dot(u_ref[...], x_ref[...],
                         preferred_element_type=jnp.float32).astype(o_ref.dtype)


def bilinear_upsample_nhwc(x, scale):
    """Separable bilinear x`scale` upsample of bf16 NHWC input; C stays on lanes, no kron,
    no transposes: H-pass matmul per sample, then W-pass matmul per output row."""
    N, H, W, C = x.shape
    Hout, Wout = H * scale, W * scale
    uh = jnp.asarray(_upsample_matrix(H, scale), jnp.bfloat16)
    uw = jnp.asarray(_upsample_matrix(W, scale), jnp.bfloat16)
    # pass 1: H direction, (Hout,H)@(H,W*C) per sample
    y1 = pl.pallas_call(
        _up_matmul_kernel,
        grid=(N,),
        in_specs=[
            pl.BlockSpec((None, H, W * C), lambda n: (n, 0, 0)),
            pl.BlockSpec((Hout, H), lambda n: (0, 0)),
        ],
        out_specs=pl.BlockSpec((None, Hout, W * C), lambda n: (n, 0, 0)),
        out_shape=jax.ShapeDtypeStruct((N, Hout, W * C), jnp.bfloat16),
        compiler_params=pltpu.CompilerParams(dimension_semantics=("parallel",)),
    )(x.reshape(N, H, W * C), uh)
    # pass 2: W direction, (Wout,W)@(W,C) per (sample, output row)
    # TODO(synk): at production resolutions coarsen this grid (block several H-rows) to
    # amortize per-step overhead.
    out = pl.pallas_call(
        _up_matmul_kernel,
        grid=(N, Hout),
        in_specs=[
            pl.BlockSpec((None, None, W, C), lambda n, h: (n, h, 0, 0)),
            pl.BlockSpec((Wout, W), lambda n, h: (0, 0)),
        ],
        out_specs=pl.BlockSpec((None, None, Wout, C), lambda n, h: (n, h, 0, 0)),
        out_shape=jax.ShapeDtypeStruct((N, Hout, Wout, C), jnp.float32),
        compiler_params=pltpu.CompilerParams(dimension_semantics=("parallel", "parallel")),
    )(y1.reshape(N, Hout, W, C), uw)
    return out


# ------------------------------------------------------------------------------ parameters
def init_params(key):
    params = {"stage": [], "proj": []}
    in_ch = 3
    for i in range(4):
        c = CHANNELS[i]
        c2 = 2 * c
        cin2 = 2 * in_ch
        # TODO(synk): SeaFormer_L stage stand-in: stride-2 avg pool + 1x1 conv + ReLU.
        key, k1 = jax.random.split(key)
        w = jax.random.normal(k1, (in_ch, c), jnp.float32) / np.sqrt(in_ch)
        wblk = jnp.zeros((cin2, c2), jnp.float32)
        wblk = wblk.at[:in_ch, :c].set(w).at[in_ch:, c:].set(w)       # same conv on A and B halves
        bblk = jnp.zeros((1, c2), jnp.float32)
        # 5 SS2D heads fused: Wz / Wy concatenated on the output axis, Wo stacked on the
        # contraction axis, head biases pre-summed -> 3 wide matmuls per tile.
        s = 1.0 / np.sqrt(c2)
        wz_l, wy_l, wo_l = [], [], []
        for _ in range(5):
            key, kz, ky, ko = jax.random.split(key, 4)
            wz_l.append(jax.random.normal(kz, (c2, c2), jnp.float32) * s)
            wy_l.append(jax.random.normal(ky, (c2, c2), jnp.float32) * s)
            wo_l.append(jax.random.normal(ko, (c2, c2), jnp.float32) * s)
        params["stage"].append({
            "wbb": wblk.astype(jnp.bfloat16),
            "bbb": bblk,
            "wz": jnp.concatenate(wz_l, axis=1).astype(jnp.bfloat16),  # (c2, 5*c2)
            "bz": jnp.zeros((1, 5 * c2), jnp.float32),
            "wy": jnp.concatenate(wy_l, axis=1).astype(jnp.bfloat16),  # (c2, 5*c2)
            "by": jnp.zeros((1, 5 * c2), jnp.float32),
            "wo": jnp.concatenate(wo_l, axis=0).astype(jnp.bfloat16),  # (5*c2, c2)
            "bo": jnp.zeros((1, c2), jnp.float32),                     # summed head biases
        })
        # input_proj: 1x1 conv (xavier_uniform, zero bias) + GroupNorm(32)
        key, kw = jax.random.split(key)
        limit = float(np.sqrt(6.0 / (c2 + c2)))
        wp_ = jax.random.uniform(kw, (c2, c2), jnp.float32, -limit, limit)
        cg = c2 // GN_GROUPS
        idx = np.arange(c2) // cg
        pmat = (idx[:, None] == idx[None, :]).astype(np.float32)      # group-membership matrix
        params["proj"].append({
            "w": wp_.astype(jnp.bfloat16),
            "b": jnp.zeros((1, c2), jnp.float32),
            "gamma": jnp.ones((1, c2), jnp.float32),
            "beta": jnp.zeros((1, c2), jnp.float32),
            "pmat": jnp.asarray(pmat),
        })
        in_ch = c
    return params


# --------------------------------------------------------------------------------- forward
def cdlamba_forward(params, xA_nchw, xB_nchw):
    xA = jnp.transpose(xA_nchw, (0, 2, 3, 1)).astype(jnp.float32)
    xB = jnp.transpose(xB_nchw, (0, 2, 3, 1)).astype(jnp.float32)
    in_cat = jnp.concatenate([xA, xB], axis=-1)                       # (N, H, W, 2*Cin) = [A|B]
    diffs = []
    for i in range(4):
        N, H, W, cin2 = in_cat.shape
        hp, wp = H // 2, W // 2
        # TODO(synk): 2x2 avg pool stays in XLA (mean in f32, emitted as bf16); fully fusing
        # it into the stage kernel would need a row-pair grid with strided in-kernel loads.
        xp = (in_cat.astype(jnp.float32)
              .reshape(N, hp, 2, wp, 2, cin2).mean(axis=(2, 4))
              .astype(jnp.bfloat16))                                  # (N, hp, wp, cin2) bf16
        M = N * hp * wp
        facc = stage_fused(xp.reshape(M, cin2), params["stage"][i])   # (M, 2*c2) [f | acc]
        c2 = facc.shape[-1] // 2
        hw = hp * wp
        diff, nxt = proj_groupnorm(facc.reshape(N, hw, 2 * c2), params["proj"][i])
        diffs.append(diff.reshape(N, hp, wp, c2 // 2))                # cdaA - cdaB (bf16)
        in_cat = nxt.reshape(N, hp, wp, c2)                           # [fA+cdaA | fB+cdaB] (bf16)
    outs = [diffs[0].astype(jnp.float32)]
    for i in range(1, 4):
        outs.append(bilinear_upsample_nhwc(diffs[i], 2 ** i))
    out = jnp.concatenate(outs, axis=-1)                              # (N, H0, W0, sum(C))
    return jnp.transpose(out, (0, 3, 1, 2))                           # back to NCHW


if __name__ == "__main__":
    key = jax.random.PRNGKey(0)
    kp, ka, kb = jax.random.split(key, 3)
    params = init_params(kp)
    xA = jax.random.normal(ka, (2, 3, 32, 32), jnp.float32)
    xB = jax.random.normal(kb, (2, 3, 32, 32), jnp.float32)
    fwd = jax.jit(cdlamba_forward)
    out = jax.block_until_ready(fwd(params, xA, xB))
    assert out.shape == (2, sum(CHANNELS), 16, 16), out.shape
    assert bool(jnp.all(jnp.isfinite(out)))
    print("KERNEL_OK")
</pallas_src>

<mosaic_0001>
module attributes {stable_mosaic.version = 11 : i64} {
  func.func @_proj_gn_kernel(%arg0: i32, %arg1: memref<1x256x64xbf16, #tpu.memory_space<vmem>>, %arg2: memref<32x32xbf16, #tpu.memory_space<vmem>>, %arg3: memref<1x32xf32, #tpu.memory_space<vmem>>, %arg4: memref<1x32xf32, #tpu.memory_space<vmem>>, %arg5: memref<1x32xf32, #tpu.memory_space<vmem>>, %arg6: memref<32x32xf32, #tpu.memory_space<vmem>>, %arg7: memref<1x256x16xbf16, #tpu.memory_space<vmem>>, %arg8: memref<1x256x32xbf16, #tpu.memory_space<vmem>>) attributes {dimension_semantics = [#tpu.dimension_semantics<parallel>], iteration_bounds = array<i64: 2>, scalar_prefetch = 0 : i64, scratch_operands = 0 : i64, tpu.core_type = #tpu.core_type<tc>, window_params = [{transform_indices = @transform_0, window_bounds = array<i64: 1, 256, 64>}, {pipeline_mode = #tpu.pipeline_mode<synchronous>, transform_indices = @transform_1, window_bounds = array<i64: 32, 32>}, {pipeline_mode = #tpu.pipeline_mode<synchronous>, transform_indices = @transform_2, window_bounds = array<i64: 1, 32>}, {pipeline_mode = #tpu.pipeline_mode<synchronous>, transform_indices = @transform_3, window_bounds = array<i64: 1, 32>}, {pipeline_mode = #tpu.pipeline_mode<synchronous>, transform_indices = @transform_4, window_bounds = array<i64: 1, 32>}, {pipeline_mode = #tpu.pipeline_mode<synchronous>, transform_indices = @transform_5, window_bounds = array<i64: 32, 32>}, {transform_indices = @transform_6, window_bounds = array<i64: 1, 256, 16>}, {transform_indices = @transform_7, window_bounds = array<i64: 1, 256, 32>}]} {
    %c0 = arith.constant 0 : index
    %c0_0 = arith.constant 0 : index
    %c0_1 = arith.constant 0 : index
    %0 = vector.load %arg1[%c0, %c0_0, %c0_1] : memref<1x256x64xbf16, #tpu.memory_space<vmem>>, vector<1x256x64xbf16>
    %1 = vector.shape_cast %0 : vector<1x256x64xbf16> to vector<256x64xbf16>
    %2 = vector.extract_strided_slice %1 {offsets = [0, 0], sizes = [256, 32], strides = [1, 1]} : vector<256x64xbf16> to vector<256x32xbf16>
    %3 = vector.extract_strided_slice %1 {offsets = [0, 32], sizes = [256, 32], strides = [1, 1]} : vector<256x64xbf16> to vector<256x32xbf16>
    %c0_2 = arith.constant 0 : index
    %c0_3 = arith.constant 0 : index
    %4 = vector.load %arg2[%c0_2, %c0_3] : memref<32x32xbf16, #tpu.memory_space<vmem>>, vector<32x32xbf16>
    %cst = arith.constant dense<0.000000e+00> : vector<256x32xf32>
    %5 = tpu.matmul %3, %4, %cst {dimension_numbers = #tpu.dot_dimension_numbers<[1], [0], [0], [1], [0, 0, 1, 1], [], []>} : vector<256x32xbf16>, vector<32x32xbf16>, vector<256x32xf32> -> vector<256x32xf32>
    %c0_4 = arith.constant 0 : index
    %c0_5 = arith.constant 0 : index
    %6 = vector.load %arg3[%c0_4, %c0_5] : memref<1x32xf32, #tpu.memory_space<vmem>>, vector<1x32xf32>
    %7 = vector.broadcast %6 : vector<1x32xf32> to vector<256x32xf32>
    %8 = arith.addf %5, %7 : vector<256x32xf32>
    %cst_6 = arith.constant dense<0.000000e+00> : vector<32xf32>
    %9 = vector.multi_reduction <add>, %8, %cst_6 [0] : vector<256x32xf32> to vector<32xf32>
    %10 = vector.shape_cast %9 : vector<32xf32> to vector<1x32xf32>
    %c0_7 = arith.constant 0 : index
    %c0_8 = arith.constant 0 : index
    %11 = vector.load %arg6[%c0_7, %c0_8] : memref<32x32xf32, #tpu.memory_space<vmem>>, vector<32x32xf32>
    %cst_9 = arith.constant dense<0.000000e+00> : vector<1x32xf32>
    %12 = tpu.matmul %10, %11, %cst_9 {dimension_numbers = #tpu.dot_dimension_numbers<[1], [0], [0], [1], [0, 0, 1, 1], [], []>} : vector<1x32xf32>, vector<32x32xf32>, vector<1x32xf32> -> vector<1x32xf32>
    %cst_10 = arith.constant 3.906250e-03 : f32
    %13 = vector.broadcast %cst_10 : f32 to vector<1x32xf32>
    %14 = arith.mulf %12, %13 : vector<1x32xf32>
    %15 = vector.broadcast %14 : vector<1x32xf32> to vector<256x32xf32>
    %16 = arith.subf %8, %15 : vector<256x32xf32>
    %17 = arith.mulf %16, %16 : vector<256x32xf32>
    %cst_11 = arith.constant dense<0.000000e+00> : vector<32xf32>
    %18 = vector.multi_reduction <add>, %17, %cst_11 [0] : vector<256x32xf32> to vector<32xf32>
    %19 = vector.shape_cast %18 : vector<32xf32> to vector<1x32xf32>
    %c0_12 = arith.constant 0 : index
    %c0_13 = arith.constant 0 : index
    %20 = vector.load %arg6[%c0_12, %c0_13] : memref<32x32xf32, #tpu.memory_space<vmem>>, vector<32x32xf32>
    %cst_14 = arith.constant dense<0.000000e+00> : vector<1x32xf32>
    %21 = tpu.matmul %19, %20, %cst_14 {dimension_numbers = #tpu.dot_dimension_numbers<[1], [0], [0], [1], [0, 0, 1, 1], [], []>} : vector<1x32xf32>, vector<32x32xf32>, vector<1x32xf32> -> vector<1x32xf32>
    %cst_15 = arith.constant 3.906250e-03 : f32
    %22 = vector.broadcast %cst_15 : f32 to vector<1x32xf32>
    %23 = arith.mulf %21, %22 : vector<1x32xf32>
    %cst_16 = arith.constant 9.99999974E-6 : f32
    %24 = vector.broadcast %cst_16 : f32 to vector<1x32xf32>
    %25 = arith.addf %23, %24 : vector<1x32xf32>
    %26 = math.rsqrt %25 : vector<1x32xf32>
    %27 = vector.broadcast %26 : vector<1x32xf32> to vector<256x32xf32>
    %28 = arith.mulf %16, %27 : vector<256x32xf32>
    %c0_17 = arith.constant 0 : index
    %c0_18 = arith.constant 0 : index
    %29 = vector.load %arg4[%c0_17, %c0_18] : memref<1x32xf32, #tpu.memory_space<vmem>>, vector<1x32xf32>
    %30 = vector.broadcast %29 : vector<1x32xf32> to vector<256x32xf32>
    %31 = arith.mulf %28, %30 : vector<256x32xf32>
    %c0_19 = arith.constant 0 : index
    %c0_20 = arith.constant 0 : index
    %32 = vector.load %arg5[%c0_19, %c0_20] : memref<1x32xf32, #tpu.memory_space<vmem>>, vector<1x32xf32>
    %33 = vector.broadcast %32 : vector<1x32xf32> to vector<256x32xf32>
    %34 = arith.addf %31, %33 : vector<256x32xf32>
    %35 = arith.extf %2 : vector<256x32xbf16> to vector<256x32xf32>
    %36 = arith.addf %35, %34 : vector<256x32xf32>
    %37 = arith.truncf %36 : vector<256x32xf32> to vector<256x32xbf16>
    %c0_21 = arith.constant 0 : index
    %c0_22 = arith.constant 0 : index
    %c0_23 = arith.constant 0 : index
    %38 = vector.load %arg8[%c0_21, %c0_22, %c0_23] : memref<1x256x32xbf16, #tpu.memory_space<vmem>>, vector<1x256x32xbf16>
    %39 = vector.shape_cast %38 : vector<1x256x32xbf16> to vector<256x32xbf16>
    %40 = vector.shape_cast %37 : vector<256x32xbf16> to vector<1x256x32xbf16>
    tpu.vector_store %arg8[%c0_21, %c0_22, %c0_23], %40 {strides = array<i32>} : memref<1x256x32xbf16, #tpu.memory_space<vmem>>, vector<1x256x32xbf16>,
    %41 = vector.extract_strided_slice %34 {offsets = [0, 0], sizes = [256, 16], strides = [1, 1]} : vector<256x32xf32> to vector<256x16xf32>
    %42 = vector.extract_strided_slice %34 {offsets = [0, 16], sizes = [256, 16], strides = [1, 1]} : vector<256x32xf32> to vector<256x16xf32>
    %43 = arith.subf %41, %42 : vector<256x16xf32>
    %44 = arith.truncf %43 : vector<256x16xf32> to vector<256x16xbf16>
    %c0_24 = arith.constant 0 : index
    %c0_25 = arith.constant 0 : index
    %c0_26 = arith.constant 0 : index
    %45 = vector.load %arg7[%c0_24, %c0_25, %c0_26] : memref<1x256x16xbf16, #tpu.memory_space<vmem>>, vector<1x256x16xbf16>
    %46 = vector.shape_cast %45 : vector<1x256x16xbf16> to vector<256x16xbf16>
    %47 = vector.shape_cast %44 : vector<256x16xbf16> to vector<1x256x16xbf16>
    tpu.vector_store %arg7[%c0_24, %c0_25, %c0_26], %47 {strides = array<i32>} : memref<1x256x16xbf16, #tpu.memory_space<vmem>>, vector<1x256x16xbf16>,
    return
  }
  func.func @transform_0(%arg0: i32) -> (i32, i32, i32) {
    %c0_i32 = arith.constant 0 : i32
    %c0_i32_0 = arith.constant 0 : i32
    %c0_i32_1 = arith.constant 0 : i32
    return %arg0, %c0_i32, %c0_i32_0 : i32, i32, i32
  }
  func.func @transform_1(%arg0: i32) -> (i32, i32) {
    %c0_i32 = arith.constant 0 : i32
    %c0_i32_0 = arith.constant 0 : i32
    %c0_i32_1 = arith.constant 0 : i32
    return %c0_i32, %c0_i32_0 : i32, i32
  }
  func.func @transform_2(%arg0: i32) -> (i32, i32) {
    %c0_i32 = arith.constant 0 : i32
    %c0_i32_0 = arith.constant 0 : i32
    %c0_i32_1 = arith.constant 0 : i32
    return %c0_i32, %c0_i32_0 : i32, i32
  }
  func.func @transform_3(%arg0: i32) -> (i32, i32) {
    %c0_i32 = arith.constant 0 : i32
    %c0_i32_0 = arith.constant 0 : i32
    %c0_i32_1 = arith.constant 0 : i32
    return %c0_i32, %c0_i32_0 : i32, i32
  }
  func.func @transform_4(%arg0: i32) -> (i32, i32) {
    %c0_i32 = arith.constant 0 : i32
    %c0_i32_0 = arith.constant 0 : i32
    %c0_i32_1 = arith.constant 0 : i32
    return %c0_i32, %c0_i32_0 : i32, i32
  }
  func.func @transform_5(%arg0: i32) -> (i32, i32) {
    %c0_i32 = arith.constant 0 : i32
    %c0_i32_0 = arith.constant 0 : i32
    %c0_i32_1 = arith.constant 0 : i32
    return %c0_i32, %c0_i32_0 : i32, i32
  }
  func.func @transform_6(%arg0: i32) -> (i32, i32, i32) {
    %c0_i32 = arith.constant 0 : i32
    %c0_i32_0 = arith.constant 0 : i32
    %c0_i32_1 = arith.constant 0 : i32
    return %arg0, %c0_i32, %c0_i32_0 : i32, i32, i32
  }
  func.func @transform_7(%arg0: i32) -> (i32, i32, i32) {
    %c0_i32 = arith.constant 0 : i32
    %c0_i32_0 = arith.constant 0 : i32
    %c0_i32_1 = arith.constant 0 : i32
    return %arg0, %c0_i32, %c0_i32_0 : i32, i32, i32
  }
}

module attributes {stable_mosaic.version = 11 : i64} {
  func.func @_stage_kernel(%arg0: i32, %arg1: memref<256x6xbf16, #tpu.memory_space<vmem>>, %arg2: memref<6x32xbf16, #tpu.memory_space<vmem>>, %arg3: memref<1x32xf32, #tpu.memory_space<vmem>>, %arg4: memref<32x160xbf16, #tpu.memory_space<vmem>>, %arg5: memref<1x160xf32, #tpu.memory_space<vmem>>, %arg6: memref<32x160xbf16, #tpu.memory_space<vmem>>, %arg7: memref<1x160xf32, #tpu.memory_space<vmem>>, %arg8: memref<160x32xbf16, #tpu.memory_space<vmem>>, %arg9: memref<1x32xf32, #tpu.memory_space<vmem>>, %arg10: memref<256x64xbf16, #tpu.memory_space<vmem>>) attributes {dimension_semantics = [#tpu.dimension_semantics<parallel>], iteration_bounds = array<i64: 2>, scalar_prefetch = 0 : i64, scratch_operands = 0 : i64, tpu.core_type = #tpu.core_type<tc>, window_params = [{transform_indices = @transform_0, window_bounds = array<i64: 256, 6>}, {pipeline_mode = #tpu.pipeline_mode<synchronous>, transform_indices = @transform_1, window_bounds = array<i64: 6, 32>}, {pipeline_mode = #tpu.pipeline_mode<synchronous>, transform_indices = @transform_2, window_bounds = array<i64: 1, 32>}, {pipeline_mode = #tpu.pipeline_mode<synchronous>, transform_indices = @transform_3, window_bounds = array<i64: 32, 160>}, {pipeline_mode = #tpu.pipeline_mode<synchronous>, transform_indices = @transform_4, window_bounds = array<i64: 1, 160>}, {pipeline_mode = #tpu.pipeline_mode<synchronous>, transform_indices = @transform_5, window_bounds = array<i64: 32, 160>}, {pipeline_mode = #tpu.pipeline_mode<synchronous>, transform_indices = @transform_6, window_bounds = array<i64: 1, 160>}, {pipeline_mode = #tpu.pipeline_mode<synchronous>, transform_indices = @transform_7, window_bounds = array<i64: 160, 32>}, {pipeline_mode = #tpu.pipeline_mode<synchronous>, transform_indices = @transform_8, window_bounds = array<i64: 1, 32>}, {transform_indices = @transform_9, window_bounds = array<i64: 256, 64>}]} {
    %c0 = arith.constant 0 : index
    %c0_0 = arith.constant 0 : index
    %0 = vector.load %arg1[%c0, %c0_0] : memref<256x6xbf16, #tpu.memory_space<vmem>>, vector<256x6xbf16>
    %c0_1 = arith.constant 0 : index
    %c0_2 = arith.constant 0 : index
    %1 = vector.load %arg2[%c0_1, %c0_2] : memref<6x32xbf16, #tpu.memory_space<vmem>>, vector<6x32xbf16>
    %cst = arith.constant dense<0.000000e+00> : vector<256x32xf32>
    %2 = tpu.matmul %0, %1, %cst {dimension_numbers = #tpu.dot_dimension_numbers<[1], [0], [0], [1], [0, 0, 1, 1], [], []>} : vector<256x6xbf16>, vector<6x32xbf16>, vector<256x32xf32> -> vector<256x32xf32>
    %c0_3 = arith.constant 0 : index
    %c0_4 = arith.constant 0 : index
    %3 = vector.load %arg3[%c0_3, %c0_4] : memref<1x32xf32, #tpu.memory_space<vmem>>, vector<1x32xf32>
    %4 = vector.broadcast %3 : vector<1x32xf32> to vector<256x32xf32>
    %5 = arith.addf %2, %4 : vector<256x32xf32>
    %cst_5 = arith.constant 0.000000e+00 : f32
    %6 = vector.broadcast %cst_5 : f32 to vector<256x32xf32>
    %7 = arith.maximumf %5, %6 : vector<256x32xf32>
    %8 = arith.truncf %7 : vector<256x32xf32> to vector<256x32xbf16>
    %c0_6 = arith.constant 0 : index
    %c0_7 = arith.constant 0 : index
    %9 = vector.load %arg4[%c0_6, %c0_7] : memref<32x160xbf16, #tpu.memory_space<vmem>>, vector<32x160xbf16>
    %cst_8 = arith.constant dense<0.000000e+00> : vector<256x160xf32>
    %10 = tpu.matmul %8, %9, %cst_8 {dimension_numbers = #tpu.dot_dimension_numbers<[1], [0], [0], [1], [0, 0, 1, 1], [], []>} : vector<256x32xbf16>, vector<32x160xbf16>, vector<256x160xf32> -> vector<256x160xf32>
    %c0_9 = arith.constant 0 : index
    %c0_10 = arith.constant 0 : index
    %11 = vector.load %arg5[%c0_9, %c0_10] : memref<1x160xf32, #tpu.memory_space<vmem>>, vector<1x160xf32>
    %12 = vector.broadcast %11 : vector<1x160xf32> to vector<256x160xf32>
    %13 = arith.addf %10, %12 : vector<256x160xf32>
    %c0_11 = arith.constant 0 : index
    %c0_12 = arith.constant 0 : index
    %14 = vector.load %arg6[%c0_11, %c0_12] : memref<32x160xbf16, #tpu.memory_space<vmem>>, vector<32x160xbf16>
    %cst_13 = arith.constant dense<0.000000e+00> : vector<256x160xf32>
    %15 = tpu.matmul %8, %14, %cst_13 {dimension_numbers = #tpu.dot_dimension_numbers<[1], [0], [0], [1], [0, 0, 1, 1], [], []>} : vector<256x32xbf16>, vector<32x160xbf16>, vector<256x160xf32> -> vector<256x160xf32>
    %c0_14 = arith.constant 0 : index
    %c0_15 = arith.constant 0 : index
    %16 = vector.load %arg7[%c0_14, %c0_15] : memref<1x160xf32, #tpu.memory_space<vmem>>, vector<1x160xf32>
    %17 = vector.broadcast %16 : vector<1x160xf32> to vector<256x160xf32>
    %18 = arith.addf %15, %17 : vector<256x160xf32>
    %19 = arith.negf %13 : vector<256x160xf32>
    %20 = math.exp %19 : vector<256x160xf32>
    %cst_16 = arith.constant 1.000000e+00 : f32
    %21 = vector.broadcast %cst_16 : f32 to vector<256x160xf32>
    %22 = arith.addf %21, %20 : vector<256x160xf32>
    %23 = arith.divf %21, %22 : vector<256x160xf32>
    %24 = arith.mulf %13, %23 : vector<256x160xf32>
    %25 = arith.mulf %18, %24 : vector<256x160xf32>
    %26 = arith.truncf %25 : vector<256x160xf32> to vector<256x160xbf16>
    %c0_17 = arith.constant 0 : index
    %c0_18 = arith.constant 0 : index
    %27 = vector.load %arg8[%c0_17, %c0_18] : memref<160x32xbf16, #tpu.memory_space<vmem>>, vector<160x32xbf16>
    %cst_19 = arith.constant dense<0.000000e+00> : vector<256x32xf32>
    %28 = tpu.matmul %26, %27, %cst_19 {dimension_numbers = #tpu.dot_dimension_numbers<[1], [0], [0], [1], [0, 0, 1, 1], [], []>} : vector<256x160xbf16>, vector<160x32xbf16>, vector<256x32xf32> -> vector<256x32xf32>
    %c0_20 = arith.constant 0 : index
    %c0_21 = arith.constant 0 : index
    %29 = vector.load %arg9[%c0_20, %c0_21] : memref<1x32xf32, #tpu.memory_space<vmem>>, vector<1x32xf32>
    %30 = vector.broadcast %29 : vector<1x32xf32> to vector<256x32xf32>
    %31 = arith.addf %28, %30 : vector<256x32xf32>
    %32 = arith.truncf %31 : vector<256x32xf32> to vector<256x32xbf16>
    %33 = tpu.concatenate %8, %32 in 1 : vector<256x32xbf16>, vector<256x32xbf16> -> vector<256x64xbf16>
    %c0_22 = arith.constant 0 : index
    %c0_23 = arith.constant 0 : index
    %34 = vector.load %arg10[%c0_22, %c0_23] : memref<256x64xbf16, #tpu.memory_space<vmem>>, vector<256x64xbf16>
    tpu.vector_store %arg10[%c0_22, %c0_23], %33 {strides = array<i32>} : memref<256x64xbf16, #tpu.memory_space<vmem>>, vector<256x64xbf16>,
    return
  }
  func.func @transform_0(%arg0: i32) -> (i32, i32) {
    %c0_i32 = arith.constant 0 : i32
    %c0_i32_0 = arith.constant 0 : i32
    return %arg0, %c0_i32 : i32, i32
  }
  func.func @transform_1(%arg0: i32) -> (i32, i32) {
    %c0_i32 = arith.constant 0 : i32
    %c0_i32_0 = arith.constant 0 : i32
    %c0_i32_1 = arith.constant 0 : i32
    return %c0_i32, %c0_i32_0 : i32, i32
  }
  func.func @transform_2(%arg0: i32) -> (i32, i32) {
    %c0_i32 = arith.constant 0 : i32
    %c0_i32_0 = arith.constant 0 : i32
    %c0_i32_1 = arith.constant 0 : i32
    return %c0_i32, %c0_i32_0 : i32, i32
  }
  func.func @transform_3(%arg0: i32) -> (i32, i32) {
    %c0_i32 = arith.constant 0 : i32
    %c0_i32_0 = arith.constant 0 : i32
    %c0_i32_1 = arith.constant 0 : i32
    return %c0_i32, %c0_i32_0 : i32, i32
  }
  func.func @transform_4(%arg0: i32) -> (i32, i32) {
    %c0_i32 = arith.constant 0 : i32
    %c0_i32_0 = arith.constant 0 : i32
    %c0_i32_1 = arith.constant 0 : i32
    return %c0_i32, %c0_i32_0 : i32, i32
  }
  func.func @transform_5(%arg0: i32) -> (i32, i32) {
    %c0_i32 = arith.constant 0 : i32
    %c0_i32_0 = arith.constant 0 : i32
    %c0_i32_1 = arith.constant 0 : i32
    return %c0_i32, %c0_i32_0 : i32, i32
  }
  func.func @transform_6(%arg0: i32) -> (i32, i32) {
    %c0_i32 = arith.constant 0 : i32
    %c0_i32_0 = arith.constant 0 : i32
    %c0_i32_1 = arith.constant 0 : i32
    return %c0_i32, %c0_i32_0 : i32, i32
  }
  func.func @transform_7(%arg0: i32) -> (i32, i32) {
    %c0_i32 = arith.constant 0 : i32
    %c0_i32_0 = arith.constant 0 : i32
    %c0_i32_1 = arith.constant 0 : i32
    return %c0_i32, %c0_i32_0 : i32, i32
  }
  func.func @transform_8(%arg0: i32) -> (i32, i32) {
    %c0_i32 = arith.constant 0 : i32
    %c0_i32_0 = arith.constant 0 : i32
    %c0_i32_1 = arith.constant 0 : i32
    return %c0_i32, %c0_i32_0 : i32, i32
  }
  func.func @transform_9(%arg0: i32) -> (i32, i32) {
    %c0_i32 = arith.constant 0 : i32
    %c0_i32_0 = arith.constant 0 : i32
    return %arg0, %c0_i32 : i32, i32
  }
}

module attributes {stable_mosaic.version = 11 : i64} {
  func.func @_stage_kernel(%arg0: i32, %arg1: memref<64x32xbf16, #tpu.memory_space<vmem>>, %arg2: memref<32x64xbf16, #tpu.memory_space<vmem>>, %arg3: memref<1x64xf32, #tpu.memory_space<vmem>>, %arg4: memref<64x320xbf16, #tpu.memory_space<vmem>>, %arg5: memref<1x320xf32, #tpu.memory_space<vmem>>, %arg6: memref<64x320xbf16, #tpu.memory_space<vmem>>, %arg7: memref<1x320xf32, #tpu.memory_space<vmem>>, %arg8: memref<320x64xbf16, #tpu.memory_space<vmem>>, %arg9: memref<1x64xf32, #tpu.memory_space<vmem>>, %arg10: memref<64x128xbf16, #tpu.memory_space<vmem>>) attributes {dimension_semantics = [#tpu.dimension_semantics<parallel>], iteration_bounds = array<i64: 2>, scalar_prefetch = 0 : i64, scratch_operands = 0 : i64, tpu.core_type = #tpu.core_type<tc>, window_params = [{transform_indices = @transform_0, window_bounds = array<i64: 64, 32>}, {pipeline_mode = #tpu.pipeline_mode<synchronous>, transform_indices = @transform_1, window_bounds = array<i64: 32, 64>}, {pipeline_mode = #tpu.pipeline_mode<synchronous>, transform_indices = @transform_2, window_bounds = array<i64: 1, 64>}, {pipeline_mode = #tpu.pipeline_mode<synchronous>, transform_indices = @transform_3, window_bounds = array<i64: 64, 320>}, {pipeline_mode = #tpu.pipeline_mode<synchronous>, transform_indices = @transform_4, window_bounds = array<i64: 1, 320>}, {pipeline_mode = #tpu.pipeline_mode<synchronous>, transform_indices = @transform_5, window_bounds = array<i64: 64, 320>}, {pipeline_mode = #tpu.pipeline_mode<synchronous>, transform_indices = @transform_6, window_bounds = array<i64: 1, 320>}, {pipeline_mode = #tpu.pipeline_mode<synchronous>, transform_indices = @transform_7, window_bounds = array<i64: 320, 64>}, {pipeline_mode = #tpu.pipeline_mode<synchronous>, transform_indices = @transform_8, window_bounds = array<i64: 1, 64>}, {transform_indices = @transform_9, window_bounds = array<i64: 64, 128>}]} {
    %c0 = arith.constant 0 : index
    %c0_0 = arith.constant 0 : index
    %0 = vector.load %arg1[%c0, %c0_0] : memref<64x32xbf16, #tpu.memory_space<vmem>>, vector<64x32xbf16>
    %c0_1 = arith.constant 0 : index
    %c0_2 = arith.constant 0 : index
    %1 = vector.load %arg2[%c0_1, %c0_2] : memref<32x64xbf16, #tpu.memory_space<vmem>>, vector<32x64xbf16>
    %cst = arith.constant dense<0.000000e+00> : vector<64x64xf32>
    %2 = tpu.matmul %0, %1, %cst {dimension_numbers = #tpu.dot_dimension_numbers<[1], [0], [0], [1], [0, 0, 1, 1], [], []>} : vector<64x32xbf16>, vector<32x64xbf16>, vector<64x64xf32> -> vector<64x64xf32>
    %c0_3 = arith.constant 0 : index
    %c0_4 = arith.constant 0 : index
    %3 = vector.load %arg3[%c0_3, %c0_4] : memref<1x64xf32, #tpu.memory_space<vmem>>, vector<1x64xf32>
    %4 = vector.broadcast %3 : vector<1x64xf32> to vector<64x64xf32>
    %5 = arith.addf %2, %4 : vector<64x64xf32>
    %cst_5 = arith.constant 0.000000e+00 : f32
    %6 = vector.broadcast %cst_5 : f32 to vector<64x64xf32>
    %7 = arith.maximumf %5, %6 : vector<64x64xf32>
    %8 = arith.truncf %7 : vector<64x64xf32> to vector<64x64xbf16>
    %c0_6 = arith.constant 0 : index
    %c0_7 = arith.constant 0 : index
    %9 = vector.load %arg4[%c0_6, %c0_7] : memref<64x320xbf16, #tpu.memory_space<vmem>>, vector<64x320xbf16>
    %cst_8 = arith.constant dense<0.000000e+00> : vector<64x320xf32>
    %10 = tpu.matmul %8, %9, %cst_8 {dimension_numbers = #tpu.dot_dimension_numbers<[1], [0], [0], [1], [0, 0, 1, 1], [], []>} : vector<64x64xbf16>, vector<64x320xbf16>, vector<64x320xf32> -> vector<64x320xf32>
    %c0_9 = arith.constant 0 : index
    %c0_10 = arith.constant 0 : index
    %11 = vector.load %arg5[%c0_9, %c0_10] : memref<1x320xf32, #tpu.memory_space<vmem>>, vector<1x320xf32>
    %12 = vector.broadcast %11 : vector<1x320xf32> to vector<64x320xf32>
    %13 = arith.addf %10, %12 : vector<64x320xf32>
    %c0_11 = arith.constant 0 : index
    %c0_12 = arith.constant 0 : index
    %14 = vector.load %arg6[%c0_11, %c0_12] : memref<64x320xbf16, #tpu.memory_space<vmem>>, vector<64x320xbf16>
    %cst_13 = arith.constant dense<0.000000e+00> : vector<64x320xf32>
    %15 = tpu.matmul %8, %14, %cst_13 {dimension_numbers = #tpu.dot_dimension_numbers<[1], [0], [0], [1], [0, 0, 1, 1], [], []>} : vector<64x64xbf16>, vector<64x320xbf16>, vector<64x320xf32> -> vector<64x320xf32>
    %c0_14 = arith.constant 0 : index
    %c0_15 = arith.constant 0 : index
    %16 = vector.load %arg7[%c0_14, %c0_15] : memref<1x320xf32, #tpu.memory_space<vmem>>, vector<1x320xf32>
    %17 = vector.broadcast %16 : vector<1x320xf32> to vector<64x320xf32>
    %18 = arith.addf %15, %17 : vector<64x320xf32>
    %19 = arith.negf %13 : vector<64x320xf32>
    %20 = math.exp %19 : vector<64x320xf32>
    %cst_16 = arith.constant 1.000000e+00 : f32
    %21 = vector.broadcast %cst_16 : f32 to vector<64x320xf32>
    %22 = arith.addf %21, %20 : vector<64x320xf32>
    %23 = arith.divf %21, %22 : vector<64x320xf32>
    %24 = arith.mulf %13, %23 : vector<64x320xf32>
    %25 = arith.mulf %18, %24 : vector<64x320xf32>
    %26 = arith.truncf %25 : vector<64x320xf32> to vector<64x320xbf16>
    %c0_17 = arith.constant 0 : index
    %c0_18 = arith.constant 0 : index
    %27 = vector.load %arg8[%c0_17, %c0_18] : memref<320x64xbf16, #tpu.memory_space<vmem>>, vector<320x64xbf16>
    %cst_19 = arith.constant dense<0.000000e+00> : vector<64x64xf32>
    %28 = tpu.matmul %26, %27, %cst_19 {dimension_numbers = #tpu.dot_dimension_numbers<[1], [0], [0], [1], [0, 0, 1, 1], [], []>} : vector<64x320xbf16>, vector<320x64xbf16>, vector<64x64xf32> -> vector<64x64xf32>
    %c0_20 = arith.constant 0 : index
    %c0_21 = arith.constant 0 : index
    %29 = vector.load %arg9[%c0_20, %c0_21] : memref<1x64xf32, #tpu.memory_space<vmem>>, vector<1x64xf32>
    %30 = vector.broadcast %29 : vector<1x64xf32> to vector<64x64xf32>
    %31 = arith.addf %28, %30 : vector<64x64xf32>
    %32 = arith.truncf %31 : vector<64x64xf32> to vector<64x64xbf16>
    %33 = tpu.concatenate %8, %32 in 1 : vector<64x64xbf16>, vector<64x64xbf16> -> vector<64x128xbf16>
    %c0_22 = arith.constant 0 : index
    %c0_23 = arith.constant 0 : index
    %34 = vector.load %arg10[%c0_22, %c0_23] : memref<64x128xbf16, #tpu.memory_space<vmem>>, vector<64x128xbf16>
    tpu.vector_store %arg10[%c0_22, %c0_23], %33 {strides = array<i32>} : memref<64x128xbf16, #tpu.memory_space<vmem>>, vector<64x128xbf16>,
    return
  }
  func.func @transform_0(%arg0: i32) -> (i32, i32) {
    %c0_i32 = arith.constant 0 : i32
    %c0_i32_0 = arith.constant 0 : i32
    return %arg0, %c0_i32 : i32, i32
  }
  func.func @transform_1(%arg0: i32) -> (i32, i32) {
    %c0_i32 = arith.constant 0 : i32
    %c0_i32_0 = arith.constant 0 : i32
    %c0_i32_1 = arith.constant 0 : i32
    return %c0_i32, %c0_i32_0 : i32, i32
  }
  func.func @transform_2(%arg0: i32) -> (i32, i32) {
    %c0_i32 = arith.constant 0 : i32
    %c0_i32_0 = arith.constant 0 : i32
    %c0_i32_1 = arith.constant 0 : i32
    return %c0_i32, %c0_i32_0 : i32, i32
  }
  func.func @transform_3(%arg0: i32) -> (i32, i32) {
    %c0_i32 = arith.constant 0 : i32
    %c0_i32_0 = arith.constant 0 : i32
    %c0_i32_1 = arith.constant 0 : i32
    return %c0_i32, %c0_i32_0 : i32, i32
  }
  func.func @transform_4(%arg0: i32) -> (i32, i32) {
    %c0_i32 = arith.constant 0 : i32
    %c0_i32_0 = arith.constant 0 : i32
    %c0_i32_1 = arith.constant 0 : i32
    return %c0_i32, %c0_i32_0 : i32, i32
  }
  func.func @transform_5(%arg0: i32) -> (i32, i32) {
    %c0_i32 = arith.constant 0 : i32
    %c0_i32_0 = arith.constant 0 : i32
    %c0_i32_1 = arith.constant 0 : i32
    return %c0_i32, %c0_i32_0 : i32, i32
  }
  func.func @transform_6(%arg0: i32) -> (i32, i32) {
    %c0_i32 = arith.constant 0 : i32
    %c0_i32_0 = arith.constant 0 : i32
    %c0_i32_1 = arith.constant 0 : i32
    return %c0_i32, %c0_i32_0 : i32, i32
  }
  func.func @transform_7(%arg0: i32) -> (i32, i32) {
    %c0_i32 = arith.constant 0 : i32
    %c0_i32_0 = arith.constant 0 : i32
    %c0_i32_1 = arith.constant 0 : i32
    return %c0_i32, %c0_i32_0 : i32, i32
  }
  func.func @transform_8(%arg0: i32) -> (i32, i32) {
    %c0_i32 = arith.constant 0 : i32
    %c0_i32_0 = arith.constant 0 : i32
    %c0_i32_1 = arith.constant 0 : i32
    return %c0_i32, %c0_i32_0 : i32, i32
  }
  func.func @transform_9(%arg0: i32) -> (i32, i32) {
    %c0_i32 = arith.constant 0 : i32
    %c0_i32_0 = arith.constant 0 : i32
    return %arg0, %c0_i32 : i32, i32
  }
}

module attributes {stable_mosaic.version = 11 : i64} {
  func.func @_proj_gn_kernel(%arg0: i32, %arg1: memref<1x64x128xbf16, #tpu.memory_space<vmem>>, %arg2: memref<64x64xbf16, #tpu.memory_space<vmem>>, %arg3: memref<1x64xf32, #tpu.memory_space<vmem>>, %arg4: memref<1x64xf32, #tpu.memory_space<vmem>>, %arg5: memref<1x64xf32, #tpu.memory_space<vmem>>, %arg6: memref<64x64xf32, #tpu.memory_space<vmem>>, %arg7: memref<1x64x32xbf16, #tpu.memory_space<vmem>>, %arg8: memref<1x64x64xbf16, #tpu.memory_space<vmem>>) attributes {dimension_semantics = [#tpu.dimension_semantics<parallel>], iteration_bounds = array<i64: 2>, scalar_prefetch = 0 : i64, scratch_operands = 0 : i64, tpu.core_type = #tpu.core_type<tc>, window_params = [{transform_indices = @transform_0, window_bounds = array<i64: 1, 64, 128>}, {pipeline_mode = #tpu.pipeline_mode<synchronous>, transform_indices = @transform_1, window_bounds = array<i64: 64, 64>}, {pipeline_mode = #tpu.pipeline_mode<synchronous>, transform_indices = @transform_2, window_bounds = array<i64: 1, 64>}, {pipeline_mode = #tpu.pipeline_mode<synchronous>, transform_indices = @transform_3, window_bounds = array<i64: 1, 64>}, {pipeline_mode = #tpu.pipeline_mode<synchronous>, transform_indices = @transform_4, window_bounds = array<i64: 1, 64>}, {pipeline_mode = #tpu.pipeline_mode<synchronous>, transform_indices = @transform_5, window_bounds = array<i64: 64, 64>}, {transform_indices = @transform_6, window_bounds = array<i64: 1, 64, 32>}, {transform_indices = @transform_7, window_bounds = array<i64: 1, 64, 64>}]} {
    %c0 = arith.constant 0 : index
    %c0_0 = arith.constant 0 : index
    %c0_1 = arith.constant 0 : index
    %0 = vector.load %arg1[%c0, %c0_0, %c0_1] : memref<1x64x128xbf16, #tpu.memory_space<vmem>>, vector<1x64x128xbf16>
    %1 = vector.shape_cast %0 : vector<1x64x128xbf16> to vector<64x128xbf16>
    %2 = vector.extract_strided_slice %1 {offsets = [0, 0], sizes = [64, 64], strides = [1, 1]} : vector<64x128xbf16> to vector<64x64xbf16>
    %3 = vector.extract_strided_slice %1 {offsets = [0, 64], sizes = [64, 64], strides = [1, 1]} : vector<64x128xbf16> to vector<64x64xbf16>
    %c0_2 = arith.constant 0 : index
    %c0_3 = arith.constant 0 : index
    %4 = vector.load %arg2[%c0_2, %c0_3] : memref<64x64xbf16, #tpu.memory_space<vmem>>, vector<64x64xbf16>
    %cst = arith.constant dense<0.000000e+00> : vector<64x64xf32>
    %5 = tpu.matmul %3, %4, %cst {dimension_numbers = #tpu.dot_dimension_numbers<[1], [0], [0], [1], [0, 0, 1, 1], [], []>} : vector<64x64xbf16>, vector<64x64xbf16>, vector<64x64xf32> -> vector<64x64xf32>
    %c0_4 = arith.constant 0 : index
    %c0_5 = arith.constant 0 : index
    %6 = vector.load %arg3[%c0_4, %c0_5] : memref<1x64xf32, #tpu.memory_space<vmem>>, vector<1x64xf32>
    %7 = vector.broadcast %6 : vector<1x64xf32> to vector<64x64xf32>
    %8 = arith.addf %5, %7 : vector<64x64xf32>
    %cst_6 = arith.constant dense<0.000000e+00> : vector<64xf32>
    %9 = vector.multi_reduction <add>, %8, %cst_6 [0] : vector<64x64xf32> to vector<64xf32>
    %10 = vector.shape_cast %9 : vector<64xf32> to vector<1x64xf32>
    %c0_7 = arith.constant 0 : index
    %c0_8 = arith.constant 0 : index
    %11 = vector.load %arg6[%c0_7, %c0_8] : memref<64x64xf32, #tpu.memory_space<vmem>>, vector<64x64xf32>
    %cst_9 = arith.constant dense<0.000000e+00> : vector<1x64xf32>
    %12 = tpu.matmul %10, %11, %cst_9 {dimension_numbers = #tpu.dot_dimension_numbers<[1], [0], [0], [1], [0, 0, 1, 1], [], []>} : vector<1x64xf32>, vector<64x64xf32>, vector<1x64xf32> -> vector<1x64xf32>
    %cst_10 = arith.constant 7.812500e-03 : f32
    %13 = vector.broadcast %cst_10 : f32 to vector<1x64xf32>
    %14 = arith.mulf %12, %13 : vector<1x64xf32>
    %15 = vector.broadcast %14 : vector<1x64xf32> to vector<64x64xf32>
    %16 = arith.subf %8, %15 : vector<64x64xf32>
    %17 = arith.mulf %16, %16 : vector<64x64xf32>
    %cst_11 = arith.constant dense<0.000000e+00> : vector<64xf32>
    %18 = vector.multi_reduction <add>, %17, %cst_11 [0] : vector<64x64xf32> to vector<64xf32>
    %19 = vector.shape_cast %18 : vector<64xf32> to vector<1x64xf32>
    %c0_12 = arith.constant 0 : index
    %c0_13 = arith.constant 0 : index
    %20 = vector.load %arg6[%c0_12, %c0_13] : memref<64x64xf32, #tpu.memory_space<vmem>>, vector<64x64xf32>
    %cst_14 = arith.constant dense<0.000000e+00> : vector<1x64xf32>
    %21 = tpu.matmul %19, %20, %cst_14 {dimension_numbers = #tpu.dot_dimension_numbers<[1], [0], [0], [1], [0, 0, 1, 1], [], []>} : vector<1x64xf32>, vector<64x64xf32>, vector<1x64xf32> -> vector<1x64xf32>
    %cst_15 = arith.constant 7.812500e-03 : f32
    %22 = vector.broadcast %cst_15 : f32 to vector<1x64xf32>
    %23 = arith.mulf %21, %22 : vector<1x64xf32>
    %cst_16 = arith.constant 9.99999974E-6 : f32
    %24 = vector.broadcast %cst_16 : f32 to vector<1x64xf32>
    %25 = arith.addf %23, %24 : vector<1x64xf32>
    %26 = math.rsqrt %25 : vector<1x64xf32>
    %27 = vector.broadcast %26 : vector<1x64xf32> to vector<64x64xf32>
    %28 = arith.mulf %16, %27 : vector<64x64xf32>
    %c0_17 = arith.constant 0 : index
    %c0_18 = arith.constant 0 : index
    %29 = vector.load %arg4[%c0_17, %c0_18] : memref<1x64xf32, #tpu.memory_space<vmem>>, vector<1x64xf32>
    %30 = vector.broadcast %29 : vector<1x64xf32> to vector<64x64xf32>
    %31 = arith.mulf %28, %30 : vector<64x64xf32>
    %c0_19 = arith.constant 0 : index
    %c0_20 = arith.constant 0 : index
    %32 = vector.load %arg5[%c0_19, %c0_20] : memref<1x64xf32, #tpu.memory_space<vmem>>, vector<1x64xf32>
    %33 = vector.broadcast %32 : vector<1x64xf32> to vector<64x64xf32>
    %34 = arith.addf %31, %33 : vector<64x64xf32>
    %35 = arith.extf %2 : vector<64x64xbf16> to vector<64x64xf32>
    %36 = arith.addf %35, %34 : vector<64x64xf32>
    %37 = arith.truncf %36 : vector<64x64xf32> to vector<64x64xbf16>
    %c0_21 = arith.constant 0 : index
    %c0_22 = arith.constant 0 : index
    %c0_23 = arith.constant 0 : index
    %38 = vector.load %arg8[%c0_21, %c0_22, %c0_23] : memref<1x64x64xbf16, #tpu.memory_space<vmem>>, vector<1x64x64xbf16>
    %39 = vector.shape_cast %38 : vector<1x64x64xbf16> to vector<64x64xbf16>
    %40 = vector.shape_cast %37 : vector<64x64xbf16> to vector<1x64x64xbf16>
    tpu.vector_store %arg8[%c0_21, %c0_22, %c0_23], %40 {strides = array<i32>} : memref<1x64x64xbf16, #tpu.memory_space<vmem>>, vector<1x64x64xbf16>,
    %41 = vector.extract_strided_slice %34 {offsets = [0, 0], sizes = [64, 32], strides = [1, 1]} : vector<64x64xf32> to vector<64x32xf32>
    %42 = vector.extract_strided_slice %34 {offsets = [0, 32], sizes = [64, 32], strides = [1, 1]} : vector<64x64xf32> to vector<64x32xf32>
    %43 = arith.subf %41, %42 : vector<64x32xf32>
    %44 = arith.truncf %43 : vector<64x32xf32> to vector<64x32xbf16>
    %c0_24 = arith.constant 0 : index
    %c0_25 = arith.constant 0 : index
    %c0_26 = arith.constant 0 : index
    %45 = vector.load %arg7[%c0_24, %c0_25, %c0_26] : memref<1x64x32xbf16, #tpu.memory_space<vmem>>, vector<1x64x32xbf16>
    %46 = vector.shape_cast %45 : vector<1x64x32xbf16> to vector<64x32xbf16>
    %47 = vector.shape_cast %44 : vector<64x32xbf16> to vector<1x64x32xbf16>
    tpu.vector_store %arg7[%c0_24, %c0_25, %c0_26], %47 {strides = array<i32>} : memref<1x64x32xbf16, #tpu.memory_space<vmem>>, vector<1x64x32xbf16>,
    return
  }
  func.func @transform_0(%arg0: i32) -> (i32, i32, i32) {
    %c0_i32 = arith.constant 0 : i32
    %c0_i32_0 = arith.constant 0 : i32
    %c0_i32_1 = arith.constant 0 : i32
    return %arg0, %c0_i32, %c0_i32_0 : i32, i32, i32
  }
  func.func @transform_1(%arg0: i32) -> (i32, i32) {
    %c0_i32 = arith.constant 0 : i32
    %c0_i32_0 = arith.constant 0 : i32
    %c0_i32_1 = arith.constant 0 : i32
    return %c0_i32, %c0_i32_0 : i32, i32
  }
  func.func @transform_2(%arg0: i32) -> (i32, i32) {
    %c0_i32 = arith.constant 0 : i32
    %c0_i32_0 = arith.constant 0 : i32
    %c0_i32_1 = arith.constant 0 : i32
    return %c0_i32, %c0_i32_0 : i32, i32
  }
  func.func @transform_3(%arg0: i32) -> (i32, i32) {
    %c0_i32 = arith.constant 0 : i32
    %c0_i32_0 = arith.constant 0 : i32
    %c0_i32_1 = arith.constant 0 : i32
    return %c0_i32, %c0_i32_0 : i32, i32
  }
  func.func @transform_4(%arg0: i32) -> (i32, i32) {
    %c0_i32 = arith.constant 0 : i32
    %c0_i32_0 = arith.constant 0 : i32
    %c0_i32_1 = arith.constant 0 : i32
    return %c0_i32, %c0_i32_0 : i32, i32
  }
  func.func @transform_5(%arg0: i32) -> (i32, i32) {
    %c0_i32 = arith.constant 0 : i32
    %c0_i32_0 = arith.constant 0 : i32
    %c0_i32_1 = arith.constant 0 : i32
    return %c0_i32, %c0_i32_0 : i32, i32
  }
  func.func @transform_6(%arg0: i32) -> (i32, i32, i32) {
    %c0_i32 = arith.constant 0 : i32
    %c0_i32_0 = arith.constant 0 : i32
    %c0_i32_1 = arith.constant 0 : i32
    return %arg0, %c0_i32, %c0_i32_0 : i32, i32, i32
  }
  func.func @transform_7(%arg0: i32) -> (i32, i32, i32) {
    %c0_i32 = arith.constant 0 : i32
    %c0_i32_0 = arith.constant 0 : i32
    %c0_i32_1 = arith.constant 0 : i32
    return %arg0, %c0_i32, %c0_i32_0 : i32, i32, i32
  }
}

module attributes {stable_mosaic.version = 11 : i64} {
  func.func @_up_matmul_kernel(%arg0: i32, %arg1: memref<1x8x256xbf16, #tpu.memory_space<vmem>>, %arg2: memref<16x8xbf16, #tpu.memory_space<vmem>>, %arg3: memref<1x16x256xbf16, #tpu.memory_space<vmem>>) attributes {dimension_semantics = [#tpu.dimension_semantics<parallel>], iteration_bounds = array<i64: 2>, scalar_prefetch = 0 : i64, scratch_operands = 0 : i64, tpu.core_type = #tpu.core_type<tc>, window_params = [{transform_indices = @transform_0, window_bounds = array<i64: 1, 8, 256>}, {pipeline_mode = #tpu.pipeline_mode<synchronous>, transform_indices = @transform_1, window_bounds = array<i64: 16, 8>}, {transform_indices = @transform_2, window_bounds = array<i64: 1, 16, 256>}]} {
    %c0 = arith.constant 0 : index
    %c0_0 = arith.constant 0 : index
    %0 = vector.load %arg2[%c0, %c0_0] : memref<16x8xbf16, #tpu.memory_space<vmem>>, vector<16x8xbf16>
    %c0_1 = arith.constant 0 : index
    %c0_2 = arith.constant 0 : index
    %c0_3 = arith.constant 0 : index
    %1 = vector.load %arg1[%c0_1, %c0_2, %c0_3] : memref<1x8x256xbf16, #tpu.memory_space<vmem>>, vector<1x8x256xbf16>
    %2 = vector.shape_cast %1 : vector<1x8x256xbf16> to vector<8x256xbf16>
    %cst = arith.constant dense<0.000000e+00> : vector<16x256xf32>
    %3 = tpu.matmul %0, %2, %cst {dimension_numbers = #tpu.dot_dimension_numbers<[1], [0], [0], [1], [0, 0, 1, 1], [], []>} : vector<16x8xbf16>, vector<8x256xbf16>, vector<16x256xf32> -> vector<16x256xf32>
    %4 = arith.truncf %3 : vector<16x256xf32> to vector<16x256xbf16>
    %c0_4 = arith.constant 0 : index
    %c0_5 = arith.constant 0 : index
    %c0_6 = arith.constant 0 : index
    %5 = vector.load %arg3[%c0_4, %c0_5, %c0_6] : memref<1x16x256xbf16, #tpu.memory_space<vmem>>, vector<1x16x256xbf16>
    %6 = vector.shape_cast %5 : vector<1x16x256xbf16> to vector<16x256xbf16>
    %7 = vector.shape_cast %4 : vector<16x256xbf16> to vector<1x16x256xbf16>
    tpu.vector_store %arg3[%c0_4, %c0_5, %c0_6], %7 {strides = array<i32>} : memref<1x16x256xbf16, #tpu.memory_space<vmem>>, vector<1x16x256xbf16>,
    return
  }
  func.func @transform_0(%arg0: i32) -> (i32, i32, i32) {
    %c0_i32 = arith.constant 0 : i32
    %c0_i32_0 = arith.constant 0 : i32
    %c0_i32_1 = arith.constant 0 : i32
    return %arg0, %c0_i32, %c0_i32_0 : i32, i32, i32
  }
  func.func @transform_1(%arg0: i32) -> (i32, i32) {
    %c0_i32 = arith.constant 0 : i32
    %c0_i32_0 = arith.constant 0 : i32
    %c0_i32_1 = arith.constant 0 : i32
    return %c0_i32, %c0_i32_0 : i32, i32
  }
  func.func @transform_2(%arg0: i32) -> (i32, i32, i32) {
    %c0_i32 = arith.constant 0 : i32
    %c0_i32_0 = arith.constant 0 : i32
    %c0_i32_1 = arith.constant 0 : i32
    return %arg0, %c0_i32, %c0_i32_0 : i32, i32, i32
  }
}

module attributes {stable_mosaic.version = 11 : i64} {
  func.func @_stage_kernel(%arg0: i32, %arg1: memref<16x64xbf16, #tpu.memory_space<vmem>>, %arg2: memref<64x64xbf16, #tpu.memory_space<vmem>>, %arg3: memref<1x64xf32, #tpu.memory_space<vmem>>, %arg4: memref<64x320xbf16, #tpu.memory_space<vmem>>, %arg5: memref<1x320xf32, #tpu.memory_space<vmem>>, %arg6: memref<64x320xbf16, #tpu.memory_space<vmem>>, %arg7: memref<1x320xf32, #tpu.memory_space<vmem>>, %arg8: memref<320x64xbf16, #tpu.memory_space<vmem>>, %arg9: memref<1x64xf32, #tpu.memory_space<vmem>>, %arg10: memref<16x128xbf16, #tpu.memory_space<vmem>>) attributes {dimension_semantics = [#tpu.dimension_semantics<parallel>], iteration_bounds = array<i64: 2>, scalar_prefetch = 0 : i64, scratch_operands = 0 : i64, tpu.core_type = #tpu.core_type<tc>, window_params = [{transform_indices = @transform_0, window_bounds = array<i64: 16, 64>}, {pipeline_mode = #tpu.pipeline_mode<synchronous>, transform_indices = @transform_1, window_bounds = array<i64: 64, 64>}, {pipeline_mode = #tpu.pipeline_mode<synchronous>, transform_indices = @transform_2, window_bounds = array<i64: 1, 64>}, {pipeline_mode = #tpu.pipeline_mode<synchronous>, transform_indices = @transform_3, window_bounds = array<i64: 64, 320>}, {pipeline_mode = #tpu.pipeline_mode<synchronous>, transform_indices = @transform_4, window_bounds = array<i64: 1, 320>}, {pipeline_mode = #tpu.pipeline_mode<synchronous>, transform_indices = @transform_5, window_bounds = array<i64: 64, 320>}, {pipeline_mode = #tpu.pipeline_mode<synchronous>, transform_indices = @transform_6, window_bounds = array<i64: 1, 320>}, {pipeline_mode = #tpu.pipeline_mode<synchronous>, transform_indices = @transform_7, window_bounds = array<i64: 320, 64>}, {pipeline_mode = #tpu.pipeline_mode<synchronous>, transform_indices = @transform_8, window_bounds = array<i64: 1, 64>}, {transform_indices = @transform_9, window_bounds = array<i64: 16, 128>}]} {
    %c0 = arith.constant 0 : index
    %c0_0 = arith.constant 0 : index
    %0 = vector.load %arg1[%c0, %c0_0] : memref<16x64xbf16, #tpu.memory_space<vmem>>, vector<16x64xbf16>
    %c0_1 = arith.constant 0 : index
    %c0_2 = arith.constant 0 : index
    %1 = vector.load %arg2[%c0_1, %c0_2] : memref<64x64xbf16, #tpu.memory_space<vmem>>, vector<64x64xbf16>
    %cst = arith.constant dense<0.000000e+00> : vector<16x64xf32>
    %2 = tpu.matmul %0, %1, %cst {dimension_numbers = #tpu.dot_dimension_numbers<[1], [0], [0], [1], [0, 0, 1, 1], [], []>} : vector<16x64xbf16>, vector<64x64xbf16>, vector<16x64xf32> -> vector<16x64xf32>
    %c0_3 = arith.constant 0 : index
    %c0_4 = arith.constant 0 : index
    %3 = vector.load %arg3[%c0_3, %c0_4] : memref<1x64xf32, #tpu.memory_space<vmem>>, vector<1x64xf32>
    %4 = vector.broadcast %3 : vector<1x64xf32> to vector<16x64xf32>
    %5 = arith.addf %2, %4 : vector<16x64xf32>
    %cst_5 = arith.constant 0.000000e+00 : f32
    %6 = vector.broadcast %cst_5 : f32 to vector<16x64xf32>
    %7 = arith.maximumf %5, %6 : vector<16x64xf32>
    %8 = arith.truncf %7 : vector<16x64xf32> to vector<16x64xbf16>
    %c0_6 = arith.constant 0 : index
    %c0_7 = arith.constant 0 : index
    %9 = vector.load %arg4[%c0_6, %c0_7] : memref<64x320xbf16, #tpu.memory_space<vmem>>, vector<64x320xbf16>
    %cst_8 = arith.constant dense<0.000000e+00> : vector<16x320xf32>
    %10 = tpu.matmul %8, %9, %cst_8 {dimension_numbers = #tpu.dot_dimension_numbers<[1], [0], [0], [1], [0, 0, 1, 1], [], []>} : vector<16x64xbf16>, vector<64x320xbf16>, vector<16x320xf32> -> vector<16x320xf32>
    %c0_9 = arith.constant 0 : index
    %c0_10 = arith.constant 0 : index
    %11 = vector.load %arg5[%c0_9, %c0_10] : memref<1x320xf32, #tpu.memory_space<vmem>>, vector<1x320xf32>
    %12 = vector.broadcast %11 : vector<1x320xf32> to vector<16x320xf32>
    %13 = arith.addf %10, %12 : vector<16x320xf32>
    %c0_11 = arith.constant 0 : index
    %c0_12 = arith.constant 0 : index
    %14 = vector.load %arg6[%c0_11, %c0_12] : memref<64x320xbf16, #tpu.memory_space<vmem>>, vector<64x320xbf16>
    %cst_13 = arith.constant dense<0.000000e+00> : vector<16x320xf32>
    %15 = tpu.matmul %8, %14, %cst_13 {dimension_numbers = #tpu.dot_dimension_numbers<[1], [0], [0], [1], [0, 0, 1, 1], [], []>} : vector<16x64xbf16>, vector<64x320xbf16>, vector<16x320xf32> -> vector<16x320xf32>
    %c0_14 = arith.constant 0 : index
    %c0_15 = arith.constant 0 : index
    %16 = vector.load %arg7[%c0_14, %c0_15] : memref<1x320xf32, #tpu.memory_space<vmem>>, vector<1x320xf32>
    %17 = vector.broadcast %16 : vector<1x320xf32> to vector<16x320xf32>
    %18 = arith.addf %15, %17 : vector<16x320xf32>
    %19 = arith.negf %13 : vector<16x320xf32>
    %20 = math.exp %19 : vector<16x320xf32>
    %cst_16 = arith.constant 1.000000e+00 : f32
    %21 = vector.broadcast %cst_16 : f32 to vector<16x320xf32>
    %22 = arith.addf %21, %20 : vector<16x320xf32>
    %23 = arith.divf %21, %22 : vector<16x320xf32>
    %24 = arith.mulf %13, %23 : vector<16x320xf32>
    %25 = arith.mulf %18, %24 : vector<16x320xf32>
    %26 = arith.truncf %25 : vector<16x320xf32> to vector<16x320xbf16>
    %c0_17 = arith.constant 0 : index
    %c0_18 = arith.constant 0 : index
    %27 = vector.load %arg8[%c0_17, %c0_18] : memref<320x64xbf16, #tpu.memory_space<vmem>>, vector<320x64xbf16>
    %cst_19 = arith.constant dense<0.000000e+00> : vector<16x64xf32>
    %28 = tpu.matmul %26, %27, %cst_19 {dimension_numbers = #tpu.dot_dimension_numbers<[1], [0], [0], [1], [0, 0, 1, 1], [], []>} : vector<16x320xbf16>, vector<320x64xbf16>, vector<16x64xf32> -> vector<16x64xf32>
    %c0_20 = arith.constant 0 : index
    %c0_21 = arith.constant 0 : index
    %29 = vector.load %arg9[%c0_20, %c0_21] : memref<1x64xf32, #tpu.memory_space<vmem>>, vector<1x64xf32>
    %30 = vector.broadcast %29 : vector<1x64xf32> to vector<16x64xf32>
    %31 = arith.addf %28, %30 : vector<16x64xf32>
    %32 = arith.truncf %31 : vector<16x64xf32> to vector<16x64xbf16>
    %33 = tpu.concatenate %8, %32 in 1 : vector<16x64xbf16>, vector<16x64xbf16> -> vector<16x128xbf16>
    %c0_22 = arith.constant 0 : index
    %c0_23 = arith.constant 0 : index
    %34 = vector.load %arg10[%c0_22, %c0_23] : memref<16x128xbf16, #tpu.memory_space<vmem>>, vector<16x128xbf16>
    tpu.vector_store %arg10[%c0_22, %c0_23], %33 {strides = array<i32>} : memref<16x128xbf16, #tpu.memory_space<vmem>>, vector<16x128xbf16>,
    return
  }
  func.func @transform_0(%arg0: i32) -> (i32, i32) {
    %c0_i32 = arith.constant 0 : i32
    %c0_i32_0 = arith.constant 0 : i32
    return %arg0, %c0_i32 : i32, i32
  }
  func.func @transform_1(%arg0: i32) -> (i32, i32) {
    %c0_i32 = arith.constant 0 : i32
    %c0_i32_0 = arith.constant 0 : i32
    %c0_i32_1 = arith.constant 0 : i32
    return %c0_i32, %c0_i32_0 : i32, i32
  }
  func.func @transform_2(%arg0: i32) -> (i32, i32) {
    %c0_i32 = arith.constant 0 : i32
    %c0_i32_0 = arith.constant 0 : i32
    %c0_i32_1 = arith.constant 0 : i32
    return %c0_i32, %c0_i32_0 : i32, i32
  }
  func.func @transform_3(%arg0: i32) -> (i32, i32) {
    %c0_i32 = arith.constant 0 : i32
    %c0_i32_0 = arith.constant 0 : i32
    %c0_i32_1 = arith.constant 0 : i32
    return %c0_i32, %c0_i32_0 : i32, i32
  }
  func.func @transform_4(%arg0: i32) -> (i32, i32) {
    %c0_i32 = arith.constant 0 : i32
    %c0_i32_0 = arith.constant 0 : i32
    %c0_i32_1 = arith.constant 0 : i32
    return %c0_i32, %c0_i32_0 : i32, i32
  }
  func.func @transform_5(%arg0: i32) -> (i32, i32) {
    %c0_i32 = arith.constant 0 : i32
    %c0_i32_0 = arith.constant 0 : i32
    %c0_i32_1 = arith.constant 0 : i32
    return %c0_i32, %c0_i32_0 : i32, i32
  }
  func.func @transform_6(%arg0: i32) -> (i32, i32) {
    %c0_i32 = arith.constant 0 : i32
    %c0_i32_0 = arith.constant 0 : i32
    %c0_i32_1 = arith.constant 0 : i32
    return %c0_i32, %c0_i32_0 : i32, i32
  }
  func.func @transform_7(%arg0: i32) -> (i32, i32) {
    %c0_i32 = arith.constant 0 : i32
    %c0_i32_0 = arith.constant 0 : i32
    %c0_i32_1 = arith.constant 0 : i32
    return %c0_i32, %c0_i32_0 : i32, i32
  }
  func.func @transform_8(%arg0: i32) -> (i32, i32) {
    %c0_i32 = arith.constant 0 : i32
    %c0_i32_0 = arith.constant 0 : i32
    %c0_i32_1 = arith.constant 0 : i32
    return %c0_i32, %c0_i32_0 : i32, i32
  }
  func.func @transform_9(%arg0: i32) -> (i32, i32) {
    %c0_i32 = arith.constant 0 : i32
    %c0_i32_0 = arith.constant 0 : i32
    return %arg0, %c0_i32 : i32, i32
  }
}

module attributes {stable_mosaic.version = 11 : i64} {
  func.func @_proj_gn_kernel(%arg0: i32, %arg1: memref<1x16x128xbf16, #tpu.memory_space<vmem>>, %arg2: memref<64x64xbf16, #tpu.memory_space<vmem>>, %arg3: memref<1x64xf32, #tpu.memory_space<vmem>>, %arg4: memref<1x64xf32, #tpu.memory_space<vmem>>, %arg5: memref<1x64xf32, #tpu.memory_space<vmem>>, %arg6: memref<64x64xf32, #tpu.memory_space<vmem>>, %arg7: memref<1x16x32xbf16, #tpu.memory_space<vmem>>, %arg8: memref<1x16x64xbf16, #tpu.memory_space<vmem>>) attributes {dimension_semantics = [#tpu.dimension_semantics<parallel>], iteration_bounds = array<i64: 2>, scalar_prefetch = 0 : i64, scratch_operands = 0 : i64, tpu.core_type = #tpu.core_type<tc>, window_params = [{transform_indices = @transform_0, window_bounds = array<i64: 1, 16, 128>}, {pipeline_mode = #tpu.pipeline_mode<synchronous>, transform_indices = @transform_1, window_bounds = array<i64: 64, 64>}, {pipeline_mode = #tpu.pipeline_mode<synchronous>, transform_indices = @transform_2, window_bounds = array<i64: 1, 64>}, {pipeline_mode = #tpu.pipeline_mode<synchronous>, transform_indices = @transform_3, window_bounds = array<i64: 1, 64>}, {pipeline_mode = #tpu.pipeline_mode<synchronous>, transform_indices = @transform_4, window_bounds = array<i64: 1, 64>}, {pipeline_mode = #tpu.pipeline_mode<synchronous>, transform_indices = @transform_5, window_bounds = array<i64: 64, 64>}, {transform_indices = @transform_6, window_bounds = array<i64: 1, 16, 32>}, {transform_indices = @transform_7, window_bounds = array<i64: 1, 16, 64>}]} {
    %c0 = arith.constant 0 : index
    %c0_0 = arith.constant 0 : index
    %c0_1 = arith.constant 0 : index
    %0 = vector.load %arg1[%c0, %c0_0, %c0_1] : memref<1x16x128xbf16, #tpu.memory_space<vmem>>, vector<1x16x128xbf16>
    %1 = vector.shape_cast %0 : vector<1x16x128xbf16> to vector<16x128xbf16>
    %2 = vector.extract_strided_slice %1 {offsets = [0, 0], sizes = [16, 64], strides = [1, 1]} : vector<16x128xbf16> to vector<16x64xbf16>
    %3 = vector.extract_strided_slice %1 {offsets = [0, 64], sizes = [16, 64], strides = [1, 1]} : vector<16x128xbf16> to vector<16x64xbf16>
    %c0_2 = arith.constant 0 : index
    %c0_3 = arith.constant 0 : index
    %4 = vector.load %arg2[%c0_2, %c0_3] : memref<64x64xbf16, #tpu.memory_space<vmem>>, vector<64x64xbf16>
    %cst = arith.constant dense<0.000000e+00> : vector<16x64xf32>
    %5 = tpu.matmul %3, %4, %cst {dimension_numbers = #tpu.dot_dimension_numbers<[1], [0], [0], [1], [0, 0, 1, 1], [], []>} : vector<16x64xbf16>, vector<64x64xbf16>, vector<16x64xf32> -> vector<16x64xf32>
    %c0_4 = arith.constant 0 : index
    %c0_5 = arith.constant 0 : index
    %6 = vector.load %arg3[%c0_4, %c0_5] : memref<1x64xf32, #tpu.memory_space<vmem>>, vector<1x64xf32>
    %7 = vector.broadcast %6 : vector<1x64xf32> to vector<16x64xf32>
    %8 = arith.addf %5, %7 : vector<16x64xf32>
    %cst_6 = arith.constant dense<0.000000e+00> : vector<64xf32>
    %9 = vector.multi_reduction <add>, %8, %cst_6 [0] : vector<16x64xf32> to vector<64xf32>
    %10 = vector.shape_cast %9 : vector<64xf32> to vector<1x64xf32>
    %c0_7 = arith.constant 0 : index
    %c0_8 = arith.constant 0 : index
    %11 = vector.load %arg6[%c0_7, %c0_8] : memref<64x64xf32, #tpu.memory_space<vmem>>, vector<64x64xf32>
    %cst_9 = arith.constant dense<0.000000e+00> : vector<1x64xf32>
    %12 = tpu.matmul %10, %11, %cst_9 {dimension_numbers = #tpu.dot_dimension_numbers<[1], [0], [0], [1], [0, 0, 1, 1], [], []>} : vector<1x64xf32>, vector<64x64xf32>, vector<1x64xf32> -> vector<1x64xf32>
    %cst_10 = arith.constant 3.125000e-02 : f32
    %13 = vector.broadcast %cst_10 : f32 to vector<1x64xf32>
    %14 = arith.mulf %12, %13 : vector<1x64xf32>
    %15 = vector.broadcast %14 : vector<1x64xf32> to vector<16x64xf32>
    %16 = arith.subf %8, %15 : vector<16x64xf32>
    %17 = arith.mulf %16, %16 : vector<16x64xf32>
    %cst_11 = arith.constant dense<0.000000e+00> : vector<64xf32>
    %18 = vector.multi_reduction <add>, %17, %cst_11 [0] : vector<16x64xf32> to vector<64xf32>
    %19 = vector.shape_cast %18 : vector<64xf32> to vector<1x64xf32>
    %c0_12 = arith.constant 0 : index
    %c0_13 = arith.constant 0 : index
    %20 = vector.load %arg6[%c0_12, %c0_13] : memref<64x64xf32, #tpu.memory_space<vmem>>, vector<64x64xf32>
    %cst_14 = arith.constant dense<0.000000e+00> : vector<1x64xf32>
    %21 = tpu.matmul %19, %20, %cst_14 {dimension_numbers = #tpu.dot_dimension_numbers<[1], [0], [0], [1], [0, 0, 1, 1], [], []>} : vector<1x64xf32>, vector<64x64xf32>, vector<1x64xf32> -> vector<1x64xf32>
    %cst_15 = arith.constant 3.125000e-02 : f32
    %22 = vector.broadcast %cst_15 : f32 to vector<1x64xf32>
    %23 = arith.mulf %21, %22 : vector<1x64xf32>
    %cst_16 = arith.constant 9.99999974E-6 : f32
    %24 = vector.broadcast %cst_16 : f32 to vector<1x64xf32>
    %25 = arith.addf %23, %24 : vector<1x64xf32>
    %26 = math.rsqrt %25 : vector<1x64xf32>
    %27 = vector.broadcast %26 : vector<1x64xf32> to vector<16x64xf32>
    %28 = arith.mulf %16, %27 : vector<16x64xf32>
    %c0_17 = arith.constant 0 : index
    %c0_18 = arith.constant 0 : index
    %29 = vector.load %arg4[%c0_17, %c0_18] : memref<1x64xf32, #tpu.memory_space<vmem>>, vector<1x64xf32>
    %30 = vector.broadcast %29 : vector<1x64xf32> to vector<16x64xf32>
    %31 = arith.mulf %28, %30 : vector<16x64xf32>
    %c0_19 = arith.constant 0 : index
    %c0_20 = arith.constant 0 : index
    %32 = vector.load %arg5[%c0_19, %c0_20] : memref<1x64xf32, #tpu.memory_space<vmem>>, vector<1x64xf32>
    %33 = vector.broadcast %32 : vector<1x64xf32> to vector<16x64xf32>
    %34 = arith.addf %31, %33 : vector<16x64xf32>
    %35 = arith.extf %2 : vector<16x64xbf16> to vector<16x64xf32>
    %36 = arith.addf %35, %34 : vector<16x64xf32>
    %37 = arith.truncf %36 : vector<16x64xf32> to vector<16x64xbf16>
    %c0_21 = arith.constant 0 : index
    %c0_22 = arith.constant 0 : index
    %c0_23 = arith.constant 0 : index
    %38 = vector.load %arg8[%c0_21, %c0_22, %c0_23] : memref<1x16x64xbf16, #tpu.memory_space<vmem>>, vector<1x16x64xbf16>
    %39 = vector.shape_cast %38 : vector<1x16x64xbf16> to vector<16x64xbf16>
    %40 = vector.shape_cast %37 : vector<16x64xbf16> to vector<1x16x64xbf16>
    tpu.vector_store %arg8[%c0_21, %c0_22, %c0_23], %40 {strides = array<i32>} : memref<1x16x64xbf16, #tpu.memory_space<vmem>>, vector<1x16x64xbf16>,
    %41 = vector.extract_strided_slice %34 {offsets = [0, 0], sizes = [16, 32], strides = [1, 1]} : vector<16x64xf32> to vector<16x32xf32>
    %42 = vector.extract_strided_slice %34 {offsets = [0, 32], sizes = [16, 32], strides = [1, 1]} : vector<16x64xf32> to vector<16x32xf32>
    %43 = arith.subf %41, %42 : vector<16x32xf32>
    %44 = arith.truncf %43 : vector<16x32xf32> to vector<16x32xbf16>
    %c0_24 = arith.constant 0 : index
    %c0_25 = arith.constant 0 : index
    %c0_26 = arith.constant 0 : index
    %45 = vector.load %arg7[%c0_24, %c0_25, %c0_26] : memref<1x16x32xbf16, #tpu.memory_space<vmem>>, vector<1x16x32xbf16>
    %46 = vector.shape_cast %45 : vector<1x16x32xbf16> to vector<16x32xbf16>
    %47 = vector.shape_cast %44 : vector<16x32xbf16> to vector<1x16x32xbf16>
    tpu.vector_store %arg7[%c0_24, %c0_25, %c0_26], %47 {strides = array<i32>} : memref<1x16x32xbf16, #tpu.memory_space<vmem>>, vector<1x16x32xbf16>,
    return
  }
  func.func @transform_0(%arg0: i32) -> (i32, i32, i32) {
    %c0_i32 = arith.constant 0 : i32
    %c0_i32_0 = arith.constant 0 : i32
    %c0_i32_1 = arith.constant 0 : i32
    return %arg0, %c0_i32, %c0_i32_0 : i32, i32, i32
  }
  func.func @transform_1(%arg0: i32) -> (i32, i32) {
    %c0_i32 = arith.constant 0 : i32
    %c0_i32_0 = arith.constant 0 : i32
    %c0_i32_1 = arith.constant 0 : i32
    return %c0_i32, %c0_i32_0 : i32, i32
  }
  func.func @transform_2(%arg0: i32) -> (i32, i32) {
    %c0_i32 = arith.constant 0 : i32
    %c0_i32_0 = arith.constant 0 : i32
    %c0_i32_1 = arith.constant 0 : i32
    return %c0_i32, %c0_i32_0 : i32, i32
  }
  func.func @transform_3(%arg0: i32) -> (i32, i32) {
    %c0_i32 = arith.constant 0 : i32
    %c0_i32_0 = arith.constant 0 : i32
    %c0_i32_1 = arith.constant 0 : i32
    return %c0_i32, %c0_i32_0 : i32, i32
  }
  func.func @transform_4(%arg0: i32) -> (i32, i32) {
    %c0_i32 = arith.constant 0 : i32
    %c0_i32_0 = arith.constant 0 : i32
    %c0_i32_1 = arith.constant 0 : i32
    return %c0_i32, %c0_i32_0 : i32, i32
  }
  func.func @transform_5(%arg0: i32) -> (i32, i32) {
    %c0_i32 = arith.constant 0 : i32
    %c0_i32_0 = arith.constant 0 : i32
    %c0_i32_1 = arith.constant 0 : i32
    return %c0_i32, %c0_i32_0 : i32, i32
  }
  func.func @transform_6(%arg0: i32) -> (i32, i32, i32) {
    %c0_i32 = arith.constant 0 : i32
    %c0_i32_0 = arith.constant 0 : i32
    %c0_i32_1 = arith.constant 0 : i32
    return %arg0, %c0_i32, %c0_i32_0 : i32, i32, i32
  }
  func.func @transform_7(%arg0: i32) -> (i32, i32, i32) {
    %c0_i32 = arith.constant 0 : i32
    %c0_i32_0 = arith.constant 0 : i32
    %c0_i32_1 = arith.constant 0 : i32
    return %arg0, %c0_i32, %c0_i32_0 : i32, i32, i32
  }
}

module attributes {stable_mosaic.version = 11 : i64} {
  func.func @_up_matmul_kernel(%arg0: i32, %arg1: memref<1x4x128xbf16, #tpu.memory_space<vmem>>, %arg2: memref<16x4xbf16, #tpu.memory_space<vmem>>, %arg3: memref<1x16x128xbf16, #tpu.memory_space<vmem>>) attributes {dimension_semantics = [#tpu.dimension_semantics<parallel>], iteration_bounds = array<i64: 2>, scalar_prefetch = 0 : i64, scratch_operands = 0 : i64, tpu.core_type = #tpu.core_type<tc>, window_params = [{transform_indices = @transform_0, window_bounds = array<i64: 1, 4, 128>}, {pipeline_mode = #tpu.pipeline_mode<synchronous>, transform_indices = @transform_1, window_bounds = array<i64: 16, 4>}, {transform_indices = @transform_2, window_bounds = array<i64: 1, 16, 128>}]} {
    %c0 = arith.constant 0 : index
    %c0_0 = arith.constant 0 : index
    %0 = vector.load %arg2[%c0, %c0_0] : memref<16x4xbf16, #tpu.memory_space<vmem>>, vector<16x4xbf16>
    %c0_1 = arith.constant 0 : index
    %c0_2 = arith.constant 0 : index
    %c0_3 = arith.constant 0 : index
    %1 = vector.load %arg1[%c0_1, %c0_2, %c0_3] : memref<1x4x128xbf16, #tpu.memory_space<vmem>>, vector<1x4x128xbf16>
    %2 = vector.shape_cast %1 : vector<1x4x128xbf16> to vector<4x128xbf16>
    %cst = arith.constant dense<0.000000e+00> : vector<16x128xf32>
    %3 = tpu.matmul %0, %2, %cst {dimension_numbers = #tpu.dot_dimension_numbers<[1], [0], [0], [1], [0, 0, 1, 1], [], []>} : vector<16x4xbf16>, vector<4x128xbf16>, vector<16x128xf32> -> vector<16x128xf32>
    %4 = arith.truncf %3 : vector<16x128xf32> to vector<16x128xbf16>
    %c0_4 = arith.constant 0 : index
    %c0_5 = arith.constant 0 : index
    %c0_6 = arith.constant 0 : index
    %5 = vector.load %arg3[%c0_4, %c0_5, %c0_6] : memref<1x16x128xbf16, #tpu.memory_space<vmem>>, vector<1x16x128xbf16>
    %6 = vector.shape_cast %5 : vector<1x16x128xbf16> to vector<16x128xbf16>
    %7 = vector.shape_cast %4 : vector<16x128xbf16> to vector<1x16x128xbf16>
    tpu.vector_store %arg3[%c0_4, %c0_5, %c0_6], %7 {strides = array<i32>} : memref<1x16x128xbf16, #tpu.memory_space<vmem>>, vector<1x16x128xbf16>,
    return
  }
  func.func @transform_0(%arg0: i32) -> (i32, i32, i32) {
    %c0_i32 = arith.constant 0 : i32
    %c0_i32_0 = arith.constant 0 : i32
    %c0_i32_1 = arith.constant 0 : i32
    return %arg0, %c0_i32, %c0_i32_0 : i32, i32, i32
  }
  func.func @transform_1(%arg0: i32) -> (i32, i32) {
    %c0_i32 = arith.constant 0 : i32
    %c0_i32_0 = arith.constant 0 : i32
    %c0_i32_1 = arith.constant 0 : i32
    return %c0_i32, %c0_i32_0 : i32, i32
  }
  func.func @transform_2(%arg0: i32) -> (i32, i32, i32) {
    %c0_i32 = arith.constant 0 : i32
    %c0_i32_0 = arith.constant 0 : i32
    %c0_i32_1 = arith.constant 0 : i32
    return %arg0, %c0_i32, %c0_i32_0 : i32, i32, i32
  }
}

module attributes {stable_mosaic.version = 11 : i64} {
  func.func @_proj_gn_kernel(%arg0: i32, %arg1: memref<1x4x256xbf16, #tpu.memory_space<vmem>>, %arg2: memref<128x128xbf16, #tpu.memory_space<vmem>>, %arg3: memref<1x128xf32, #tpu.memory_space<vmem>>, %arg4: memref<1x128xf32, #tpu.memory_space<vmem>>, %arg5: memref<1x128xf32, #tpu.memory_space<vmem>>, %arg6: memref<128x128xf32, #tpu.memory_space<vmem>>, %arg7: memref<1x4x64xbf16, #tpu.memory_space<vmem>>, %arg8: memref<1x4x128xbf16, #tpu.memory_space<vmem>>) attributes {dimension_semantics = [#tpu.dimension_semantics<parallel>], iteration_bounds = array<i64: 2>, scalar_prefetch = 0 : i64, scratch_operands = 0 : i64, tpu.core_type = #tpu.core_type<tc>, window_params = [{transform_indices = @transform_0, window_bounds = array<i64: 1, 4, 256>}, {pipeline_mode = #tpu.pipeline_mode<synchronous>, transform_indices = @transform_1, window_bounds = array<i64: 128, 128>}, {pipeline_mode = #tpu.pipeline_mode<synchronous>, transform_indices = @transform_2, window_bounds = array<i64: 1, 128>}, {pipeline_mode = #tpu.pipeline_mode<synchronous>, transform_indices = @transform_3, window_bounds = array<i64: 1, 128>}, {pipeline_mode = #tpu.pipeline_mode<synchronous>, transform_indices = @transform_4, window_bounds = array<i64: 1, 128>}, {pipeline_mode = #tpu.pipeline_mode<synchronous>, transform_indices = @transform_5, window_bounds = array<i64: 128, 128>}, {transform_indices = @transform_6, window_bounds = array<i64: 1, 4, 64>}, {transform_indices = @transform_7, window_bounds = array<i64: 1, 4, 128>}]} {
    %c0 = arith.constant 0 : index
    %c0_0 = arith.constant 0 : index
    %c0_1 = arith.constant 0 : index
    %0 = vector.load %arg1[%c0, %c0_0, %c0_1] : memref<1x4x256xbf16, #tpu.memory_space<vmem>>, vector<1x4x256xbf16>
    %1 = vector.shape_cast %0 : vector<1x4x256xbf16> to vector<4x256xbf16>
    %2 = vector.extract_strided_slice %1 {offsets = [0, 0], sizes = [4, 128], strides = [1, 1]} : vector<4x256xbf16> to vector<4x128xbf16>
    %3 = vector.extract_strided_slice %1 {offsets = [0, 128], sizes = [4, 128], strides = [1, 1]} : vector<4x256xbf16> to vector<4x128xbf16>
    %c0_2 = arith.constant 0 : index
    %c0_3 = arith.constant 0 : index
    %4 = vector.load %arg2[%c0_2, %c0_3] : memref<128x128xbf16, #tpu.memory_space<vmem>>, vector<128x128xbf16>
    %cst = arith.constant dense<0.000000e+00> : vector<4x128xf32>
    %5 = tpu.matmul %3, %4, %cst {dimension_numbers = #tpu.dot_dimension_numbers<[1], [0], [0], [1], [0, 0, 1, 1], [], []>} : vector<4x128xbf16>, vector<128x128xbf16>, vector<4x128xf32> -> vector<4x128xf32>
    %c0_4 = arith.constant 0 : index
    %c0_5 = arith.constant 0 : index
    %6 = vector.load %arg3[%c0_4, %c0_5] : memref<1x128xf32, #tpu.memory_space<vmem>>, vector<1x128xf32>
    %7 = vector.broadcast %6 : vector<1x128xf32> to vector<4x128xf32>
    %8 = arith.addf %5, %7 : vector<4x128xf32>
    %cst_6 = arith.constant dense<0.000000e+00> : vector<128xf32>
    %9 = vector.multi_reduction <add>, %8, %cst_6 [0] : vector<4x128xf32> to vector<128xf32>
    %10 = vector.shape_cast %9 : vector<128xf32> to vector<1x128xf32>
    %c0_7 = arith.constant 0 : index
    %c0_8 = arith.constant 0 : index
    %11 = vector.load %arg6[%c0_7, %c0_8] : memref<128x128xf32, #tpu.memory_space<vmem>>, vector<128x128xf32>
    %cst_9 = arith.constant dense<0.000000e+00> : vector<1x128xf32>
    %12 = tpu.matmul %10, %11, %cst_9 {dimension_numbers = #tpu.dot_dimension_numbers<[1], [0], [0], [1], [0, 0, 1, 1], [], []>} : vector<1x128xf32>, vector<128x128xf32>, vector<1x128xf32> -> vector<1x128xf32>
    %cst_10 = arith.constant 6.250000e-02 : f32
    %13 = vector.broadcast %cst_10 : f32 to vector<1x128xf32>
    %14 = arith.mulf %12, %13 : vector<1x128xf32>
    %15 = vector.broadcast %14 : vector<1x128xf32> to vector<4x128xf32>
    %16 = arith.subf %8, %15 : vector<4x128xf32>
    %17 = arith.mulf %16, %16 : vector<4x128xf32>
    %cst_11 = arith.constant dense<0.000000e+00> : vector<128xf32>
    %18 = vector.multi_reduction <add>, %17, %cst_11 [0] : vector<4x128xf32> to vector<128xf32>
    %19 = vector.shape_cast %18 : vector<128xf32> to vector<1x128xf32>
    %c0_12 = arith.constant 0 : index
    %c0_13 = arith.constant 0 : index
    %20 = vector.load %arg6[%c0_12, %c0_13] : memref<128x128xf32, #tpu.memory_space<vmem>>, vector<128x128xf32>
    %cst_14 = arith.constant dense<0.000000e+00> : vector<1x128xf32>
    %21 = tpu.matmul %19, %20, %cst_14 {dimension_numbers = #tpu.dot_dimension_numbers<[1], [0], [0], [1], [0, 0, 1, 1], [], []>} : vector<1x128xf32>, vector<128x128xf32>, vector<1x128xf32> -> vector<1x128xf32>
    %cst_15 = arith.constant 6.250000e-02 : f32
    %22 = vector.broadcast %cst_15 : f32 to vector<1x128xf32>
    %23 = arith.mulf %21, %22 : vector<1x128xf32>
    %cst_16 = arith.constant 9.99999974E-6 : f32
    %24 = vector.broadcast %cst_16 : f32 to vector<1x128xf32>
    %25 = arith.addf %23, %24 : vector<1x128xf32>
    %26 = math.rsqrt %25 : vector<1x128xf32>
    %27 = vector.broadcast %26 : vector<1x128xf32> to vector<4x128xf32>
    %28 = arith.mulf %16, %27 : vector<4x128xf32>
    %c0_17 = arith.constant 0 : index
    %c0_18 = arith.constant 0 : index
    %29 = vector.load %arg4[%c0_17, %c0_18] : memref<1x128xf32, #tpu.memory_space<vmem>>, vector<1x128xf32>
    %30 = vector.broadcast %29 : vector<1x128xf32> to vector<4x128xf32>
    %31 = arith.mulf %28, %30 : vector<4x128xf32>
    %c0_19 = arith.constant 0 : index
    %c0_20 = arith.constant 0 : index
    %32 = vector.load %arg5[%c0_19, %c0_20] : memref<1x128xf32, #tpu.memory_space<vmem>>, vector<1x128xf32>
    %33 = vector.broadcast %32 : vector<1x128xf32> to vector<4x128xf32>
    %34 = arith.addf %31, %33 : vector<4x128xf32>
    %35 = arith.extf %2 : vector<4x128xbf16> to vector<4x128xf32>
    %36 = arith.addf %35, %34 : vector<4x128xf32>
    %37 = arith.truncf %36 : vector<4x128xf32> to vector<4x128xbf16>
    %c0_21 = arith.constant 0 : index
    %c0_22 = arith.constant 0 : index
    %c0_23 = arith.constant 0 : index
    %38 = vector.load %arg8[%c0_21, %c0_22, %c0_23] : memref<1x4x128xbf16, #tpu.memory_space<vmem>>, vector<1x4x128xbf16>
    %39 = vector.shape_cast %38 : vector<1x4x128xbf16> to vector<4x128xbf16>
    %40 = vector.shape_cast %37 : vector<4x128xbf16> to vector<1x4x128xbf16>
    tpu.vector_store %arg8[%c0_21, %c0_22, %c0_23], %40 {strides = array<i32>} : memref<1x4x128xbf16, #tpu.memory_space<vmem>>, vector<1x4x128xbf16>,
    %41 = vector.extract_strided_slice %34 {offsets = [0, 0], sizes = [4, 64], strides = [1, 1]} : vector<4x128xf32> to vector<4x64xf32>
    %42 = vector.extract_strided_slice %34 {offsets = [0, 64], sizes = [4, 64], strides = [1, 1]} : vector<4x128xf32> to vector<4x64xf32>
    %43 = arith.subf %41, %42 : vector<4x64xf32>
    %44 = arith.truncf %43 : vector<4x64xf32> to vector<4x64xbf16>
    %c0_24 = arith.constant 0 : index
    %c0_25 = arith.constant 0 : index
    %c0_26 = arith.constant 0 : index
    %45 = vector.load %arg7[%c0_24, %c0_25, %c0_26] : memref<1x4x64xbf16, #tpu.memory_space<vmem>>, vector<1x4x64xbf16>
    %46 = vector.shape_cast %45 : vector<1x4x64xbf16> to vector<4x64xbf16>
    %47 = vector.shape_cast %44 : vector<4x64xbf16> to vector<1x4x64xbf16>
    tpu.vector_store %arg7[%c0_24, %c0_25, %c0_26], %47 {strides = array<i32>} : memref<1x4x64xbf16, #tpu.memory_space<vmem>>, vector<1x4x64xbf16>,
    return
  }
  func.func @transform_0(%arg0: i32) -> (i32, i32, i32) {
    %c0_i32 = arith.constant 0 : i32
    %c0_i32_0 = arith.constant 0 : i32
    %c0_i32_1 = arith.constant 0 : i32
    return %arg0, %c0_i32, %c0_i32_0 : i32, i32, i32
  }
  func.func @transform_1(%arg0: i32) -> (i32, i32) {
    %c0_i32 = arith.constant 0 : i32
    %c0_i32_0 = arith.constant 0 : i32
    %c0_i32_1 = arith.constant 0 : i32
    return %c0_i32, %c0_i32_0 : i32, i32
  }
  func.func @transform_2(%arg0: i32) -> (i32, i32) {
    %c0_i32 = arith.constant 0 : i32
    %c0_i32_0 = arith.constant 0 : i32
    %c0_i32_1 = arith.constant 0 : i32
    return %c0_i32, %c0_i32_0 : i32, i32
  }
  func.func @transform_3(%arg0: i32) -> (i32, i32) {
    %c0_i32 = arith.constant 0 : i32
    %c0_i32_0 = arith.constant 0 : i32
    %c0_i32_1 = arith.constant 0 : i32
    return %c0_i32, %c0_i32_0 : i32, i32
  }
  func.func @transform_4(%arg0: i32) -> (i32, i32) {
    %c0_i32 = arith.constant 0 : i32
    %c0_i32_0 = arith.constant 0 : i32
    %c0_i32_1 = arith.constant 0 : i32
    return %c0_i32, %c0_i32_0 : i32, i32
  }
  func.func @transform_5(%arg0: i32) -> (i32, i32) {
    %c0_i32 = arith.constant 0 : i32
    %c0_i32_0 = arith.constant 0 : i32
    %c0_i32_1 = arith.constant 0 : i32
    return %c0_i32, %c0_i32_0 : i32, i32
  }
  func.func @transform_6(%arg0: i32) -> (i32, i32, i32) {
    %c0_i32 = arith.constant 0 : i32
    %c0_i32_0 = arith.constant 0 : i32
    %c0_i32_1 = arith.constant 0 : i32
    return %arg0, %c0_i32, %c0_i32_0 : i32, i32, i32
  }
  func.func @transform_7(%arg0: i32) -> (i32, i32, i32) {
    %c0_i32 = arith.constant 0 : i32
    %c0_i32_0 = arith.constant 0 : i32
    %c0_i32_1 = arith.constant 0 : i32
    return %arg0, %c0_i32, %c0_i32_0 : i32, i32, i32
  }
}

module attributes {stable_mosaic.version = 11 : i64} {
  func.func @_up_matmul_kernel(%arg0: i32, %arg1: memref<1x2x128xbf16, #tpu.memory_space<vmem>>, %arg2: memref<16x2xbf16, #tpu.memory_space<vmem>>, %arg3: memref<1x16x128xbf16, #tpu.memory_space<vmem>>) attributes {dimension_semantics = [#tpu.dimension_semantics<parallel>], iteration_bounds = array<i64: 2>, scalar_prefetch = 0 : i64, scratch_operands = 0 : i64, tpu.core_type = #tpu.core_type<tc>, window_params = [{transform_indices = @transform_0, window_bounds = array<i64: 1, 2, 128>}, {pipeline_mode = #tpu.pipeline_mode<synchronous>, transform_indices = @transform_1, window_bounds = array<i64: 16, 2>}, {transform_indices = @transform_2, window_bounds = array<i64: 1, 16, 128>}]} {
    %c0 = arith.constant 0 : index
    %c0_0 = arith.constant 0 : index
    %0 = vector.load %arg2[%c0, %c0_0] : memref<16x2xbf16, #tpu.memory_space<vmem>>, vector<16x2xbf16>
    %c0_1 = arith.constant 0 : index
    %c0_2 = arith.constant 0 : index
    %c0_3 = arith.constant 0 : index
    %1 = vector.load %arg1[%c0_1, %c0_2, %c0_3] : memref<1x2x128xbf16, #tpu.memory_space<vmem>>, vector<1x2x128xbf16>
    %2 = vector.shape_cast %1 : vector<1x2x128xbf16> to vector<2x128xbf16>
    %cst = arith.constant dense<0.000000e+00> : vector<16x128xf32>
    %3 = tpu.matmul %0, %2, %cst {dimension_numbers = #tpu.dot_dimension_numbers<[1], [0], [0], [1], [0, 0, 1, 1], [], []>} : vector<16x2xbf16>, vector<2x128xbf16>, vector<16x128xf32> -> vector<16x128xf32>
    %4 = arith.truncf %3 : vector<16x128xf32> to vector<16x128xbf16>
    %c0_4 = arith.constant 0 : index
    %c0_5 = arith.constant 0 : index
    %c0_6 = arith.constant 0 : index
    %5 = vector.load %arg3[%c0_4, %c0_5, %c0_6] : memref<1x16x128xbf16, #tpu.memory_space<vmem>>, vector<1x16x128xbf16>
    %6 = vector.shape_cast %5 : vector<1x16x128xbf16> to vector<16x128xbf16>
    %7 = vector.shape_cast %4 : vector<16x128xbf16> to vector<1x16x128xbf16>
    tpu.vector_store %arg3[%c0_4, %c0_5, %c0_6], %7 {strides = array<i32>} : memref<1x16x128xbf16, #tpu.memory_space<vmem>>, vector<1x16x128xbf16>,
    return
  }
  func.func @transform_0(%arg0: i32) -> (i32, i32, i32) {
    %c0_i32 = arith.constant 0 : i32
    %c0_i32_0 = arith.constant 0 : i32
    %c0_i32_1 = arith.constant 0 : i32
    return %arg0, %c0_i32, %c0_i32_0 : i32, i32, i32
  }
  func.func @transform_1(%arg0: i32) -> (i32, i32) {
    %c0_i32 = arith.constant 0 : i32
    %c0_i32_0 = arith.constant 0 : i32
    %c0_i32_1 = arith.constant 0 : i32
    return %c0_i32, %c0_i32_0 : i32, i32
  }
  func.func @transform_2(%arg0: i32) -> (i32, i32, i32) {
    %c0_i32 = arith.constant 0 : i32
    %c0_i32_0 = arith.constant 0 : i32
    %c0_i32_1 = arith.constant 0 : i32
    return %arg0, %c0_i32, %c0_i32_0 : i32, i32, i32
  }
}

module attributes {stable_mosaic.version = 11 : i64} {
  func.func @_stage_kernel(%arg0: i32, %arg1: memref<8x64xbf16, #tpu.memory_space<vmem>>, %arg2: memref<64x128xbf16, #tpu.memory_space<vmem>>, %arg3: memref<1x128xf32, #tpu.memory_space<vmem>>, %arg4: memref<128x640xbf16, #tpu.memory_space<vmem>>, %arg5: memref<1x640xf32, #tpu.memory_space<vmem>>, %arg6: memref<128x640xbf16, #tpu.memory_space<vmem>>, %arg7: memref<1x640xf32, #tpu.memory_space<vmem>>, %arg8: memref<640x128xbf16, #tpu.memory_space<vmem>>, %arg9: memref<1x128xf32, #tpu.memory_space<vmem>>, %arg10: memref<8x256xbf16, #tpu.memory_space<vmem>>) attributes {dimension_semantics = [#tpu.dimension_semantics<parallel>], iteration_bounds = array<i64: 1>, scalar_prefetch = 0 : i64, scratch_operands = 0 : i64, tpu.core_type = #tpu.core_type<tc>, window_params = [{transform_indices = @transform_0, window_bounds = array<i64: 8, 64>}, {pipeline_mode = #tpu.pipeline_mode<synchronous>, transform_indices = @transform_1, window_bounds = array<i64: 64, 128>}, {pipeline_mode = #tpu.pipeline_mode<synchronous>, transform_indices = @transform_2, window_bounds = array<i64: 1, 128>}, {pipeline_mode = #tpu.pipeline_mode<synchronous>, transform_indices = @transform_3, window_bounds = array<i64: 128, 640>}, {pipeline_mode = #tpu.pipeline_mode<synchronous>, transform_indices = @transform_4, window_bounds = array<i64: 1, 640>}, {pipeline_mode = #tpu.pipeline_mode<synchronous>, transform_indices = @transform_5, window_bounds = array<i64: 128, 640>}, {pipeline_mode = #tpu.pipeline_mode<synchronous>, transform_indices = @transform_6, window_bounds = array<i64: 1, 640>}, {pipeline_mode = #tpu.pipeline_mode<synchronous>, transform_indices = @transform_7, window_bounds = array<i64: 640, 128>}, {pipeline_mode = #tpu.pipeline_mode<synchronous>, transform_indices = @transform_8, window_bounds = array<i64: 1, 128>}, {transform_indices = @transform_9, window_bounds = array<i64: 8, 256>}]} {
    %c0 = arith.constant 0 : index
    %c0_0 = arith.constant 0 : index
    %0 = vector.load %arg1[%c0, %c0_0] : memref<8x64xbf16, #tpu.memory_space<vmem>>, vector<8x64xbf16>
    %c0_1 = arith.constant 0 : index
    %c0_2 = arith.constant 0 : index
    %1 = vector.load %arg2[%c0_1, %c0_2] : memref<64x128xbf16, #tpu.memory_space<vmem>>, vector<64x128xbf16>
    %cst = arith.constant dense<0.000000e+00> : vector<8x128xf32>
    %2 = tpu.matmul %0, %1, %cst {dimension_numbers = #tpu.dot_dimension_numbers<[1], [0], [0], [1], [0, 0, 1, 1], [], []>} : vector<8x64xbf16>, vector<64x128xbf16>, vector<8x128xf32> -> vector<8x128xf32>
    %c0_3 = arith.constant 0 : index
    %c0_4 = arith.constant 0 : index
    %3 = vector.load %arg3[%c0_3, %c0_4] : memref<1x128xf32, #tpu.memory_space<vmem>>, vector<1x128xf32>
    %4 = vector.broadcast %3 : vector<1x128xf32> to vector<8x128xf32>
    %5 = arith.addf %2, %4 : vector<8x128xf32>
    %cst_5 = arith.constant 0.000000e+00 : f32
    %6 = vector.broadcast %cst_5 : f32 to vector<8x128xf32>
    %7 = arith.maximumf %5, %6 : vector<8x128xf32>
    %8 = arith.truncf %7 : vector<8x128xf32> to vector<8x128xbf16>
    %c0_6 = arith.constant 0 : index
    %c0_7 = arith.constant 0 : index
    %9 = vector.load %arg4[%c0_6, %c0_7] : memref<128x640xbf16, #tpu.memory_space<vmem>>, vector<128x640xbf16>
    %cst_8 = arith.constant dense<0.000000e+00> : vector<8x640xf32>
    %10 = tpu.matmul %8, %9, %cst_8 {dimension_numbers = #tpu.dot_dimension_numbers<[1], [0], [0], [1], [0, 0, 1, 1], [], []>} : vector<8x128xbf16>, vector<128x640xbf16>, vector<8x640xf32> -> vector<8x640xf32>
    %c0_9 = arith.constant 0 : index
    %c0_10 = arith.constant 0 : index
    %11 = vector.load %arg5[%c0_9, %c0_10] : memref<1x640xf32, #tpu.memory_space<vmem>>, vector<1x640xf32>
    %12 = vector.broadcast %11 : vector<1x640xf32> to vector<8x640xf32>
    %13 = arith.addf %10, %12 : vector<8x640xf32>
    %c0_11 = arith.constant 0 : index
    %c0_12 = arith.constant 0 : index
    %14 = vector.load %arg6[%c0_11, %c0_12] : memref<128x640xbf16, #tpu.memory_space<vmem>>, vector<128x640xbf16>
    %cst_13 = arith.constant dense<0.000000e+00> : vector<8x640xf32>
    %15 = tpu.matmul %8, %14, %cst_13 {dimension_numbers = #tpu.dot_dimension_numbers<[1], [0], [0], [1], [0, 0, 1, 1], [], []>} : vector<8x128xbf16>, vector<128x640xbf16>, vector<8x640xf32> -> vector<8x640xf32>
    %c0_14 = arith.constant 0 : index
    %c0_15 = arith.constant 0 : index
    %16 = vector.load %arg7[%c0_14, %c0_15] : memref<1x640xf32, #tpu.memory_space<vmem>>, vector<1x640xf32>
    %17 = vector.broadcast %16 : vector<1x640xf32> to vector<8x640xf32>
    %18 = arith.addf %15, %17 : vector<8x640xf32>
    %19 = arith.negf %13 : vector<8x640xf32>
    %20 = math.exp %19 : vector<8x640xf32>
    %cst_16 = arith.constant 1.000000e+00 : f32
    %21 = vector.broadcast %cst_16 : f32 to vector<8x640xf32>
    %22 = arith.addf %21, %20 : vector<8x640xf32>
    %23 = arith.divf %21, %22 : vector<8x640xf32>
    %24 = arith.mulf %13, %23 : vector<8x640xf32>
    %25 = arith.mulf %18, %24 : vector<8x640xf32>
    %26 = arith.truncf %25 : vector<8x640xf32> to vector<8x640xbf16>
    %c0_17 = arith.constant 0 : index
    %c0_18 = arith.constant 0 : index
    %27 = vector.load %arg8[%c0_17, %c0_18] : memref<640x128xbf16, #tpu.memory_space<vmem>>, vector<640x128xbf16>
    %cst_19 = arith.constant dense<0.000000e+00> : vector<8x128xf32>
    %28 = tpu.matmul %26, %27, %cst_19 {dimension_numbers = #tpu.dot_dimension_numbers<[1], [0], [0], [1], [0, 0, 1, 1], [], []>} : vector<8x640xbf16>, vector<640x128xbf16>, vector<8x128xf32> -> vector<8x128xf32>
    %c0_20 = arith.constant 0 : index
    %c0_21 = arith.constant 0 : index
    %29 = vector.load %arg9[%c0_20, %c0_21] : memref<1x128xf32, #tpu.memory_space<vmem>>, vector<1x128xf32>
    %30 = vector.broadcast %29 : vector<1x128xf32> to vector<8x128xf32>
    %31 = arith.addf %28, %30 : vector<8x128xf32>
    %32 = arith.truncf %31 : vector<8x128xf32> to vector<8x128xbf16>
    %33 = tpu.concatenate %8, %32 in 1 : vector<8x128xbf16>, vector<8x128xbf16> -> vector<8x256xbf16>
    %c0_22 = arith.constant 0 : index
    %c0_23 = arith.constant 0 : index
    %34 = vector.load %arg10[%c0_22, %c0_23] : memref<8x256xbf16, #tpu.memory_space<vmem>>, vector<8x256xbf16>
    tpu.vector_store %arg10[%c0_22, %c0_23], %33 {strides = array<i32>} : memref<8x256xbf16, #tpu.memory_space<vmem>>, vector<8x256xbf16>,
    return
  }
  func.func @transform_0(%arg0: i32) -> (i32, i32) {
    %c0_i32 = arith.constant 0 : i32
    %c0_i32_0 = arith.constant 0 : i32
    return %arg0, %c0_i32 : i32, i32
  }
  func.func @transform_1(%arg0: i32) -> (i32, i32) {
    %c0_i32 = arith.constant 0 : i32
    %c0_i32_0 = arith.constant 0 : i32
    %c0_i32_1 = arith.constant 0 : i32
    return %c0_i32, %c0_i32_0 : i32, i32
  }
  func.func @transform_2(%arg0: i32) -> (i32, i32) {
    %c0_i32 = arith.constant 0 : i32
    %c0_i32_0 = arith.constant 0 : i32
    %c0_i32_1 = arith.constant 0 : i32
    return %c0_i32, %c0_i32_0 : i32, i32
  }
  func.func @transform_3(%arg0: i32) -> (i32, i32) {
    %c0_i32 = arith.constant 0 : i32
    %c0_i32_0 = arith.constant 0 : i32
    %c0_i32_1 = arith.constant 0 : i32
    return %c0_i32, %c0_i32_0 : i32, i32
  }
  func.func @transform_4(%arg0: i32) -> (i32, i32) {
    %c0_i32 = arith.constant 0 : i32
    %c0_i32_0 = arith.constant 0 : i32
    %c0_i32_1 = arith.constant 0 : i32
    return %c0_i32, %c0_i32_0 : i32, i32
  }
  func.func @transform_5(%arg0: i32) -> (i32, i32) {
    %c0_i32 = arith.constant 0 : i32
    %c0_i32_0 = arith.constant 0 : i32
    %c0_i32_1 = arith.constant 0 : i32
    return %c0_i32, %c0_i32_0 : i32, i32
  }
  func.func @transform_6(%arg0: i32) -> (i32, i32) {
    %c0_i32 = arith.constant 0 : i32
    %c0_i32_0 = arith.constant 0 : i32
    %c0_i32_1 = arith.constant 0 : i32
    return %c0_i32, %c0_i32_0 : i32, i32
  }
  func.func @transform_7(%arg0: i32) -> (i32, i32) {
    %c0_i32 = arith.constant 0 : i32
    %c0_i32_0 = arith.constant 0 : i32
    %c0_i32_1 = arith.constant 0 : i32
    return %c0_i32, %c0_i32_0 : i32, i32
  }
  func.func @transform_8(%arg0: i32) -> (i32, i32) {
    %c0_i32 = arith.constant 0 : i32
    %c0_i32_0 = arith.constant 0 : i32
    %c0_i32_1 = arith.constant 0 : i32
    return %c0_i32, %c0_i32_0 : i32, i32
  }
  func.func @transform_9(%arg0: i32) -> (i32, i32) {
    %c0_i32 = arith.constant 0 : i32
    %c0_i32_0 = arith.constant 0 : i32
    return %arg0, %c0_i32 : i32, i32
  }
}

module attributes {stable_mosaic.version = 11 : i64} {
  func.func @_up_matmul_kernel(%arg0: i32, %arg1: i32, %arg2: memref<1x1x8x32xbf16, #tpu.memory_space<vmem>>, %arg3: memref<16x8xbf16, #tpu.memory_space<vmem>>, %arg4: memref<1x1x16x32xf32, #tpu.memory_space<vmem>>) attributes {dimension_semantics = [#tpu.dimension_semantics<parallel>, #tpu.dimension_semantics<parallel>], iteration_bounds = array<i64: 2, 16>, scalar_prefetch = 0 : i64, scratch_operands = 0 : i64, tpu.core_type = #tpu.core_type<tc>, window_params = [{transform_indices = @transform_0, window_bounds = array<i64: 1, 1, 8, 32>}, {pipeline_mode = #tpu.pipeline_mode<synchronous>, transform_indices = @transform_1, window_bounds = array<i64: 16, 8>}, {transform_indices = @transform_2, window_bounds = array<i64: 1, 1, 16, 32>}]} {
    %c0 = arith.constant 0 : index
    %c0_0 = arith.constant 0 : index
    %0 = vector.load %arg3[%c0, %c0_0] : memref<16x8xbf16, #tpu.memory_space<vmem>>, vector<16x8xbf16>
    %c0_1 = arith.constant 0 : index
    %c0_2 = arith.constant 0 : index
    %c0_3 = arith.constant 0 : index
    %c0_4 = arith.constant 0 : index
    %1 = vector.load %arg2[%c0_1, %c0_2, %c0_3, %c0_4] : memref<1x1x8x32xbf16, #tpu.memory_space<vmem>>, vector<1x1x8x32xbf16>
    %2 = vector.shape_cast %1 : vector<1x1x8x32xbf16> to vector<8x32xbf16>
    %cst = arith.constant dense<0.000000e+00> : vector<16x32xf32>
    %3 = tpu.matmul %0, %2, %cst {dimension_numbers = #tpu.dot_dimension_numbers<[1], [0], [0], [1], [0, 0, 1, 1], [], []>} : vector<16x8xbf16>, vector<8x32xbf16>, vector<16x32xf32> -> vector<16x32xf32>
    %c0_5 = arith.constant 0 : index
    %c0_6 = arith.constant 0 : index
    %c0_7 = arith.constant 0 : index
    %c0_8 = arith.constant 0 : index
    %4 = vector.load %arg4[%c0_5, %c0_6, %c0_7, %c0_8] : memref<1x1x16x32xf32, #tpu.memory_space<vmem>>, vector<1x1x16x32xf32>
    %5 = vector.shape_cast %4 : vector<1x1x16x32xf32> to vector<16x32xf32>
    %6 = vector.shape_cast %3 : vector<16x32xf32> to vector<1x1x16x32xf32>
    tpu.vector_store %arg4[%c0_5, %c0_6, %c0_7, %c0_8], %6 {strides = array<i32>} : memref<1x1x16x32xf32, #tpu.memory_space<vmem>>, vector<1x1x16x32xf32>,
    return
  }
  func.func @transform_0(%arg0: i32, %arg1: i32) -> (i32, i32, i32, i32) {
    %c0_i32 = arith.constant 0 : i32
    %c0_i32_0 = arith.constant 0 : i32
    %c0_i32_1 = arith.constant 0 : i32
    return %arg0, %arg1, %c0_i32, %c0_i32_0 : i32, i32, i32, i32
  }
  func.func @transform_1(%arg0: i32, %arg1: i32) -> (i32, i32) {
    %c0_i32 = arith.constant 0 : i32
    %c0_i32_0 = arith.constant 0 : i32
    %c0_i32_1 = arith.constant 0 : i32
    return %c0_i32, %c0_i32_0 : i32, i32
  }
  func.func @transform_2(%arg0: i32, %arg1: i32) -> (i32, i32, i32, i32) {
    %c0_i32 = arith.constant 0 : i32
    %c0_i32_0 = arith.constant 0 : i32
    %c0_i32_1 = arith.constant 0 : i32
    return %arg0, %arg1, %c0_i32, %c0_i32_0 : i32, i32, i32, i32
  }
}

module attributes {stable_mosaic.version = 11 : i64} {
  func.func @_up_matmul_kernel(%arg0: i32, %arg1: i32, %arg2: memref<1x1x4x32xbf16, #tpu.memory_space<vmem>>, %arg3: memref<16x4xbf16, #tpu.memory_space<vmem>>, %arg4: memref<1x1x16x32xf32, #tpu.memory_space<vmem>>) attributes {dimension_semantics = [#tpu.dimension_semantics<parallel>, #tpu.dimension_semantics<parallel>], iteration_bounds = array<i64: 2, 16>, scalar_prefetch = 0 : i64, scratch_operands = 0 : i64, tpu.core_type = #tpu.core_type<tc>, window_params = [{transform_indices = @transform_0, window_bounds = array<i64: 1, 1, 4, 32>}, {pipeline_mode = #tpu.pipeline_mode<synchronous>, transform_indices = @transform_1, window_bounds = array<i64: 16, 4>}, {transform_indices = @transform_2, window_bounds = array<i64: 1, 1, 16, 32>}]} {
    %c0 = arith.constant 0 : index
    %c0_0 = arith.constant 0 : index
    %0 = vector.load %arg3[%c0, %c0_0] : memref<16x4xbf16, #tpu.memory_space<vmem>>, vector<16x4xbf16>
    %c0_1 = arith.constant 0 : index
    %c0_2 = arith.constant 0 : index
    %c0_3 = arith.constant 0 : index
    %c0_4 = arith.constant 0 : index
    %1 = vector.load %arg2[%c0_1, %c0_2, %c0_3, %c0_4] : memref<1x1x4x32xbf16, #tpu.memory_space<vmem>>, vector<1x1x4x32xbf16>
    %2 = vector.shape_cast %1 : vector<1x1x4x32xbf16> to vector<4x32xbf16>
    %cst = arith.constant dense<0.000000e+00> : vector<16x32xf32>
    %3 = tpu.matmul %0, %2, %cst {dimension_numbers = #tpu.dot_dimension_numbers<[1], [0], [0], [1], [0, 0, 1, 1], [], []>} : vector<16x4xbf16>, vector<4x32xbf16>, vector<16x32xf32> -> vector<16x32xf32>
    %c0_5 = arith.constant 0 : index
    %c0_6 = arith.constant 0 : index
    %c0_7 = arith.constant 0 : index
    %c0_8 = arith.constant 0 : index
    %4 = vector.load %arg4[%c0_5, %c0_6, %c0_7, %c0_8] : memref<1x1x16x32xf32, #tpu.memory_space<vmem>>, vector<1x1x16x32xf32>
    %5 = vector.shape_cast %4 : vector<1x1x16x32xf32> to vector<16x32xf32>
    %6 = vector.shape_cast %3 : vector<16x32xf32> to vector<1x1x16x32xf32>
    tpu.vector_store %arg4[%c0_5, %c0_6, %c0_7, %c0_8], %6 {strides = array<i32>} : memref<1x1x16x32xf32, #tpu.memory_space<vmem>>, vector<1x1x16x32xf32>,
    return
  }
  func.func @transform_0(%arg0: i32, %arg1: i32) -> (i32, i32, i32, i32) {
    %c0_i32 = arith.constant 0 : i32
    %c0_i32_0 = arith.constant 0 : i32
    %c0_i32_1 = arith.constant 0 : i32
    return %arg0, %arg1, %c0_i32, %c0_i32_0 : i32, i32, i32, i32
  }
  func.func @transform_1(%arg0: i32, %arg1: i32) -> (i32, i32) {
    %c0_i32 = arith.constant 0 : i32
    %c0_i32_0 = arith.constant 0 : i32
    %c0_i32_1 = arith.constant 0 : i32
    return %c0_i32, %c0_i32_0 : i32, i32
  }
  func.func @transform_2(%arg0: i32, %arg1: i32) -> (i32, i32, i32, i32) {
    %c0_i32 = arith.constant 0 : i32
    %c0_i32_0 = arith.constant 0 : i32
    %c0_i32_1 = arith.constant 0 : i32
    return %arg0, %arg1, %c0_i32, %c0_i32_0 : i32, i32, i32, i32
  }
}

module attributes {stable_mosaic.version = 11 : i64} {
  func.func @_up_matmul_kernel(%arg0: i32, %arg1: i32, %arg2: memref<1x1x2x64xbf16, #tpu.memory_space<vmem>>, %arg3: memref<16x2xbf16, #tpu.memory_space<vmem>>, %arg4: memref<1x1x16x64xf32, #tpu.memory_space<vmem>>) attributes {dimension_semantics = [#tpu.dimension_semantics<parallel>, #tpu.dimension_semantics<parallel>], iteration_bounds = array<i64: 2, 16>, scalar_prefetch = 0 : i64, scratch_operands = 0 : i64, tpu.core_type = #tpu.core_type<tc>, window_params = [{transform_indices = @transform_0, window_bounds = array<i64: 1, 1, 2, 64>}, {pipeline_mode = #tpu.pipeline_mode<synchronous>, transform_indices = @transform_1, window_bounds = array<i64: 16, 2>}, {transform_indices = @transform_2, window_bounds = array<i64: 1, 1, 16, 64>}]} {
    %c0 = arith.constant 0 : index
    %c0_0 = arith.constant 0 : index
    %0 = vector.load %arg3[%c0, %c0_0] : memref<16x2xbf16, #tpu.memory_space<vmem>>, vector<16x2xbf16>
    %c0_1 = arith.constant 0 : index
    %c0_2 = arith.constant 0 : index
    %c0_3 = arith.constant 0 : index
    %c0_4 = arith.constant 0 : index
    %1 = vector.load %arg2[%c0_1, %c0_2, %c0_3, %c0_4] : memref<1x1x2x64xbf16, #tpu.memory_space<vmem>>, vector<1x1x2x64xbf16>
    %2 = vector.shape_cast %1 : vector<1x1x2x64xbf16> to vector<2x64xbf16>
    %cst = arith.constant dense<0.000000e+00> : vector<16x64xf32>
    %3 = tpu.matmul %0, %2, %cst {dimension_numbers = #tpu.dot_dimension_numbers<[1], [0], [0], [1], [0, 0, 1, 1], [], []>} : vector<16x2xbf16>, vector<2x64xbf16>, vector<16x64xf32> -> vector<16x64xf32>
    %c0_5 = arith.constant 0 : index
    %c0_6 = arith.constant 0 : index
    %c0_7 = arith.constant 0 : index
    %c0_8 = arith.constant 0 : index
    %4 = vector.load %arg4[%c0_5, %c0_6, %c0_7, %c0_8] : memref<1x1x16x64xf32, #tpu.memory_space<vmem>>, vector<1x1x16x64xf32>
    %5 = vector.shape_cast %4 : vector<1x1x16x64xf32> to vector<16x64xf32>
    %6 = vector.shape_cast %3 : vector<16x64xf32> to vector<1x1x16x64xf32>
    tpu.vector_store %arg4[%c0_5, %c0_6, %c0_7, %c0_8], %6 {strides = array<i32>} : memref<1x1x16x64xf32, #tpu.memory_space<vmem>>, vector<1x1x16x64xf32>,
    return
  }
  func.func @transform_0(%arg0: i32, %arg1: i32) -> (i32, i32, i32, i32) {
    %c0_i32 = arith.constant 0 : i32
    %c0_i32_0 = arith.constant 0 : i32
    %c0_i32_1 = arith.constant 0 : i32
    return %arg0, %arg1, %c0_i32, %c0_i32_0 : i32, i32, i32, i32
  }
  func.func @transform_1(%arg0: i32, %arg1: i32) -> (i32, i32) {
    %c0_i32 = arith.constant 0 : i32
    %c0_i32_0 = arith.constant 0 : i32
    %c0_i32_1 = arith.constant 0 : i32
    return %c0_i32, %c0_i32_0 : i32, i32
  }
  func.func @transform_2(%arg0: i32, %arg1: i32) -> (i32, i32, i32, i32) {
    %c0_i32 = arith.constant 0 : i32
    %c0_i32_0 = arith.constant 0 : i32
    %c0_i32_1 = arith.constant 0 : i32
    return %arg0, %arg1, %c0_i32, %c0_i32_0 : i32, i32, i32, i32
  }
}

</mosaic_0001>

<bundles_post_ra>
// kernel: cdlamba_forward.15
= control target key start
LH: loop header
LB: loop body
LE: loop exit
PB: predicated region body
PF: predicated region fallthrough
CT: control target
= control target key end

     0   :  { %s2166_s24 = smov 0   ;;  %s3298_s0 = inlined_call_operand.vmem [shape: bf16[2,256,64], index: 0, kind: input, shape index: {}]   ;;  %s3299_s1 = inlined_call_operand.vmem [shape: bf16[32,32], index: 1, kind: input, shape index: {}]   ;;  %s3300_s2 = inlined_call_operand.vmem [shape: f32[1,32], index: 2, kind: input, shape index: {}]   ;;  %s3301_s3 = inlined_call_operand.vmem [shape: f32[1,32], index: 3, kind: input, shape index: {}]   ;;  %s3302_s4 = inlined_call_operand.vmem [shape: f32[1,32], index: 4, kind: input, shape index: {}]   ;;  %s3303_s5 = inlined_call_operand.vmem [shape: f32[32,32], index: 5, kind: input, shape index: {}]   ;;  %s3304_s6 = inlined_call_operand.vmem [shape: bf16[2,256,16], index: 6, kind: output, shape index: {0}]   ;;  %s3305_s7 = inlined_call_operand.vmem [shape: bf16[2,256,32], index: 7, kind: output, shape index: {1}]  }
   0x1 LB: > { %s1778_s25 = sadd.s32 4294967295, %s2119_s24   ;;  %p1782_p0 = scmp.ge.s32.totalorder %s2119_s24, 1  ;;  %s2119_s24 = sphi %s2166_s24, %s18_s24  }
   0x2   : > { %p240_p1 = scmp.lt.s32.totalorder %s2119_s24, 3 }
   0x4   : > { %p241_p2 = pnand %p1782_p0, %p240_p1 }
   0x6   : > { %244 = sbr.rel (%p241_p2) target bundleno = 1151 (0x47f), region = 44 }
   0xd   : > { %p277_p3 = scmp.lt.s32.totalorder %s1778_s25, 1  ;;  %v2092_v0 = vld [vmem:[%s3299_s1] sm:$0xff]   ;;  %v2093_v1 = vld [vmem:[%s3299_s1 + $0x8] sm:$0xff]   ;;  %s2121_s11 = smov 96   ;;  %vm460_vm0 = vcmask 261120   ;;  %v3306_v37 = vmov 0.0|0.0  }
   0xe   : > { %1989 = vmatprep.subr.bf16.mxu0 %v2092_v0  ;;  %2059 = vmatprep.subr.bf16.mxu1 %v2092_v0  ;;  %v739_v34 = vld [vmem:[%s3303_s5] sm:$0xff]  ;;  %v740_v35 = vld [vmem:[%s3303_s5 + $0x8] sm:$0xff]  ;;  %v741_v38 = vld [vmem:[%s3303_s5 + $0x10] sm:$0xff]  ;;  %vm2123_vm1 = vmmov 0   ;;  %v3307_v41 = vmov 0.0   ;;  %vm1336_vm2 = vcmask 257024  }
   0xf   : > { %s3345_s25 = smov (!%p277_p3, %s1778_s25), 1  ;;  %1990 = vmatpush3.bf16.msra.mxu0 %v2092_v0  ;;  %2061 = vmatpush3.bf16.msra.mxu1 %v2092_v0  ;;  %v2271_v36 = vpack.c.bf16 %v740_v35, %v739_v34  ;;  %v742_v39 = vld [vmem:[%s3303_s5 + $0x18] sm:$0xff]  ;;  %v2291_v42 = vld [vmem:[%s3300_s2] ss:$0 sm:$0xff]  ;;  %s2125_s27 = smov 112   ;;  %vm1657_vm3 = vcmask 125952  }
  0x10   : > { %s2180_s30 = sshll.u32 %s3345_s25, 7  ;;  %1991 = vmatprep.subr.bf16.mxu0 %v2093_v1  ;;  %2060 = vmatprep.subr.bf16.mxu1 %v2093_v1  ;;  %v2282_v40 = vpack.c.bf16 %v742_v39, %v741_v38 }
  0x11   : > { %s2186_s10 = scalar_lea.vmem %s3298_s0, %s2180_s30  ;;  %s2861_s8 = scalar_lea.vmem %s3305_s7, %s2180_s30 }
  0x12   : > { %v2189_v2 = vld [vmem:[%s2186_s10] sm:$0xff]   ;;  %v2192_v3 = vld [vmem:[%s2186_s10 + $0x8] sm:$0xff]   ;;  %v2195_v4 = vld [vmem:[%s2186_s10 + $0x10] sm:$0xff]  }
  0x13   : > { %v2198_v5 = vld [vmem:[%s2186_s10 + $0x18] sm:$0xff]   ;;  %1992 = vmatpush3.bf16.msra.mxu0 %v2093_v1  ;;  %2062 = vmatpush3.bf16.msra.mxu1 %v2093_v1  ;;  %v2203_v6 = vld [vmem:[%s2186_s10 + $0x20] sm:$0xff]   ;;  %v2206_v7 = vld [vmem:[%s2186_s10 + $0x28] sm:$0xff]  }
  0x14   : > { %416 = vrot.lane.b32.xlu0 %v2189_v2, %s2121_s11  ;;  %420 = vrot.lane.b32.xlu1 %v2195_v4, %s2121_s11  ;;  %v2211_v8 = vld [vmem:[%s2186_s10 + $0x30] sm:$0xff]   ;;  %v2214_v9 = vld [vmem:[%s2186_s10 + $0x38] sm:$0xff]  }
  0x15   : > { %v2219_v10 = vld [vmem:[%s2186_s10 + $0x40] sm:$0xff]   ;;  %v2222_v11 = vld [vmem:[%s2186_s10 + $0x48] sm:$0xff]   ;;  %v2227_v12 = vld [vmem:[%s2186_s10 + $0x50] sm:$0xff]   ;;  %2047 = vmatprep.subr.bf16.mxu1 %v3306_v37 }
  0x16   : > { %v2230_v13 = vld [vmem:[%s2186_s10 + $0x58] sm:$0xff]   ;;  %v2235_v14 = vld [vmem:[%s2186_s10 + $0x60] sm:$0xff]   ;;  %v2238_v15 = vld [vmem:[%s2186_s10 + $0x68] sm:$0xff]  }
  0x17   : > { %3315 = vst [vmem:[#allocation2_spill] sm:$0xff] %v2238_v15  ;;  %v2243_v16 = vld [vmem:[%s2186_s10 + $0x70] sm:$0xff]   ;;  %v323_v17 = vld [vmem:[%s2186_s10 + $0x78] sm:$0xff]  }
  0x18   : > { %418 = vrot.lane.b32.xlu0 %v2192_v3, %s2121_s11  ;;  %422 = vrot.lane.b32.xlu1 %v2198_v5, %s2121_s11  ;;  %3316 = vst [vmem:[#allocation3_spill] sm:$0xff] %v2243_v16 }
  0x1c   : > { %424 = vrot.lane.b32.xlu0 %v2203_v6, %s2121_s11  ;;  %426 = vrot.lane.b32.xlu1 %v2206_v7, %s2121_s11 }
  0x20   : > { %428 = vrot.lane.b32.xlu0 %v2211_v8, %s2121_s11  ;;  %430 = vrot.lane.b32.xlu1 %v2214_v9, %s2121_s11 }
  0x24   : > { %432 = vrot.lane.b32.xlu0 %v2219_v10, %s2121_s11  ;;  %434 = vrot.lane.b32.xlu1 %v2222_v11, %s2121_s11 }
  0x28   : > { %436 = vrot.lane.b32.xlu0 %v2227_v12, %s2121_s11  ;;  %438 = vrot.lane.b32.xlu1 %v2230_v13, %s2121_s11 }
  0x2c   : > { %440 = vrot.lane.b32.xlu0 %v2235_v14, %s2121_s11  ;;  %442 = vrot.lane.b32.xlu1 %v2238_v15, %s2121_s11 }
  0x30   : > { %444 = vrot.lane.b32.xlu0 %v2243_v16, %s2121_s11  ;;  %446 = vrot.lane.b32.xlu1 %v323_v17, %s2121_s11  ;;  %s3199_s11 = scalar_lea.vmem %s3304_s6, %s2180_s30 }
  0x86   : > { %v417_v18 = vpop.permute.xlu0 %416  ;;  %v421_v19 = vpop.permute.xlu1 %420 }
  0x87   : > { %1993 = vmatprep.mubr.msk.bf16.mxu0 %vm460_vm0, %v417_v18 }
  0x8a   : > { %v419_v20 = vpop.permute.xlu0 %418  ;;  %v423_v21 = vpop.permute.xlu1 %422 }
  0x8b   : > { %1994 = vmatmul.mubr.msk.bf16.vlgmr.msra.gmra.mrb[0].mxu0 %vm460_vm0, %v419_v20 }
  0x8c   : > { %1997 = vmatprep.mubr.msk.bf16.mxu0 %vm460_vm0, %v421_v19 }
  0x8e   : > { %v425_v22 = vpop.permute.xlu0 %424  ;;  %v427_v23 = vpop.permute.xlu1 %426 }
  0x92   : > { %v429_v24 = vpop.permute.xlu0 %428  ;;  %v431_v25 = vpop.permute.xlu1 %430 }
  0x93   : > { %1998 = vmatmul.mubr.msk.bf16.gmra.mrb[4].mxu0 %vm460_vm0, %v423_v21 }
  0x94   : > { %2001 = vmatprep.mubr.msk.bf16.mxu0 %vm460_vm0, %v425_v22 }
  0x96   : > { %v433_v26 = vpop.permute.xlu0 %432  ;;  %v435_v27 = vpop.permute.xlu1 %434 }
  0x9a   : > { %v437_v28 = vpop.permute.xlu0 %436  ;;  %v439_v29 = vpop.permute.xlu1 %438 }
  0x9b   : > { %2002 = vmatmul.mubr.msk.bf16.gmra.mrb[8].mxu0 %vm460_vm0, %v427_v23  ;;  %2013 = vmatprep.mubr.msk.bf16.mxu1 %vm460_vm0, %v437_v28 }
  0x9c   : > { %2005 = vmatprep.mubr.msk.bf16.mxu0 %vm460_vm0, %v429_v24  ;;  %2014 = vmatmul.mubr.msk.bf16.vlgmr.msra.gmra.mrb[0].mxu1 %vm460_vm0, %v439_v29 }
  0x9d   : > { %2049 = vmatpush3.bf16.msra.mxu1 %v2271_v36 }
  0x9e   : > { %v441_v30 = vpop.permute.xlu0 %440  ;;  %v443_v31 = vpop.permute.xlu1 %442  ;;  %2050 = vmatprep.subr.bf16.mxu1 %v3306_v37 }
  0x9f   : > { %2017 = vmatprep.mubr.msk.bf16.mxu1 %vm460_vm0, %v441_v30 }
  0xa1   : > { %2052 = vmatpush3.bf16.msra.mxu1 %v2282_v40 }
  0xa2   : > { %v445_v32 = vpop.permute.xlu0 %444  ;;  %v447_v33 = vpop.permute.xlu1 %446  ;;  %2053 = vmatprep.subr.bf16.mxu1 %v3306_v37 }
  0xa3   : > { %2006 = vmatmul.mubr.msk.bf16.gmra.mrb[12].mxu0 %vm460_vm0, %v431_v25 }
  0xa4   : > { %2009 = vmatprep.mubr.msk.bf16.mxu0 %vm460_vm0, %v433_v26  ;;  %2018 = vmatmul.mubr.msk.bf16.gmra.mrb[4].mxu1 %vm460_vm0, %v443_v31 }
  0xa5   : > { %2021 = vmatprep.mubr.msk.bf16.mxu1 %vm460_vm0, %v445_v32 }
  0xab   : > { %2010 = vmatmul.mubr.msk.bf16.gmra.mrb[16].mxu0 %vm460_vm0, %v435_v27 }
  0xac   : > { %2022 = vmatmul.mubr.msk.bf16.gmra.mrb[8].mxu1 %vm460_vm0, %v447_v33 }
  0xad   : > { %2033 = vmatprep.mubr.msk.f32.mxu1 %vm2123_vm1, %v3307_v41 }
 0x15e   : > { %v1995_v43 = vpop.f32.mrb[0].mxu0 }
 0x15f   : > { %v543_v44 = vpop.f32.mrb[1].mxu0  ;;  %v2297_v48 = vadd.f32 %v1995_v43, %v2291_v42 }
 0x160   : > { %v2294_v45 = vadd.f32 %v2291_v42, %v543_v44  ;;  %v1996_v46 = vpop.f32.mrb[2].mxu0 }
 0x161   : > { %v546_v47 = vpop.f32.mrb[3].mxu0  ;;  %v2305_v51 = vadd.f32 %v1996_v46, %v2291_v42  ;;  %v673_v54 = vsel %vm460_vm0, %v2297_v48, 0.0 }
 0x162   : > { %v2300_v49 = vadd.f32 %v2291_v42, %v546_v47  ;;  %v670_v50 = vsel %vm460_vm0, %v2294_v45, 0.0 }
 0x163   : > { %v675_v58 = vsel %vm460_vm0, %v2305_v51, 0.0 }
 0x164   : > { %v671_v52 = vsel %vm460_vm0, %v2300_v49, 0.0 }
 0x165   : > { %v672_v53 = vadd.f32 %v671_v52, %v670_v50 }
 0x166   : > { %v1999_v55 = vpop.f32.mrb[4].mxu0 }
 0x167   : > { %v674_v56 = vadd.f32 %v673_v54, %v672_v53  ;;  %v559_v57 = vpop.f32.mrb[5].mxu0  ;;  %v2317_v63 = vadd.f32 %v1999_v55, %v2291_v42 }
 0x168   : > { %v2314_v59 = vadd.f32 %v2291_v42, %v559_v57  ;;  %v2000_v60 = vpop.f32.mrb[6].mxu0 }
 0x169   : > { %v676_v61 = vadd.f32 %v675_v58, %v674_v56  ;;  %v562_v62 = vpop.f32.mrb[7].mxu0  ;;  %v2325_v18 = vadd.f32 %v2000_v60, %v2291_v42  ;;  %v681_v21 = vsel %vm460_vm0, %v2317_v63, 0.0 }
 0x16a   : > { %v677_v0 = vsel %vm460_vm0, %v2314_v59, 0.0  ;;  %v2322_v1 = vadd.f32 %v2291_v42, %v562_v62 }
 0x16b   : > { %v678_v17 = vadd.f32 %v677_v0, %v676_v61  ;;  %v683_v26 = vsel %vm460_vm0, %v2325_v18, 0.0 }
 0x16c   : > { %v679_v19 = vsel %vm460_vm0, %v2322_v1, 0.0 }
 0x16d   : > { %v680_v20 = vadd.f32 %v679_v19, %v678_v17 }
 0x16e   : > { %v2003_v22 = vpop.f32.mrb[8].mxu0 }
 0x16f   : > { %v682_v23 = vadd.f32 %v681_v21, %v680_v20  ;;  %v575_v24 = vpop.f32.mrb[9].mxu0  ;;  %v2331_v25 = vpop.f32.mrb[0].mxu1  ;;  %v2339_v33 = vadd.f32 %v2003_v22, %v2291_v42 }
 0x170   : > { %v2336_v27 = vadd.f32 %v2291_v42, %v575_v24  ;;  %v2004_v28 = vpop.f32.mrb[10].mxu0  ;;  %v623_v29 = vpop.f32.mrb[1].mxu1 }
 0x171   : > { %v684_v30 = vadd.f32 %v683_v26, %v682_v23  ;;  %v578_v31 = vpop.f32.mrb[11].mxu0  ;;  %v2016_v32 = vpop.f32.mrb[2].mxu1  ;;  %v2347_v43 = vadd.f32 %v2004_v28, %v2291_v42  ;;  %v689_v47 = vsel %vm460_vm0, %v2339_v33, 0.0 }
 0x172   : > { %v685_v34 = vsel %vm460_vm0, %v2336_v27, 0.0  ;;  %v2344_v35 = vadd.f32 %v2291_v42, %v578_v31  ;;  %v626_v38 = vpop.f32.mrb[3].mxu1 }
 0x173   : > { %v686_v39 = vadd.f32 %v685_v34, %v684_v30  ;;  %v691_v55 = vsel %vm460_vm0, %v2347_v43, 0.0 }
 0x174   : > { %v687_v44 = vsel %vm460_vm0, %v2344_v35, 0.0 }
 0x175   : > { %v688_v46 = vadd.f32 %v687_v44, %v686_v39 }
 0x176   : > { %v2007_v50 = vpop.f32.mrb[12].mxu0 }
 0x177   : > { %v690_v52 = vadd.f32 %v689_v47, %v688_v46  ;;  %v591_v53 = vpop.f32.mrb[13].mxu0  ;;  %v2019_v54 = vpop.f32.mrb[4].mxu1  ;;  %v2359_v0 = vadd.f32 %v2007_v50, %v2291_v42 }
 0x178   : > { %v2356_v56 = vadd.f32 %v2291_v42, %v591_v53  ;;  %v2008_v57 = vpop.f32.mrb[14].mxu0  ;;  %v639_v58 = vpop.f32.mrb[5].mxu1 }
 0x179   : > { %v692_v60 = vadd.f32 %v691_v55, %v690_v52  ;;  %v594_v61 = vpop.f32.mrb[15].mxu0  ;;  %v2020_v62 = vpop.f32.mrb[6].mxu1  ;;  %v2367_v22 = vadd.f32 %v2008_v57, %v2291_v42  ;;  %v697_v26 = vsel %vm460_vm0, %v2359_v0, 0.0 }
 0x17a   : > { %v693_v17 = vsel %vm460_vm0, %v2356_v56, 0.0  ;;  %v2364_v19 = vadd.f32 %v2291_v42, %v594_v61  ;;  %v642_v20 = vpop.f32.mrb[7].mxu1 }
 0x17b   : > { %v694_v21 = vadd.f32 %v693_v17, %v692_v60  ;;  %v699_v39 = vsel %vm460_vm0, %v2367_v22, 0.0 }
 0x17c   : > { %v695_v23 = vsel %vm460_vm0, %v2364_v19, 0.0 }
 0x17d   : > { %v696_v24 = vadd.f32 %v695_v23, %v694_v21 }
 0x17e   : > { %v2011_v28 = vpop.f32.mrb[16].mxu0 }
 0x17f   : > { %v698_v30 = vadd.f32 %v697_v26, %v696_v24  ;;  %v607_v31 = vpop.f32.mrb[17].mxu0  ;;  %v2023_v34 = vpop.f32.mrb[8].mxu1  ;;  %v2379_v55 = vadd.f32 %v2011_v28, %v2291_v42  ;;  %v2392_v24 = vadd.f32 %v2291_v42, %v623_v29 }
 0x180   : > { %v2376_v44 = vadd.f32 %v2291_v42, %v607_v31  ;;  %v2012_v46 = vpop.f32.mrb[18].mxu0  ;;  %v655_v47 = vpop.f32.mrb[9].mxu1 }
 0x181   : > { %v700_v50 = vadd.f32 %v699_v39, %v698_v30  ;;  %v610_v52 = vpop.f32.mrb[19].mxu0  ;;  %v2024_v53 = vpop.f32.mrb[10].mxu1  ;;  %v2387_v21 = vadd.f32 %v2012_v46, %v2291_v42  ;;  %v705_v28 = vsel %vm460_vm0, %v2379_v55, 0.0  ;;  %v709_v39 = vsel %vm460_vm0, %v2392_v24, 0.0 }
 0x182   : > { %v701_v57 = vsel %vm460_vm0, %v2376_v44, 0.0  ;;  %v2384_v60 = vadd.f32 %v2291_v42, %v610_v52  ;;  %v658_v61 = vpop.f32.mrb[11].mxu1  ;;  %v2401_v46 = vadd.f32 %v2291_v42, %v626_v38  ;;  %v2405_v52 = vadd.f32 %v2331_v25, %v2291_v42 }
 0x183   : > { %v702_v17 = vadd.f32 %v701_v57, %v700_v50  ;;  %v707_v31 = vsel %vm460_vm0, %v2387_v21, 0.0  ;;  %v2408_v57 = vadd.f32 %v2016_v32, %v2291_v42  ;;  %v2422_v32 = vadd.f32 %v2291_v42, %v642_v20 }
 0x184   : > { %v703_v23 = vsel %vm460_vm0, %v2384_v60, 0.0  ;;  %v713_v38 = vsel %vm460_vm0, %v2405_v52, 0.0 }
 0x185   : > { %v704_v26 = vadd.f32 %v703_v23, %v702_v17  ;;  %v711_v17 = vsel %vm460_vm0, %v2401_v46, 0.0  ;;  %v2413_v23 = vadd.f32 %v2291_v42, %v639_v58 }
 0x187   : > { %v706_v30 = vadd.f32 %v705_v28, %v704_v26  ;;  %v717_v25 = vsel %vm460_vm0, %v2413_v23, 0.0 }
 0x189   : > { %v708_v50 = vadd.f32 %v707_v31, %v706_v30  ;;  %v715_v30 = vsel %vm460_vm0, %v2408_v57, 0.0 }
 0x18b   : > { %v710_v29 = vadd.f32 %v709_v39, %v708_v50  ;;  %v2425_v39 = vadd.f32 %v2019_v54, %v2291_v42  ;;  %v2428_v50 = vadd.f32 %v2020_v62, %v2291_v42  ;;  %v2442_v62 = vadd.f32 %v2291_v42, %v658_v61 }
 0x18d   : > { %v712_v26 = vadd.f32 %v711_v17, %v710_v29  ;;  %v719_v29 = vsel %vm460_vm0, %v2422_v32, 0.0  ;;  %v2433_v17 = vadd.f32 %v2291_v42, %v655_v47 }
 0x18f   : > { %v714_v28 = vadd.f32 %v713_v38, %v712_v26  ;;  %v721_v38 = vsel %vm460_vm0, %v2425_v39, 0.0  ;;  %v725_v54 = vsel %vm460_vm0, %v2433_v17, 0.0 }
 0x191   : > { %v716_v31 = vadd.f32 %v715_v30, %v714_v28  ;;  %v723_v28 = vsel %vm460_vm0, %v2428_v50, 0.0 }
 0x193   : > { %v718_v58 = vadd.f32 %v717_v25, %v716_v31  ;;  %v2445_v25 = vadd.f32 %v2023_v34, %v2291_v42  ;;  %v2448_v31 = vadd.f32 %v2024_v53, %v2291_v42  ;;  %v3317_v42 = vmov 0.0  }
 0x194   : > { %v3318_v53 = vmov 0.0|0.0  }
 0x195   : > { %v720_v26 = vadd.f32 %v719_v29, %v718_v58  ;;  %v727_v58 = vsel %vm460_vm0, %v2442_v62, 0.0  ;;  %v731_v61 = vsel %vm460_vm0, %v2448_v31, 0.0 }
 0x197   : > { %v722_v20 = vadd.f32 %v721_v38, %v720_v26  ;;  %v729_v26 = vsel %vm460_vm0, %v2445_v25, 0.0 }
 0x199   : > { %v724_v30 = vadd.f32 %v723_v28, %v722_v20 }
 0x19b   : > { %v726_v47 = vadd.f32 %v725_v54, %v724_v30 }
 0x19d   : > { %v728_v29 = vadd.f32 %v727_v58, %v726_v47  ;;  %v817_v47 = vlaneseq }
 0x19f   : > { %v730_v38 = vadd.f32 %v729_v26, %v728_v29  ;;  %v2462_v29 = vshrl.u32 %v817_v47, 7 }
 0x1a1   : > { %v732_v37 = vadd.f32 %v731_v61, %v730_v38  ;;  %v3308_v38 = vsub.s32 0, %v2462_v29 }
 0x1a3   : > { %v733_v20 = vrot.slane %v732_v37, 4 }
 0x1a5   : > { %v734_v28 = vadd.f32 %v733_v20, %v732_v37 }
 0x1a7   : > { %v735_v34 = vrot.slane %v734_v28, 2 }
 0x1a9   : > { %v736_v41 = vadd.f32 %v735_v34, %v734_v28 }
 0x1ab   : > { %v737_v54 = vrot.slane %v736_v41, 1 }
 0x1ad   : > { %v738_v30 = vadd.f32 %v737_v54, %v736_v41 }
 0x1af   : > { %2034 = vmatmul.mubr.msk.f32.vlgmr.msra.gmra.mrb[12].mxu1 %vm460_vm0, %v738_v30 }
 0x1b0   : > { %2055 = vmatpush3.bf16.msra.mxu1 %v2271_v36  ;;  %2044 = vmatprep.mubr.msk.f32.mxu1 %vm2123_vm1, %v3317_v42 }
 0x1b1   : > { %2056 = vmatprep.subr.bf16.mxu1 %v3318_v53 }
 0x1b4   : > { %2058 = vmatpush3.bf16.msra.mxu1 %v2282_v40 }
 0x282   : > { %v812_v58 = vpop.f32.mrb[12].mxu1 }
 0x283   : > { %v2035_v37 = vpop.f32.mrb[13].mxu1  ;;  %v816_v26 = vmul.f32 0.00390625, %v812_v58 }
 0x285   : > { %v2467_v41 = vrot.slane %v816_v26, %v3308_v38 }
 0x287   : > { %v2471_v36 = vsub.f32 %v2294_v45, %v2467_v41  ;;  %v2475_v61 = vsub.f32 %v2300_v49, %v2467_v41  ;;  %v2479_v40 = vsub.f32 %v2297_v48, %v2467_v41  ;;  %v2483_v20 = vsub.f32 %v2305_v51, %v2467_v41 }
 0x288   : > { %v2491_v45 = vsub.f32 %v2314_v59, %v2467_v41  ;;  %v2497_v48 = vsub.f32 %v2322_v1, %v2467_v41  ;;  %v2505_v53 = vsub.f32 %v2317_v63, %v2467_v41  ;;  %v2512_v1 = vsub.f32 %v2325_v18, %v2467_v41 }
 0x289   : > { %v853_v28 = vmul.f32 %v2471_v36, %v2471_v36  ;;  %v854_v34 = vmul.f32 %v2475_v61, %v2475_v61  ;;  %v855_v49 = vmul.f32 %v2479_v40, %v2479_v40  ;;  %v856_v51 = vmul.f32 %v2483_v20, %v2483_v20 }
 0x28a   : > { %v857_v59 = vmul.f32 %v2491_v45, %v2491_v45  ;;  %v858_v37 = vmul.f32 %v2497_v48, %v2497_v48  ;;  %v2519_v63 = vsub.f32 %v2336_v27, %v2467_v41  ;;  %v2526_v18 = vsub.f32 %v2344_v35, %v2467_v41 }
 0x28b   : > { %v885_v54 = vsel %vm460_vm0, %v853_v28, 0.0  ;;  %v886_v30 = vsel %vm460_vm0, %v854_v34, 0.0  ;;  %v888_v47 = vsel %vm460_vm0, %v855_v49, 0.0  ;;  %v890_v26 = vsel %vm460_vm0, %v856_v51, 0.0 }
 0x28c   : > { %v887_v42 = vadd.f32 %v886_v30, %v885_v54  ;;  %v859_v34 = vmul.f32 %v2505_v53, %v2505_v53  ;;  %v892_v49 = vsel %vm460_vm0, %v857_v59, 0.0  ;;  %v860_v30 = vmul.f32 %v2512_v1, %v2512_v1 }
 0x28d   : > { %v894_v51 = vsel %vm460_vm0, %v858_v37, 0.0  ;;  %v2533_v27 = vsub.f32 %v2339_v33, %v2467_v41  ;;  %v2540_v35 = vsub.f32 %v2347_v43, %v2467_v41  ;;  %v2547_v33 = vsub.f32 %v2356_v56, %v2467_v41 }
 0x28e   : > { %v889_v58 = vadd.f32 %v888_v47, %v887_v42  ;;  %v861_v47 = vmul.f32 %v2519_v63, %v2519_v63  ;;  %v896_v59 = vsel %vm460_vm0, %v859_v34, 0.0  ;;  %v898_v37 = vsel %vm460_vm0, %v860_v30, 0.0 }
 0x28f   : > { %v2554_v43 = vsub.f32 %v2364_v19, %v2467_v41  ;;  %v2561_v56 = vsub.f32 %v2359_v0, %v2467_v41  ;;  %v2568_v19 = vsub.f32 %v2367_v22, %v2467_v41  ;;  %v2575_v0 = vsub.f32 %v2376_v44, %v2467_v41 }
 0x290   : > { %v891_v28 = vadd.f32 %v890_v26, %v889_v58  ;;  %v862_v26 = vmul.f32 %v2526_v18, %v2526_v18  ;;  %v900_v34 = vsel %vm460_vm0, %v861_v47, 0.0  ;;  %v2582_v22 = vsub.f32 %v2384_v60, %v2467_v41 }
 0x291   : > { %v2589_v44 = vsub.f32 %v2379_v55, %v2467_v41  ;;  %v2596_v60 = vsub.f32 %v2387_v21, %v2467_v41  ;;  %v2603_v55 = vsub.f32 %v2392_v24, %v2467_v41  ;;  %v2610_v21 = vsub.f32 %v2401_v46, %v2467_v41 }
 0x292   : > { %v893_v54 = vadd.f32 %v892_v49, %v891_v28  ;;  %v863_v49 = vmul.f32 %v2533_v27, %v2533_v27  ;;  %v902_v30 = vsel %vm460_vm0, %v862_v26, 0.0  ;;  %v2617_v24 = vsub.f32 %v2405_v52, %v2467_v41 }
 0x293   : > { %v2624_v46 = vsub.f32 %v2408_v57, %v2467_v41  ;;  %v2631_v52 = vsub.f32 %v2413_v23, %v2467_v41  ;;  %v2638_v57 = vsub.f32 %v2422_v32, %v2467_v41  ;;  %v2645_v23 = vsub.f32 %v2425_v39, %v2467_v41 }
 0x294   : > { %v895_v42 = vadd.f32 %v894_v51, %v893_v54  ;;  %v864_v51 = vmul.f32 %v2540_v35, %v2540_v35  ;;  %v904_v47 = vsel %vm460_vm0, %v863_v49, 0.0  ;;  %v2652_v32 = vsub.f32 %v2428_v50, %v2467_v41 }
 0x295   : > { %v2659_v39 = vsub.f32 %v2433_v17, %v2467_v41  ;;  %v2666_v50 = vsub.f32 %v2442_v62, %v2467_v41  ;;  %v2673_v17 = vsub.f32 %v2445_v25, %v2467_v41  ;;  %v2680_v62 = vsub.f32 %v2448_v31, %v2467_v41 }
 0x296   : > { %v897_v58 = vadd.f32 %v896_v59, %v895_v42  ;;  %v865_v59 = vmul.f32 %v2547_v33, %v2547_v33  ;;  %v906_v26 = vsel %vm460_vm0, %v864_v51, 0.0 }
 0x297   : > { %3319 = vst [vmem:[#allocation4_spill] sm:$0xff] %v2673_v17  ;;  %3320 = vst [vmem:[#allocation5_spill] sm:$0xff] %v2680_v62  ;;  %v883_v25 = vmul.f32 %v2673_v17, %v2673_v17 }
 0x298   : > { %v899_v28 = vadd.f32 %v898_v37, %v897_v58  ;;  %v866_v37 = vmul.f32 %v2554_v43, %v2554_v43  ;;  %v908_v49 = vsel %vm460_vm0, %v865_v59, 0.0 }
 0x299   : > { %v944_v31 = vsel %vm460_vm0, %v883_v25, 0.0  ;;  %v1145_v25 = vunpack.c.h.bf16 %v2189_v2 }
 0x29a   : > { %v901_v54 = vadd.f32 %v900_v34, %v899_v28  ;;  %v867_v34 = vmul.f32 %v2561_v56, %v2561_v56  ;;  %v910_v51 = vsel %vm460_vm0, %v866_v37, 0.0 }
 0x29c   : > { %v903_v42 = vadd.f32 %v902_v30, %v901_v54  ;;  %v868_v30 = vmul.f32 %v2568_v19, %v2568_v19  ;;  %v912_v59 = vsel %vm460_vm0, %v867_v34, 0.0 }
 0x29e   : > { %v905_v58 = vadd.f32 %v904_v47, %v903_v42  ;;  %v869_v47 = vmul.f32 %v2575_v0, %v2575_v0  ;;  %v914_v37 = vsel %vm460_vm0, %v868_v30, 0.0 }
 0x2a0   : > { %v907_v28 = vadd.f32 %v906_v26, %v905_v58  ;;  %v870_v26 = vmul.f32 %v2582_v22, %v2582_v22  ;;  %v916_v34 = vsel %vm460_vm0, %v869_v47, 0.0 }
 0x2a2   : > { %v909_v54 = vadd.f32 %v908_v49, %v907_v28  ;;  %v871_v49 = vmul.f32 %v2589_v44, %v2589_v44  ;;  %v918_v30 = vsel %vm460_vm0, %v870_v26, 0.0 }
 0x2a4   : > { %v911_v42 = vadd.f32 %v910_v51, %v909_v54  ;;  %v872_v51 = vmul.f32 %v2596_v60, %v2596_v60  ;;  %v920_v47 = vsel %vm460_vm0, %v871_v49, 0.0 }
 0x2a6   : > { %v913_v58 = vadd.f32 %v912_v59, %v911_v42  ;;  %v873_v59 = vmul.f32 %v2603_v55, %v2603_v55  ;;  %v922_v26 = vsel %vm460_vm0, %v872_v51, 0.0 }
 0x2a8   : > { %v915_v28 = vadd.f32 %v914_v37, %v913_v58  ;;  %v874_v37 = vmul.f32 %v2610_v21, %v2610_v21  ;;  %v924_v49 = vsel %vm460_vm0, %v873_v59, 0.0 }
 0x2aa   : > { %v917_v54 = vadd.f32 %v916_v34, %v915_v28  ;;  %v875_v34 = vmul.f32 %v2617_v24, %v2617_v24  ;;  %v926_v51 = vsel %vm460_vm0, %v874_v37, 0.0 }
 0x2ac   : > { %v919_v42 = vadd.f32 %v918_v30, %v917_v54  ;;  %v876_v30 = vmul.f32 %v2624_v46, %v2624_v46  ;;  %v928_v59 = vsel %vm460_vm0, %v875_v34, 0.0 }
 0x2ae   : > { %v921_v58 = vadd.f32 %v920_v47, %v919_v42  ;;  %v877_v47 = vmul.f32 %v2631_v52, %v2631_v52  ;;  %v930_v37 = vsel %vm460_vm0, %v876_v30, 0.0 }
 0x2b0   : > { %v923_v28 = vadd.f32 %v922_v26, %v921_v58  ;;  %v878_v26 = vmul.f32 %v2638_v57, %v2638_v57  ;;  %v932_v34 = vsel %vm460_vm0, %v877_v47, 0.0 }
 0x2b2   : > { %v925_v54 = vadd.f32 %v924_v49, %v923_v28  ;;  %v879_v49 = vmul.f32 %v2645_v23, %v2645_v23  ;;  %v934_v30 = vsel %vm460_vm0, %v878_v26, 0.0 }
 0x2b4   : > { %v927_v42 = vadd.f32 %v926_v51, %v925_v54  ;;  %v880_v51 = vmul.f32 %v2652_v32, %v2652_v32  ;;  %v936_v47 = vsel %vm460_vm0, %v879_v49, 0.0  ;;  %v884_v49 = vmul.f32 %v2680_v62, %v2680_v62 }
 0x2b6   : > { %v929_v58 = vadd.f32 %v928_v59, %v927_v42  ;;  %v881_v59 = vmul.f32 %v2659_v39, %v2659_v39  ;;  %v938_v26 = vsel %vm460_vm0, %v880_v51, 0.0 }
 0x2b8   : > { %v931_v28 = vadd.f32 %v930_v37, %v929_v58  ;;  %v882_v37 = vmul.f32 %v2666_v50, %v2666_v50 }
 0x2ba   : > { %v933_v54 = vadd.f32 %v932_v34, %v931_v28  ;;  %v940_v34 = vsel %vm460_vm0, %v881_v59, 0.0 }
 0x2bc   : > { %v935_v42 = vadd.f32 %v934_v30, %v933_v54  ;;  %v942_v30 = vsel %vm460_vm0, %v882_v37, 0.0  ;;  %v1144_v37 = vunpack.c.l.bf16 %v2189_v2 }
 0x2be   : > { %v937_v58 = vadd.f32 %v936_v47, %v935_v42  ;;  %v946_v47 = vsel %vm460_vm0, %v884_v49, 0.0  ;;  %v1147_v49 = vunpack.c.h.bf16 %v2192_v3 }
 0x2c0   : > { %v939_v28 = vadd.f32 %v938_v26, %v937_v58 }
 0x2c2   : > { %v941_v54 = vadd.f32 %v940_v34, %v939_v28 }
 0x2c4   : > { %v943_v42 = vadd.f32 %v942_v30, %v941_v54  ;;  %v1146_v54 = vunpack.c.l.bf16 %v2192_v3  ;;  %v1149_v30 = vunpack.c.h.bf16 %v2195_v4 }
 0x2c6   : > { %v945_v41 = vadd.f32 %v944_v31, %v943_v42 }
 0x2c8   : > { %v947_v38 = vadd.f32 %v946_v47, %v945_v41  ;;  %v3321_v41 = vsub.s32 0, %v2462_v29 }
 0x2ca   : > { %v948_v51 = vrot.slane %v947_v38, 4 }
 0x2cc   : > { %v949_v58 = vadd.f32 %v948_v51, %v947_v38  ;;  %v1148_v38 = vunpack.c.l.bf16 %v2195_v4 }
 0x2ce   : > { %v950_v26 = vrot.slane %v949_v58, 2 }
 0x2d0   : > { %v951_v16 = vadd.f32 %v950_v26, %v949_v58 }
 0x2d2   : > { %v952_v15 = vrot.slane %v951_v16, 1 }
 0x2d4   : > { %v953_v17 = vadd.f32 %v952_v15, %v951_v16  ;;  %v1150_v15 = vunpack.c.l.bf16 %v2198_v5  ;;  %v1151_v16 = vunpack.c.h.bf16 %v2198_v5 }
 0x2d6   : > { %2045 = vmatmul.mubr.msk.f32.vlgmr.msra.gmra.mrb[14].mxu1 %vm460_vm0, %v953_v17 }
 0x3a9   : > { %v1023_v59 = vpop.f32.mrb[14].mxu1 }
 0x3aa   : > { %v1027_v28 = vmul.f32 0.00390625, %v1023_v59  ;;  %v2046_v34 = vpop.f32.mrb[15].mxu1 }
 0x3ac   : > { %v1028_v62 = vadd.f32 1e-05, %v1027_v28 }
 0x3ae   : > { %2110 = vrsqrt.f32 %v1028_v62 }
 0x3b8   : > { %v2111_v58 = vpop.eup %2110 }
 0x3b9   : > { %v1033_v47 = vrot.slane %v2111_v58, %v3321_v41 }
 0x3bb   : > { %v1034_v28 = vmul.f32 %v1033_v47, %v2471_v36  ;;  %v1035_v34 = vmul.f32 %v1033_v47, %v2475_v61  ;;  %v1036_v17 = vmul.f32 %v1033_v47, %v2479_v40  ;;  %v1037_v42 = vmul.f32 %v1033_v47, %v2483_v20 }
 0x3bc   : > { %v1038_v31 = vmul.f32 %v1033_v47, %v2491_v45  ;;  %v1039_v29 = vmul.f32 %v1033_v47, %v2497_v48  ;;  %v1040_v41 = vmul.f32 %v1033_v47, %v2505_v53  ;;  %v1041_v58 = vmul.f32 %v1033_v47, %v2512_v1 }
 0x3bd   : > { %v2731_v26 = vmul.f32 %v1033_v47, %v2519_v63  ;;  %v2734_v59 = vmul.f32 %v1033_v47, %v2526_v18  ;;  %v2737_v36 = vmul.f32 %v1033_v47, %v2533_v27  ;;  %v2740_v61 = vmul.f32 %v1033_v47, %v2540_v35 }
 0x3be   : > { %v2743_v40 = vmul.f32 %v1033_v47, %v2547_v33  ;;  %v2746_v20 = vmul.f32 %v1033_v47, %v2554_v43  ;;  %v2749_v45 = vmul.f32 %v1033_v47, %v2561_v56  ;;  %v2752_v48 = vmul.f32 %v1033_v47, %v2568_v19  ;;  %v2781_v56 = vld [vmem:[%s3301_s3] ss:$0 sm:$0xff] }
 0x3bf   : > { %v2755_v53 = vmul.f32 %v1033_v47, %v2575_v0  ;;  %v2758_v1 = vmul.f32 %v1033_v47, %v2582_v22  ;;  %v2761_v63 = vmul.f32 %v1033_v47, %v2589_v44  ;;  %v2764_v18 = vmul.f32 %v1033_v47, %v2596_v60 }
 0x3c0   : > { %v2767_v27 = vmul.f32 %v1033_v47, %v2603_v55  ;;  %v2770_v35 = vmul.f32 %v1033_v47, %v2610_v21  ;;  %v2773_v33 = vmul.f32 %v1033_v47, %v2617_v24  ;;  %v2776_v43 = vmul.f32 %v1033_v47, %v2624_v46  ;;  %v3322_v21 = vld [vmem:[#allocation4_spill] sm:$0xff]  ;;  %v3323_v46 = vld [vmem:[#allocation5_spill] sm:$0xff] }
 0x3c1   : > { %v2784_v19 = vmul.f32 %v1033_v47, %v2631_v52  ;;  %v2787_v0 = vmul.f32 %v1033_v47, %v2638_v57  ;;  %v2790_v22 = vmul.f32 %v1033_v47, %v2645_v23  ;;  %v2793_v44 = vmul.f32 %v1033_v47, %v2652_v32  ;;  %v2810_v57 = vld [vmem:[%s3302_s4] ss:$0 sm:$0xff] }
 0x3c2   : > { %v2796_v60 = vmul.f32 %v1033_v47, %v2659_v39  ;;  %v2799_v55 = vmul.f32 %v1033_v47, %v2666_v50  ;;  %v2802_v24 = vmul.f32 %v1033_v47, %v3322_v21  ;;  %v2805_v52 = vmul.f32 %v1033_v47, %v3323_v46 }
 0x3c3   : > { %v1074_v23 = vmul.f32 %v2781_v56, %v1035_v34  ;;  %v1073_v32 = vmul.f32 %v2781_v56, %v1034_v28  ;;  %v1076_v39 = vmul.f32 %v2781_v56, %v1037_v42  ;;  %v1075_v50 = vmul.f32 %v2781_v56, %v1036_v17 }
 0x3c4   : > { %v1078_v51 = vmul.f32 %v2781_v56, %v1039_v29  ;;  %v1077_v21 = vmul.f32 %v2781_v56, %v1038_v31  ;;  %v1080_v47 = vmul.f32 %v2781_v56, %v1041_v58  ;;  %v1079_v46 = vmul.f32 %v2781_v56, %v1040_v41 }
 0x3c5   : > { %v2821_v62 = vadd.f32 %v2810_v57, %v1074_v23  ;;  %v2824_v34 = vadd.f32 %v2810_v57, %v1073_v32  ;;  %v2827_v28 = vadd.f32 %v2810_v57, %v1076_v39  ;;  %v2830_v17 = vadd.f32 %v2810_v57, %v1075_v50 }
 0x3c6   : > { %v2833_v42 = vadd.f32 %v2810_v57, %v1078_v51  ;;  %v2836_v31 = vadd.f32 %v2810_v57, %v1077_v21  ;;  %v2839_v29 = vadd.f32 %v2810_v57, %v1080_v47  ;;  %v2842_v41 = vadd.f32 %v2810_v57, %v1079_v46 }
 0x3c7   : > { %1403 = vrot.lane.b32.xlu1 %v2821_v62, %s2125_s27  ;;  %v1177_v58 = vadd.f32 %v1145_v25, %v2821_v62  ;;  %1401 = vrot.lane.b32.xlu0 %v2824_v34, %s2125_s27  ;;  %v1176_v51 = vadd.f32 %v1144_v37, %v2824_v34  ;;  %v1179_v23 = vadd.f32 %v1147_v49, %v2827_v28 }
 0x3c8   : > { %v1178_v25 = vadd.f32 %v1146_v54, %v2830_v17  ;;  %v1181_v2 = vadd.f32 %v1149_v30, %v2833_v42  ;;  %v1180_v37 = vadd.f32 %v1148_v38, %v2836_v31  ;;  %v1183_v49 = vadd.f32 %v1151_v16, %v2839_v29  ;;  %v3324_v38 = vld [vmem:[#allocation2_spill] sm:$0xff] }
 0x3c9   : > { %v1898_v32 = vpack.c.bf16 %v1177_v58, %v1177_v58  ;;  %v1897_v39 = vpack.c.bf16 %v1176_v51, %v1176_v51  ;;  %v1900_v3 = vpack.c.bf16 %v1179_v23, %v1179_v23  ;;  %v1182_v54 = vadd.f32 %v1150_v15, %v2842_v41 }
 0x3ca   : > { %v1899_v50 = vpack.c.bf16 %v1178_v25, %v1178_v25  ;;  %v1902_v30 = vpack.c.bf16 %v1181_v2, %v1181_v2  ;;  %v1901_v21 = vpack.c.bf16 %v1180_v37, %v1180_v37  ;;  %v1904_v4 = vpack.c.bf16 %v1183_v49, %v1183_v49 }
 0x3cb   : > { %v1170_v47 = vunpack.c.l.bf16 %v3324_v38  ;;  %1338 = vst.msk [vmem:[%s2861_s8 + $0x4] sm:$0xf] %vm1336_vm2, %v1898_v32  ;;  %1337 = vst.msk [vmem:[%s2861_s8] sm:$0xf] %vm1336_vm2, %v1897_v39  ;;  %1407 = vrot.lane.b32.xlu1 %v2827_v28, %s2125_s27  ;;  %1405 = vrot.lane.b32.xlu0 %v2830_v17, %s2125_s27  ;;  %v1903_v5 = vpack.c.bf16 %v1182_v54, %v1182_v54  ;;  %v1082_v15 = vmul.f32 %v2781_v56, %v2734_v59 }
 0x3cc   : > { %1340 = vst.msk [vmem:[%s2861_s8 + $0xc] sm:$0xf] %vm1336_vm2, %v1900_v3  ;;  %v1081_v16 = vmul.f32 %v2781_v56, %v2731_v26  ;;  %1339 = vst.msk [vmem:[%s2861_s8 + $0x8] sm:$0xf] %vm1336_vm2, %v1899_v50  ;;  %v1084_v46 = vmul.f32 %v2781_v56, %v2740_v61  ;;  %v1083_v58 = vmul.f32 %v2781_v56, %v2737_v36  ;;  %v1171_v37 = vunpack.c.h.bf16 %v3324_v38 }
 0x3cd   : > { %1342 = vst.msk [vmem:[%s2861_s8 + $0x14] sm:$0xf] %vm1336_vm2, %v1902_v30  ;;  %1341 = vst.msk [vmem:[%s2861_s8 + $0x10] sm:$0xf] %vm1336_vm2, %v1901_v21  ;;  %v1086_v59 = vmul.f32 %v2781_v56, %v2746_v20  ;;  %v1085_v26 = vmul.f32 %v2781_v56, %v2743_v40  ;;  %v2912_v51 = vadd.f32 %v2810_v57, %v1082_v15  ;;  %v3326_v49 = vunpack.c.l.bf16 %v2203_v6 }
 0x3ce   : > { %1344 = vst.msk [vmem:[%s2861_s8 + $0x1c] sm:$0xf] %vm1336_vm2, %v1904_v4  ;;  %1343 = vst.msk [vmem:[%s2861_s8 + $0x18] sm:$0xf] %vm1336_vm2, %v1903_v5  ;;  %v2915_v23 = vadd.f32 %v2810_v57, %v1081_v16  ;;  %v1088_v61 = vmul.f32 %v2781_v56, %v2752_v48  ;;  %v1087_v36 = vmul.f32 %v2781_v56, %v2749_v45  ;;  %v3325_v45 = vunpack.c.h.bf16 %v2203_v6 }
 0x3cf   : > { %v2922_v25 = vadd.f32 %v2810_v57, %v1084_v46  ;;  %v2925_v20 = vadd.f32 %v2810_v57, %v1083_v58  ;;  %v2928_v40 = vadd.f32 %v2810_v57, %v1086_v59  ;;  %v2931_v2 = vadd.f32 %v2810_v57, %v1085_v26  ;;  %1411 = vrot.lane.b32.xlu1 %v2833_v42, %s2125_s27 }
 0x3d0   : > { %1409 = vrot.lane.b32.xlu0 %v2836_v31, %s2125_s27  ;;  %v1185_v48 = vadd.f32 %v3325_v45, %v2912_v51  ;;  %v1184_v32 = vadd.f32 %v3326_v49, %v2915_v23  ;;  %v2945_v39 = vadd.f32 %v2810_v57, %v1088_v61  ;;  %v3327_v3 = vunpack.c.h.bf16 %v2206_v7  ;;  %v3332_v49 = vld [vmem:[#allocation3_spill] sm:$0xff] }
 0x3d1   : > { %v3328_v50 = vunpack.c.l.bf16 %v2206_v7  ;;  %v3329_v21 = vunpack.c.h.bf16 %v2211_v8  ;;  %v3330_v6 = vunpack.c.l.bf16 %v2211_v8  ;;  %v3331_v46 = vunpack.c.h.bf16 %v2214_v9 }
 0x3d2   : > { %v1187_v54 = vadd.f32 %v3327_v3, %v2922_v25  ;;  %v1906_v15 = vpack.c.bf16 %v1185_v48, %v1185_v48  ;;  %v1905_v16 = vpack.c.bf16 %v1184_v32, %v1184_v32  ;;  %v2963_v7 = vadd.f32 %v2810_v57, %v1087_v36 }
 0x3d3   : > { %v1186_v30 = vadd.f32 %v3328_v50, %v2925_v20  ;;  %v1189_v4 = vadd.f32 %v3329_v21, %v2928_v40  ;;  %v1188_v5 = vadd.f32 %v3330_v6, %v2931_v2  ;;  %v1191_v58 = vadd.f32 %v3331_v46, %v2945_v39  ;;  %1415 = vrot.lane.b32.xlu1 %v2839_v29, %s2125_s27 }
 0x3d4   : > { %v1908_v59 = vpack.c.bf16 %v1187_v54, %v1187_v54  ;;  %v1172_v8 = vunpack.c.l.bf16 %v3332_v49  ;;  %1413 = vrot.lane.b32.xlu0 %v2842_v41, %s2125_s27  ;;  %1346 = vst.msk [vmem:[%s2861_s8 + $0x24] sm:$0xf] %vm1336_vm2, %v1906_v15  ;;  %1345 = vst.msk [vmem:[%s2861_s8 + $0x20] sm:$0xf] %vm1336_vm2, %v1905_v16  ;;  %v3333_v48 = vunpack.c.l.bf16 %v2214_v9  ;;  %v1090_v3 = vmul.f32 %v2781_v56, %v2758_v1 }
 0x3d5   : > { %v1907_v26 = vpack.c.bf16 %v1186_v30, %v1186_v30  ;;  %v1910_v61 = vpack.c.bf16 %v1189_v4, %v1189_v4  ;;  %v1909_v45 = vpack.c.bf16 %v1188_v5, %v1188_v5  ;;  %v1912_v36 = vpack.c.bf16 %v1191_v58, %v1191_v58 }
 0x3d6   : > { %v1190_v32 = vadd.f32 %v3333_v48, %v2963_v7  ;;  %1348 = vst.msk [vmem:[%s2861_s8 + $0x2c] sm:$0xf] %vm1336_vm2, %v1908_v59  ;;  %v1089_v54 = vmul.f32 %v2781_v56, %v2755_v53  ;;  %v1092_v50 = vmul.f32 %v2781_v56, %v2764_v18  ;;  %v1091_v9 = vmul.f32 %v2781_v56, %v2761_v63 }
 0x3d7   : > { %1347 = vst.msk [vmem:[%s2861_s8 + $0x28] sm:$0xf] %vm1336_vm2, %v1907_v26  ;;  %1350 = vst.msk [vmem:[%s2861_s8 + $0x34] sm:$0xf] %vm1336_vm2, %v1910_v61  ;;  %v1094_v1 = vmul.f32 %v2781_v56, %v2770_v35  ;;  %v2998_v21 = vadd.f32 %v2810_v57, %v1090_v3  ;;  %v1093_v4 = vmul.f32 %v2781_v56, %v2767_v27  ;;  %v1173_v5 = vunpack.c.h.bf16 %v3332_v49 }
 0x3d8   : > { %1349 = vst.msk [vmem:[%s2861_s8 + $0x30] sm:$0xf] %vm1336_vm2, %v1909_v45  ;;  %1352 = vst.msk [vmem:[%s2861_s8 + $0x3c] sm:$0xf] %vm1336_vm2, %v1912_v36  ;;  %v1911_v30 = vpack.c.bf16 %v1190_v32, %v1190_v32  ;;  %v1096_v53 = vmul.f32 %v2781_v56, %v2776_v43  ;;  %v3005_v18 = vadd.f32 %v2810_v57, %v1089_v54  ;;  %1419 = vrot.lane.b32.xlu1 %v2912_v51, %s2125_s27 }
 0x3d9   : > { %v3008_v63 = vadd.f32 %v2810_v57, %v1092_v50  ;;  %v3011_v35 = vadd.f32 %v2810_v57, %v1091_v9  ;;  %v3014_v6 = vadd.f32 %v2810_v57, %v1094_v1  ;;  %1417 = vrot.lane.b32.xlu0 %v2915_v23, %s2125_s27  ;;  %v3334_v27 = vunpack.c.h.bf16 %v2219_v10 }
 0x3da   : > { %1351 = vst.msk [vmem:[%s2861_s8 + $0x38] sm:$0xf] %vm1336_vm2, %v1911_v30  ;;  %v3027_v15 = vadd.f32 %v2810_v57, %v1093_v4  ;;  %v3030_v16 = vadd.f32 %v2810_v57, %v1096_v53  ;;  %v3335_v46 = vunpack.c.l.bf16 %v2219_v10  ;;  %v3336_v59 = vunpack.c.h.bf16 %v2222_v11  ;;  %v2112_v53 = vld [vmem:[%s2186_s10 + $0x78] sm:$0xff]  }
 0x3db   : > { %v1193_v43 = vadd.f32 %v3334_v27, %v2998_v21  ;;  %v3337_v61 = vunpack.c.l.bf16 %v2222_v11  ;;  %v3338_v36 = vunpack.c.h.bf16 %v2227_v12  ;;  %v3339_v3 = vunpack.c.l.bf16 %v2227_v12 }
 0x3dc   : > { %v1192_v58 = vadd.f32 %v3335_v46, %v3005_v18  ;;  %v1195_v26 = vadd.f32 %v3336_v59, %v3008_v63  ;;  %v3340_v54 = vunpack.c.h.bf16 %v2230_v13  ;;  %v1095_v11 = vmul.f32 %v2781_v56, %v2773_v33  ;;  %1423 = vrot.lane.b32.xlu1 %v2922_v25, %s2125_s27 }
 0x3dd   : > { %v1194_v45 = vadd.f32 %v3337_v61, %v3011_v35  ;;  %v1197_v48 = vadd.f32 %v3338_v36, %v3014_v6  ;;  %v1914_v32 = vpack.c.bf16 %v1193_v43, %v1193_v43  ;;  %v1196_v10 = vadd.f32 %v3339_v3, %v3027_v15  ;;  %1421 = vrot.lane.b32.xlu0 %v2925_v20, %s2125_s27 }
 0x3de   : > { %v1199_v50 = vadd.f32 %v3340_v54, %v3030_v16  ;;  %v1913_v9 = vpack.c.bf16 %v1192_v58, %v1192_v58  ;;  %v1916_v1 = vpack.c.bf16 %v1195_v26, %v1195_v26  ;;  %v1174_v27 = vunpack.c.l.bf16 %v2112_v53 }
 0x3df   : > { %v1915_v30 = vpack.c.bf16 %v1194_v45, %v1194_v45  ;;  %v1918_v4 = vpack.c.bf16 %v1197_v48, %v1197_v48  ;;  %1354 = vst.msk [vmem:[%s2861_s8 + $0x44] sm:$0xf] %vm1336_vm2, %v1914_v32  ;;  %v1917_v12 = vpack.c.bf16 %v1196_v10, %v1196_v10  ;;  %v3060_v33 = vadd.f32 %v2810_v57, %v1095_v11 }
 0x3e0   : > { %v1920_v43 = vpack.c.bf16 %v1199_v50, %v1199_v50  ;;  %1353 = vst.msk [vmem:[%s2861_s8 + $0x40] sm:$0xf] %vm1336_vm2, %v1913_v9  ;;  %1356 = vst.msk [vmem:[%s2861_s8 + $0x4c] sm:$0xf] %vm1336_vm2, %v1916_v1  ;;  %v1098_v46 = vmul.f32 %v2781_v56, %v2787_v0  ;;  %v1097_v58 = vmul.f32 %v2781_v56, %v2784_v19  ;;  %v3341_v61 = vunpack.c.l.bf16 %v2230_v13 }
 0x3e1   : > { %1355 = vst.msk [vmem:[%s2861_s8 + $0x48] sm:$0xf] %vm1336_vm2, %v1915_v30  ;;  %1358 = vst.msk [vmem:[%s2861_s8 + $0x54] sm:$0xf] %vm1336_vm2, %v1918_v4  ;;  %v1100_v59 = vmul.f32 %v2781_v56, %v2793_v44  ;;  %v1099_v26 = vmul.f32 %v2781_v56, %v2790_v22  ;;  %v1102_v0 = vmul.f32 %v2781_v56, %v2799_v55  ;;  %v1175_v55 = vunpack.c.h.bf16 %v2112_v53 }
 0x3e2   : > { %1357 = vst.msk [vmem:[%s2861_s8 + $0x50] sm:$0xf] %vm1336_vm2, %v1917_v12  ;;  %1360 = vst.msk [vmem:[%s2861_s8 + $0x5c] sm:$0xf] %vm1336_vm2, %v1920_v43  ;;  %v1198_v45 = vadd.f32 %v3341_v61, %v3060_v33  ;;  %v1101_v19 = vmul.f32 %v2781_v56, %v2796_v60  ;;  %v1104_v44 = vmul.f32 %v2781_v56, %v2805_v52  ;;  %1427 = vrot.lane.b32.xlu1 %v2928_v40, %s2125_s27 }
 0x3e3   : > { %v3092_v22 = vadd.f32 %v2810_v57, %v1098_v46  ;;  %v3095_v36 = vadd.f32 %v2810_v57, %v1097_v58  ;;  %v3098_v48 = vadd.f32 %v2810_v57, %v1100_v59  ;;  %v3101_v13 = vadd.f32 %v2810_v57, %v1099_v26  ;;  %1425 = vrot.lane.b32.xlu0 %v2931_v2, %s2125_s27 }
 0x3e4   : > { %v1919_v60 = vpack.c.bf16 %v1198_v45, %v1198_v45  ;;  %v3108_v52 = vadd.f32 %v2810_v57, %v1102_v0  ;;  %v3111_v32 = vadd.f32 %v2810_v57, %v1101_v19  ;;  %v3342_v3 = vunpack.c.h.bf16 %v2235_v14 }
 0x3e5   : > { %v3343_v54 = vunpack.c.l.bf16 %v2235_v14  ;;  %v1203_v11 = vadd.f32 %v1171_v37, %v3098_v48  ;;  %v1202_v9 = vadd.f32 %v1170_v47, %v3101_v13  ;;  %v3132_v30 = vadd.f32 %v2810_v57, %v1104_v44 }
 0x3e6   : > { %v1201_v10 = vadd.f32 %v3342_v3, %v3092_v22  ;;  %1359 = vst.msk [vmem:[%s2861_s8 + $0x58] sm:$0xf] %vm1336_vm2, %v1919_v60  ;;  %v1205_v1 = vadd.f32 %v1173_v5, %v3108_v52  ;;  %v1204_v14 = vadd.f32 %v1172_v8, %v3111_v32  ;;  %v1103_v38 = vmul.f32 %v2781_v56, %v2802_v24 }
 0x3e7   : > { %v1200_v50 = vadd.f32 %v3343_v54, %v3095_v36  ;;  %v1924_v4 = vpack.c.bf16 %v1203_v11, %v1203_v11  ;;  %v1923_v53 = vpack.c.bf16 %v1202_v9, %v1202_v9  ;;  %1431 = vrot.lane.b32.xlu1 %v2945_v39, %s2125_s27  ;;  %1429 = vrot.lane.b32.xlu0 %v2963_v7, %s2125_s27 }
 0x3e8   : > { %v1922_v47 = vpack.c.bf16 %v1201_v10, %v1201_v10  ;;  %v1926_v49 = vpack.c.bf16 %v1205_v1, %v1205_v1  ;;  %v1925_v8 = vpack.c.bf16 %v1204_v14, %v1204_v14  ;;  %v1207_v5 = vadd.f32 %v1175_v55, %v3132_v30 }
 0x3e9   : > { %v1921_v37 = vpack.c.bf16 %v1200_v50, %v1200_v50  ;;  %1364 = vst.msk [vmem:[%s2861_s8 + $0x6c] sm:$0xf] %vm1336_vm2, %v1924_v4  ;;  %1363 = vst.msk [vmem:[%s2861_s8 + $0x68] sm:$0xf] %vm1336_vm2, %v1923_v53  ;;  %v3150_v56 = vadd.f32 %v2810_v57, %v1103_v38 }
 0x3ea   : > { %1362 = vst.msk [vmem:[%s2861_s8 + $0x64] sm:$0xf] %vm1336_vm2, %v1922_v47  ;;  %1366 = vst.msk [vmem:[%s2861_s8 + $0x74] sm:$0xf] %vm1336_vm2, %v1926_v49  ;;  %v1928_v24 = vpack.c.bf16 %v1207_v5, %v1207_v5 }
 0x3eb   : > { %1361 = vst.msk [vmem:[%s2861_s8 + $0x60] sm:$0xf] %vm1336_vm2, %v1921_v37  ;;  %1365 = vst.msk [vmem:[%s2861_s8 + $0x70] sm:$0xf] %vm1336_vm2, %v1925_v8  ;;  %v1206_v12 = vadd.f32 %v1174_v27, %v3150_v56  ;;  %1435 = vrot.lane.b32.xlu1 %v2998_v21, %s2125_s27  ;;  %1433 = vrot.lane.b32.xlu0 %v3005_v18, %s2125_s27 }
 0x3ec   : > { %1368 = vst.msk [vmem:[%s2861_s8 + $0x7c] sm:$0xf] %vm1336_vm2, %v1928_v24 }
 0x3ed   : > { %v1927_v43 = vpack.c.bf16 %v1206_v12, %v1206_v12 }
 0x3ef   : > { %1367 = vst.msk [vmem:[%s2861_s8 + $0x78] sm:$0xf] %vm1336_vm2, %v1927_v43  ;;  %1439 = vrot.lane.b32.xlu1 %v3008_v63, %s2125_s27  ;;  %1437 = vrot.lane.b32.xlu0 %v3011_v35, %s2125_s27 }
 0x3f3   : > { %1443 = vrot.lane.b32.xlu1 %v3014_v6, %s2125_s27  ;;  %1441 = vrot.lane.b32.xlu0 %v3027_v15, %s2125_s27 }
 0x3f7   : > { %1447 = vrot.lane.b32.xlu1 %v3030_v16, %s2125_s27  ;;  %1445 = vrot.lane.b32.xlu0 %v3060_v33, %s2125_s27 }
 0x3fb   : > { %1451 = vrot.lane.b32.xlu1 %v3092_v22, %s2125_s27  ;;  %1449 = vrot.lane.b32.xlu0 %v3095_v36, %s2125_s27 }
 0x3ff   : > { %1455 = vrot.lane.b32.xlu1 %v3098_v48, %s2125_s27  ;;  %1453 = vrot.lane.b32.xlu0 %v3101_v13, %s2125_s27 }
 0x403   : > { %1459 = vrot.lane.b32.xlu1 %v3108_v52, %s2125_s27  ;;  %1457 = vrot.lane.b32.xlu0 %v3111_v32, %s2125_s27 }
 0x407   : > { %1463 = vrot.lane.b32.xlu1 %v3132_v30, %s2125_s27  ;;  %1461 = vrot.lane.b32.xlu0 %v3150_v56, %s2125_s27 }
 0x439   : > { %v1404_v57 = vpop.permute.xlu1 %1403  ;;  %v1402_v27 = vpop.permute.xlu0 %1401 }
 0x43a   : > { %v1498_v46 = vsub.f32 %v2821_v62, %v1404_v57  ;;  %v1497_v58 = vsub.f32 %v2824_v34, %v1402_v27 }
 0x43c   : > { %v1930_v59 = vpack.c.bf16 %v1498_v46, %v1498_v46  ;;  %v1929_v26 = vpack.c.bf16 %v1497_v58, %v1497_v58 }
 0x43d   : > { %v1408_v61 = vpop.permute.xlu1 %1407  ;;  %v1406_v45 = vpop.permute.xlu0 %1405 }
 0x43e   : > { %1659 = vst.msk [vmem:[%s3199_s11 + $0x4] sm:$0xf] %vm1657_vm3, %v1930_v59  ;;  %1658 = vst.msk [vmem:[%s3199_s11] sm:$0xf] %vm1657_vm3, %v1929_v26  ;;  %v1500_v62 = vsub.f32 %v2827_v28, %v1408_v61  ;;  %v1499_v34 = vsub.f32 %v2830_v17, %v1406_v45 }
 0x440   : > { %v1932_v0 = vpack.c.bf16 %v1500_v62, %v1500_v62  ;;  %v1931_v19 = vpack.c.bf16 %v1499_v34, %v1499_v34 }
 0x441   : > { %v1412_v44 = vpop.permute.xlu1 %1411 }
 0x442   : > { %v1410_v55 = vpop.permute.xlu0 %1409  ;;  %1661 = vst.msk [vmem:[%s3199_s11 + $0xc] sm:$0xf] %vm1657_vm3, %v1932_v0  ;;  %1660 = vst.msk [vmem:[%s3199_s11 + $0x8] sm:$0xf] %vm1657_vm3, %v1931_v19  ;;  %v1502_v60 = vsub.f32 %v2833_v42, %v1412_v44 }
 0x443   : > { %v1501_v3 = vsub.f32 %v2836_v31, %v1410_v55 }
 0x444   : > { %v1934_v10 = vpack.c.bf16 %v1502_v60, %v1502_v60 }
 0x445   : > { %v1933_v54 = vpack.c.bf16 %v1501_v3, %v1501_v3  ;;  %v1416_v50 = vpop.permute.xlu1 %1415 }
 0x446   : > { %v1414_v28 = vpop.permute.xlu0 %1413  ;;  %1663 = vst.msk [vmem:[%s3199_s11 + $0x14] sm:$0xf] %vm1657_vm3, %v1934_v10  ;;  %v1504_v17 = vsub.f32 %v2839_v29, %v1416_v50 }
 0x447   : > { %1662 = vst.msk [vmem:[%s3199_s11 + $0x10] sm:$0xf] %vm1657_vm3, %v1933_v54  ;;  %v1503_v11 = vsub.f32 %v2842_v41, %v1414_v28 }
 0x448   : > { %v1936_v9 = vpack.c.bf16 %v1504_v17, %v1504_v17 }
 0x449   : > { %v1935_v1 = vpack.c.bf16 %v1503_v11, %v1503_v11 }
 0x44a   : > { %v1420_v14 = vpop.permute.xlu1 %1419  ;;  %1665 = vst.msk [vmem:[%s3199_s11 + $0x1c] sm:$0xf] %vm1657_vm3, %v1936_v9 }
 0x44b   : > { %v1418_v42 = vpop.permute.xlu0 %1417  ;;  %1664 = vst.msk [vmem:[%s3199_s11 + $0x18] sm:$0xf] %vm1657_vm3, %v1935_v1  ;;  %v1506_v31 = vsub.f32 %v2912_v51, %v1420_v14 }
 0x44c   : > { %v1505_v38 = vsub.f32 %v2915_v23, %v1418_v42 }
 0x44d   : > { %v1938_v47 = vpack.c.bf16 %v1506_v31, %v1506_v31 }
 0x44e   : > { %v1937_v37 = vpack.c.bf16 %v1505_v38, %v1505_v38  ;;  %v1424_v4 = vpop.permute.xlu1 %1423 }
 0x44f   : > { %v1422_v29 = vpop.permute.xlu0 %1421  ;;  %1667 = vst.msk [vmem:[%s3199_s11 + $0x24] sm:$0xf] %vm1657_vm3, %v1938_v47  ;;  %v1508_v41 = vsub.f32 %v2922_v25, %v1424_v4 }
 0x450   : > { %1666 = vst.msk [vmem:[%s3199_s11 + $0x20] sm:$0xf] %vm1657_vm3, %v1937_v37  ;;  %v1507_v53 = vsub.f32 %v2925_v20, %v1422_v29 }
 0x451   : > { %v1940_v49 = vpack.c.bf16 %v1508_v41, %v1508_v41 }
 0x452   : > { %v1939_v8 = vpack.c.bf16 %v1507_v53, %v1507_v53 }
 0x453   : > { %1669 = vst.msk [vmem:[%s3199_s11 + $0x2c] sm:$0xf] %vm1657_vm3, %v1940_v49 }
 0x454   : > { %v1428_v5 = vpop.permute.xlu1 %1427  ;;  %1668 = vst.msk [vmem:[%s3199_s11 + $0x28] sm:$0xf] %vm1657_vm3, %v1939_v8 }
 0x455   : > { %v1426_v51 = vpop.permute.xlu0 %1425  ;;  %v1510_v23 = vsub.f32 %v2928_v40, %v1428_v5 }
 0x456   : > { %v1509_v24 = vsub.f32 %v2931_v2, %v1426_v51 }
 0x457   : > { %v1942_v12 = vpack.c.bf16 %v1510_v23, %v1510_v23 }
 0x458   : > { %v1941_v43 = vpack.c.bf16 %v1509_v24, %v1509_v24 }
 0x459   : > { %v1432_v57 = vpop.permute.xlu1 %1431  ;;  %v1430_v25 = vpop.permute.xlu0 %1429  ;;  %1671 = vst.msk [vmem:[%s3199_s11 + $0x34] sm:$0xf] %vm1657_vm3, %v1942_v12 }
 0x45a   : > { %1670 = vst.msk [vmem:[%s3199_s11 + $0x30] sm:$0xf] %vm1657_vm3, %v1941_v43  ;;  %v1512_v20 = vsub.f32 %v2945_v39, %v1432_v57  ;;  %v1511_v27 = vsub.f32 %v2963_v7, %v1430_v25 }
 0x45c   : > { %v1944_v46 = vpack.c.bf16 %v1512_v20, %v1512_v20  ;;  %v1943_v58 = vpack.c.bf16 %v1511_v27, %v1511_v27 }
 0x45d   : > { %v1436_v59 = vpop.permute.xlu1 %1435  ;;  %v1434_v40 = vpop.permute.xlu0 %1433 }
 0x45e   : > { %1673 = vst.msk [vmem:[%s3199_s11 + $0x3c] sm:$0xf] %vm1657_vm3, %v1944_v46  ;;  %1672 = vst.msk [vmem:[%s3199_s11 + $0x38] sm:$0xf] %vm1657_vm3, %v1943_v58  ;;  %v1514_v2 = vsub.f32 %v2998_v21, %v1436_v59  ;;  %v1513_v26 = vsub.f32 %v3005_v18, %v1434_v40 }
 0x460   : > { %v1946_v61 = vpack.c.bf16 %v1514_v2, %v1514_v2  ;;  %v1945_v45 = vpack.c.bf16 %v1513_v26, %v1513_v26 }
 0x461   : > { %v1440_v62 = vpop.permute.xlu1 %1439  ;;  %v1438_v39 = vpop.permute.xlu0 %1437 }
 0x462   : > { %1675 = vst.msk [vmem:[%s3199_s11 + $0x44] sm:$0xf] %vm1657_vm3, %v1946_v61  ;;  %1674 = vst.msk [vmem:[%s3199_s11 + $0x40] sm:$0xf] %vm1657_vm3, %v1945_v45  ;;  %v1516_v7 = vsub.f32 %v3008_v63, %v1440_v62  ;;  %v1515_v34 = vsub.f32 %v3011_v35, %v1438_v39 }
 0x464   : > { %v1948_v0 = vpack.c.bf16 %v1516_v7, %v1516_v7  ;;  %v1947_v19 = vpack.c.bf16 %v1515_v34, %v1515_v34 }
 0x465   : > { %v1444_v44 = vpop.permute.xlu1 %1443  ;;  %v1442_v21 = vpop.permute.xlu0 %1441 }
 0x466   : > { %1677 = vst.msk [vmem:[%s3199_s11 + $0x4c] sm:$0xf] %vm1657_vm3, %v1948_v0  ;;  %1676 = vst.msk [vmem:[%s3199_s11 + $0x48] sm:$0xf] %vm1657_vm3, %v1947_v19  ;;  %v1518_v18 = vsub.f32 %v3014_v6, %v1444_v44  ;;  %v1517_v55 = vsub.f32 %v3027_v15, %v1442_v21 }
 0x468   : > { %v1950_v60 = vpack.c.bf16 %v1518_v18, %v1518_v18  ;;  %v1949_v3 = vpack.c.bf16 %v1517_v55, %v1517_v55 }
 0x469   : > { %v1448_v10 = vpop.permute.xlu1 %1447  ;;  %v1446_v63 = vpop.permute.xlu0 %1445 }
 0x46a   : > { %1679 = vst.msk [vmem:[%s3199_s11 + $0x54] sm:$0xf] %vm1657_vm3, %v1950_v60  ;;  %1678 = vst.msk [vmem:[%s3199_s11 + $0x50] sm:$0xf] %vm1657_vm3, %v1949_v3  ;;  %v1520_v35 = vsub.f32 %v3030_v16, %v1448_v10  ;;  %v1519_v54 = vsub.f32 %v3060_v33, %v1446_v63 }
 0x46c   : > { %v1952_v50 = vpack.c.bf16 %v1520_v35, %v1520_v35  ;;  %v1951_v28 = vpack.c.bf16 %v1519_v54, %v1519_v54 }
 0x46d   : > { %v1452_v17 = vpop.permute.xlu1 %1451  ;;  %v1450_v6 = vpop.permute.xlu0 %1449 }
 0x46e   : > { %1681 = vst.msk [vmem:[%s3199_s11 + $0x5c] sm:$0xf] %vm1657_vm3, %v1952_v50  ;;  %1680 = vst.msk [vmem:[%s3199_s11 + $0x58] sm:$0xf] %vm1657_vm3, %v1951_v28  ;;  %v1522_v15 = vsub.f32 %v3092_v22, %v1452_v17  ;;  %v1521_v11 = vsub.f32 %v3095_v36, %v1450_v6 }
 0x470   : > { %v1954_v9 = vpack.c.bf16 %v1522_v15, %v1522_v15  ;;  %v1953_v1 = vpack.c.bf16 %v1521_v11, %v1521_v11 }
 0x471   : > { %v1456_v14 = vpop.permute.xlu1 %1455  ;;  %v1454_v16 = vpop.permute.xlu0 %1453 }
 0x472   : > { %1683 = vst.msk [vmem:[%s3199_s11 + $0x64] sm:$0xf] %vm1657_vm3, %v1954_v9  ;;  %1682 = vst.msk [vmem:[%s3199_s11 + $0x60] sm:$0xf] %vm1657_vm3, %v1953_v1  ;;  %v1524_v33 = vsub.f32 %v3098_v48, %v1456_v14  ;;  %v1523_v42 = vsub.f32 %v3101_v13, %v1454_v16 }
 0x474   : > { %v1956_v31 = vpack.c.bf16 %v1524_v33, %v1524_v33  ;;  %v1955_v38 = vpack.c.bf16 %v1523_v42, %v1523_v42 }
 0x475   : > { %v1460_v47 = vpop.permute.xlu1 %1459  ;;  %v1458_v22 = vpop.permute.xlu0 %1457 }
 0x476   : > { %1685 = vst.msk [vmem:[%s3199_s11 + $0x6c] sm:$0xf] %vm1657_vm3, %v1956_v31  ;;  %1684 = vst.msk [vmem:[%s3199_s11 + $0x68] sm:$0xf] %vm1657_vm3, %v1955_v38  ;;  %v1526_v36 = vsub.f32 %v3108_v52, %v1460_v47  ;;  %v1525_v37 = vsub.f32 %v3111_v32, %v1458_v22 }
 0x478   : > { %v1958_v4 = vpack.c.bf16 %v1526_v36, %v1526_v36  ;;  %v1957_v29 = vpack.c.bf16 %v1525_v37, %v1525_v37 }
 0x479   : > { %v1464_v41 = vpop.permute.xlu1 %1463  ;;  %v1462_v48 = vpop.permute.xlu0 %1461 }
 0x47a   : > { %1687 = vst.msk [vmem:[%s3199_s11 + $0x74] sm:$0xf] %vm1657_vm3, %v1958_v4  ;;  %1686 = vst.msk [vmem:[%s3199_s11 + $0x70] sm:$0xf] %vm1657_vm3, %v1957_v29  ;;  %v1528_v13 = vsub.f32 %v3132_v30, %v1464_v41  ;;  %v1527_v53 = vsub.f32 %v3150_v56, %v1462_v48 }
 0x47c   : > { %v1960_v49 = vpack.c.bf16 %v1528_v13, %v1528_v13  ;;  %v1959_v8 = vpack.c.bf16 %v1527_v53, %v1527_v53 }
 0x47e   : > { %1689 = vst.msk [vmem:[%s3199_s11 + $0x7c] sm:$0xf] %vm1657_vm3, %v1960_v49  ;;  %1688 = vst.msk [vmem:[%s3199_s11 + $0x78] sm:$0xf] %vm1657_vm3, %v1959_v8 }
 0x47f PF: > { %s18_s24 = sadd.s32 1, %s2119_s24  }
 0x480   : > { %p15_p4 = scmp.ge.s32.totalorder %s18_s24, 4  }
 0x482   :  { %17 = sbr.rel (!%p15_p4) target bundleno = 1 (0x1), region = 86 }

// kernel: cdlamba_forward.14
= control target key start
LH: loop header
LB: loop body
LE: loop exit
PB: predicated region body
PF: predicated region fallthrough
CT: control target
= control target key end

     0   :  { %s2990_s30 = smov 0   ;;  %s4130_s0 = inlined_call_operand.vmem [shape: bf16[512,6], index: 0, kind: input, shape index: {}]   ;;  %s4131_s1 = inlined_call_operand.vmem [shape: bf16[6,32], index: 1, kind: input, shape index: {}]   ;;  %s4132_s2 = inlined_call_operand.vmem [shape: f32[1,32], index: 2, kind: input, shape index: {}]   ;;  %s4133_s3 = inlined_call_operand.vmem [shape: bf16[32,160], index: 3, kind: input, shape index: {}]   ;;  %s4134_s4 = inlined_call_operand.vmem [shape: f32[1,160], index: 4, kind: input, shape index: {}]   ;;  %s4135_s5 = inlined_call_operand.vmem [shape: bf16[32,160], index: 5, kind: input, shape index: {}]   ;;  %s4136_s6 = inlined_call_operand.vmem [shape: f32[1,160], index: 6, kind: input, shape index: {}]   ;;  %s4137_s7 = inlined_call_operand.vmem [shape: bf16[160,32], index: 7, kind: input, shape index: {}]   ;;  %s4138_s8 = inlined_call_operand.vmem [shape: f32[1,32], index: 8, kind: input, shape index: {}]   ;;  %s4139_s9 = inlined_call_operand.vmem [shape: bf16[512,64], index: 9, kind: output, shape index: {}]  }
   0x1 LB: > { %s2363_s10 = sadd.s32 4294967295, %s2936_s30   ;;  %p2367_p0 = scmp.ge.s32.totalorder %s2936_s30, 1  ;;  %s2936_s30 = sphi %s2990_s30, %s19_s30  }
   0x2   : > { %p288_p1 = scmp.lt.s32.totalorder %s2936_s30, 3 }
   0x4   : > { %p289_p2 = pnand %p2367_p0, %p288_p1 }
   0x6   : > { %292 = sbr.rel (%p289_p2) target bundleno = 970 (0x3ca), region = 56 }
   0xd   : > { %v369_v0 = vld [vmem:[%s4131_s1] sm:$0x7]  ;;  %vm506_vm0 = vcmask 1042432   ;;  %s2368_s13 = sshll.u32 %s2363_s10, 5  ;;  %v2654_v3 = vld [vmem:[%s4133_s3 + $0x4] ss:$8 sps:$4 sm:$0xff]  }
   0xe   : > { %2625 = vmatprep.subr.msk.bf16.mxu0 %vm506_vm0, %v369_v0  ;;  %v508_v1 = vsel %vm506_vm0, %v369_v0, 0  ;;  %p325_p3 = scmp.lt.s32.totalorder %s2368_s13, 63  ;;  %v2652_v2 = vld [vmem:[%s4133_s3] ss:$8 sps:$4 sm:$0xff]   ;;  %v2657_v4 = vld [vmem:[%s4133_s3 + $0x14] ss:$8 sps:$4 sm:$0xff]   ;;  %2621 = vmatprep.subr.bf16.mxu1 %v2654_v3 }
   0xf   : > { %2588 = vmatpush3.bf16.msra.mxu0 %v508_v1  ;;  %vm457_vm1 = vcmask 48128   ;;  %v2655_v5 = vld [vmem:[%s4133_s3 + $0x10] ss:$8 sps:$4 sm:$0xff]   ;;  %2623 = vmatpush1.bf16.msra.mxu1 %v2652_v2  ;;  %v2660_v22 = vld [vmem:[%s4135_s5 + $0x4] ss:$8 sps:$4 sm:$0xff]   ;;  %v2938_v23 = vmov 0  }
  0x10   : > { %s4192_s13 = smov (!%p325_p3, %s2368_s13), 63  ;;  %804 = vmatprep.subr.bf16.mxu0 %v2654_v3  ;;  %2622 = vmatprep.subr.bf16.mxu1 %v2657_v4  ;;  %v3064_v24 = vld [vmem:[%s4132_s2] ss:$0 sm:$0xff]  ;;  %vm755_vm2 = vcmask 261120   ;;  %v2663_v41 = vld [vmem:[%s4135_s5 + $0x14] ss:$8 sps:$4 sm:$0xff]  }
  0x11   : > { %s2369_s20 = sshll.u32 %s4192_s13, 2  ;;  %876 = vmatprep.mubr.bf16.mxu1 %v2938_v23  ;;  %v2658_v38 = vld [vmem:[%s4135_s5] ss:$8 sps:$4 sm:$0xff]   ;;  %v2661_v49 = vld [vmem:[%s4135_s5 + $0x10] ss:$8 sps:$4 sm:$0xff]   ;;  %s2939_s26 = smov 32  }
  0x12   : > { %s3021_s25 = scalar_lea.vmem %s4130_s0, %s2369_s20  ;;  %s4022_s29 = scalar_lea.vmem %s4139_s9, %s2369_s20  ;;  %vm2274_vm3 = vcmask 519168  }
  0x13   : > { %v2636_v6 = vld [vmem:[%s3021_s25] sm:$0xff]   ;;  %v2637_v7 = vld [vmem:[%s3021_s25 + $0x8] sm:$0xff]   ;;  %v2638_v8 = vld [vmem:[%s3021_s25 + $0x10] sm:$0xff]   ;;  %2624 = vmatpush1.bf16.msra.mxu1 %v2655_v5 }
  0x14   : > { %2589 = vmatprep.mubr.msk.bf16.mxu0 %vm457_vm1, %v2636_v6  ;;  %v2639_v9 = vld [vmem:[%s3021_s25 + $0x18] sm:$0xff]   ;;  %v2640_v10 = vld [vmem:[%s3021_s25 + $0x20] sm:$0xff]   ;;  %v2641_v11 = vld [vmem:[%s3021_s25 + $0x28] sm:$0xff]   ;;  %1905 = vmatprep.subr.bf16.mxu1 %v2938_v23 }
  0x15   : > { %2590 = vmatmul.mubr.msk.bf16.vlgmr.msra.gmra.mrb[0].mxu0 %vm457_vm1, %v2637_v7  ;;  %v2642_v12 = vld [vmem:[%s3021_s25 + $0x30] sm:$0xff]   ;;  %v2643_v13 = vld [vmem:[%s3021_s25 + $0x38] sm:$0xff]   ;;  %v2644_v14 = vld [vmem:[%s3021_s25 + $0x40] sm:$0xff]  }
  0x16   : > { %2593 = vmatprep.mubr.msk.bf16.mxu0 %vm457_vm1, %v2638_v8  ;;  %805 = vmatpush1.bf16.msra.mxu0 %v2652_v2  ;;  %v2645_v15 = vld [vmem:[%s3021_s25 + $0x48] sm:$0xff]   ;;  %v2646_v16 = vld [vmem:[%s3021_s25 + $0x50] sm:$0xff]   ;;  %v2647_v17 = vld [vmem:[%s3021_s25 + $0x58] sm:$0xff]  }
  0x17   : > { %806 = vmatprep.subr.bf16.mxu0 %v2657_v4  ;;  %v2648_v18 = vld [vmem:[%s3021_s25 + $0x60] sm:$0xff]   ;;  %v2649_v19 = vld [vmem:[%s3021_s25 + $0x68] sm:$0xff]   ;;  %v2650_v20 = vld [vmem:[%s3021_s25 + $0x70] sm:$0xff]  }
  0x18   : > { %v2651_v21 = vld [vmem:[%s3021_s25 + $0x78] sm:$0xff]  }
  0x1a   : > { %807 = vmatpush1.bf16.msra.mxu0 %v2655_v5 }
  0x1b   : > { %1033 = vmatprep.subr.bf16.mxu0 %v2660_v22 }
  0x1d   : > { %2594 = vmatmul.mubr.msk.bf16.gmra.mrb[4].mxu0 %vm457_vm1, %v2639_v9 }
  0x1e   : > { %2597 = vmatprep.mubr.msk.bf16.mxu0 %vm457_vm1, %v2640_v10 }
  0x25   : > { %2598 = vmatmul.mubr.msk.bf16.gmra.mrb[8].mxu0 %vm457_vm1, %v2641_v11 }
  0x26   : > { %2601 = vmatprep.mubr.msk.bf16.mxu0 %vm457_vm1, %v2642_v12 }
  0x2d   : > { %2602 = vmatmul.mubr.msk.bf16.gmra.mrb[12].mxu0 %vm457_vm1, %v2643_v13 }
  0x2e   : > { %2605 = vmatprep.mubr.msk.bf16.mxu0 %vm457_vm1, %v2644_v14 }
  0x35   : > { %2606 = vmatmul.mubr.msk.bf16.gmra.mrb[16].mxu0 %vm457_vm1, %v2645_v15 }
  0x36   : > { %2609 = vmatprep.mubr.msk.bf16.mxu0 %vm457_vm1, %v2646_v16 }
  0x3d   : > { %2610 = vmatmul.mubr.msk.bf16.gmra.mrb[20].mxu0 %vm457_vm1, %v2647_v17 }
  0x3e   : > { %2613 = vmatprep.mubr.msk.bf16.mxu0 %vm457_vm1, %v2648_v18 }
  0x45   : > { %2614 = vmatmul.mubr.msk.bf16.gmra.mrb[24].mxu0 %vm457_vm1, %v2649_v19 }
  0x46   : > { %2617 = vmatprep.mubr.msk.bf16.mxu0 %vm457_vm1, %v2650_v20 }
  0x4d   : > { %2618 = vmatmul.mubr.msk.bf16.gmra.mrb[28].mxu0 %vm457_vm1, %v2651_v21 }
  0x4e   : > { %836 = vmatprep.mubr.bf16.mxu0 %v2938_v23 }
  0xe8   : > { %v2591_v25 = vpop.f32.mrb[0].mxu0 }
  0xe9   : > { %v553_v26 = vadd.f32 %v2591_v25, %v3064_v24  ;;  %v544_v27 = vpop.f32.mrb[1].mxu0 }
  0xea   : > { %v545_v28 = vadd.f32 %v3064_v24, %v544_v27  ;;  %v2592_v29 = vpop.f32.mrb[2].mxu0  ;;  %v2664_v27 = vld [vmem:[%s4137_s7] sm:$0xff]  }
  0xeb   : > { %v556_v30 = vadd.f32 %v2592_v29, %v3064_v24  ;;  %v547_v31 = vpop.f32.mrb[3].mxu0  ;;  %v673_v33 = vmax.f32 %v553_v26, 0.0 }
  0xec   : > { %v548_v32 = vadd.f32 %v3064_v24, %v547_v31  ;;  %v671_v35 = vmax.f32 %v545_v28, 0.0 }
  0xed   : > { %v674_v34 = vmax.f32 %v556_v30, 0.0 }
  0xee   : > { %v672_v36 = vmax.f32 %v548_v32, 0.0 }
  0xef   : > { %v3070_v37 = vpack.c.bf16 %v674_v34, %v673_v33  ;;  %v2665_v33 = vld [vmem:[%s4137_s7 + $0x8] sm:$0xff]  }
  0xf0   : > { %v3075_v39 = vpack.c.bf16 %v672_v36, %v671_v35  ;;  %v2595_v40 = vpop.f32.mrb[4].mxu0 }
  0xf1   : > { %4157 = vst [vmem:[#allocation2_spill] sm:$0xff] %v3070_v37  ;;  %v569_v42 = vadd.f32 %v2595_v40, %v3064_v24  ;;  %v560_v43 = vpop.f32.mrb[5].mxu0 }
  0xf2   : > { %4158 = vst [vmem:[#allocation3_spill] sm:$0xff] %v3075_v39  ;;  %2409 = vmatmul.mubr.msk.bf16.vlgmr.msra.gmra.mrb[32].mxu0 %vm755_vm2, %v3075_v39  ;;  %v561_v44 = vadd.f32 %v3064_v24, %v560_v43  ;;  %v2596_v45 = vpop.f32.mrb[6].mxu0 }
  0xf3   : > { %1034 = vmatpush1.bf16.msra.mxu0 %v2658_v38  ;;  %v677_v46 = vmax.f32 %v569_v42, 0.0  ;;  %v572_v47 = vadd.f32 %v2596_v45, %v3064_v24  ;;  %v563_v48 = vpop.f32.mrb[7].mxu0  ;;  %846 = vmatprep.mubr.bf16.mxu0 %v2938_v23 }
  0xf4   : > { %v675_v50 = vmax.f32 %v561_v44, 0.0  ;;  %v564_v51 = vadd.f32 %v3064_v24, %v563_v48  ;;  %1035 = vmatprep.subr.bf16.mxu0 %v2663_v41  ;;  %v2666_v41 = vld [vmem:[%s4137_s7 + $0x10] sm:$0xff]  }
  0xf5   : > { %v678_v52 = vmax.f32 %v572_v47, 0.0 }
  0xf6   : > { %v676_v53 = vmax.f32 %v564_v51, 0.0  ;;  %v2667_v51 = vld [vmem:[%s4137_s7 + $0x18] sm:$0xff]  }
  0xf7   : > { %v3090_v54 = vpack.c.bf16 %v678_v52, %v677_v46  ;;  %1036 = vmatpush1.bf16.msra.mxu0 %v2661_v49 }
  0xf8   : > { %v3092_v55 = vpack.c.bf16 %v676_v53, %v675_v50  ;;  %v2599_v56 = vpop.f32.mrb[8].mxu0 }
  0xf9   : > { %4159 = vst [vmem:[#allocation4_spill] sm:$0xff] %v3090_v54  ;;  %v585_v57 = vadd.f32 %v2599_v56, %v3064_v24  ;;  %v576_v58 = vpop.f32.mrb[9].mxu0 }
  0xfa   : > { %4160 = vst [vmem:[#allocation5_spill] sm:$0xff] %v3092_v55  ;;  %v577_v59 = vadd.f32 %v3064_v24, %v576_v58  ;;  %v2600_v60 = vpop.f32.mrb[10].mxu0  ;;  %2410 = vmatmul.mubr.msk.bf16.gmra.mrb[36].mxu0 %vm755_vm2, %v3070_v37 }
  0xfb   : > { %v681_v61 = vmax.f32 %v585_v57, 0.0  ;;  %v588_v62 = vadd.f32 %v2600_v60, %v3064_v24  ;;  %v579_v63 = vpop.f32.mrb[11].mxu0  ;;  %856 = vmatprep.mubr.bf16.mxu0 %v2938_v23 }
  0xfc   : > { %v679_v0 = vmax.f32 %v577_v59, 0.0  ;;  %v580_v1 = vadd.f32 %v3064_v24, %v579_v63  ;;  %v2668_v59 = vld [vmem:[%s4137_s7 + $0x20] sm:$0xff]  }
  0xfd   : > { %v682_v2 = vmax.f32 %v588_v62, 0.0 }
  0xfe   : > { %v680_v3 = vmax.f32 %v580_v1, 0.0 }
  0xff   : > { %v3101_v4 = vpack.c.bf16 %v682_v2, %v681_v61 }
 0x100   : > { %v3103_v5 = vpack.c.bf16 %v680_v3, %v679_v0  ;;  %v2603_v6 = vpop.f32.mrb[12].mxu0 }
 0x101   : > { %4161 = vst [vmem:[#allocation6_spill] sm:$0xff] %v3101_v4  ;;  %v601_v7 = vadd.f32 %v2603_v6, %v3064_v24  ;;  %v592_v8 = vpop.f32.mrb[13].mxu0 }
 0x102   : > { %4162 = vst [vmem:[#allocation7_spill] sm:$0xff] %v3103_v5  ;;  %2411 = vmatmul.mubr.msk.bf16.gmra.mrb[40].mxu0 %vm755_vm2, %v3092_v55  ;;  %2413 = vmatmul.mubr.msk.bf16.vlgmr.msra.gmra.mrb[0].mxu1 %vm755_vm2, %v3103_v5  ;;  %v593_v9 = vadd.f32 %v3064_v24, %v592_v8  ;;  %v2604_v10 = vpop.f32.mrb[14].mxu0 }
 0x103   : > { %v685_v11 = vmax.f32 %v601_v7, 0.0  ;;  %866 = vmatprep.mubr.bf16.mxu0 %v2938_v23  ;;  %886 = vmatprep.mubr.bf16.mxu1 %v2938_v23  ;;  %v604_v12 = vadd.f32 %v2604_v10, %v3064_v24  ;;  %v595_v13 = vpop.f32.mrb[15].mxu0  ;;  %v2669_v7 = vld [vmem:[%s4137_s7 + $0x28] sm:$0xff]  }
 0x104   : > { %v683_v14 = vmax.f32 %v593_v9, 0.0  ;;  %v596_v15 = vadd.f32 %v3064_v24, %v595_v13  ;;  %1906 = vmatpush1.bf16.msra.mxu1 %v2664_v27 }
 0x105   : > { %v686_v16 = vmax.f32 %v604_v12, 0.0  ;;  %1907 = vmatprep.subr.bf16.mxu1 %v2938_v23 }
 0x106   : > { %v684_v17 = vmax.f32 %v596_v15, 0.0 }
 0x107   : > { %v3115_v18 = vpack.c.bf16 %v686_v16, %v685_v11 }
 0x108   : > { %v3117_v19 = vpack.c.bf16 %v684_v17, %v683_v14  ;;  %v2607_v20 = vpop.f32.mrb[16].mxu0  ;;  %1908 = vmatpush1.bf16.msra.mxu1 %v2665_v33  ;;  %v725_v33 = vlaneseq }
 0x109   : > { %4163 = vst [vmem:[#allocation8_spill] sm:$0xff] %v3115_v18  ;;  %v617_v21 = vadd.f32 %v2607_v20, %v3064_v24  ;;  %v608_v22 = vpop.f32.mrb[17].mxu0  ;;  %1909 = vmatprep.subr.bf16.mxu1 %v2938_v23 }
 0x10a   : > { %4164 = vst [vmem:[#allocation9_spill] sm:$0xff] %v3117_v19  ;;  %2412 = vmatmul.mubr.msk.bf16.gmra.mrb[44].mxu0 %vm755_vm2, %v3090_v54  ;;  %2414 = vmatmul.mubr.msk.bf16.gmra.mrb[4].mxu1 %vm755_vm2, %v3101_v4  ;;  %v609_v25 = vadd.f32 %v3064_v24, %v608_v22  ;;  %v2608_v26 = vpop.f32.mrb[18].mxu0 }
 0x10b   : > { %896 = vmatprep.mubr.bf16.mxu1 %v2938_v23  ;;  %1065 = vmatprep.mubr.bf16.mxu0 %v2938_v23  ;;  %v689_v28 = vmax.f32 %v617_v21, 0.0  ;;  %v620_v29 = vadd.f32 %v2608_v26, %v3064_v24  ;;  %v611_v30 = vpop.f32.mrb[19].mxu0 }
 0x10c   : > { %v687_v31 = vmax.f32 %v609_v25, 0.0  ;;  %v612_v32 = vadd.f32 %v3064_v24, %v611_v30  ;;  %1910 = vmatpush1.bf16.msra.mxu1 %v2666_v41  ;;  %v2671_v30 = vld [vmem:[%s4137_s7 + $0x38] sm:$0xff]  }
 0x10d   : > { %v690_v34 = vmax.f32 %v620_v29, 0.0  ;;  %1911 = vmatprep.subr.bf16.mxu1 %v2938_v23 }
 0x10e   : > { %v688_v35 = vmax.f32 %v612_v32, 0.0  ;;  %v2673_v32 = vld [vmem:[%s4137_s7 + $0x48] sm:$0xff]  }
 0x10f   : > { %v3136_v36 = vpack.c.bf16 %v690_v34, %v689_v28  ;;  %v3272_v34 = vshrl.u32 %v725_v33, 7 }
 0x110   : > { %v3138_v38 = vpack.c.bf16 %v688_v35, %v687_v31  ;;  %v2611_v40 = vpop.f32.mrb[20].mxu0  ;;  %1912 = vmatpush1.bf16.msra.mxu1 %v2667_v51  ;;  %v2672_v31 = vld [vmem:[%s4137_s7 + $0x40] sm:$0xff]  }
 0x111   : > { %4165 = vst [vmem:[#allocation10_spill] sm:$0xff] %v3136_v36  ;;  %v633_v42 = vadd.f32 %v2611_v40, %v3064_v24  ;;  %v624_v43 = vpop.f32.mrb[21].mxu0  ;;  %1913 = vmatprep.subr.bf16.mxu1 %v2938_v23  ;;  %v727_v35 = vsub.s32 0, %v3272_v34  ;;  %v723_v40 = vld [vmem:[%s4134_s4] sm:$0x3]  ;;  %v731_v41 = vsub.s32 1, %v3272_v34 }
 0x112   : > { %4166 = vst [vmem:[#allocation11_spill] sm:$0xff] %v3138_v38  ;;  %2415 = vmatmul.mubr.msk.bf16.gmra.mrb[8].mxu1 %vm755_vm2, %v3117_v19  ;;  %2429 = vmatmul.mubr.msk.bf16.vlgmr.msra.gmra.mrb[48].mxu0 %vm755_vm2, %v3075_v39  ;;  %v625_v44 = vadd.f32 %v3064_v24, %v624_v43  ;;  %v2612_v45 = vpop.f32.mrb[22].mxu0 }
 0x113   : > { %906 = vmatprep.mubr.bf16.mxu1 %v2938_v23  ;;  %1075 = vmatprep.mubr.bf16.mxu0 %v2938_v23  ;;  %v693_v46 = vmax.f32 %v633_v42, 0.0  ;;  %v636_v47 = vadd.f32 %v2612_v45, %v3064_v24  ;;  %v627_v48 = vpop.f32.mrb[23].mxu0  ;;  %v3281_v42 = vrot.slane %v723_v40, %v727_v35 }
 0x114   : > { %v691_v49 = vmax.f32 %v625_v44, 0.0  ;;  %v628_v50 = vadd.f32 %v3064_v24, %v627_v48  ;;  %1914 = vmatpush1.bf16.msra.mxu1 %v2668_v59 }
 0x115   : > { %v694_v52 = vmax.f32 %v636_v47, 0.0  ;;  %1915 = vmatprep.subr.bf16.mxu1 %v2938_v23 }
 0x116   : > { %v692_v53 = vmax.f32 %v628_v50, 0.0 }
 0x117   : > { %v3158_v56 = vpack.c.bf16 %v694_v52, %v693_v46 }
 0x118   : > { %v3160_v57 = vpack.c.bf16 %v692_v53, %v691_v49  ;;  %v2615_v58 = vpop.f32.mrb[24].mxu0  ;;  %1916 = vmatpush1.bf16.msra.mxu1 %v2669_v7 }
 0x119   : > { %4167 = vst [vmem:[#allocation12_spill] sm:$0xff] %v3158_v56  ;;  %v649_v60 = vadd.f32 %v2615_v58, %v3064_v24  ;;  %v640_v61 = vpop.f32.mrb[25].mxu0  ;;  %1917 = vmatprep.subr.bf16.mxu1 %v2938_v23 }
 0x11a   : > { %4168 = vst [vmem:[#allocation13_spill] sm:$0xff] %v3160_v57  ;;  %2416 = vmatmul.mubr.msk.bf16.gmra.mrb[12].mxu1 %vm755_vm2, %v3115_v18  ;;  %2430 = vmatmul.mubr.msk.bf16.gmra.mrb[52].mxu0 %vm755_vm2, %v3070_v37  ;;  %v641_v62 = vadd.f32 %v3064_v24, %v640_v61  ;;  %v2616_v63 = vpop.f32.mrb[26].mxu0 }
 0x11b   : > { %916 = vmatprep.mubr.bf16.mxu1 %v2938_v23  ;;  %1085 = vmatprep.mubr.bf16.mxu0 %v2938_v23  ;;  %v697_v0 = vmax.f32 %v649_v60, 0.0  ;;  %v652_v1 = vadd.f32 %v2616_v63, %v3064_v24  ;;  %v643_v2 = vpop.f32.mrb[27].mxu0 }
 0x11c   : > { %v695_v3 = vmax.f32 %v641_v62, 0.0  ;;  %v644_v6 = vadd.f32 %v3064_v24, %v643_v2 }
 0x11d   : > { %v698_v8 = vmax.f32 %v652_v1, 0.0 }
 0x11e   : > { %v696_v9 = vmax.f32 %v644_v6, 0.0 }
 0x11f   : > { %v3180_v10 = vpack.c.bf16 %v698_v8, %v697_v0 }
 0x120   : > { %v3182_v11 = vpack.c.bf16 %v696_v9, %v695_v3  ;;  %v2619_v12 = vpop.f32.mrb[28].mxu0 }
 0x121   : > { %4169 = vst [vmem:[#allocation14_spill] sm:$0xff] %v3180_v10  ;;  %v665_v13 = vadd.f32 %v2619_v12, %v3064_v24  ;;  %v656_v14 = vpop.f32.mrb[29].mxu0 }
 0x122   : > { %4170 = vst [vmem:[#allocation15_spill] sm:$0xff] %v3182_v11  ;;  %2417 = vmatmul.mubr.msk.bf16.gmra.mrb[16].mxu1 %vm755_vm2, %v3138_v38  ;;  %2431 = vmatmul.mubr.msk.bf16.gmra.mrb[56].mxu0 %vm755_vm2, %v3092_v55  ;;  %v657_v15 = vadd.f32 %v3064_v24, %v656_v14  ;;  %v2620_v16 = vpop.f32.mrb[30].mxu0 }
 0x123   : > { %926 = vmatprep.mubr.bf16.mxu1 %v2938_v23  ;;  %1095 = vmatprep.mubr.bf16.mxu0 %v2938_v23  ;;  %v701_v17 = vmax.f32 %v665_v13, 0.0  ;;  %v668_v20 = vadd.f32 %v2620_v16, %v3064_v24  ;;  %v659_v21 = vpop.f32.mrb[31].mxu0 }
 0x124   : > { %v699_v22 = vmax.f32 %v657_v15, 0.0  ;;  %v660_v25 = vadd.f32 %v3064_v24, %v659_v21  ;;  %v2670_v24 = vld [vmem:[%s4137_s7 + $0x30] sm:$0xff]  }
 0x125   : > { %v702_v26 = vmax.f32 %v668_v20, 0.0  ;;  %1918 = vmatpush1.bf16.msra.mxu1 %v2670_v24 }
 0x126   : > { %v700_v27 = vmax.f32 %v660_v25, 0.0  ;;  %1919 = vmatprep.subr.bf16.mxu1 %v2938_v23 }
 0x127   : > { %v3195_v28 = vpack.c.bf16 %v702_v26, %v701_v17 }
 0x128   : > { %v3197_v29 = vpack.c.bf16 %v700_v27, %v699_v22 }
 0x129   : > { %4171 = vst [vmem:[#allocation16_spill] sm:$0xff] %v3195_v28  ;;  %1920 = vmatpush1.bf16.msra.mxu1 %v2671_v30 }
 0x12a   : > { %4172 = vst [vmem:[#allocation17_spill] sm:$0xff] %v3197_v29  ;;  %2418 = vmatmul.mubr.msk.bf16.gmra.mrb[20].mxu1 %vm755_vm2, %v3136_v36  ;;  %2432 = vmatmul.mubr.msk.bf16.gmra.mrb[60].mxu0 %vm755_vm2, %v3090_v54 }
 0x12b   : > { %936 = vmatprep.mubr.bf16.mxu1 %v2938_v23  ;;  %1105 = vmatprep.mubr.bf16.mxu0 %v2938_v23 }
 0x12c   : > { %1921 = vmatprep.subr.bf16.mxu1 %v2938_v23 }
 0x12d   : > { %1922 = vmatpush1.bf16.msra.mxu1 %v2672_v31 }
 0x12e   : > { %1923 = vmatprep.subr.bf16.mxu1 %v2938_v23 }
 0x131   : > { %1924 = vmatpush1.bf16.msra.mxu1 %v2673_v32 }
 0x132   : > { %2419 = vmatmul.mubr.msk.bf16.gmra.mrb[24].mxu1 %vm755_vm2, %v3160_v57  ;;  %2433 = vmatmul.mubr.msk.bf16.gmra.mrb[64].mxu0 %vm755_vm2, %v3103_v5 }
 0x133   : > { %946 = vmatprep.mubr.bf16.mxu1 %v2938_v23  ;;  %1115 = vmatprep.mubr.bf16.mxu0 %v2938_v23 }
 0x13a   : > { %2420 = vmatmul.mubr.msk.bf16.gmra.mrb[28].mxu1 %vm755_vm2, %v3158_v56  ;;  %2434 = vmatmul.mubr.msk.bf16.gmra.mrb[68].mxu0 %vm755_vm2, %v3101_v4 }
 0x13b   : > { %956 = vmatprep.mubr.bf16.mxu1 %v2938_v23  ;;  %1125 = vmatprep.mubr.bf16.mxu0 %v2938_v23 }
 0x142   : > { %2421 = vmatmul.mubr.msk.bf16.gmra.mrb[32].mxu1 %vm755_vm2, %v3182_v11  ;;  %2435 = vmatmul.mubr.msk.bf16.gmra.mrb[72].mxu0 %vm755_vm2, %v3117_v19 }
 0x143   : > { %966 = vmatprep.mubr.bf16.mxu1 %v2938_v23  ;;  %1135 = vmatprep.mubr.bf16.mxu0 %v2938_v23 }
 0x14a   : > { %2422 = vmatmul.mubr.msk.bf16.gmra.mrb[36].mxu1 %vm755_vm2, %v3180_v10  ;;  %2436 = vmatmul.mubr.msk.bf16.gmra.mrb[76].mxu0 %vm755_vm2, %v3115_v18 }
 0x14b   : > { %976 = vmatprep.mubr.bf16.mxu1 %v2938_v23  ;;  %1145 = vmatprep.mubr.bf16.mxu0 %v2938_v23 }
 0x152   : > { %2423 = vmatmul.mubr.msk.bf16.gmra.mrb[40].mxu1 %vm755_vm2, %v3197_v29  ;;  %2437 = vmatmul.mubr.msk.bf16.gmra.mrb[80].mxu0 %vm755_vm2, %v3138_v38 }
 0x153   : > { %986 = vmatprep.mubr.bf16.mxu1 %v2938_v23  ;;  %1155 = vmatprep.mubr.bf16.mxu0 %v2938_v23 }
 0x15a   : > { %2424 = vmatmul.mubr.msk.bf16.gmra.mrb[44].mxu1 %vm755_vm2, %v3195_v28  ;;  %2438 = vmatmul.mubr.msk.bf16.gmra.mrb[84].mxu0 %vm755_vm2, %v3136_v36 }
 0x15b   : > { %1165 = vmatprep.mubr.bf16.mxu0 %v2938_v23 }
 0x162   : > { %2439 = vmatmul.mubr.msk.bf16.gmra.mrb[88].mxu0 %vm755_vm2, %v3160_v57 }
 0x163   : > { %1175 = vmatprep.mubr.bf16.mxu0 %v2938_v23 }
 0x16a   : > { %2440 = vmatmul.mubr.msk.bf16.gmra.mrb[92].mxu0 %vm755_vm2, %v3158_v56 }
 0x16b   : > { %1185 = vmatprep.mubr.bf16.mxu0 %v2938_v23 }
 0x172   : > { %2441 = vmatmul.mubr.msk.bf16.gmra.mrb[96].mxu0 %vm755_vm2, %v3182_v11 }
 0x173   : > { %1195 = vmatprep.mubr.bf16.mxu0 %v2938_v23 }
 0x17a   : > { %2442 = vmatmul.mubr.msk.bf16.gmra.mrb[100].mxu0 %vm755_vm2, %v3180_v10 }
 0x17b   : > { %1205 = vmatprep.mubr.bf16.mxu0 %v2938_v23 }
 0x182   : > { %2443 = vmatmul.mubr.msk.bf16.gmra.mrb[104].mxu0 %vm755_vm2, %v3197_v29 }
 0x183   : > { %1215 = vmatprep.mubr.bf16.mxu0 %v2938_v23  ;;  %v3285_v23 = vrot.slane %v723_v40, %v731_v41 }
 0x18a   : > { %2444 = vmatmul.mubr.msk.bf16.gmra.mrb[108].mxu0 %vm755_vm2, %v3195_v28 }
 0x1c5   : > { %v838_v43 = vpop.f32.mrb[32].mxu0 }
 0x1c6   : > { %v3288_v44 = vadd.f32 %v838_v43, %v3281_v42  ;;  %v840_v45 = vpop.f32.mrb[33].mxu0 }
 0x1c7   : > { %v3291_v46 = vadd.f32 %v840_v45, %v3285_v23  ;;  %v842_v47 = vpop.f32.mrb[34].mxu0 }
 0x1c8   : > { %v2445_v48 = vmul.f32 -1.442695, %v3288_v44  ;;  %v3295_v49 = vadd.f32 %v842_v47, %v3281_v42  ;;  %v844_v50 = vpop.f32.mrb[35].mxu0 }
 0x1c9   : > { %v2446_v51 = vmul.f32 -1.442695, %v3291_v46  ;;  %v3299_v52 = vadd.f32 %v844_v50, %v3285_v23 }
 0x1ca   : > { %2674 = vpow2.f32 %v2445_v48  ;;  %v2447_v53 = vmul.f32 -1.442695, %v3295_v49 }
 0x1cb   : > { %2676 = vpow2.f32 %v2446_v51  ;;  %v2448_v58 = vmul.f32 -1.442695, %v3299_v52  ;;  %v1001_v51 = vld [vmem:[%s4136_s6] sm:$0x3] }
 0x1cc   : > { %2678 = vpow2.f32 %v2447_v53 }
 0x1cd   : > { %2680 = vpow2.f32 %v2448_v58  ;;  %v848_v59 = vpop.f32.mrb[36].mxu0 }
 0x1ce   : > { %v3304_v60 = vadd.f32 %v848_v59, %v3281_v42  ;;  %v850_v61 = vpop.f32.mrb[37].mxu0 }
 0x1cf   : > { %v3307_v62 = vadd.f32 %v850_v61, %v3285_v23  ;;  %v852_v63 = vpop.f32.mrb[38].mxu0 }
 0x1d0   : > { %v2449_v0 = vmul.f32 -1.442695, %v3304_v60  ;;  %v3311_v1 = vadd.f32 %v852_v63, %v3281_v42  ;;  %v854_v2 = vpop.f32.mrb[39].mxu0  ;;  %v3349_v63 = vrot.slane %v1001_v51, %v727_v35 }
 0x1d1   : > { %v2450_v3 = vmul.f32 -1.442695, %v3307_v62  ;;  %v3315_v6 = vadd.f32 %v854_v2, %v3285_v23 }
 0x1d2   : > { %2682 = vpow2.f32 %v2449_v0  ;;  %v2451_v7 = vmul.f32 -1.442695, %v3311_v1 }
 0x1d3   : > { %2684 = vpow2.f32 %v2450_v3  ;;  %v2452_v8 = vmul.f32 -1.442695, %v3315_v6 }
 0x1d4   : > { %v2675_v9 = vpop.eup %2674  ;;  %2686 = vpow2.f32 %v2451_v7 }
 0x1d5   : > { %v2677_v12 = vpop.eup %2676  ;;  %v1418_v13 = vadd.f32 1.0, %v2675_v9  ;;  %2688 = vpow2.f32 %v2452_v8  ;;  %v858_v14 = vpop.f32.mrb[40].mxu0 }
 0x1d6   : > { %v878_v15 = vpop.f32.mrb[0].mxu1  ;;  %v2679_v16 = vpop.eup %2678  ;;  %v1419_v17 = vadd.f32 1.0, %v2677_v12  ;;  %v3320_v20 = vadd.f32 %v858_v14, %v3281_v42 }
 0x1d7   : > { %v3323_v21 = vadd.f32 %v878_v15, %v3281_v42  ;;  %v860_v22 = vpop.f32.mrb[41].mxu0  ;;  %v880_v25 = vpop.f32.mrb[1].mxu1  ;;  %2690 = vrcp.f32 %v1418_v13  ;;  %v1420_v27 = vadd.f32 1.0, %v2679_v16 }
 0x1d8   : > { %v2681_v26 = vpop.eup %2680  ;;  %v3326_v24 = vadd.f32 %v860_v22, %v3285_v23  ;;  %v3329_v30 = vadd.f32 %v880_v25, %v3285_v23  ;;  %v862_v31 = vpop.f32.mrb[42].mxu0  ;;  %2692 = vrcp.f32 %v1419_v17  ;;  %v2453_v40 = vmul.f32 -1.442695, %v3320_v20 }
 0x1d9   : > { %v882_v32 = vpop.f32.mrb[2].mxu1  ;;  %v1421_v33 = vadd.f32 1.0, %v2681_v26  ;;  %v2461_v43 = vmul.f32 -1.442695, %v3323_v21  ;;  %v864_v45 = vpop.f32.mrb[43].mxu0  ;;  %2694 = vrcp.f32 %v1420_v27  ;;  %v3335_v48 = vadd.f32 %v862_v31, %v3281_v42 }
 0x1da   : > { %v2454_v47 = vmul.f32 -1.442695, %v3326_v24  ;;  %v884_v50 = vpop.f32.mrb[3].mxu1  ;;  %v2462_v53 = vmul.f32 -1.442695, %v3329_v30  ;;  %v3342_v59 = vadd.f32 %v882_v32, %v3281_v42  ;;  %v3345_v61 = vadd.f32 %v864_v45, %v3285_v23 }
 0x1db   : > { %2696 = vrcp.f32 %v1421_v33  ;;  %v2455_v3 = vmul.f32 -1.442695, %v3335_v48  ;;  %v3353_v7 = vadd.f32 %v884_v50, %v3285_v23 }
 0x1dc   : > { %2698 = vpow2.f32 %v2453_v40  ;;  %v2683_v58 = vpop.eup %2682  ;;  %v2463_v33 = vmul.f32 -1.442695, %v3342_v59 }
 0x1dd   : > { %2700 = vpow2.f32 %v2461_v43  ;;  %v2685_v0 = vpop.eup %2684  ;;  %v1422_v2 = vadd.f32 1.0, %v2683_v58  ;;  %v868_v8 = vpop.f32.mrb[44].mxu0  ;;  %v3370_v43 = vrot.slane %v1001_v51, %v731_v41  ;;  %v2464_v50 = vmul.f32 -1.442695, %v3353_v7 }
 0x1de   : > { %2702 = vpow2.f32 %v2454_v47  ;;  %v888_v9 = vpop.f32.mrb[4].mxu1  ;;  %v2687_v12 = vpop.eup %2686  ;;  %v1423_v13 = vadd.f32 1.0, %v2685_v0  ;;  %v3356_v14 = vadd.f32 %v868_v8, %v3281_v42  ;;  %v2456_v47 = vmul.f32 -1.442695, %v3345_v61 }
 0x1df   : > { %2704 = vpow2.f32 %v2462_v53  ;;  %v3359_v15 = vadd.f32 %v888_v9, %v3281_v42  ;;  %v870_v35 = vpop.f32.mrb[45].mxu0  ;;  %v890_v16 = vpop.f32.mrb[5].mxu1  ;;  %v1424_v22 = vadd.f32 1.0, %v2687_v12 }
 0x1e0   : > { %v2689_v17 = vpop.eup %2688  ;;  %2706 = vrcp.f32 %v1422_v2  ;;  %v3362_v25 = vadd.f32 %v870_v35, %v3285_v23  ;;  %v3365_v26 = vadd.f32 %v890_v16, %v3285_v23  ;;  %v872_v27 = vpop.f32.mrb[46].mxu0  ;;  %v2457_v2 = vmul.f32 -1.442695, %v3356_v14 }
 0x1e1   : > { %v892_v31 = vpop.f32.mrb[6].mxu1  ;;  %2708 = vrcp.f32 %v1423_v13  ;;  %v1425_v32 = vadd.f32 1.0, %v2689_v17  ;;  %v874_v40 = vpop.f32.mrb[47].mxu0  ;;  %v3375_v53 = vadd.f32 %v872_v27, %v3281_v42  ;;  %v2465_v8 = vmul.f32 -1.442695, %v3359_v15 }
 0x1e2   : > { %v2691_v45 = vpop.eup %2690  ;;  %2710 = vrcp.f32 %v1424_v22  ;;  %v894_v58 = vpop.f32.mrb[7].mxu1  ;;  %v3380_v34 = vadd.f32 %v892_v31, %v3281_v42  ;;  %v2458_v9 = vmul.f32 -1.442695, %v3362_v25  ;;  %v2466_v12 = vmul.f32 -1.442695, %v3365_v26 }
 0x1e3   : > { %v2693_v0 = vpop.eup %2692  ;;  %2712 = vrcp.f32 %v1425_v32  ;;  %v1610_v51 = vmul.f32 %v2691_v45, %v3288_v44  ;;  %v3387_v16 = vmul.f32 -1.442695, %v3375_v53  ;;  %v3390_v17 = vadd.f32 %v874_v40, %v3285_v23 }
 0x1e4   : > { %v2695_v41 = vpop.eup %2694  ;;  %2714 = vpow2.f32 %v2455_v3  ;;  %v1611_v35 = vmul.f32 %v2693_v0, %v3291_v46  ;;  %v3394_v44 = vmul.f32 -1.442695, %v3380_v34  ;;  %v3397_v3 = vadd.f32 %v894_v58, %v3285_v23 }
 0x1e5   : > { %v2697_v13 = vpop.eup %2696  ;;  %2716 = vpow2.f32 %v2463_v33  ;;  %v1612_v27 = vmul.f32 %v2695_v41, %v3295_v49  ;;  %v898_v31 = vpop.f32.mrb[8].mxu1 }
 0x1e6   : > { %v2699_v22 = vpop.eup %2698  ;;  %2718 = vpow2.f32 %v2456_v47  ;;  %v1067_v32 = vpop.f32.mrb[48].mxu0  ;;  %v3400_v45 = vadd.f32 %v898_v31, %v3281_v42 }
 0x1e7   : > { %v2701_v46 = vpop.eup %2700  ;;  %v1426_v33 = vadd.f32 1.0, %v2699_v22  ;;  %2720 = vpow2.f32 %v2464_v50  ;;  %v1068_v40 = vadd.f32 %v1067_v32, %v3349_v63  ;;  %v900_v0 = vpop.f32.mrb[9].mxu1  ;;  %v3408_v22 = vmul.f32 -1.442695, %v3390_v17 }
 0x1e8   : > { %v1069_v28 = vpop.f32.mrb[49].mxu0  ;;  %v2703_v49 = vpop.eup %2702  ;;  %v1434_v47 = vadd.f32 1.0, %v2701_v46  ;;  %2722 = vpow2.f32 %v2457_v2  ;;  %v3404_v41 = vadd.f32 %v900_v0, %v3285_v23  ;;  %v1613_v46 = vmul.f32 %v2697_v13, %v3299_v52 }
 0x1e9   : > { %v1070_v58 = vadd.f32 %v1069_v28, %v3370_v43  ;;  %v902_v29 = vpop.f32.mrb[10].mxu1  ;;  %v1071_v10 = vpop.f32.mrb[50].mxu0  ;;  %2724 = vrcp.f32 %v1426_v33  ;;  %v1427_v50 = vadd.f32 1.0, %v2703_v49  ;;  %v1674_v31 = vmul.f32 %v1610_v51, %v1068_v40 }
 0x1ea   : > { %v2705_v11 = vpop.eup %2704  ;;  %v904_v32 = vpop.f32.mrb[11].mxu1  ;;  %2726 = vrcp.f32 %v1434_v47  ;;  %v3412_v28 = vmul.f32 -1.442695, %v3397_v3  ;;  %v3415_v33 = vadd.f32 %v902_v29, %v3281_v42  ;;  %v1072_v49 = vadd.f32 %v1071_v10, %v3349_v63 }
 0x1eb   : > { %v1073_v56 = vpop.f32.mrb[51].mxu0  ;;  %v2707_v57 = vpop.eup %2706  ;;  %v1435_v2 = vadd.f32 1.0, %v2705_v11  ;;  %v1675_v0 = vmul.f32 %v1611_v35, %v1070_v58  ;;  %2728 = vrcp.f32 %v1427_v50  ;;  %v3419_v51 = vmul.f32 -1.442695, %v3400_v45 }
 0x1ec   : > { %v2709_v36 = vpop.eup %2708  ;;  %v3422_v52 = vmul.f32 -1.442695, %v3404_v41  ;;  %v1074_v11 = vadd.f32 %v1073_v56, %v3370_v43  ;;  %v1614_v35 = vmul.f32 %v2707_v57, %v3304_v60  ;;  %v1676_v29 = vmul.f32 %v1612_v27, %v1072_v49 }
 0x1ed   : > { %v2711_v38 = vpop.eup %2710  ;;  %2730 = vrcp.f32 %v1435_v2  ;;  %v1615_v40 = vmul.f32 %v2709_v36, %v3307_v62  ;;  %v3429_v58 = vadd.f32 %v904_v32, %v3285_v23  ;;  %v908_v2 = vpop.f32.mrb[12].mxu1  ;;  %v3432_v56 = vmul.f32 -1.442695, %v3415_v33 }
 0x1ee   : > { %v2713_v13 = vpop.eup %2712  ;;  %2732 = vpow2.f32 %v2465_v8  ;;  %v1616_v10 = vmul.f32 %v2711_v38, %v3311_v1  ;;  %v1677_v50 = vmul.f32 %v1613_v46, %v1074_v11  ;;  %v1077_v18 = vpop.f32.mrb[52].mxu0  ;;  %v1738_v57 = vpack.c.bf16 %v1676_v29, %v1674_v31 }
 0x1ef   : > { %v2715_v47 = vpop.eup %2714  ;;  %2734 = vpow2.f32 %v2458_v9  ;;  %v910_v36 = vpop.f32.mrb[13].mxu1  ;;  %v1078_v1 = vadd.f32 %v1077_v18, %v3349_v63 }
 0x1f0   : > { %v2717_v19 = vpop.eup %2716  ;;  %v1428_v4 = vadd.f32 1.0, %v2715_v47  ;;  %2736 = vpow2.f32 %v2466_v12  ;;  %v1079_v60 = vpop.f32.mrb[53].mxu0  ;;  %v1739_v38 = vpack.c.bf16 %v1677_v50, %v1675_v0  ;;  %v3437_v12 = vadd.f32 %v908_v2, %v3281_v42 }
 0x1f1   : > { %v2719_v62 = vpop.eup %2718  ;;  %v1436_v8 = vadd.f32 1.0, %v2717_v19  ;;  %2738 = vpow2.f32 %v3387_v16  ;;  %v912_v9 = vpop.f32.mrb[14].mxu1  ;;  %v3440_v49 = vadd.f32 %v910_v36, %v3285_v23  ;;  %v3442_v16 = vmul.f32 %v1614_v35, %v1078_v1 }
 0x1f2   : > { %v1081_v27 = vpop.f32.mrb[54].mxu0  ;;  %v2721_v32 = vpop.eup %2720  ;;  %2740 = vrcp.f32 %v1428_v4  ;;  %v1429_v46 = vadd.f32 1.0, %v2719_v62  ;;  %v1080_v18 = vadd.f32 %v1079_v60, %v3370_v43  ;;  %2520 = vmatprep.mubr.msk.bf16.mxu1 %vm755_vm2, %v1739_v38  ;;  %v1617_v4 = vmul.f32 %v2713_v13, %v3315_v6 }
 0x1f3   : > { %v914_v31 = vpop.f32.mrb[15].mxu1  ;;  %v1083_v11 = vpop.f32.mrb[55].mxu0  ;;  %2742 = vrcp.f32 %v1436_v8  ;;  %v1437_v19 = vadd.f32 1.0, %v2721_v32  ;;  %v3448_v50 = vadd.f32 %v912_v9, %v3281_v42  ;;  %1938 = vmatmul.mubr.bf16.vlgmr.msra.gmra.mrb[48].mxu1 %v1738_v57  ;;  %v3451_v36 = vmul.f32 -1.442695, %v3429_v58 }
 0x1f4   : > { %v2723_v29 = vpop.eup %2722  ;;  %2744 = vrcp.f32 %v1429_v46  ;;  %v1679_v35 = vmul.f32 %v1615_v40, %v1080_v18  ;;  %v1082_v62 = vadd.f32 %v1081_v27, %v3349_v63  ;;  %v3456_v6 = vmul.f32 -1.442695, %v3437_v12 }
 0x1f5   : > { %v2725_v0 = vpop.eup %2724  ;;  %v1430_v47 = vadd.f32 1.0, %v2723_v29  ;;  %2746 = vrcp.f32 %v1437_v19  ;;  %v3459_v13 = vmul.f32 -1.442695, %v3440_v49  ;;  %v1084_v40 = vadd.f32 %v1083_v11, %v3370_v43  ;;  %v918_v9 = vpop.f32.mrb[16].mxu1 }
 0x1f6   : > { %v2727_v2 = vpop.eup %2726  ;;  %v1618_v8 = vmul.f32 %v2725_v0, %v3320_v20  ;;  %v3465_v1 = vmul.f32 %v1616_v10, %v1082_v62  ;;  %v1087_v27 = vpop.f32.mrb[56].mxu0  ;;  %v3471_v46 = vmul.f32 -1.442695, %v3448_v50  ;;  %v3474_v29 = vadd.f32 %v914_v31, %v3285_v23 }
 0x1f7   : > { %v2729_v60 = vpop.eup %2728  ;;  %2748 = vrcp.f32 %v1430_v47  ;;  %v3462_v57 = vmul.f32 %v2727_v2, %v3323_v21  ;;  %v920_v21 = vpop.f32.mrb[17].mxu1  ;;  %v1681_v11 = vmul.f32 %v1617_v4, %v1084_v40  ;;  %v1088_v18 = vadd.f32 %v1087_v27, %v3349_v63 }
 0x1f8   : > { %v2731_v38 = vpop.eup %2730  ;;  %2750 = vpow2.f32 %v3394_v44  ;;  %v1619_v32 = vmul.f32 %v2729_v60, %v3326_v24  ;;  %v1089_v19 = vpop.f32.mrb[57].mxu0  ;;  %v3483_v31 = vadd.f32 %v920_v21, %v3285_v23  ;;  %v3493_v54 = vmul.f32 -1.442695, %v3474_v29 }
 0x1f9   : > { %v2733_v20 = vpop.eup %2732  ;;  %2752 = vpow2.f32 %v3408_v22  ;;  %v922_v0 = vpop.f32.mrb[18].mxu1  ;;  %v3480_v22 = vadd.f32 %v918_v9, %v3281_v42  ;;  %v1741_v4 = vpack.c.bf16 %v1681_v11, %v1679_v35  ;;  %v3485_v40 = vmul.f32 %v1618_v8, %v1088_v18 }
 0x1fa   : > { %v2735_v44 = vpop.eup %2734  ;;  %v1438_v10 = vadd.f32 1.0, %v2733_v20  ;;  %2754 = vpow2.f32 %v3412_v28  ;;  %v1091_v47 = vpop.f32.mrb[58].mxu0  ;;  %v3488_v5 = vmul.f32 %v2731_v38, %v3329_v30  ;;  %v1090_v9 = vadd.f32 %v1089_v19, %v3370_v43 }
 0x1fb   : > { %v2737_v24 = vpop.eup %2736  ;;  %v1431_v2 = vadd.f32 1.0, %v2735_v44  ;;  %2756 = vpow2.f32 %v3419_v51  ;;  %v924_v62 = vpop.f32.mrb[19].mxu1  ;;  %2521 = vmatprep.mubr.msk.bf16.mxu1 %vm755_vm2, %v1741_v4  ;;  %v3498_v30 = vmul.f32 -1.442695, %v3480_v22  ;;  %v3501_v8 = vmul.f32 -1.442695, %v3483_v31 }
 0x1fc   : > { %v1093_v60 = vpop.f32.mrb[59].mxu0  ;;  %v2739_v20 = vpop.eup %2738  ;;  %2758 = vrcp.f32 %v1438_v10  ;;  %v1439_v28 = vadd.f32 1.0, %v2737_v24  ;;  %v1092_v10 = vadd.f32 %v1091_v47, %v3349_v63  ;;  %v1683_v38 = vmul.f32 %v1619_v32, %v1090_v9 }
 0x1fd   : > { %v2741_v27 = vpop.eup %2740  ;;  %2760 = vrcp.f32 %v1431_v2  ;;  %v1432_v51 = vadd.f32 1.0, %v2739_v20  ;;  %v3508_v11 = vadd.f32 %v922_v0, %v3281_v42  ;;  %v928_v47 = vpop.f32.mrb[20].mxu1  ;;  %v3515_v32 = vadd.f32 %v924_v62, %v3285_v23 }
 0x1fe   : > { %v2743_v44 = vpop.eup %2742  ;;  %v1620_v21 = vmul.f32 %v2741_v27, %v3335_v48  ;;  %2762 = vrcp.f32 %v1439_v28  ;;  %v1097_v24 = vpop.f32.mrb[60].mxu0  ;;  %v1740_v27 = vpack.c.bf16 %v3465_v1, %v3442_v16 }
 0x1ff   : > { %v2745_v35 = vpop.eup %2744  ;;  %2764 = vrcp.f32 %v1432_v51  ;;  %v3504_v48 = vmul.f32 %v2743_v44, %v3342_v59  ;;  %v1094_v59 = vadd.f32 %v1093_v60, %v3370_v43  ;;  %v930_v28 = vpop.f32.mrb[21].mxu1  ;;  %v3523_v51 = vadd.f32 %v928_v47, %v3281_v42 }
 0x200   : > { %v2747_v19 = vpop.eup %2746  ;;  %2766 = vpow2.f32 %v3422_v52  ;;  %v3510_v18 = vmul.f32 %v1620_v21, %v1092_v10  ;;  %v1621_v20 = vmul.f32 %v2745_v35, %v3345_v61  ;;  %v1099_v4 = vpop.f32.mrb[61].mxu0  ;;  %v1098_v44 = vadd.f32 %v1097_v24, %v3349_v63  ;;  %1946 = vmatmul.mubr.bf16.gmra.mrb[52].mxu1 %v1740_v27 }
 0x201   : > { %v2749_v2 = vpop.eup %2748  ;;  %2768 = vpow2.f32 %v3432_v56  ;;  %v932_v61 = vpop.f32.mrb[22].mxu1  ;;  %v3529_v16 = vmul.f32 -1.442695, %v3508_v11  ;;  %v3541_v27 = vmul.f32 -1.442695, %v3515_v32 }
 0x202   : > { %v2751_v52 = vpop.eup %2750  ;;  %v1622_v0 = vmul.f32 %v2749_v2, %v3356_v14  ;;  %2770 = vpow2.f32 %v3451_v36  ;;  %v1101_v56 = vpop.f32.mrb[62].mxu0  ;;  %v1685_v60 = vmul.f32 %v1621_v20, %v1094_v59  ;;  %v3532_v36 = vadd.f32 %v930_v28, %v3285_v23 }
 0x203   : > { %v2753_v9 = vpop.eup %2752  ;;  %v1440_v62 = vadd.f32 1.0, %v2751_v52  ;;  %2772 = vpow2.f32 %v3456_v6  ;;  %v934_v21 = vpop.f32.mrb[23].mxu1  ;;  %v3537_v20 = vmul.f32 %v2747_v19, %v3353_v7  ;;  %v3544_v28 = vmul.f32 -1.442695, %v3523_v51 }
 0x204   : > { %v1103_v10 = vpop.f32.mrb[63].mxu0  ;;  %v2755_v14 = vpop.eup %2754  ;;  %v1433_v35 = vadd.f32 1.0, %v2753_v9  ;;  %2774 = vpow2.f32 %v3459_v13  ;;  %v1743_v6 = vpack.c.bf16 %v1685_v60, %v1683_v38  ;;  %v3534_v2 = vmul.f32 %v1622_v0, %v1098_v44 }
 0x205   : > { %v2757_v1 = vpop.eup %2756  ;;  %2776 = vrcp.f32 %v1440_v62  ;;  %v1441_v47 = vadd.f32 1.0, %v2755_v14  ;;  %v1100_v13 = vadd.f32 %v1099_v4, %v3370_v43  ;;  %v3547_v38 = vmul.f32 -1.442695, %v3532_v36  ;;  %v938_v9 = vpop.f32.mrb[24].mxu1 }
 0x206   : > { %v2759_v24 = vpop.eup %2758  ;;  %2778 = vrcp.f32 %v1433_v35  ;;  %v1442_v59 = vadd.f32 1.0, %v2757_v1  ;;  %2522 = vmatprep.mubr.msk.bf16.mxu1 %vm755_vm2, %v1743_v6  ;;  %v1102_v4 = vadd.f32 %v1101_v56, %v3349_v63  ;;  %v1107_v62 = vpop.f32.mrb[64].mxu0  ;;  %v3557_v44 = vadd.f32 %v932_v61, %v3281_v42 }
 0x207   : > { %v2761_v52 = vpop.eup %2760  ;;  %2780 = vrcp.f32 %v1441_v47  ;;  %v3551_v7 = vmul.f32 %v2759_v24, %v3359_v15  ;;  %v3560_v14 = vadd.f32 %v934_v21, %v3285_v23  ;;  %v1742_v15 = vpack.c.bf16 %v3510_v18, %v3485_v40  ;;  %v940_v35 = vpop.f32.mrb[25].mxu1 }
 0x208   : > { %v2763_v0 = vpop.eup %2762  ;;  %v1623_v19 = vmul.f32 %v2761_v52, %v3362_v25  ;;  %2782 = vrcp.f32 %v1442_v59  ;;  %v1109_v1 = vpop.f32.mrb[65].mxu0  ;;  %v1108_v40 = vadd.f32 %v1107_v62, %v3349_v63 }
 0x209   : > { %v2765_v60 = vpop.eup %2764  ;;  %2784 = vpow2.f32 %v3471_v46  ;;  %v1104_v46 = vadd.f32 %v1103_v10, %v3370_v43  ;;  %v942_v6 = vpop.f32.mrb[26].mxu1  ;;  %v3570_v21 = vmul.f32 %v2763_v0, %v3365_v26  ;;  %1954 = vmatmul.mubr.bf16.gmra.mrb[56].mxu1 %v1742_v15  ;;  %v3578_v10 = vadd.f32 %v938_v9, %v3281_v42 }
 0x20a   : > { %v2767_v25 = vpop.eup %2766  ;;  %v1624_v47 = vmul.f32 %v2765_v60, %v3375_v53  ;;  %2786 = vpow2.f32 %v3493_v54  ;;  %v3566_v56 = vmul.f32 %v1623_v19, %v1100_v13  ;;  %v1111_v61 = vpop.f32.mrb[66].mxu0  ;;  %v3581_v0 = vmul.f32 %v3462_v57, %v1108_v40 }
 0x20b   : > { %v2769_v24 = vpop.eup %2768  ;;  %v1443_v59 = vadd.f32 1.0, %v2767_v25  ;;  %2788 = vpow2.f32 %v3498_v30  ;;  %v944_v18 = vpop.f32.mrb[27].mxu1  ;;  %v3584_v30 = vadd.f32 %v940_v35, %v3285_v23  ;;  %v3591_v25 = vadd.f32 %v942_v6, %v3281_v42 }
 0x20c   : > { %v1113_v52 = vpop.f32.mrb[67].mxu0  ;;  %v2771_v53 = vpop.eup %2770  ;;  %v1444_v60 = vadd.f32 1.0, %v2769_v24  ;;  %2790 = vpow2.f32 %v3501_v8  ;;  %v3575_v54 = vmul.f32 %v1624_v47, %v1102_v4  ;;  %v3587_v8 = vmul.f32 -1.442695, %v3557_v44 }
 0x20d   : > { %v2773_v13 = vpop.eup %2772  ;;  %2792 = vrcp.f32 %v1443_v59  ;;  %v1445_v26 = vadd.f32 1.0, %v2771_v53  ;;  %v1110_v4 = vadd.f32 %v1109_v1, %v3370_v43  ;;  %4173 = vst [vmem:[#allocation18_spill] sm:$0xff] %v3591_v25  ;;  %v1112_v57 = vadd.f32 %v1111_v61, %v3349_v63  ;;  %v948_v40 = vpop.f32.mrb[28].mxu1 }
 0x20e   : > { %v2775_v19 = vpop.eup %2774  ;;  %2794 = vrcp.f32 %v1444_v60  ;;  %v1446_v62 = vadd.f32 1.0, %v2773_v13  ;;  %v3595_v35 = vmul.f32 -1.442695, %v3560_v14  ;;  %v3598_v24 = vmul.f32 -1.442695, %v3578_v10  ;;  %v1117_v1 = vpop.f32.mrb[68].mxu0 }
 0x20f   : > { %v2777_v15 = vpop.eup %2776  ;;  %2796 = vrcp.f32 %v1445_v26  ;;  %v1447_v9 = vadd.f32 1.0, %v2775_v19  ;;  %v1691_v59 = vmul.f32 %v3488_v5, %v1110_v4  ;;  %v3603_v6 = vmul.f32 -1.442695, %v3584_v30  ;;  %v950_v13 = vpop.f32.mrb[29].mxu1 }
 0x210   : > { %v2779_v47 = vpop.eup %2778  ;;  %2798 = vrcp.f32 %v1446_v62  ;;  %v3606_v61 = vmul.f32 %v3504_v48, %v1112_v57  ;;  %v1119_v26 = vpop.f32.mrb[69].mxu0  ;;  %v1632_v62 = vmul.f32 %v2777_v15, %v3380_v34  ;;  %v3611_v5 = vadd.f32 %v944_v18, %v3285_v23 }
 0x211   : > { %v2781_v53 = vpop.eup %2780  ;;  %v1625_v60 = vmul.f32 %v2779_v47, %v3390_v17  ;;  %2800 = vrcp.f32 %v1447_v9  ;;  %v1114_v4 = vadd.f32 %v1113_v52, %v3370_v43  ;;  %v952_v17 = vpop.f32.mrb[30].mxu1  ;;  %v3616_v48 = vmul.f32 -1.442695, %v3591_v25 }
 0x212   : > { %v2783_v19 = vpop.eup %2782  ;;  %2802 = vpow2.f32 %v3529_v16  ;;  %v1121_v9 = vpop.f32.mrb[70].mxu0  ;;  %v1744_v57 = vpack.c.bf16 %v3575_v54, %v3534_v2  ;;  %v3623_v52 = vadd.f32 %v948_v40, %v3281_v42  ;;  %v1633_v54 = vmul.f32 %v2781_v53, %v3397_v3 }
 0x213   : > { %v2785_v47 = vpop.eup %2784  ;;  %2804 = vpow2.f32 %v3541_v27  ;;  %v1689_v55 = vmul.f32 %v1625_v60, %v1104_v46  ;;  %v954_v34 = vpop.f32.mrb[31].mxu1  ;;  %v1693_v18 = vmul.f32 %v3537_v20, %v1114_v4  ;;  %v1118_v60 = vadd.f32 %v1117_v1, %v3349_v63 }
 0x214   : > { %v1123_v15 = vpop.f32.mrb[71].mxu0  ;;  %v2787_v16 = vpop.eup %2786  ;;  %v1448_v37 = vadd.f32 1.0, %v2785_v47  ;;  %2806 = vpow2.f32 %v3544_v28  ;;  %v3645_v53 = vmul.f32 -1.442695, %v3623_v52 }
 0x215   : > { %v2789_v39 = vpop.eup %2788  ;;  %v1449_v27 = vadd.f32 1.0, %v2787_v16  ;;  %2808 = vpow2.f32 %v3547_v38  ;;  %v1745_v46 = vpack.c.bf16 %v1689_v55, %v3566_v56  ;;  %v1747_v25 = vpack.c.bf16 %v1693_v18, %v1691_v59  ;;  %v958_v3 = vpop.f32.mrb[32].mxu1 }
 0x216   : > { %v2791_v2 = vpop.eup %2790  ;;  %2810 = vrcp.f32 %v1448_v37  ;;  %v1450_v47 = vadd.f32 1.0, %v2789_v39  ;;  %v3631_v40 = vmul.f32 %v3551_v7, %v1118_v60  ;;  %v3634_v38 = vadd.f32 %v950_v13, %v3285_v23  ;;  %v1127_v59 = vpop.f32.mrb[72].mxu0 }
 0x217   : > { %v2793_v28 = vpop.eup %2792  ;;  %2812 = vrcp.f32 %v1449_v27  ;;  %v1451_v20 = vadd.f32 1.0, %v2791_v2  ;;  %2523 = vmatprep.mubr.msk.bf16.mxu1 %vm755_vm2, %v1745_v46  ;;  %v3637_v56 = vmul.f32 -1.442695, %v3611_v5  ;;  %v1120_v37 = vadd.f32 %v1119_v26, %v3370_v43  ;;  %v960_v4 = vpop.f32.mrb[33].mxu1 }
 0x218   : > { %v2795_v55 = vpop.eup %2794  ;;  %2814 = vrcp.f32 %v1450_v47  ;;  %1962 = vmatmul.mubr.bf16.gmra.mrb[60].mxu1 %v1744_v57  ;;  %v3641_v39 = vadd.f32 %v952_v17, %v3281_v42  ;;  %v1634_v7 = vmul.f32 %v2783_v19, %v3400_v45  ;;  %v1122_v13 = vadd.f32 %v1121_v9, %v3349_v63  ;;  %v1129_v57 = vpop.f32.mrb[73].mxu0 }
 0x219   : > { %v2797_v1 = vpop.eup %2796  ;;  %2816 = vrcp.f32 %v1451_v20  ;;  %2524 = vmatprep.mubr.msk.bf16.mxu1 %vm755_vm2, %v1747_v25  ;;  %v1635_v26 = vmul.f32 %v2793_v28, %v3404_v41  ;;  %v3651_v17 = vmul.f32 %v2795_v55, %v3415_v33  ;;  %v1695_v45 = vmul.f32 %v3570_v21, %v1120_v37  ;;  %v962_v19 = vpop.f32.mrb[34].mxu1 }
 0x21a   : > { %v2799_v16 = vpop.eup %2798  ;;  %2818 = vpow2.f32 %v3587_v8  ;;  %v1131_v18 = vpop.f32.mrb[74].mxu0  ;;  %v3656_v46 = vmul.f32 %v2797_v1, %v3429_v58  ;;  %v2490_v25 = vmul.f32 -1.442695, %v3634_v38  ;;  %v3660_v9 = vmul.f32 %v1632_v62, %v1122_v13 }
 0x21b   : > { %v2801_v27 = vpop.eup %2800  ;;  %2820 = vpow2.f32 %v3595_v35  ;;  %v964_v41 = vpop.f32.mrb[35].mxu1  ;;  %v2491_v8 = vmul.f32 -1.442695, %v3641_v39  ;;  %v1124_v21 = vadd.f32 %v1123_v15, %v3370_v43  ;;  %v1746_v2 = vpack.c.bf16 %v3606_v61, %v3581_v0 }
 0x21c   : > { %v1133_v60 = vpop.f32.mrb[75].mxu0  ;;  %v2803_v33 = vpop.eup %2802  ;;  %2822 = vpow2.f32 %v3598_v24  ;;  %v3669_v35 = vadd.f32 %v954_v34, %v3285_v23  ;;  %v3672_v62 = vadd.f32 %v958_v3, %v3281_v42  ;;  %v1128_v15 = vadd.f32 %v1127_v59, %v3349_v63 }
 0x21d   : > { %v2805_v58 = vpop.eup %2804  ;;  %v1452_v47 = vadd.f32 1.0, %v2803_v33  ;;  %2824 = vpow2.f32 %v3603_v6  ;;  %v1697_v24 = vmul.f32 %v1633_v54, %v1124_v21  ;;  %v3677_v0 = vmul.f32 %v2799_v16, %v3437_v12  ;;  %v1137_v54 = vpop.f32.mrb[76].mxu0 }
 0x21e   : > { %v2807_v28 = vpop.eup %2806  ;;  %v1453_v20 = vadd.f32 1.0, %v2805_v58  ;;  %2826 = vpow2.f32 %v3616_v48  ;;  %v3680_v6 = vadd.f32 %v960_v4, %v3285_v23  ;;  %v3682_v1 = vmul.f32 %v1634_v7, %v1128_v15  ;;  %v968_v48 = vpop.f32.mrb[36].mxu1 }
 0x21f   : > { %v2809_v55 = vpop.eup %2808  ;;  %2828 = vrcp.f32 %v1452_v47  ;;  %v1454_v61 = vadd.f32 1.0, %v2807_v28  ;;  %v1749_v3 = vpack.c.bf16 %v1697_v24, %v1695_v45  ;;  %v3685_v59 = vmul.f32 %v2801_v27, %v3440_v49  ;;  %v970_v16 = vpop.f32.mrb[37].mxu1 }
 0x220   : > { %v2811_v34 = vpop.eup %2810  ;;  %2830 = vrcp.f32 %v1453_v20  ;;  %v1455_v37 = vadd.f32 1.0, %v2809_v55  ;;  %1970 = vmatmul.mubr.bf16.gmra.mrb[64].mxu1 %v1746_v2  ;;  %v3688_v12 = vmul.f32 -1.442695, %v3669_v35  ;;  %v1130_v4 = vadd.f32 %v1129_v57, %v3370_v43  ;;  %v1139_v33 = vpop.f32.mrb[77].mxu0 }
 0x221   : > { %v2813_v13 = vpop.eup %2812  ;;  %2832 = vrcp.f32 %v1454_v61  ;;  %v3692_v45 = vmul.f32 %v2811_v34, %v3448_v50  ;;  %v3695_v7 = vmul.f32 -1.442695, %v3672_v62  ;;  %v1132_v2 = vadd.f32 %v1131_v18, %v3349_v63  ;;  %2525 = vmatprep.mubr.msk.bf16.mxu1 %vm755_vm2, %v1749_v3  ;;  %v3699_v49 = vpop.f32.mrb[38].mxu1 }
 0x222   : > { %v2815_v21 = vpop.eup %2814  ;;  %2834 = vrcp.f32 %v1455_v37  ;;  %v1141_v27 = vpop.f32.mrb[78].mxu0  ;;  %v3702_v57 = vmul.f32 %v2813_v13, %v3474_v29  ;;  %v3706_v50 = vmul.f32 -1.442695, %v3680_v6  ;;  %v1699_v47 = vmul.f32 %v1635_v26, %v1130_v4 }
 0x223   : > { %v2817_v58 = vpop.eup %2816  ;;  %2836 = vpow2.f32 %v3637_v56  ;;  %v3708_v28 = vpop.f32.mrb[39].mxu1  ;;  %v3713_v24 = vmul.f32 %v2815_v21, %v3480_v22  ;;  %v3717_v15 = vadd.f32 %v962_v19, %v3281_v42  ;;  %v3720_v29 = vmul.f32 %v3651_v17, %v1132_v2 }
 0x224   : > { %v3710_v20 = vpop.f32.mrb[79].mxu0  ;;  %v2819_v18 = vpop.eup %2818  ;;  %2838 = vpow2.f32 %v3645_v53  ;;  %v3723_v26 = vadd.f32 %v964_v41, %v3285_v23  ;;  %v1134_v61 = vadd.f32 %v1133_v60, %v3370_v43  ;;  %v1748_v22 = vpack.c.bf16 %v3660_v9, %v3631_v40 }
 0x225   : > { %v2821_v56 = vpop.eup %2820  ;;  %v1456_v55 = vadd.f32 1.0, %v2819_v18  ;;  %2840 = vpow2.f32 %v2490_v25  ;;  %v3729_v53 = vadd.f32 %v968_v48, %v3281_v42  ;;  %v1138_v25 = vadd.f32 %v1137_v54, %v3349_v63  ;;  %v978_v40 = vpop.f32.mrb[40].mxu1 }
 0x226   : > { %v2823_v34 = vpop.eup %2822  ;;  %v1457_v37 = vadd.f32 1.0, %v2821_v56  ;;  %2842 = vpow2.f32 %v2491_v8  ;;  %v1701_v3 = vmul.f32 %v3656_v46, %v1134_v61  ;;  %v3734_v13 = vmul.f32 %v2817_v58, %v3483_v31  ;;  %v1147_v9 = vpop.f32.mrb[80].mxu0 }
 0x227   : > { %v2825_v19 = vpop.eup %2824  ;;  %2844 = vrcp.f32 %v1456_v55  ;;  %v1458_v17 = vadd.f32 1.0, %v2823_v34  ;;  %v3737_v8 = vadd.f32 %v970_v16, %v3285_v23  ;;  %v3740_v46 = vmul.f32 %v3677_v0, %v1138_v25  ;;  %v980_v54 = vpop.f32.mrb[41].mxu1 }
 0x228   : > { %v2827_v41 = vpop.eup %2826  ;;  %2846 = vrcp.f32 %v1457_v37  ;;  %v1459_v60 = vadd.f32 1.0, %v2825_v19  ;;  %1978 = vmatmul.mubr.bf16.gmra.mrb[68].mxu1 %v1748_v22  ;;  %v1751_v21 = vpack.c.bf16 %v1701_v3, %v1699_v47  ;;  %v1149_v2 = vpop.f32.mrb[81].mxu0  ;;  %v2495_v31 = vmul.f32 -1.442695, %v3717_v15 }
 0x229   : > { %v2829_v48 = vpop.eup %2828  ;;  %2848 = vrcp.f32 %v1458_v17  ;;  %v1460_v4 = vadd.f32 1.0, %v2827_v41  ;;  %v3744_v58 = vmul.f32 -1.442695, %v3723_v26  ;;  %v1140_v16 = vadd.f32 %v1139_v33, %v3370_v43  ;;  %v3747_v56 = vpop.f32.mrb[42].mxu1 }
 0x22a   : > { %v2831_v18 = vpop.eup %2830  ;;  %2850 = vrcp.f32 %v1459_v60  ;;  %v1151_v55 = vpop.f32.mrb[82].mxu0  ;;  %v3750_v47 = vmul.f32 %v2829_v48, %v3508_v11  ;;  %v2497_v0 = vmul.f32 -1.442695, %v3729_v53  ;;  %v1142_v34 = vadd.f32 %v1141_v27, %v3349_v63  ;;  %2526 = vmatprep.mubr.msk.bf16.mxu1 %vm755_vm2, %v1751_v21 }
 0x22b   : > { %v2833_v61 = vpop.eup %2832  ;;  %2852 = vrcp.f32 %v1460_v4  ;;  %v3755_v37 = vpop.f32.mrb[43].mxu1  ;;  %v3760_v33 = vmul.f32 %v2831_v18, %v3515_v32  ;;  %v2498_v11 = vmul.f32 -1.442695, %v3737_v8  ;;  %v1703_v17 = vmul.f32 %v3685_v59, %v1140_v16 }
 0x22c   : > { %v3757_v22 = vpop.f32.mrb[83].mxu0  ;;  %v2835_v19 = vpop.eup %2834  ;;  %2854 = vpow2.f32 %v3688_v12  ;;  %v3766_v25 = vmul.f32 %v2833_v61, %v3523_v51  ;;  %v3771_v27 = vadd.f32 %v3699_v49, %v3281_v42  ;;  %v3774_v41 = vmul.f32 %v3692_v45, %v1142_v34 }
 0x22d   : > { %v2837_v3 = vpop.eup %2836  ;;  %2856 = vpow2.f32 %v3695_v7  ;;  %v3779_v59 = vadd.f32 %v3708_v28, %v3285_v23  ;;  %v1144_v51 = vadd.f32 %v3710_v20, %v3370_v43  ;;  %v1750_v49 = vpack.c.bf16 %v3720_v29, %v3682_v1  ;;  %v988_v21 = vpop.f32.mrb[44].mxu1 }
 0x22e   : > { %v2839_v32 = vpop.eup %2838  ;;  %v1461_v60 = vadd.f32 1.0, %v2837_v3  ;;  %2858 = vpow2.f32 %v3706_v50  ;;  %v3786_v45 = vadd.f32 %v978_v40, %v3281_v42  ;;  %v1148_v28 = vadd.f32 %v1147_v9, %v3349_v63  ;;  %v1157_v18 = vpop.f32.mrb[84].mxu0 }
 0x22f   : > { %v2841_v12 = vpop.eup %2840  ;;  %v1462_v7 = vadd.f32 1.0, %v2839_v32  ;;  %2860 = vpow2.f32 %v2495_v31  ;;  %v1705_v50 = vmul.f32 %v3702_v57, %v1144_v51  ;;  %v3791_v20 = vmul.f32 %v2835_v19, %v3532_v36  ;;  %v990_v29 = vpop.f32.mrb[45].mxu1 }
 0x230   : > { %v2843_v48 = vpop.eup %2842  ;;  %2862 = vrcp.f32 %v1461_v60  ;;  %v1463_v4 = vadd.f32 1.0, %v2841_v12  ;;  %1986 = vmatmul.mubr.bf16.gmra.mrb[72].mxu1 %v1750_v49  ;;  %v3794_v1 = vadd.f32 %v980_v54, %v3285_v23  ;;  %v3796_v40 = vpop.f32.mrb[85].mxu0  ;;  %v2499_v57 = vmul.f32 -1.442695, %v3771_v27 }
 0x231   : > { %v2845_v16 = vpop.eup %2844  ;;  %2864 = vrcp.f32 %v1462_v7  ;;  %v1464_v31 = vadd.f32 1.0, %v2843_v48  ;;  %v1753_v9 = vpack.c.bf16 %v1705_v50, %v1703_v17  ;;  %v3800_v34 = vmul.f32 %v3713_v24, %v1148_v28  ;;  %v3802_v3 = vpop.f32.mrb[46].mxu1 }
 0x232   : > { %v2847_v61 = vpop.eup %2846  ;;  %2866 = vrcp.f32 %v1463_v4  ;;  %v3804_v36 = vpop.f32.mrb[86].mxu0  ;;  %v2500_v54 = vmul.f32 -1.442695, %v3779_v59  ;;  %v2501_v32 = vmul.f32 -1.442695, %v3786_v45  ;;  %v1150_v60 = vadd.f32 %v1149_v2, %v3370_v43 }
 0x233   : > { %v2849_v19 = vpop.eup %2848  ;;  %2868 = vrcp.f32 %v1464_v31  ;;  %v3809_v51 = vpop.f32.mrb[47].mxu1  ;;  %v3814_v24 = vmul.f32 %v2845_v16, %v3557_v44  ;;  %v3817_v7 = vmul.f32 %v2847_v61, %v3560_v14  ;;  %v1152_v49 = vadd.f32 %v1151_v55, %v3349_v63  ;;  %2527 = vmatprep.mubr.msk.bf16.mxu1 %vm755_vm2, %v1753_v9 }
 0x234   : > { %v3811_v12 = vpop.f32.mrb[87].mxu0  ;;  %v2851_v17 = vpop.eup %2850  ;;  %2870 = vpow2.f32 %v3744_v58  ;;  %v3823_v2 = vmul.f32 %v2849_v19, %v3578_v10  ;;  %v2502_v4 = vmul.f32 -1.442695, %v3794_v1  ;;  %v1707_v50 = vmul.f32 %v3734_v13, %v1150_v60 }
 0x235   : > { %v2853_v48 = vpop.eup %2852  ;;  %2872 = vpow2.f32 %v2497_v0  ;;  %v3828_v28 = vmul.f32 %v2851_v17, %v3584_v30  ;;  %v3832_v14 = vadd.f32 %v3747_v56, %v3281_v42  ;;  %v3835_v58 = vmul.f32 %v3750_v47, %v1152_v49  ;;  %v1167_v47 = vpop.f32.mrb[88].mxu0 }
 0x236   : > { %v2855_v44 = vpop.eup %2854  ;;  %2874 = vpow2.f32 %v2498_v11  ;;  %v3839_v0 = vadd.f32 %v3755_v37, %v3285_v23  ;;  %v1154_v13 = vadd.f32 %v3757_v22, %v3370_v43  ;;  %v1752_v56 = vpack.c.bf16 %v3774_v41, %v3740_v46  ;;  %v1169_v9 = vpop.f32.mrb[89].mxu0  ;;  %v4174_v22 = vld [vmem:[#allocation18_spill] sm:$0xff] }
 0x237   : > { %v2857_v55 = vpop.eup %2856  ;;  %v1465_v10 = vadd.f32 1.0, %v2855_v44  ;;  %2876 = vpow2.f32 %v2499_v57  ;;  %v3846_v11 = vadd.f32 %v988_v21, %v3281_v42  ;;  %v1158_v37 = vadd.f32 %v1157_v18, %v3349_v63  ;;  %v1171_v41 = vpop.f32.mrb[90].mxu0 }
 0x238   : > { %v2859_v30 = vpop.eup %2858  ;;  %v1466_v16 = vadd.f32 1.0, %v2857_v55  ;;  %2878 = vpow2.f32 %v2500_v54  ;;  %v1709_v57 = vmul.f32 %v3760_v33, %v1154_v13  ;;  %v3851_v60 = vmul.f32 %v2853_v48, %v4174_v22  ;;  %1994 = vmatmul.mubr.bf16.gmra.mrb[76].mxu1 %v1752_v56  ;;  %v1173_v18 = vpop.f32.mrb[91].mxu0 }
 0x239   : > { %v2861_v31 = vpop.eup %2860  ;;  %2880 = vrcp.f32 %v1465_v10  ;;  %v1467_v61 = vadd.f32 1.0, %v2859_v30  ;;  %v3854_v46 = vadd.f32 %v990_v29, %v3285_v23  ;;  %v2503_v17 = vmul.f32 -1.442695, %v3832_v14 }
 0x23a   : > { %v2863_v19 = vpop.eup %2862  ;;  %2882 = vrcp.f32 %v1466_v16  ;;  %v1468_v54 = vadd.f32 1.0, %v2861_v31  ;;  %v1755_v49 = vpack.c.bf16 %v1709_v57, %v1707_v50  ;;  %v3858_v33 = vmul.f32 %v3766_v25, %v1158_v37 }
 0x23b   : > { %v2865_v21 = vpop.eup %2864  ;;  %2884 = vrcp.f32 %v1467_v61  ;;  %v2504_v48 = vmul.f32 -1.442695, %v3839_v0  ;;  %v2505_v55 = vmul.f32 -1.442695, %v3846_v11  ;;  %v1160_v29 = vadd.f32 %v3796_v40, %v3370_v43 }
 0x23c   : > { %v2867_v44 = vpop.eup %2866  ;;  %2886 = vrcp.f32 %v1468_v54  ;;  %v1653_v13 = vmul.f32 %v2863_v19, %v3611_v5  ;;  %v3866_v30 = vmul.f32 %v2865_v21, %v3623_v52  ;;  %v1162_v25 = vadd.f32 %v3804_v36, %v3349_v63  ;;  %2528 = vmatprep.mubr.msk.bf16.mxu1 %vm755_vm2, %v1755_v49 }
 0x23d   : > { %v2869_v10 = vpop.eup %2868  ;;  %2888 = vpow2.f32 %v2501_v32  ;;  %v3872_v16 = vmul.f32 %v2867_v44, %v3634_v38  ;;  %v2506_v56 = vmul.f32 -1.442695, %v3854_v46  ;;  %v1711_v40 = vmul.f32 %v3791_v20, %v1160_v29 }
 0x23e   : > { %v2871_v50 = vpop.eup %2870  ;;  %2890 = vpow2.f32 %v2502_v4  ;;  %v3878_v52 = vadd.f32 %v3802_v3, %v3281_v42  ;;  %v3881_v36 = vmul.f32 %v3814_v24, %v1162_v25  ;;  %v3885_v38 = vadd.f32 %v3809_v51, %v3285_v23  ;;  %v1177_v4 = vpop.f32.mrb[92].mxu0 }
 0x23f   : > { %v2873_v31 = vpop.eup %2872  ;;  %v1469_v5 = vadd.f32 1.0, %v2871_v50  ;;  %2892 = vpow2.f32 %v2503_v17  ;;  %v1164_v20 = vadd.f32 %v3811_v12, %v3370_v43  ;;  %v1754_v42 = vpack.c.bf16 %v3835_v58, %v3800_v34  ;;  %v1179_v24 = vpop.f32.mrb[93].mxu0 }
 0x240   : > { %v2875_v32 = vpop.eup %2874  ;;  %v1470_v61 = vadd.f32 1.0, %v2873_v31  ;;  %2894 = vpow2.f32 %v2504_v48  ;;  %v1168_v3 = vadd.f32 %v1167_v47, %v3349_v63  ;;  %v1170_v23 = vadd.f32 %v1169_v9, %v3370_v43  ;;  %v1181_v51 = vpop.f32.mrb[94].mxu0 }
 0x241   : > { %v2877_v57 = vpop.eup %2876  ;;  %2896 = vrcp.f32 %v1469_v5  ;;  %v1471_v37 = vadd.f32 1.0, %v2875_v32  ;;  %v1713_v54 = vmul.f32 %v3817_v7, %v1164_v20  ;;  %2002 = vmatmul.mubr.bf16.gmra.mrb[80].mxu1 %v1754_v42  ;;  %v1172_v34 = vadd.f32 %v1171_v41, %v3349_v63  ;;  %v1183_v58 = vpop.f32.mrb[95].mxu0 }
 0x242   : > { %v2879_v19 = vpop.eup %2878  ;;  %2898 = vrcp.f32 %v1470_v61  ;;  %v1472_v22 = vadd.f32 1.0, %v2877_v57  ;;  %v3895_v17 = vmul.f32 %v3823_v2, %v1168_v3  ;;  %v2507_v49 = vmul.f32 -1.442695, %v3878_v52 }
 0x243   : > { %v2881_v21 = vpop.eup %2880  ;;  %2900 = vrcp.f32 %v1471_v37  ;;  %v1473_v12 = vadd.f32 1.0, %v2879_v19  ;;  %v1757_v44 = vpack.c.bf16 %v1713_v54, %v1711_v40  ;;  %v1715_v7 = vmul.f32 %v3828_v28, %v1170_v23 }
 0x244   : > { %v2883_v47 = vpop.eup %2882  ;;  %2902 = vrcp.f32 %v1472_v22  ;;  %v2508_v9 = vmul.f32 -1.442695, %v3885_v38  ;;  %v3902_v29 = vmul.f32 %v3851_v60, %v1172_v34  ;;  %v1174_v2 = vadd.f32 %v1173_v18, %v3370_v43 }
 0x245   : > { %v2885_v48 = vpop.eup %2884  ;;  %2904 = vrcp.f32 %v1473_v12  ;;  %v1656_v41 = vmul.f32 %v2869_v10, %v3641_v39  ;;  %2529 = vmatprep.mubr.msk.bf16.mxu1 %vm755_vm2, %v1757_v44  ;;  %v1756_v50 = vpack.c.bf16 %v3881_v36, %v3858_v33  ;;  %v1178_v28 = vadd.f32 %v1177_v4, %v3349_v63  ;;  %v1187_v10 = vpop.f32.mrb[96].mxu0 }
 0x246   : > { %v2887_v25 = vpop.eup %2886  ;;  %2906 = vpow2.f32 %v2505_v55  ;;  %v1657_v31 = vmul.f32 %v2881_v21, %v3669_v35  ;;  %v1717_v5 = vmul.f32 %v1653_v13, %v1174_v2  ;;  %v1180_v60 = vadd.f32 %v1179_v24, %v3370_v43  ;;  %v1189_v35 = vpop.f32.mrb[97].mxu0 }
 0x247   : > { %v2889_v40 = vpop.eup %2888  ;;  %2908 = vpow2.f32 %v2506_v56  ;;  %v3913_v39 = vmul.f32 %v3866_v30, %v1178_v28  ;;  %v1182_v55 = vadd.f32 %v1181_v51, %v3349_v63  ;;  %v1658_v13 = vmul.f32 %v2883_v47, %v3672_v62  ;;  %v1191_v30 = vpop.f32.mrb[98].mxu0 }
 0x248   : > { %v2891_v32 = vpop.eup %2890  ;;  %v1474_v18 = vadd.f32 1.0, %v2889_v40  ;;  %2910 = vpow2.f32 %v2507_v49  ;;  %v1759_v36 = vpack.c.bf16 %v1717_v5, %v1715_v7  ;;  %v1719_v20 = vmul.f32 %v3872_v16, %v1180_v60  ;;  %v1193_v22 = vpop.f32.mrb[99].mxu0 }
 0x249   : > { %v2893_v61 = vpop.eup %2892  ;;  %v1475_v33 = vadd.f32 1.0, %v2891_v32  ;;  %2912 = vpow2.f32 %v2508_v9  ;;  %v3918_v57 = vmul.f32 %v1656_v41, %v1182_v55  ;;  %v1184_v37 = vadd.f32 %v1183_v58, %v3370_v43  ;;  %2010 = vmatmul.mubr.bf16.gmra.mrb[84].mxu1 %v1756_v50 }
 0x24a   : > { %v2895_v56 = vpop.eup %2894  ;;  %v1476_v4 = vadd.f32 1.0, %v2893_v61  ;;  %v1659_v3 = vmul.f32 %v2885_v48, %v3680_v6  ;;  %v1758_v19 = vpack.c.bf16 %v3902_v29, %v3895_v17  ;;  %v1188_v16 = vadd.f32 %v1187_v10, %v3349_v63  ;;  %2530 = vmatprep.mubr.msk.bf16.mxu1 %vm755_vm2, %v1759_v36 }
 0x24b   : > { %v2897_v42 = vpop.eup %2896  ;;  %v1477_v24 = vadd.f32 1.0, %v2895_v56  ;;  %v1660_v62 = vmul.f32 %v2887_v25, %v3717_v15  ;;  %2914 = vrcp.f32 %v1474_v18  ;;  %v1721_v23 = vmul.f32 %v1657_v31, %v1184_v37 }
 0x24c   : > { %v2899_v54 = vpop.eup %2898  ;;  %v1190_v51 = vadd.f32 %v1189_v35, %v3370_v43  ;;  %v1661_v6 = vmul.f32 %v2897_v42, %v3723_v26  ;;  %2916 = vrcp.f32 %v1475_v33  ;;  %v3929_v12 = vmul.f32 %v1658_v13, %v1188_v16 }
 0x24d   : > { %v2901_v21 = vpop.eup %2900  ;;  %v1192_v17 = vadd.f32 %v1191_v30, %v3349_v63  ;;  %2918 = vrcp.f32 %v1476_v4  ;;  %v1761_v58 = vpack.c.bf16 %v1721_v23, %v1719_v20  ;;  %v1194_v15 = vadd.f32 %v1193_v22, %v3370_v43  ;;  %v1197_v29 = vpop.f32.mrb[100].mxu0 }
 0x24e   : > { %v2903_v34 = vpop.eup %2902  ;;  %v1723_v47 = vmul.f32 %v1659_v3, %v1190_v51  ;;  %2920 = vrcp.f32 %v1477_v24  ;;  %v1760_v7 = vpack.c.bf16 %v3918_v57, %v3913_v39  ;;  %v1662_v26 = vmul.f32 %v2899_v54, %v3729_v53  ;;  %v1199_v28 = vpop.f32.mrb[101].mxu0 }
 0x24f   : > { %v2905_v49 = vpop.eup %2904  ;;  %v3933_v44 = vmul.f32 %v1660_v62, %v1192_v17  ;;  %v1725_v9 = vmul.f32 %v1661_v6, %v1194_v15  ;;  %v1663_v25 = vmul.f32 %v2901_v21, %v3737_v8  ;;  %v1198_v50 = vadd.f32 %v1197_v29, %v3349_v63  ;;  %v1201_v53 = vpop.f32.mrb[102].mxu0 }
 0x250   : > { %v2907_v48 = vpop.eup %2906  ;;  %v1664_v5 = vmul.f32 %v2903_v34, %v3771_v27  ;;  %v1200_v18 = vadd.f32 %v1199_v28, %v3370_v43  ;;  %v1665_v55 = vmul.f32 %v2905_v49, %v3779_v59  ;;  %v1202_v61 = vadd.f32 %v1201_v53, %v3349_v63  ;;  %v1203_v33 = vpop.f32.mrb[103].mxu0 }
 0x251   : > { %v2909_v2 = vpop.eup %2908  ;;  %v1478_v41 = vadd.f32 1.0, %v2907_v48  ;;  %v1762_v40 = vpack.c.bf16 %v3933_v44, %v3929_v12  ;;  %v1763_v32 = vpack.c.bf16 %v1725_v9, %v1723_v47  ;;  %2018 = vmatmul.mubr.bf16.gmra.mrb[88].mxu1 %v1758_v19  ;;  %v3945_v8 = vmul.f32 %v1662_v26, %v1198_v50 }
 0x252   : > { %v2911_v31 = vpop.eup %2910  ;;  %v1479_v60 = vadd.f32 1.0, %v2909_v2  ;;  %2531 = vmatprep.mubr.msk.bf16.mxu1 %vm755_vm2, %v1761_v58  ;;  %v1727_v27 = vmul.f32 %v1663_v25, %v1200_v18  ;;  %v1204_v20 = vadd.f32 %v1203_v33, %v3370_v43  ;;  %v1728_v35 = vmul.f32 %v1664_v5, %v1202_v61 }
 0x253   : > { %v2913_v39 = vpop.eup %2912  ;;  %v1480_v10 = vadd.f32 1.0, %v2911_v31  ;;  %2922 = vrcp.f32 %v1478_v41 }
 0x254   : > { %v1481_v36 = vadd.f32 1.0, %v2913_v39  ;;  %2924 = vrcp.f32 %v1479_v60  ;;  %v1729_v13 = vmul.f32 %v1665_v55, %v1204_v20  ;;  %v1764_v4 = vpack.c.bf16 %v1728_v35, %v3945_v8 }
 0x255   : > { %v2915_v56 = vpop.eup %2914  ;;  %2926 = vrcp.f32 %v1480_v10  ;;  %v1207_v30 = vpop.f32.mrb[104].mxu0 }
 0x256   : > { %v2917_v59 = vpop.eup %2916  ;;  %2928 = vrcp.f32 %v1481_v36  ;;  %v1765_v37 = vpack.c.bf16 %v1729_v13, %v1727_v27  ;;  %v1666_v3 = vmul.f32 %v2915_v56, %v3786_v45  ;;  %v1208_v24 = vadd.f32 %v1207_v30, %v3349_v63  ;;  %v1209_v19 = vpop.f32.mrb[105].mxu0 }
 0x257   : > { %v2919_v57 = vpop.eup %2918  ;;  %v1667_v16 = vmul.f32 %v2917_v59, %v3794_v1  ;;  %v1210_v22 = vadd.f32 %v1209_v19, %v3370_v43  ;;  %v1211_v54 = vpop.f32.mrb[106].mxu0 }
 0x258   : > { %v2921_v42 = vpop.eup %2920  ;;  %v1668_v62 = vmul.f32 %v2919_v57, %v3832_v14  ;;  %v1730_v23 = vmul.f32 %v1666_v3, %v1208_v24  ;;  %v1212_v51 = vadd.f32 %v1211_v54, %v3349_v63  ;;  %v1213_v21 = vpop.f32.mrb[107].mxu0 }
 0x259   : > { %2026 = vmatmul.mubr.bf16.gmra.mrb[92].mxu1 %v1760_v7  ;;  %v1669_v6 = vmul.f32 %v2921_v42, %v3839_v0  ;;  %v1731_v45 = vmul.f32 %v1667_v16, %v1210_v22  ;;  %v1214_v12 = vadd.f32 %v1213_v21, %v3370_v43 }
 0x25a   : > { %2532 = vmatprep.mubr.msk.bf16.mxu1 %vm755_vm2, %v1763_v32  ;;  %v1732_v17 = vmul.f32 %v1668_v62, %v1212_v51 }
 0x25b   : > { %v1733_v1 = vmul.f32 %v1669_v6, %v1214_v12 }
 0x25c   : > { %v1766_v47 = vpack.c.bf16 %v1732_v17, %v1730_v23 }
 0x25d   : > { %v2923_v34 = vpop.eup %2922  ;;  %v1767_v49 = vpack.c.bf16 %v1733_v1, %v1731_v45  ;;  %v1217_v14 = vpop.f32.mrb[108].mxu0 }
 0x25e   : > { %v2925_v58 = vpop.eup %2924  ;;  %v1670_v7 = vmul.f32 %v2923_v34, %v3846_v11  ;;  %v1218_v48 = vadd.f32 %v1217_v14, %v3349_v63  ;;  %v1219_v26 = vpop.f32.mrb[109].mxu0 }
 0x25f   : > { %v2927_v15 = vpop.eup %2926  ;;  %v1671_v0 = vmul.f32 %v2925_v58, %v3854_v46  ;;  %v1220_v9 = vadd.f32 %v1219_v26, %v3370_v43  ;;  %v1221_v29 = vpop.f32.mrb[110].mxu0 }
 0x260   : > { %v2929_v44 = vpop.eup %2928  ;;  %v1672_v2 = vmul.f32 %v2927_v15, %v3878_v52  ;;  %v1734_v25 = vmul.f32 %v1670_v7, %v1218_v48  ;;  %v1222_v41 = vadd.f32 %v1221_v29, %v3349_v63  ;;  %v1223_v50 = vpop.f32.mrb[111].mxu0  ;;  %v3974_v63 = vld [vmem:[%s4138_s8] ss:$0 sm:$0xff] }
 0x261   : > { %2034 = vmatmul.mubr.bf16.gmra.mrb[96].mxu1 %v1762_v40  ;;  %v1673_v28 = vmul.f32 %v2929_v44, %v3885_v38  ;;  %v1735_v11 = vmul.f32 %v1671_v0, %v1220_v9  ;;  %v1224_v31 = vadd.f32 %v1223_v50, %v3370_v43 }
 0x262   : > { %2533 = vmatprep.mubr.msk.bf16.mxu1 %vm755_vm2, %v1765_v37  ;;  %v1736_v5 = vmul.f32 %v1672_v2, %v1222_v41 }
 0x263   : > { %v1737_v60 = vmul.f32 %v1673_v28, %v1224_v31 }
 0x264   : > { %v1768_v46 = vpack.c.bf16 %v1736_v5, %v1734_v25 }
 0x265   : > { %v1769_v32 = vpack.c.bf16 %v1737_v60, %v1735_v11 }
 0x269   : > { %2042 = vmatmul.mubr.bf16.gmra.mrb[100].mxu1 %v1764_v4 }
 0x26a   : > { %2534 = vmatprep.mubr.msk.bf16.mxu1 %vm755_vm2, %v1767_v49 }
 0x271   : > { %2050 = vmatmul.mubr.bf16.gmra.mrb[104].mxu1 %v1766_v47 }
 0x272   : > { %2535 = vmatprep.mubr.msk.bf16.mxu1 %vm755_vm2, %v1769_v32 }
 0x279   : > { %2058 = vmatmul.mubr.bf16.gmra.mrb[108].mxu1 %v1768_v46 }
 0x2c6   : > { %v1939_v52 = vpop.f32.mrb[48].mxu1 }
 0x2c7   : > { %v1941_v38 = vpop.f32.mrb[49].mxu1  ;;  %v1940_v43 = vadd.f32 %v3974_v63, %v1939_v52 }
 0x2c8   : > { %v1942_v40 = vpop.f32.mrb[50].mxu1 }
 0x2c9   : > { %v1943_v18 = vadd.f32 %v3974_v63, %v1942_v40  ;;  %v1944_v53 = vpop.f32.mrb[51].mxu1 }
 0x2cb   : > { %v2066_v39 = vpack.c.bf16 %v1943_v18, %v1940_v43 }
 0x2cd   : > { %2098 = vrot.lane.b32.xlu0 %v2066_v39, %s2939_s26 }
 0x2d3   : > { %v1947_v55 = vpop.f32.mrb[52].mxu1 }
 0x2d4   : > { %v1949_v10 = vpop.f32.mrb[53].mxu1  ;;  %v1948_v61 = vadd.f32 %v3974_v63, %v1947_v55 }
 0x2d5   : > { %v1950_v8 = vpop.f32.mrb[54].mxu1 }
 0x2d6   : > { %v1951_v33 = vadd.f32 %v3974_v63, %v1950_v8  ;;  %v1952_v36 = vpop.f32.mrb[55].mxu1 }
 0x2d8   : > { %v2067_v27 = vpack.c.bf16 %v1951_v33, %v1948_v61 }
 0x2da   : > { %2100 = vrot.lane.b32.xlu0 %v2067_v27, %s2939_s26 }
 0x2dc   : > { %v1955_v20 = vpop.f32.mrb[56].mxu1 }
 0x2dd   : > { %v1957_v35 = vpop.f32.mrb[57].mxu1  ;;  %v1956_v13 = vadd.f32 %v3974_v63, %v1955_v20 }
 0x2de   : > { %v1958_v56 = vpop.f32.mrb[58].mxu1 }
 0x2df   : > { %v1959_v59 = vadd.f32 %v3974_v63, %v1958_v56  ;;  %v1960_v4 = vpop.f32.mrb[59].mxu1 }
 0x2e1   : > { %v2068_v57 = vpack.c.bf16 %v1959_v59, %v1956_v13 }
 0x2e3   : > { %2102 = vrot.lane.b32.xlu1 %v2068_v57, %s2939_s26 }
 0x2eb   : > { %v1963_v37 = vpop.f32.mrb[60].mxu1 }
 0x2ec   : > { %v1965_v30 = vpop.f32.mrb[61].mxu1  ;;  %v1964_v3 = vadd.f32 %v3974_v63, %v1963_v37 }
 0x2ed   : > { %v1966_v42 = vpop.f32.mrb[62].mxu1 }
 0x2ee   : > { %v1967_v24 = vadd.f32 %v3974_v63, %v1966_v42  ;;  %v1968_v19 = vpop.f32.mrb[63].mxu1 }
 0x2f0   : > { %v2069_v16 = vpack.c.bf16 %v1967_v24, %v1964_v3 }
 0x2f2   : > { %2104 = vrot.lane.b32.xlu1 %v2069_v16, %s2939_s26 }
 0x2f3   : > { %v1971_v22 = vpop.f32.mrb[64].mxu1 }
 0x2f4   : > { %v1973_v54 = vpop.f32.mrb[65].mxu1  ;;  %v1972_v23 = vadd.f32 %v3974_v63, %v1971_v22 }
 0x2f5   : > { %v1974_v62 = vpop.f32.mrb[66].mxu1 }
 0x2f6   : > { %v1975_v51 = vadd.f32 %v3974_v63, %v1974_v62  ;;  %v1976_v21 = vpop.f32.mrb[67].mxu1 }
 0x2f8   : > { %v2070_v6 = vpack.c.bf16 %v1975_v51, %v1972_v23 }
 0x2fa   : > { %2106 = vrot.lane.b32.xlu0 %v2070_v6, %s2939_s26 }
 0x2fb   : > { %v1979_v45 = vpop.f32.mrb[68].mxu1 }
 0x2fc   : > { %v1981_v12 = vpop.f32.mrb[69].mxu1  ;;  %v1980_v34 = vadd.f32 %v3974_v63, %v1979_v45  ;;  %v4175_v45 = vld [vmem:[#allocation3_spill] sm:$0xff] }
 0x2fd   : > { %v1982_v17 = vpop.f32.mrb[70].mxu1 }
 0x2fe   : > { %v1983_v1 = vadd.f32 %v3974_v63, %v1982_v17  ;;  %v1984_v58 = vpop.f32.mrb[71].mxu1 }
 0x300   : > { %v2071_v47 = vpack.c.bf16 %v1983_v1, %v1980_v34 }
 0x302   : > { %2108 = vrot.lane.b32.xlu1 %v2071_v47, %s2939_s26 }
 0x303   : > { %v1987_v15 = vpop.f32.mrb[72].mxu1 }
 0x304   : > { %v1989_v49 = vpop.f32.mrb[73].mxu1  ;;  %v1988_v44 = vadd.f32 %v3974_v63, %v1987_v15 }
 0x305   : > { %v1990_v14 = vpop.f32.mrb[74].mxu1 }
 0x306   : > { %v1991_v7 = vadd.f32 %v3974_v63, %v1990_v14  ;;  %v1992_v48 = vpop.f32.mrb[75].mxu1 }
 0x308   : > { %v2072_v26 = vpack.c.bf16 %v1991_v7, %v1988_v44 }
 0x30a   : > { %2110 = vrot.lane.b32.xlu0 %v2072_v26, %s2939_s26 }
 0x30b   : > { %v1995_v0 = vpop.f32.mrb[76].mxu1 }
 0x30c   : > { %v1997_v9 = vpop.f32.mrb[77].mxu1  ;;  %v1996_v2 = vadd.f32 %v3974_v63, %v1995_v0 }
 0x30d   : > { %v1998_v29 = vpop.f32.mrb[78].mxu1 }
 0x30e   : > { %v1999_v25 = vadd.f32 %v3974_v63, %v1998_v29  ;;  %v2000_v41 = vpop.f32.mrb[79].mxu1 }
 0x30f   : > { %v4176_v41 = vld [vmem:[#allocation2_spill] sm:$0xff] }
 0x310   : > { %v2073_v50 = vpack.c.bf16 %v1999_v25, %v1996_v2 }
 0x312   : > { %2112 = vrot.lane.b32.xlu1 %v2073_v50, %s2939_s26 }
 0x314   : > { %v2003_v28 = vpop.f32.mrb[80].mxu1 }
 0x315   : > { %v2005_v11 = vpop.f32.mrb[81].mxu1  ;;  %v2004_v5 = vadd.f32 %v3974_v63, %v2003_v28 }
 0x316   : > { %v2006_v31 = vpop.f32.mrb[82].mxu1 }
 0x317   : > { %v2007_v60 = vadd.f32 %v3974_v63, %v2006_v31  ;;  %v2008_v46 = vpop.f32.mrb[83].mxu1 }
 0x319   : > { %v2074_v32 = vpack.c.bf16 %v2007_v60, %v2004_v5  ;;  %v4177_v60 = vld [vmem:[#allocation5_spill] sm:$0xff] }
 0x31b   : > { %2114 = vrot.lane.b32.xlu0 %v2074_v32, %s2939_s26 }
 0x31c   : > { %v2011_v52 = vpop.f32.mrb[84].mxu1 }
 0x31d   : > { %v2013_v38 = vpop.f32.mrb[85].mxu1  ;;  %v2012_v43 = vadd.f32 %v3974_v63, %v2011_v52 }
 0x31e   : > { %v2014_v40 = vpop.f32.mrb[86].mxu1  ;;  %v4178_v38 = vld [vmem:[#allocation4_spill] sm:$0xff] }
 0x31f   : > { %v2015_v18 = vadd.f32 %v3974_v63, %v2014_v40  ;;  %v2016_v53 = vpop.f32.mrb[87].mxu1 }
 0x321   : > { %v2075_v39 = vpack.c.bf16 %v2015_v18, %v2012_v43 }
 0x323   : > { %2116 = vrot.lane.b32.xlu1 %v2075_v39, %s2939_s26  ;;  %v4179_v39 = vld [vmem:[#allocation7_spill] sm:$0xff] }
 0x324   : > { %v2019_v55 = vpop.f32.mrb[88].mxu1 }
 0x325   : > { %v2021_v10 = vpop.f32.mrb[89].mxu1  ;;  %v2020_v61 = vadd.f32 %v3974_v63, %v2019_v55 }
 0x326   : > { %v2022_v8 = vpop.f32.mrb[90].mxu1 }
 0x327   : > { %v2023_v33 = vadd.f32 %v3974_v63, %v2022_v8  ;;  %v2024_v36 = vpop.f32.mrb[91].mxu1 }
 0x329   : > { %v2076_v27 = vpack.c.bf16 %v2023_v33, %v2020_v61  ;;  %v4180_v33 = vld [vmem:[#allocation6_spill] sm:$0xff] }
 0x32b   : > { %2118 = vrot.lane.b32.xlu0 %v2076_v27, %s2939_s26 }
 0x32c   : > { %v2027_v20 = vpop.f32.mrb[92].mxu1 }
 0x32d   : > { %v2029_v35 = vpop.f32.mrb[93].mxu1  ;;  %v2028_v13 = vadd.f32 %v3974_v63, %v2027_v20 }
 0x32e   : > { %v2030_v56 = vpop.f32.mrb[94].mxu1 }
 0x32f   : > { %v2031_v59 = vadd.f32 %v3974_v63, %v2030_v56  ;;  %v2032_v4 = vpop.f32.mrb[95].mxu1  ;;  %v4181_v56 = vld [vmem:[#allocation9_spill] sm:$0xff] }
 0x331   : > { %v2077_v57 = vpack.c.bf16 %v2031_v59, %v2028_v13 }
 0x333   : > { %2120 = vrot.lane.b32.xlu1 %v2077_v57, %s2939_s26 }
 0x334   : > { %v2035_v37 = vpop.f32.mrb[96].mxu1 }
 0x335   : > { %v2037_v30 = vpop.f32.mrb[97].mxu1  ;;  %v2036_v3 = vadd.f32 %v3974_v63, %v2035_v37  ;;  %v4182_v37 = vld [vmem:[#allocation8_spill] sm:$0xff] }
 0x336   : > { %v2038_v42 = vpop.f32.mrb[98].mxu1 }
 0x337   : > { %v2039_v24 = vadd.f32 %v3974_v63, %v2038_v42  ;;  %v2040_v19 = vpop.f32.mrb[99].mxu1 }
 0x338   : > { %v4183_v19 = vld [vmem:[#allocation11_spill] sm:$0xff] }
 0x339   : > { %v2078_v16 = vpack.c.bf16 %v2039_v24, %v2036_v3 }
 0x33b   : > { %2122 = vrot.lane.b32.xlu0 %v2078_v16, %s2939_s26 }
 0x33c   : > { %v2043_v22 = vpop.f32.mrb[100].mxu1 }
 0x33d   : > { %v2045_v54 = vpop.f32.mrb[101].mxu1  ;;  %v2044_v23 = vadd.f32 %v3974_v63, %v2043_v22 }
 0x33e   : > { %v2046_v62 = vpop.f32.mrb[102].mxu1 }
 0x33f   : > { %v2047_v51 = vadd.f32 %v3974_v63, %v2046_v62  ;;  %v2048_v21 = vpop.f32.mrb[103].mxu1  ;;  %v2099_v6 = vpop.permute.xlu0 %2098 }
 0x340   : > { %v2131_v12 = vsel %vm755_vm2, %v4175_v45, %v2099_v6 }
 0x341   : > { %v2079_v17 = vpack.c.bf16 %v2047_v51, %v2044_v23  ;;  %v2536_v34 = vcombine.low %v2131_v12, %v2131_v12  ;;  %v2537_v1 = vcombine.high %v2131_v12, %v2131_v12  ;;  %v4184_v23 = vld [vmem:[#allocation10_spill] sm:$0xff]  ;;  %v4185_v12 = vld [vmem:[#allocation13_spill] sm:$0xff] }
 0x343   : > { %2124 = vrot.lane.b32.xlu1 %v2079_v17, %s2939_s26  ;;  %2275 = vst.msk [vmem:[%s4022_s29] sm:$0xf] %vm2274_vm3, %v2536_v34  ;;  %2276 = vst.msk [vmem:[%s4022_s29 + $0x4] sm:$0xf] %vm2274_vm3, %v2537_v1 }
 0x344   : > { %v2051_v58 = vpop.f32.mrb[104].mxu1 }
 0x345   : > { %v2053_v47 = vpop.f32.mrb[105].mxu1  ;;  %v2052_v49 = vadd.f32 %v3974_v63, %v2051_v58 }
 0x346   : > { %v2054_v15 = vpop.f32.mrb[106].mxu1  ;;  %v4186_v47 = vld [vmem:[#allocation12_spill] sm:$0xff] }
 0x347   : > { %v2055_v14 = vadd.f32 %v3974_v63, %v2054_v15  ;;  %v2056_v44 = vpop.f32.mrb[107].mxu1 }
 0x349   : > { %v2080_v7 = vpack.c.bf16 %v2055_v14, %v2052_v49 }
 0x34b   : > { %2126 = vrot.lane.b32.xlu0 %v2080_v7, %s2939_s26  ;;  %v4187_v7 = vld [vmem:[#allocation15_spill] sm:$0xff] }
 0x34c   : > { %v2059_v48 = vpop.f32.mrb[108].mxu1  ;;  %v2101_v9 = vpop.permute.xlu0 %2100 }
 0x34d   : > { %v2061_v26 = vpop.f32.mrb[109].mxu1  ;;  %v2060_v29 = vadd.f32 %v3974_v63, %v2059_v48  ;;  %v2133_v50 = vsel %vm755_vm2, %v4176_v41, %v2101_v9 }
 0x34e   : > { %v2062_v0 = vpop.f32.mrb[110].mxu1  ;;  %v2538_v28 = vcombine.low %v2133_v50, %v2133_v50  ;;  %v2539_v11 = vcombine.high %v2133_v50, %v2133_v50 }
 0x34f   : > { %v2063_v2 = vadd.f32 %v3974_v63, %v2062_v0  ;;  %v2064_v25 = vpop.f32.mrb[111].mxu1 }
 0x350   : > { %2277 = vst.msk [vmem:[%s4022_s29 + $0x8] sm:$0xf] %vm2274_vm3, %v2538_v28  ;;  %2278 = vst.msk [vmem:[%s4022_s29 + $0xc] sm:$0xf] %vm2274_vm3, %v2539_v11  ;;  %v4189_v28 = vld [vmem:[#allocation17_spill] sm:$0xff] }
 0x351   : > { %v2081_v31 = vpack.c.bf16 %v2063_v2, %v2060_v29  ;;  %v4188_v29 = vld [vmem:[#allocation14_spill] sm:$0xff] }
 0x353   : > { %2128 = vrot.lane.b32.xlu1 %v2081_v31, %s2939_s26 }
 0x355   : > { %v2103_v5 = vpop.permute.xlu1 %2102 }
 0x356   : > { %v2135_v63 = vsel %vm755_vm2, %v4177_v60, %v2103_v5 }
 0x357   : > { %v2540_v46 = vcombine.low %v2135_v63, %v2135_v63  ;;  %v2541_v32 = vcombine.high %v2135_v63, %v2135_v63  ;;  %v4190_v63 = vld [vmem:[#allocation16_spill] sm:$0xff] }
 0x359   : > { %2279 = vst.msk [vmem:[%s4022_s29 + $0x10] sm:$0xf] %vm2274_vm3, %v2540_v46  ;;  %2280 = vst.msk [vmem:[%s4022_s29 + $0x14] sm:$0xf] %vm2274_vm3, %v2541_v32 }
 0x364   : > { %v2105_v52 = vpop.permute.xlu1 %2104 }
 0x365   : > { %v2137_v40 = vsel %vm755_vm2, %v4178_v38, %v2105_v52 }
 0x366   : > { %v2542_v43 = vcombine.low %v2137_v40, %v2137_v40  ;;  %v2543_v18 = vcombine.high %v2137_v40, %v2137_v40 }
 0x368   : > { %2281 = vst.msk [vmem:[%s4022_s29 + $0x18] sm:$0xf] %vm2274_vm3, %v2542_v43  ;;  %2282 = vst.msk [vmem:[%s4022_s29 + $0x1c] sm:$0xf] %vm2274_vm3, %v2543_v18 }
 0x36c   : > { %v2107_v53 = vpop.permute.xlu0 %2106 }
 0x36d   : > { %v2139_v55 = vsel %vm755_vm2, %v4179_v39, %v2107_v53 }
 0x36e   : > { %v2544_v10 = vcombine.low %v2139_v55, %v2139_v55  ;;  %v2545_v8 = vcombine.high %v2139_v55, %v2139_v55 }
 0x370   : > { %2283 = vst.msk [vmem:[%s4022_s29 + $0x20] sm:$0xf] %vm2274_vm3, %v2544_v10  ;;  %2284 = vst.msk [vmem:[%s4022_s29 + $0x24] sm:$0xf] %vm2274_vm3, %v2545_v8 }
 0x374   : > { %v2109_v61 = vpop.permute.xlu1 %2108 }
 0x375   : > { %v2141_v36 = vsel %vm755_vm2, %v4180_v33, %v2109_v61 }
 0x376   : > { %v2546_v27 = vcombine.low %v2141_v36, %v2141_v36  ;;  %v2547_v20 = vcombine.high %v2141_v36, %v2141_v36 }
 0x378   : > { %2285 = vst.msk [vmem:[%s4022_s29 + $0x28] sm:$0xf] %vm2274_vm3, %v2546_v27  ;;  %2286 = vst.msk [vmem:[%s4022_s29 + $0x2c] sm:$0xf] %vm2274_vm3, %v2547_v20 }
 0x37c   : > { %v2111_v35 = vpop.permute.xlu0 %2110 }
 0x37d   : > { %v2143_v13 = vsel %vm755_vm2, %v4181_v56, %v2111_v35 }
 0x37e   : > { %v2548_v59 = vcombine.low %v2143_v13, %v2143_v13  ;;  %v2549_v4 = vcombine.high %v2143_v13, %v2143_v13 }
 0x380   : > { %2287 = vst.msk [vmem:[%s4022_s29 + $0x30] sm:$0xf] %vm2274_vm3, %v2548_v59  ;;  %2288 = vst.msk [vmem:[%s4022_s29 + $0x34] sm:$0xf] %vm2274_vm3, %v2549_v4 }
 0x384   : > { %v2113_v57 = vpop.permute.xlu1 %2112 }
 0x385   : > { %v2145_v30 = vsel %vm755_vm2, %v4182_v37, %v2113_v57 }
 0x386   : > { %v2550_v42 = vcombine.low %v2145_v30, %v2145_v30  ;;  %v2551_v3 = vcombine.high %v2145_v30, %v2145_v30 }
 0x388   : > { %2289 = vst.msk [vmem:[%s4022_s29 + $0x38] sm:$0xf] %vm2274_vm3, %v2550_v42  ;;  %2290 = vst.msk [vmem:[%s4022_s29 + $0x3c] sm:$0xf] %vm2274_vm3, %v2551_v3 }
 0x38d   : > { %v2115_v24 = vpop.permute.xlu0 %2114 }
 0x38e   : > { %v2147_v16 = vsel %vm755_vm2, %v4183_v19, %v2115_v24 }
 0x38f   : > { %v2552_v22 = vcombine.low %v2147_v16, %v2147_v16  ;;  %v2553_v54 = vcombine.high %v2147_v16, %v2147_v16 }
 0x391   : > { %2291 = vst.msk [vmem:[%s4022_s29 + $0x40] sm:$0xf] %vm2274_vm3, %v2552_v22  ;;  %2292 = vst.msk [vmem:[%s4022_s29 + $0x44] sm:$0xf] %vm2274_vm3, %v2553_v54 }
 0x395   : > { %v2117_v62 = vpop.permute.xlu1 %2116 }
 0x396   : > { %v2149_v51 = vsel %vm755_vm2, %v4184_v23, %v2117_v62 }
 0x397   : > { %v2554_v21 = vcombine.low %v2149_v51, %v2149_v51  ;;  %v2555_v6 = vcombine.high %v2149_v51, %v2149_v51 }
 0x399   : > { %2293 = vst.msk [vmem:[%s4022_s29 + $0x48] sm:$0xf] %vm2274_vm3, %v2554_v21  ;;  %2294 = vst.msk [vmem:[%s4022_s29 + $0x4c] sm:$0xf] %vm2274_vm3, %v2555_v6 }
 0x39d   : > { %v2119_v45 = vpop.permute.xlu0 %2118 }
 0x39e   : > { %v2151_v17 = vsel %vm755_vm2, %v4185_v12, %v2119_v45 }
 0x39f   : > { %v2556_v34 = vcombine.low %v2151_v17, %v2151_v17  ;;  %v2557_v1 = vcombine.high %v2151_v17, %v2151_v17 }
 0x3a1   : > { %2295 = vst.msk [vmem:[%s4022_s29 + $0x50] sm:$0xf] %vm2274_vm3, %v2556_v34  ;;  %2296 = vst.msk [vmem:[%s4022_s29 + $0x54] sm:$0xf] %vm2274_vm3, %v2557_v1 }
 0x3a5   : > { %v2121_v58 = vpop.permute.xlu1 %2120 }
 0x3a6   : > { %v2153_v15 = vsel %vm755_vm2, %v4186_v47, %v2121_v58 }
 0x3a7   : > { %v2558_v49 = vcombine.low %v2153_v15, %v2153_v15  ;;  %v2559_v14 = vcombine.high %v2153_v15, %v2153_v15 }
 0x3a9   : > { %2297 = vst.msk [vmem:[%s4022_s29 + $0x58] sm:$0xf] %vm2274_vm3, %v2558_v49  ;;  %2298 = vst.msk [vmem:[%s4022_s29 + $0x5c] sm:$0xf] %vm2274_vm3, %v2559_v14 }
 0x3ad   : > { %v2123_v44 = vpop.permute.xlu0 %2122 }
 0x3ae   : > { %v2155_v48 = vsel %vm755_vm2, %v4187_v7, %v2123_v44 }
 0x3af   : > { %v2560_v26 = vcombine.low %v2155_v48, %v2155_v48  ;;  %v2561_v0 = vcombine.high %v2155_v48, %v2155_v48 }
 0x3b1   : > { %2299 = vst.msk [vmem:[%s4022_s29 + $0x60] sm:$0xf] %vm2274_vm3, %v2560_v26  ;;  %2300 = vst.msk [vmem:[%s4022_s29 + $0x64] sm:$0xf] %vm2274_vm3, %v2561_v0 }
 0x3b5   : > { %v2125_v9 = vpop.permute.xlu1 %2124 }
 0x3b6   : > { %v2157_v2 = vsel %vm755_vm2, %v4188_v29, %v2125_v9 }
 0x3b7   : > { %v2562_v25 = vcombine.low %v2157_v2, %v2157_v2  ;;  %v2563_v41 = vcombine.high %v2157_v2, %v2157_v2 }
 0x3b9   : > { %2301 = vst.msk [vmem:[%s4022_s29 + $0x68] sm:$0xf] %vm2274_vm3, %v2562_v25  ;;  %2302 = vst.msk [vmem:[%s4022_s29 + $0x6c] sm:$0xf] %vm2274_vm3, %v2563_v41 }
 0x3bd   : > { %v2127_v50 = vpop.permute.xlu0 %2126 }
 0x3be   : > { %v2159_v11 = vsel %vm755_vm2, %v4189_v28, %v2127_v50 }
 0x3bf   : > { %v2564_v31 = vcombine.low %v2159_v11, %v2159_v11  ;;  %v2565_v5 = vcombine.high %v2159_v11, %v2159_v11 }
 0x3c1   : > { %2303 = vst.msk [vmem:[%s4022_s29 + $0x70] sm:$0xf] %vm2274_vm3, %v2564_v31  ;;  %2304 = vst.msk [vmem:[%s4022_s29 + $0x74] sm:$0xf] %vm2274_vm3, %v2565_v5 }
 0x3c5   : > { %v2129_v60 = vpop.permute.xlu1 %2128 }
 0x3c6   : > { %v2161_v46 = vsel %vm755_vm2, %v4190_v63, %v2129_v60 }
 0x3c7   : > { %v2566_v32 = vcombine.low %v2161_v46, %v2161_v46  ;;  %v2567_v52 = vcombine.high %v2161_v46, %v2161_v46 }
 0x3c9   : > { %2305 = vst.msk [vmem:[%s4022_s29 + $0x78] sm:$0xf] %vm2274_vm3, %v2566_v32  ;;  %2306 = vst.msk [vmem:[%s4022_s29 + $0x7c] sm:$0xf] %vm2274_vm3, %v2567_v52 }
 0x3ca PF: > { %s19_s30 = sadd.s32 1, %s2936_s30  }
 0x3cb   : > { %p16_p4 = scmp.ge.s32.totalorder %s19_s30, 4  }
 0x3cd   :  { %18 = sbr.rel (!%p16_p4) target bundleno = 1 (0x1), region = 86 }

// kernel: cdlamba_forward.17
= control target key start
LH: loop header
LB: loop body
LE: loop exit
PB: predicated region body
PF: predicated region fallthrough
CT: control target
= control target key end

     0   :  { %s1183_s24 = smov 0   ;;  %s1329_s0 = inlined_call_operand.vmem [shape: bf16[2,64,128], index: 0, kind: input, shape index: {}]   ;;  %s1330_s1 = inlined_call_operand.vmem [shape: bf16[64,64], index: 1, kind: input, shape index: {}]   ;;  %s1331_s2 = inlined_call_operand.vmem [shape: f32[1,64], index: 2, kind: input, shape index: {}]   ;;  %s1332_s3 = inlined_call_operand.vmem [shape: f32[1,64], index: 3, kind: input, shape index: {}]   ;;  %s1333_s4 = inlined_call_operand.vmem [shape: f32[1,64], index: 4, kind: input, shape index: {}]   ;;  %s1334_s5 = inlined_call_operand.vmem [shape: f32[64,64], index: 5, kind: input, shape index: {}]   ;;  %s1335_s6 = inlined_call_operand.vmem [shape: bf16[2,64,32], index: 6, kind: output, shape index: {0}]   ;;  %s1336_s7 = inlined_call_operand.vmem [shape: bf16[2,64,64], index: 7, kind: output, shape index: {1}]  }
   0x1 LB: > { %s934_s25 = sadd.s32 4294967295, %s1136_s24   ;;  %p938_p0 = scmp.ge.s32.totalorder %s1136_s24, 1  ;;  %s1136_s24 = sphi %s1183_s24, %s18_s24  }
   0x2   : > { %p240_p1 = scmp.lt.s32.totalorder %s1136_s24, 3 }
   0x4   : > { %p241_p2 = pnand %p938_p0, %p240_p1 }
   0x5   : > { %p277_p3 = scmp.lt.s32.totalorder (!%p241_p2), %s934_s25, 1  ;;  %v1120_v0 = vld [vmem:[%s1330_s1] sm:$0xff] (!%p241_p2)   ;;  %v1121_v1 = vld [vmem:[%s1330_s1 + $0x8] sm:$0xff] (!%p241_p2)   ;;  %v1122_v2 = vld [vmem:[%s1330_s1 + $0x10] sm:$0xff] (!%p241_p2)   ;;  %s1138_s13 = smov (!%p241_p2), 64   ;;  %vm368_vm0 = vcmask (!%p241_p2), 523264  }
   0x6   : > { %244 = sbr.rel (%p241_p2) target bundleno = 994 (0x3e2), region = 44  ;;  %1025 = vmatprep.subr.bf16.mxu0 (!%p241_p2), %v1120_v0  ;;  %v1123_v7 = vld [vmem:[%s1330_s1 + $0x18] sm:$0xff] (!%p241_p2)   ;;  %v467_v12 = vld [vmem:[%s1334_s5] sm:$0xff] (!%p241_p2)  ;;  %v468_v13 = vld [vmem:[%s1334_s5 + $0x8] sm:$0xff] (!%p241_p2)  ;;  %v1139_v15 = vmov (!%p241_p2), 0.0|0.0   ;;  %vm1140_vm1 = vmmov (!%p241_p2), 0  }
   0x7   : > { %1026 = vmatpush3.bf16.msra.mxu0 (!%p241_p2), %v1120_v0  ;;  %v1080_v14 = vpack.c.bf16 (!%p241_p2), %v468_v13, %v467_v12  ;;  %1079 = vmatprep.subr.bf16.mxu1 (!%p241_p2), %v1139_v15  ;;  %v469_v16 = vld [vmem:[%s1334_s5 + $0x10] sm:$0xff] (!%p241_p2)  ;;  %v470_v17 = vld [vmem:[%s1334_s5 + $0x18] sm:$0xff] (!%p241_p2)  ;;  %v471_v19 = vld [vmem:[%s1334_s5 + $0x20] sm:$0xff] (!%p241_p2)  ;;  %v1141_v24 = vmov (!%p241_p2), 0.0   ;;  %v549_v0 = vlaneseq (!%p241_p2)  ;;  %vm756_vm2 = vcmask (!%p241_p2), 519168   ;;  %s1142_s17 = smov (!%p241_p2), 96  }
   0x8   : > { %1027 = vmatprep.subr.bf16.mxu0 (!%p241_p2), %v1121_v1  ;;  %v1083_v18 = vpack.c.bf16 (!%p241_p2), %v470_v17, %v469_v16  ;;  %v472_v20 = vld [vmem:[%s1334_s5 + $0x28] sm:$0xff] (!%p241_p2)  ;;  %v473_v21 = vld [vmem:[%s1334_s5 + $0x30] sm:$0xff] (!%p241_p2)  ;;  %v474_v23 = vld [vmem:[%s1334_s5 + $0x38] sm:$0xff] (!%p241_p2)  ;;  %1057 = vmatprep.mubr.msk.f32.mxu1 (!%p241_p2), %vm1140_vm1, %v1141_v24  ;;  %vm837_vm3 = vcmask (!%p241_p2), 257024  }
   0x9   : > { %1081 = vmatpush3.bf16.msra.mxu1 (!%p241_p2), %v1080_v14  ;;  %v1086_v22 = vpack.c.bf16 (!%p241_p2), %v472_v20, %v471_v19  ;;  %v1089_v25 = vpack.c.bf16 (!%p241_p2), %v474_v23, %v473_v21  ;;  %v945_v26 = vld [vmem:[%s1331_s2] ss:$0 sm:$0xff] (!%p241_p2) }
   0xa   : > { %1082 = vmatprep.subr.bf16.mxu1 (!%p241_p2), %v1139_v15 }
   0xb   : > { %1028 = vmatpush3.bf16.msra.mxu0 (!%p241_p2), %v1121_v1  ;;  %v550_v1 = vshrl.u32 (!%p241_p2), %v549_v0, 7 }
   0xc   : > { %1029 = vmatprep.subr.bf16.mxu0 (!%p241_p2), %v1122_v2 }
   0xd   : > { %s1338_s25 = smov (!%p277_p3, %s934_s25), 1  ;;  %1084 = vmatpush3.bf16.msra.mxu1 %v1083_v18 }
   0xe   : > { %s1197_s30 = sshll.u32 %s1338_s25, 5  ;;  %1085 = vmatprep.subr.bf16.mxu1 %v1139_v15 }
   0xf   : > { %s281_s10 = scalar_lea.vmem %s1329_s0, %s1197_s30  ;;  %1030 = vmatpush3.bf16.msra.mxu0 %v1122_v2  ;;  %v551_v2 = vsub.s32 0, %v550_v1  ;;  %s291_s20 = scalar_lea.vmem %s1336_s7, %s1197_s30 }
  0x10   : > { %v1206_v3 = vld [vmem:[%s281_s10] sm:$0xff]   ;;  %v1208_v4 = vld [vmem:[%s281_s10 + $0x8] sm:$0xff]   ;;  %v1210_v5 = vld [vmem:[%s281_s10 + $0x10] sm:$0xff]   ;;  %1031 = vmatprep.subr.bf16.mxu0 %v1123_v7  ;;  %s286_s23 = scalar_lea.vmem %s1335_s6, %s1197_s30 }
  0x11   : > { %v1212_v6 = vld [vmem:[%s281_s10 + $0x18] sm:$0xff]   ;;  %336 = vrot.lane.b32.xlu0 %v1206_v3, %s1138_s13  ;;  %340 = vrot.lane.b32.xlu1 %v1210_v5, %s1138_s13 }
  0x12   : > { %1087 = vmatpush3.bf16.msra.mxu1 %v1086_v22 }
  0x13   : > { %1032 = vmatpush3.bf16.msra.mxu0 %v1123_v7  ;;  %1088 = vmatprep.subr.bf16.mxu1 %v1139_v15 }
  0x14   : > { %1091 = vmatprep.subr.bf16.mxu0 %v1139_v15 }
  0x15   : > { %338 = vrot.lane.b32.xlu0 %v1208_v4, %s1138_s13  ;;  %342 = vrot.lane.b32.xlu1 %v1212_v6, %s1138_s13 }
  0x16   : > { %1090 = vmatpush3.bf16.msra.mxu1 %v1089_v25 }
  0x83   : > { %v337_v8 = vpop.permute.xlu0 %336  ;;  %v341_v9 = vpop.permute.xlu1 %340 }
  0x84   : > { %1033 = vmatprep.mubr.msk.bf16.mxu0 %vm368_vm0, %v337_v8 }
  0x87   : > { %v339_v10 = vpop.permute.xlu0 %338  ;;  %v343_v11 = vpop.permute.xlu1 %342 }
  0x88   : > { %1034 = vmatmul.mubr.msk.bf16.vlgmr.msra.gmra.mrb[0].mxu0 %vm368_vm0, %v339_v10 }
  0x89   : > { %1037 = vmatprep.mubr.msk.bf16.mxu0 %vm368_vm0, %v341_v9  ;;  %1093 = vmatpush3.bf16.msra.mxu0 %v1080_v14 }
  0x8a   : > { %1094 = vmatprep.subr.bf16.mxu0 %v1139_v15 }
  0x8d   : > { %1096 = vmatpush3.bf16.msra.mxu0 %v1083_v18 }
  0x8e   : > { %1097 = vmatprep.subr.bf16.mxu0 %v1139_v15 }
  0x90   : > { %1038 = vmatmul.mubr.msk.bf16.gmra.mrb[4].mxu0 %vm368_vm0, %v343_v11 }
  0x91   : > { %1076 = vmatprep.mubr.msk.f32.mxu0 %vm1140_vm1, %v1141_v24  ;;  %1099 = vmatpush3.bf16.msra.mxu0 %v1086_v22 }
  0x92   : > { %1100 = vmatprep.subr.bf16.mxu0 %v1139_v15 }
  0x95   : > { %1102 = vmatpush3.bf16.msra.mxu0 %v1089_v25 }
 0x15b   : > { %v1035_v27 = vpop.f32.mrb[0].mxu0 }
 0x15c   : > { %v415_v28 = vpop.f32.mrb[1].mxu0  ;;  %v424_v32 = vadd.f32 %v1035_v27, %v945_v26 }
 0x15d   : > { %v416_v29 = vadd.f32 %v945_v26, %v415_v28  ;;  %v1036_v30 = vpop.f32.mrb[2].mxu0 }
 0x15e   : > { %v418_v31 = vpop.f32.mrb[3].mxu0  ;;  %v427_v35 = vadd.f32 %v1036_v30, %v945_v26  ;;  %v449_v38 = vsel %vm368_vm0, %v424_v32, 0.0 }
 0x15f   : > { %v419_v33 = vadd.f32 %v945_v26, %v418_v31  ;;  %v446_v34 = vsel %vm368_vm0, %v416_v29, 0.0 }
 0x160   : > { %v451_v42 = vsel %vm368_vm0, %v427_v35, 0.0 }
 0x161   : > { %v447_v36 = vsel %vm368_vm0, %v419_v33, 0.0 }
 0x162   : > { %v448_v37 = vadd.f32 %v447_v36, %v446_v34 }
 0x163   : > { %v1039_v39 = vpop.f32.mrb[4].mxu0 }
 0x164   : > { %v450_v40 = vadd.f32 %v449_v38, %v448_v37  ;;  %v431_v41 = vpop.f32.mrb[5].mxu0  ;;  %v440_v47 = vadd.f32 %v1039_v39, %v945_v26 }
 0x165   : > { %v432_v43 = vadd.f32 %v945_v26, %v431_v41  ;;  %v1040_v44 = vpop.f32.mrb[6].mxu0 }
 0x166   : > { %v452_v45 = vadd.f32 %v451_v42, %v450_v40  ;;  %v434_v46 = vpop.f32.mrb[7].mxu0  ;;  %v443_v51 = vadd.f32 %v1040_v44, %v945_v26  ;;  %v457_v54 = vsel %vm368_vm0, %v440_v47, 0.0 }
 0x167   : > { %v453_v48 = vsel %vm368_vm0, %v432_v43, 0.0  ;;  %v435_v49 = vadd.f32 %v945_v26, %v434_v46 }
 0x168   : > { %v454_v50 = vadd.f32 %v453_v48, %v452_v45  ;;  %v459_v56 = vsel %vm368_vm0, %v443_v51, 0.0 }
 0x169   : > { %v455_v52 = vsel %vm368_vm0, %v435_v49, 0.0 }
 0x16a   : > { %v456_v53 = vadd.f32 %v455_v52, %v454_v50 }
 0x16c   : > { %v458_v55 = vadd.f32 %v457_v54, %v456_v53  ;;  %v708_v53 = vunpack.c.l.bf16 %v1206_v3  ;;  %v709_v54 = vunpack.c.h.bf16 %v1206_v3 }
 0x16e   : > { %v460_v57 = vadd.f32 %v459_v56, %v458_v55  ;;  %v710_v55 = vunpack.c.l.bf16 %v1208_v4  ;;  %v711_v56 = vunpack.c.h.bf16 %v1208_v4  ;;  %v961_v4 = vld [vmem:[%s1333_s4] ss:$0 sm:$0xff] }
 0x170   : > { %v461_v58 = vrot.slane %v460_v57, 4 }
 0x172   : > { %v462_v59 = vadd.f32 %v461_v58, %v460_v57  ;;  %v712_v58 = vunpack.c.l.bf16 %v1210_v5 }
 0x174   : > { %v463_v60 = vrot.slane %v462_v59, 2 }
 0x176   : > { %v464_v61 = vadd.f32 %v463_v60, %v462_v59  ;;  %v713_v59 = vunpack.c.h.bf16 %v1210_v5  ;;  %v714_v60 = vunpack.c.l.bf16 %v1212_v6 }
 0x178   : > { %v465_v62 = vrot.slane %v464_v61, 1 }
 0x17a   : > { %v466_v63 = vadd.f32 %v465_v62, %v464_v61  ;;  %v715_v61 = vunpack.c.h.bf16 %v1212_v6  ;;  %v960_v62 = vld [vmem:[%s1332_s3] ss:$0 sm:$0xff] }
 0x17c   : > { %1058 = vmatmul.mubr.msk.f32.vlgmr.msra.gmra.mrb[0].mxu1 %vm368_vm0, %v466_v63 }
 0x24f   : > { %v544_v7 = vpop.f32.mrb[0].mxu1 }
 0x250   : > { %v548_v8 = vmul.f32 0.0078125, %v544_v7  ;;  %v1059_v9 = vpop.f32.mrb[1].mxu1 }
 0x252   : > { %v552_v10 = vrot.slane %v548_v8, %v551_v2 }
 0x254   : > { %v553_v11 = vsub.f32 %v416_v29, %v552_v10  ;;  %v554_v12 = vsub.f32 %v419_v33, %v552_v10  ;;  %v555_v13 = vsub.f32 %v424_v32, %v552_v10  ;;  %v556_v14 = vsub.f32 %v427_v35, %v552_v10 }
 0x255   : > { %v557_v17 = vsub.f32 %v432_v43, %v552_v10  ;;  %v558_v19 = vsub.f32 %v435_v49, %v552_v10  ;;  %v559_v24 = vsub.f32 %v440_v47, %v552_v10  ;;  %v560_v28 = vsub.f32 %v443_v51, %v552_v10 }
 0x256   : > { %v561_v15 = vmul.f32 %v553_v11, %v553_v11  ;;  %v562_v16 = vmul.f32 %v554_v12, %v554_v12  ;;  %v563_v18 = vmul.f32 %v555_v13, %v555_v13  ;;  %v564_v20 = vmul.f32 %v556_v14, %v556_v14 }
 0x257   : > { %v565_v25 = vmul.f32 %v557_v17, %v557_v17  ;;  %v566_v29 = vmul.f32 %v558_v19, %v558_v19  ;;  %v567_v32 = vmul.f32 %v559_v24, %v559_v24  ;;  %v568_v35 = vmul.f32 %v560_v28, %v560_v28 }
 0x258   : > { %v569_v21 = vsel %vm368_vm0, %v561_v15, 0.0  ;;  %v570_v22 = vsel %vm368_vm0, %v562_v16, 0.0  ;;  %v572_v26 = vsel %vm368_vm0, %v563_v18, 0.0  ;;  %v574_v30 = vsel %vm368_vm0, %v564_v20, 0.0 }
 0x259   : > { %v571_v23 = vadd.f32 %v570_v22, %v569_v21  ;;  %v576_v33 = vsel %vm368_vm0, %v565_v25, 0.0  ;;  %v578_v36 = vsel %vm368_vm0, %v566_v29, 0.0  ;;  %v580_v38 = vsel %vm368_vm0, %v567_v32, 0.0 }
 0x25a   : > { %v582_v40 = vsel %vm368_vm0, %v568_v35, 0.0 }
 0x25b   : > { %v573_v27 = vadd.f32 %v572_v26, %v571_v23 }
 0x25d   : > { %v575_v31 = vadd.f32 %v574_v30, %v573_v27 }
 0x25f   : > { %v577_v34 = vadd.f32 %v576_v33, %v575_v31 }
 0x261   : > { %v579_v37 = vadd.f32 %v578_v36, %v577_v34 }
 0x263   : > { %v581_v39 = vadd.f32 %v580_v38, %v579_v37 }
 0x265   : > { %v583_v41 = vadd.f32 %v582_v40, %v581_v39 }
 0x267   : > { %v584_v42 = vrot.slane %v583_v41, 4 }
 0x269   : > { %v585_v43 = vadd.f32 %v584_v42, %v583_v41 }
 0x26b   : > { %v586_v44 = vrot.slane %v585_v43, 2 }
 0x26d   : > { %v587_v45 = vadd.f32 %v586_v44, %v585_v43 }
 0x26f   : > { %v588_v46 = vrot.slane %v587_v45, 1 }
 0x271   : > { %v589_v47 = vadd.f32 %v588_v46, %v587_v45 }
 0x273   : > { %1077 = vmatmul.mubr.msk.f32.vlgmr.msra.gmra.mrb[8].mxu0 %vm368_vm0, %v589_v47 }
 0x346   : > { %v659_v48 = vpop.f32.mrb[8].mxu0 }
 0x347   : > { %v663_v49 = vmul.f32 0.0078125, %v659_v48  ;;  %v1078_v50 = vpop.f32.mrb[9].mxu0 }
 0x349   : > { %v664_v51 = vadd.f32 1e-05, %v663_v49 }
 0x34b   : > { %1128 = vrsqrt.f32 %v664_v51 }
 0x355   : > { %v1129_v52 = vpop.eup %1128 }
 0x356   : > { %v669_v57 = vrot.slane %v1129_v52, %v551_v2 }
 0x358   : > { %v671_v63 = vmul.f32 %v669_v57, %v554_v12  ;;  %v670_v0 = vmul.f32 %v669_v57, %v553_v11  ;;  %v673_v3 = vmul.f32 %v669_v57, %v556_v14  ;;  %v672_v1 = vmul.f32 %v669_v57, %v555_v13 }
 0x359   : > { %v675_v2 = vmul.f32 %v669_v57, %v558_v19  ;;  %v674_v7 = vmul.f32 %v669_v57, %v557_v17  ;;  %v677_v8 = vmul.f32 %v669_v57, %v560_v28  ;;  %v676_v5 = vmul.f32 %v669_v57, %v559_v24 }
 0x35a   : > { %v686_v9 = vmul.f32 %v960_v62, %v671_v63  ;;  %v685_v10 = vmul.f32 %v960_v62, %v670_v0  ;;  %v688_v15 = vmul.f32 %v960_v62, %v673_v3  ;;  %v687_v6 = vmul.f32 %v960_v62, %v672_v1 }
 0x35b   : > { %v690_v16 = vmul.f32 %v960_v62, %v675_v2  ;;  %v689_v18 = vmul.f32 %v960_v62, %v674_v7  ;;  %v692_v20 = vmul.f32 %v960_v62, %v677_v8  ;;  %v691_v21 = vmul.f32 %v960_v62, %v676_v5 }
 0x35c   : > { %v701_v11 = vadd.f32 %v961_v4, %v686_v9  ;;  %v700_v12 = vadd.f32 %v961_v4, %v685_v10  ;;  %v703_v13 = vadd.f32 %v961_v4, %v688_v15  ;;  %v702_v14 = vadd.f32 %v961_v4, %v687_v6 }
 0x35d   : > { %v705_v22 = vadd.f32 %v961_v4, %v690_v16  ;;  %v704_v23 = vadd.f32 %v961_v4, %v689_v18  ;;  %v1284_v25 = vadd.f32 %v961_v4, %v692_v20  ;;  %v1286_v17 = vadd.f32 %v961_v4, %v691_v21 }
 0x35e   : > { %775 = vrot.lane.b32.xlu1 %v701_v11, %s1142_s17  ;;  %v717_v19 = vadd.f32 %v709_v54, %v701_v11  ;;  %773 = vrot.lane.b32.xlu0 %v700_v12, %s1142_s17  ;;  %v716_v24 = vadd.f32 %v708_v53, %v700_v12  ;;  %v719_v26 = vadd.f32 %v711_v56, %v703_v13 }
 0x35f   : > { %v718_v27 = vadd.f32 %v710_v55, %v702_v14  ;;  %v721_v28 = vadd.f32 %v713_v59, %v705_v22  ;;  %v720_v29 = vadd.f32 %v712_v58, %v704_v23  ;;  %v723_v30 = vadd.f32 %v715_v61, %v1284_v25 }
 0x360   : > { %v984_v31 = vpack.c.bf16 %v717_v19, %v717_v19  ;;  %v983_v32 = vpack.c.bf16 %v716_v24, %v716_v24  ;;  %v986_v33 = vpack.c.bf16 %v719_v26, %v719_v26  ;;  %v722_v34 = vadd.f32 %v714_v60, %v1286_v17 }
 0x361   : > { %v985_v35 = vpack.c.bf16 %v718_v27, %v718_v27  ;;  %v988_v36 = vpack.c.bf16 %v721_v28, %v721_v28  ;;  %v987_v37 = vpack.c.bf16 %v720_v29, %v720_v29  ;;  %v990_v38 = vpack.c.bf16 %v723_v30, %v723_v30 }
 0x362   : > { %758 = vst.msk [vmem:[%s291_s20 + $0x4] sm:$0xf] %vm756_vm2, %v984_v31  ;;  %757 = vst.msk [vmem:[%s291_s20] sm:$0xf] %vm756_vm2, %v983_v32  ;;  %779 = vrot.lane.b32.xlu1 %v703_v13, %s1142_s17  ;;  %777 = vrot.lane.b32.xlu0 %v702_v14, %s1142_s17  ;;  %v989_v39 = vpack.c.bf16 %v722_v34, %v722_v34 }
 0x363   : > { %760 = vst.msk [vmem:[%s291_s20 + $0xc] sm:$0xf] %vm756_vm2, %v986_v33  ;;  %759 = vst.msk [vmem:[%s291_s20 + $0x8] sm:$0xf] %vm756_vm2, %v985_v35 }
 0x364   : > { %762 = vst.msk [vmem:[%s291_s20 + $0x14] sm:$0xf] %vm756_vm2, %v988_v36  ;;  %761 = vst.msk [vmem:[%s291_s20 + $0x10] sm:$0xf] %vm756_vm2, %v987_v37 }
 0x365   : > { %764 = vst.msk [vmem:[%s291_s20 + $0x1c] sm:$0xf] %vm756_vm2, %v990_v38  ;;  %763 = vst.msk [vmem:[%s291_s20 + $0x18] sm:$0xf] %vm756_vm2, %v989_v39 }
 0x366   : > { %783 = vrot.lane.b32.xlu1 %v705_v22, %s1142_s17  ;;  %781 = vrot.lane.b32.xlu0 %v704_v23, %s1142_s17 }
 0x36a   : > { %787 = vrot.lane.b32.xlu1 %v1284_v25, %s1142_s17  ;;  %785 = vrot.lane.b32.xlu0 %v1286_v17, %s1142_s17 }
 0x3d0   : > { %v776_v40 = vpop.permute.xlu1 %775  ;;  %v774_v41 = vpop.permute.xlu0 %773 }
 0x3d1   : > { %v798_v42 = vsub.f32 %v701_v11, %v776_v40  ;;  %v797_v43 = vsub.f32 %v700_v12, %v774_v41 }
 0x3d3   : > { %v992_v44 = vpack.c.bf16 %v798_v42, %v798_v42  ;;  %v991_v45 = vpack.c.bf16 %v797_v43, %v797_v43 }
 0x3d4   : > { %v780_v46 = vpop.permute.xlu1 %779  ;;  %v778_v47 = vpop.permute.xlu0 %777 }
 0x3d5   : > { %839 = vst.msk [vmem:[%s286_s23 + $0x4] sm:$0xf] %vm837_vm3, %v992_v44  ;;  %838 = vst.msk [vmem:[%s286_s23] sm:$0xf] %vm837_vm3, %v991_v45  ;;  %v800_v48 = vsub.f32 %v703_v13, %v780_v46  ;;  %v799_v49 = vsub.f32 %v702_v14, %v778_v47 }
 0x3d7   : > { %v994_v50 = vpack.c.bf16 %v800_v48, %v800_v48  ;;  %v993_v51 = vpack.c.bf16 %v799_v49, %v799_v49 }
 0x3d8   : > { %v784_v52 = vpop.permute.xlu1 %783  ;;  %v782_v53 = vpop.permute.xlu0 %781 }
 0x3d9   : > { %841 = vst.msk [vmem:[%s286_s23 + $0xc] sm:$0xf] %vm837_vm3, %v994_v50  ;;  %840 = vst.msk [vmem:[%s286_s23 + $0x8] sm:$0xf] %vm837_vm3, %v993_v51  ;;  %v802_v54 = vsub.f32 %v705_v22, %v784_v52  ;;  %v801_v55 = vsub.f32 %v704_v23, %v782_v53 }
 0x3db   : > { %v996_v56 = vpack.c.bf16 %v802_v54, %v802_v54  ;;  %v995_v57 = vpack.c.bf16 %v801_v55, %v801_v55 }
 0x3dc   : > { %v788_v58 = vpop.permute.xlu1 %787  ;;  %v786_v59 = vpop.permute.xlu0 %785 }
 0x3dd   : > { %843 = vst.msk [vmem:[%s286_s23 + $0x14] sm:$0xf] %vm837_vm3, %v996_v56  ;;  %842 = vst.msk [vmem:[%s286_s23 + $0x10] sm:$0xf] %vm837_vm3, %v995_v57  ;;  %v804_v60 = vsub.f32 %v1284_v25, %v788_v58  ;;  %v803_v61 = vsub.f32 %v1286_v17, %v786_v59 }
 0x3df   : > { %v998_v62 = vpack.c.bf16 %v804_v60, %v804_v60  ;;  %v997_v63 = vpack.c.bf16 %v803_v61, %v803_v61 }
 0x3e1   : > { %845 = vst.msk [vmem:[%s286_s23 + $0x1c] sm:$0xf] %vm837_vm3, %v998_v62  ;;  %844 = vst.msk [vmem:[%s286_s23 + $0x18] sm:$0xf] %vm837_vm3, %v997_v63 }
 0x3e2 PF: > { %s18_s24 = sadd.s32 1, %s1136_s24  }
 0x3e3   : > { %p15_p4 = scmp.ge.s32.totalorder %s18_s24, 4  }
 0x3e5   :  { %17 = sbr.rel (!%p15_p4) target bundleno = 1 (0x1), region = 86 }

// kernel: cdlamba_forward.16
= control target key start
LH: loop header
LB: loop body
LE: loop exit
PB: predicated region body
PF: predicated region fallthrough
CT: control target
= control target key end

     0   :  { %s2063_s30 = smov 0   ;;  %s2532_s0 = inlined_call_operand.vmem [shape: bf16[128,32], index: 0, kind: input, shape index: {}]   ;;  %s2533_s1 = inlined_call_operand.vmem [shape: bf16[32,64], index: 1, kind: input, shape index: {}]   ;;  %s2534_s2 = inlined_call_operand.vmem [shape: f32[1,64], index: 2, kind: input, shape index: {}]   ;;  %s2535_s3 = inlined_call_operand.vmem [shape: bf16[64,320], index: 3, kind: input, shape index: {}]   ;;  %s2536_s4 = inlined_call_operand.vmem [shape: f32[1,320], index: 4, kind: input, shape index: {}]   ;;  %s2537_s5 = inlined_call_operand.vmem [shape: bf16[64,320], index: 5, kind: input, shape index: {}]   ;;  %s2538_s6 = inlined_call_operand.vmem [shape: f32[1,320], index: 6, kind: input, shape index: {}]   ;;  %s2539_s7 = inlined_call_operand.vmem [shape: bf16[320,64], index: 7, kind: input, shape index: {}]   ;;  %s2540_s8 = inlined_call_operand.vmem [shape: f32[1,64], index: 8, kind: input, shape index: {}]   ;;  %s2541_s9 = inlined_call_operand.vmem [shape: bf16[128,128], index: 9, kind: output, shape index: {}]  }
   0x1 LB: > { %s1590_s10 = sadd.s32 4294967295, %s2009_s30   ;;  %p1594_p0 = scmp.ge.s32.totalorder %s2009_s30, 1  ;;  %s2009_s30 = sphi %s2063_s30, %s19_s30  }
   0x2   : > { %p288_p1 = scmp.lt.s32.totalorder %s2009_s30, 3 }
   0x4   : > { %p289_p2 = pnand %p1594_p0, %p288_p1 }
   0x5   : > { %v1849_v0 = vld [vmem:[%s2533_s1] sm:$0xff] (!%p289_p2)   ;;  %s1595_s13 = sshll.u32 (!%p289_p2), %s1590_s10, 3  ;;  %v1850_v1 = vld [vmem:[%s2533_s1 + $0x8] sm:$0xff] (!%p289_p2)   ;;  %vm388_vm0 = vcmask (!%p289_p2), 261120   ;;  %v1863_v13 = vld [vmem:[%s2535_s3 + $0x30] ss:$12 sps:$4 sm:$0xff] (!%p289_p2)  }
   0x6   : > { %292 = sbr.rel (%p289_p2) target bundleno = 872 (0x368), region = 56  ;;  %p325_p3 = scmp.lt.s32.totalorder (!%p289_p2), %s1595_s13, 15  ;;  %1779 = vmatprep.subr.bf16.mxu1 (!%p289_p2), %v1849_v0  ;;  %v1857_v2 = vld [vmem:[%s2535_s3 + $0x4] ss:$12 sps:$4 sm:$0xff] (!%p289_p2)   ;;  %v1858_v3 = vld [vmem:[%s2535_s3 + $0x8] ss:$12 sps:$4 sm:$0xff] (!%p289_p2)  }
   0x7   : > { %1780 = vmatpush3.bf16.msra.mxu1 (!%p289_p2), %v1849_v0  ;;  %v1855_v4 = vld [vmem:[%s2535_s3] ss:$12 sps:$4 sm:$0xff] (!%p289_p2)   ;;  %1791 = vmatprep.subr.bf16.mxu0 (!%p289_p2), %v1858_v3  ;;  %v1861_v5 = vld [vmem:[%s2535_s3 + $0x1c] ss:$12 sps:$4 sm:$0xff] (!%p289_p2)   ;;  %v1859_v10 = vld [vmem:[%s2535_s3 + $0x18] ss:$12 sps:$4 sm:$0xff] (!%p289_p2)  }
   0x8   : > { %1781 = vmatprep.subr.bf16.mxu1 (!%p289_p2), %v1850_v1  ;;  %v1862_v6 = vld [vmem:[%s2535_s3 + $0x20] ss:$12 sps:$4 sm:$0xff] (!%p289_p2)   ;;  %1792 = vmatpush3.bf16.msra.mxu0 (!%p289_p2), %v1858_v3  ;;  %v1866_v14 = vld [vmem:[%s2535_s3 + $0x38] ss:$12 sps:$4 sm:$0xff] (!%p289_p2)   ;;  %v1867_v16 = vld [vmem:[%s2535_s3 + $0x48] ss:$12 sps:$4 sm:$0xff] (!%p289_p2)  }
   0x9   : > { %1793 = vmatprep.subr.bf16.mxu0 (!%p289_p2), %v1862_v6  ;;  %v1865_v12 = vld [vmem:[%s2535_s3 + $0x34] ss:$12 sps:$4 sm:$0xff] (!%p289_p2)   ;;  %v1869_v15 = vld [vmem:[%s2535_s3 + $0x4c] ss:$12 sps:$4 sm:$0xff] (!%p289_p2)   ;;  %v1870_v17 = vld [vmem:[%s2535_s3 + $0x50] ss:$12 sps:$4 sm:$0xff] (!%p289_p2)  }
   0xa   : > { %v2011_v18 = vmov (!%p289_p2), 0   ;;  %v1873_v19 = vld [vmem:[%s2537_s5 + $0x4] ss:$12 sps:$4 sm:$0xff] (!%p289_p2)   ;;  %v1880_v20 = vld [vmem:[%s2537_s5 + $0x8] ss:$12 sps:$4 sm:$0xff] (!%p289_p2)   ;;  %vm575_vm1 = vcmask (!%p289_p2), 523264  }
   0xb   : > { %1782 = vmatpush3.bf16.msra.mxu1 (!%p289_p2), %v1850_v1  ;;  %v1599_v21 = vld [vmem:[%s2534_s2] ss:$0 sm:$0xff] (!%p289_p2)  ;;  %v1876_v40 = vld [vmem:[%s2537_s5 + $0x1c] ss:$12 sps:$4 sm:$0xff] (!%p289_p2)   ;;  %v1874_v49 = vld [vmem:[%s2537_s5 + $0x18] ss:$12 sps:$4 sm:$0xff] (!%p289_p2)  }
   0xc   : > { %588 = vmatprep.subr.bf16.mxu1 (!%p289_p2), %v1857_v2  ;;  %1794 = vmatpush3.bf16.msra.mxu0 (!%p289_p2), %v1862_v6  ;;  %v1871_v37 = vld [vmem:[%s2537_s5] ss:$12 sps:$4 sm:$0xff] (!%p289_p2)   ;;  %v1885_v52 = vld [vmem:[%s2537_s5 + $0x38] ss:$12 sps:$4 sm:$0xff] (!%p289_p2)   ;;  %v1877_v56 = vld [vmem:[%s2537_s5 + $0x30] ss:$12 sps:$4 sm:$0xff] (!%p289_p2)  }
   0xd   : > { %s2543_s13 = smov (!%p325_p3, %s1595_s13), 15  ;;  %1795 = vmatprep.subr.bf16.mxu0 %v1866_v14  ;;  %v1884_v41 = vld [vmem:[%s2537_s5 + $0x20] ss:$12 sps:$4 sm:$0xff]   ;;  %v1886_v58 = vld [vmem:[%s2537_s5 + $0x50] ss:$12 sps:$4 sm:$0xff]   ;;  %s2012_s26 = smov 64  }
   0xe   : > { %s1596_s20 = sshll.u32 %s2543_s13, 2  ;;  %v1879_v51 = vld [vmem:[%s2537_s5 + $0x34] ss:$12 sps:$4 sm:$0xff]   ;;  %v1883_v57 = vld [vmem:[%s2537_s5 + $0x4c] ss:$12 sps:$4 sm:$0xff]  }
   0xf   : > { %s328_s25 = scalar_lea.vmem %s2532_s0, %s1596_s20  ;;  %v1881_v59 = vld [vmem:[%s2537_s5 + $0x48] ss:$12 sps:$4 sm:$0xff]   ;;  %v1887_v60 = vld [vmem:[%s2539_s7 + $0x40] sm:$0xff]   ;;  %v1893_v2 = vld [vmem:[%s2539_s7 + $0x58] sm:$0xff]   ;;  %s334_s29 = scalar_lea.vmem %s2541_s9, %s1596_s20 }
  0x10   : > { %v1851_v7 = vld [vmem:[%s328_s25] sm:$0xff]   ;;  %v1852_v8 = vld [vmem:[%s328_s25 + $0x8] sm:$0xff]   ;;  %v1853_v9 = vld [vmem:[%s328_s25 + $0x10] sm:$0xff]   ;;  %1796 = vmatpush3.bf16.msra.mxu0 %v1866_v14 }
  0x11   : > { %1783 = vmatprep.mubr.msk.bf16.mxu1 %vm388_vm0, %v1851_v7  ;;  %v1854_v11 = vld [vmem:[%s328_s25 + $0x18] sm:$0xff]   ;;  %1797 = vmatprep.subr.bf16.mxu0 %v1870_v17  ;;  %v1888_v61 = vld [vmem:[%s2539_s7] sm:$0xff]   ;;  %v1889_v62 = vld [vmem:[%s2539_s7 + $0x48] sm:$0xff]  }
  0x12   : > { %1784 = vmatmul.mubr.msk.bf16.vlgmr.msra.gmra.mrb[0].mxu1 %vm388_vm0, %v1852_v8  ;;  %v1890_v63 = vld [vmem:[%s2539_s7 + $0x8] sm:$0xff]   ;;  %v1891_v0 = vld [vmem:[%s2539_s7 + $0x50] sm:$0xff]   ;;  %v1894_v3 = vld [vmem:[%s2539_s7 + $0x18] sm:$0xff]  }
  0x13   : > { %1787 = vmatprep.mubr.msk.bf16.mxu1 %vm388_vm0, %v1853_v9  ;;  %589 = vmatpush1.bf16.msra.mxu1 %v1855_v4  ;;  %v1892_v1 = vld [vmem:[%s2539_s7 + $0x10] sm:$0xff]   ;;  %v1895_v4 = vld [vmem:[%s2539_s7 + $0x60] sm:$0xff]   ;;  %v1897_v6 = vld [vmem:[%s2539_s7 + $0x68] sm:$0xff]  }
  0x14   : > { %590 = vmatprep.subr.bf16.mxu1 %v1861_v5  ;;  %1798 = vmatpush3.bf16.msra.mxu0 %v1870_v17  ;;  %v1896_v5 = vld [vmem:[%s2539_s7 + $0x20] sm:$0xff]   ;;  %v1898_v8 = vld [vmem:[%s2539_s7 + $0x28] sm:$0xff]   ;;  %v1900_v9 = vld [vmem:[%s2539_s7 + $0x70] sm:$0xff]  }
  0x15   : > { %823 = vmatprep.subr.bf16.mxu0 %v1873_v19  ;;  %v1899_v7 = vld [vmem:[%s2539_s7 + $0x80] sm:$0xff]   ;;  %v1904_v14 = vld [vmem:[%s2539_s7 + $0x38] sm:$0xff]  }
  0x16   : > { %v494_v19 = vld [vmem:[%s2536_s4] sm:$0x7] }
  0x17   : > { %591 = vmatpush1.bf16.msra.mxu1 %v1859_v10  ;;  %v1902_v10 = vld [vmem:[%s2539_s7 + $0x88] sm:$0xff]  }
  0x18   : > { %592 = vmatprep.subr.bf16.mxu1 %v1865_v12  ;;  %v1903_v12 = vld [vmem:[%s2539_s7 + $0x78] sm:$0xff]  }
  0x1a   : > { %1788 = vmatmul.mubr.msk.bf16.gmra.mrb[4].mxu1 %vm388_vm0, %v1854_v11  ;;  %v1901_v11 = vld [vmem:[%s2539_s7 + $0x30] sm:$0xff]  }
  0x1b   : > { %593 = vmatpush1.bf16.msra.mxu1 %v1863_v13  ;;  %620 = vmatprep.mubr.bf16.mxu1 %v2011_v18  ;;  %v1905_v13 = vld [vmem:[%s2539_s7 + $0x90] sm:$0xff]  }
  0x1c   : > { %594 = vmatprep.subr.bf16.mxu1 %v1869_v15  ;;  %v1906_v15 = vld [vmem:[%s2539_s7 + $0x98] sm:$0xff]  }
  0x1f   : > { %595 = vmatpush1.bf16.msra.mxu1 %v1867_v16  ;;  %v496_v16 = vlaneseq }
  0x20   : > { %1807 = vmatprep.subr.bf16.mxu1 %v1880_v20 }
  0x21   : > { %v2272_v17 = vshrl.u32 %v496_v16, 7 }
  0xe5   : > { %v1785_v22 = vpop.f32.mrb[0].mxu1 }
  0xe6   : > { %v444_v23 = vadd.f32 %v1785_v22, %v1599_v21  ;;  %v435_v24 = vpop.f32.mrb[1].mxu1 }
  0xe7   : > { %v436_v25 = vadd.f32 %v1599_v21, %v435_v24  ;;  %v1786_v26 = vpop.f32.mrb[2].mxu1 }
  0xe8   : > { %v447_v27 = vadd.f32 %v1786_v26, %v1599_v21  ;;  %v438_v28 = vpop.f32.mrb[3].mxu1  ;;  %v468_v30 = vmax.f32 %v444_v23, 0.0 }
  0xe9   : > { %v439_v29 = vadd.f32 %v1599_v21, %v438_v28  ;;  %v466_v32 = vmax.f32 %v436_v25, 0.0 }
  0xea   : > { %v469_v31 = vmax.f32 %v447_v27, 0.0 }
  0xeb   : > { %v467_v33 = vmax.f32 %v439_v29, 0.0 }
  0xec   : > { %v2135_v34 = vpack.c.bf16 %v469_v31, %v468_v30 }
  0xed   : > { %v2137_v35 = vpack.c.bf16 %v467_v33, %v466_v32  ;;  %v1789_v36 = vpop.f32.mrb[4].mxu1 }
  0xee   : > { %v460_v38 = vadd.f32 %v1789_v36, %v1599_v21  ;;  %v451_v39 = vpop.f32.mrb[5].mxu1 }
  0xef   : > { %v452_v42 = vadd.f32 %v1599_v21, %v451_v39  ;;  %v1790_v43 = vpop.f32.mrb[6].mxu1  ;;  %1622 = vmatmul.mubr.msk.bf16.vlgmr.msra.gmra.mrb[8].mxu1 %vm575_vm1, %v2137_v35  ;;  %1799 = vmatprep.mubr.msk.bf16.mxu0 %vm575_vm1, %v2137_v35 }
  0xf0   : > { %v472_v44 = vmax.f32 %v460_v38, 0.0  ;;  %v463_v45 = vadd.f32 %v1790_v43, %v1599_v21  ;;  %v454_v46 = vpop.f32.mrb[7].mxu1  ;;  %1800 = vmatmul.mubr.msk.bf16.vlgmr.msra.gmra.mrb[0].mxu0 %vm575_vm1, %v2135_v34  ;;  %630 = vmatprep.mubr.bf16.mxu1 %v2011_v18 }
  0xf1   : > { %v470_v47 = vmax.f32 %v452_v42, 0.0  ;;  %v455_v48 = vadd.f32 %v1599_v21, %v454_v46  ;;  %824 = vmatpush1.bf16.msra.mxu0 %v1871_v37  ;;  %1808 = vmatpush3.bf16.msra.mxu1 %v1880_v20  ;;  %v502_v20 = vsub.s32 1, %v2272_v17  ;;  %v506_v21 = vsub.s32 2, %v2272_v17 }
  0xf2   : > { %v473_v50 = vmax.f32 %v463_v45, 0.0  ;;  %825 = vmatprep.subr.bf16.mxu0 %v1876_v40  ;;  %1809 = vmatprep.subr.bf16.mxu1 %v1884_v41 }
  0xf3   : > { %v471_v53 = vmax.f32 %v455_v48, 0.0  ;;  %v2286_v23 = vrot.slane %v494_v19, %v502_v20  ;;  %v2290_v24 = vrot.slane %v494_v19, %v506_v21 }
  0xf4   : > { %v2164_v54 = vpack.c.bf16 %v473_v50, %v472_v44 }
  0xf5   : > { %v2166_v55 = vpack.c.bf16 %v471_v53, %v470_v47  ;;  %826 = vmatpush1.bf16.msra.mxu0 %v1874_v49  ;;  %1810 = vmatpush3.bf16.msra.mxu1 %v1884_v41 }
  0xf6   : > { %827 = vmatprep.subr.bf16.mxu0 %v1879_v51  ;;  %1811 = vmatprep.subr.bf16.mxu1 %v1885_v52 }
  0xf7   : > { %1623 = vmatmul.mubr.msk.bf16.gmra.mrb[12].mxu1 %vm575_vm1, %v2135_v34  ;;  %1803 = vmatprep.mubr.msk.bf16.mxu0 %vm575_vm1, %v2166_v55 }
  0xf8   : > { %1804 = vmatmul.mubr.msk.bf16.gmra.mrb[4].mxu0 %vm575_vm1, %v2164_v54  ;;  %640 = vmatprep.mubr.bf16.mxu1 %v2011_v18 }
  0xf9   : > { %828 = vmatpush1.bf16.msra.mxu0 %v1877_v56  ;;  %855 = vmatprep.mubr.bf16.mxu0 %v2011_v18 }
  0xfa   : > { %829 = vmatprep.subr.bf16.mxu0 %v1883_v57  ;;  %1812 = vmatpush3.bf16.msra.mxu1 %v1885_v52 }
  0xfb   : > { %1813 = vmatprep.subr.bf16.mxu1 %v1886_v58 }
  0xfd   : > { %830 = vmatpush1.bf16.msra.mxu0 %v1881_v59 }
  0xfe   : > { %1814 = vmatpush3.bf16.msra.mxu1 %v1886_v58  ;;  %1731 = vmatprep.subr.bf16.mxu0 %v1887_v60 }
  0xff   : > { %1624 = vmatmul.mubr.msk.bf16.gmra.mrb[16].mxu1 %vm575_vm1, %v2166_v55  ;;  %1823 = vmatprep.subr.bf16.mxu1 %v1899_v7 }
 0x100   : > { %1642 = vmatmul.mubr.msk.bf16.vlgmr.msra.gmra.mrb[8].mxu0 %vm575_vm1, %v2137_v35  ;;  %650 = vmatprep.mubr.bf16.mxu1 %v2011_v18 }
 0x101   : > { %865 = vmatprep.mubr.bf16.mxu0 %v2011_v18  ;;  %1732 = vmatpush3.bf16.msra.mxu0 %v1888_v61 }
 0x102   : > { %1733 = vmatprep.subr.bf16.mxu0 %v1889_v62 }
 0x105   : > { %1734 = vmatpush3.bf16.msra.mxu0 %v1890_v63 }
 0x106   : > { %1735 = vmatprep.subr.bf16.mxu0 %v1891_v0 }
 0x107   : > { %1625 = vmatmul.mubr.msk.bf16.gmra.mrb[20].mxu1 %vm575_vm1, %v2164_v54 }
 0x108   : > { %1643 = vmatmul.mubr.msk.bf16.gmra.mrb[12].mxu0 %vm575_vm1, %v2135_v34  ;;  %1815 = vmatprep.mubr.msk.bf16.mxu1 %vm575_vm1, %v2137_v35 }
 0x109   : > { %875 = vmatprep.mubr.bf16.mxu0 %v2011_v18  ;;  %1736 = vmatpush3.bf16.msra.mxu0 %v1892_v1 }
 0x10a   : > { %1737 = vmatprep.subr.bf16.mxu0 %v1893_v2 }
 0x10d   : > { %1738 = vmatpush3.bf16.msra.mxu0 %v1894_v3 }
 0x10e   : > { %1739 = vmatprep.subr.bf16.mxu0 %v1895_v4 }
 0x10f   : > { %1816 = vmatmul.mubr.msk.bf16.vlgmr.msra.gmra.mrb[24].mxu1 %vm575_vm1, %v2135_v34 }
 0x110   : > { %1644 = vmatmul.mubr.msk.bf16.gmra.mrb[16].mxu0 %vm575_vm1, %v2166_v55  ;;  %1819 = vmatprep.mubr.msk.bf16.mxu1 %vm575_vm1, %v2166_v55 }
 0x111   : > { %885 = vmatprep.mubr.bf16.mxu0 %v2011_v18  ;;  %1740 = vmatpush3.bf16.msra.mxu0 %v1896_v5  ;;  %v498_v18 = vsub.s32 0, %v2272_v17 }
 0x112   : > { %1741 = vmatprep.subr.bf16.mxu0 %v1897_v6  ;;  %1824 = vmatpush3.bf16.msra.mxu1 %v1899_v7 }
 0x113   : > { %1825 = vmatprep.subr.bf16.mxu1 %v1902_v10  ;;  %v2282_v22 = vrot.slane %v494_v19, %v498_v18 }
 0x115   : > { %1742 = vmatpush3.bf16.msra.mxu0 %v1898_v8 }
 0x116   : > { %1743 = vmatprep.subr.bf16.mxu0 %v1900_v9  ;;  %1826 = vmatpush3.bf16.msra.mxu1 %v1902_v10 }
 0x117   : > { %1820 = vmatmul.mubr.msk.bf16.gmra.mrb[28].mxu1 %vm575_vm1, %v2164_v54  ;;  %1827 = vmatprep.subr.bf16.mxu1 %v1905_v13 }
 0x118   : > { %1645 = vmatmul.mubr.msk.bf16.gmra.mrb[20].mxu0 %vm575_vm1, %v2164_v54 }
 0x119   : > { %1744 = vmatpush3.bf16.msra.mxu0 %v1901_v11 }
 0x11a   : > { %1745 = vmatprep.subr.bf16.mxu0 %v1903_v12  ;;  %1828 = vmatpush3.bf16.msra.mxu1 %v1905_v13 }
 0x11b   : > { %1829 = vmatprep.subr.bf16.mxu1 %v1906_v15 }
 0x11d   : > { %1746 = vmatpush3.bf16.msra.mxu0 %v1904_v14  ;;  %v742_v14 = vld [vmem:[%s2538_s6] sm:$0x7] }
 0x11e   : > { %1830 = vmatpush3.bf16.msra.mxu1 %v1906_v15 }
 0x1c2   : > { %v622_v25 = vpop.f32.mrb[8].mxu1 }
 0x1c3   : > { %v2293_v26 = vadd.f32 %v622_v25, %v2282_v22  ;;  %v624_v27 = vpop.f32.mrb[9].mxu1  ;;  %v1801_v28 = vpop.f32.mrb[0].mxu0 }
 0x1c4   : > { %v2296_v29 = vadd.f32 %v624_v27, %v2286_v23  ;;  %v2299_v30 = vadd.f32 %v1801_v28, %v2290_v24  ;;  %v626_v31 = vpop.f32.mrb[10].mxu1  ;;  %v695_v32 = vpop.f32.mrb[1].mxu0 }
 0x1c5   : > { %v1650_v33 = vmul.f32 -1.442695, %v2293_v26  ;;  %v2303_v36 = vadd.f32 %v626_v31, %v2282_v22  ;;  %v2306_v37 = vadd.f32 %v695_v32, %v2290_v24  ;;  %v628_v38 = vpop.f32.mrb[11].mxu1  ;;  %v1802_v39 = vpop.f32.mrb[2].mxu0 }
 0x1c6   : > { %v1651_v40 = vmul.f32 -1.442695, %v2296_v29  ;;  %v1658_v41 = vmul.f32 -1.442695, %v2299_v30  ;;  %v2311_v42 = vadd.f32 %v628_v38, %v2286_v23  ;;  %v2314_v43 = vadd.f32 %v1802_v39, %v2290_v24  ;;  %v698_v44 = vpop.f32.mrb[3].mxu0 }
 0x1c7   : > { %1907 = vpow2.f32 %v1650_v33  ;;  %v1653_v45 = vmul.f32 -1.442695, %v2303_v36  ;;  %v1652_v46 = vmul.f32 -1.442695, %v2306_v37  ;;  %v2319_v47 = vadd.f32 %v698_v44, %v2290_v24 }
 0x1c8   : > { %1909 = vpow2.f32 %v1651_v40  ;;  %v1654_v48 = vmul.f32 -1.442695, %v2311_v42  ;;  %v1661_v49 = vmul.f32 -1.442695, %v2314_v43 }
 0x1c9   : > { %1911 = vpow2.f32 %v1658_v41  ;;  %v1655_v50 = vmul.f32 -1.442695, %v2319_v47 }
 0x1ca   : > { %1913 = vpow2.f32 %v1653_v45  ;;  %v632_v51 = vpop.f32.mrb[12].mxu1  ;;  %v2358_v45 = vrot.slane %v742_v14, %v498_v18 }
 0x1cb   : > { %1915 = vpow2.f32 %v1652_v46  ;;  %v2325_v52 = vadd.f32 %v632_v51, %v2282_v22  ;;  %v634_v53 = vpop.f32.mrb[13].mxu1  ;;  %v1805_v56 = vpop.f32.mrb[4].mxu0  ;;  %v2362_v46 = vrot.slane %v742_v14, %v502_v20  ;;  %v2369_v51 = vrot.slane %v742_v14, %v506_v21 }
 0x1cc   : > { %1917 = vpow2.f32 %v1654_v48  ;;  %v2328_v57 = vadd.f32 %v634_v53, %v2286_v23  ;;  %v2331_v58 = vadd.f32 %v1805_v56, %v2290_v24  ;;  %v636_v59 = vpop.f32.mrb[14].mxu1  ;;  %v711_v60 = vpop.f32.mrb[5].mxu0 }
 0x1cd   : > { %1919 = vpow2.f32 %v1661_v49  ;;  %v1656_v61 = vmul.f32 -1.442695, %v2325_v52  ;;  %v2335_v62 = vadd.f32 %v636_v59, %v2282_v22  ;;  %v2338_v63 = vadd.f32 %v711_v60, %v2290_v24  ;;  %v638_v0 = vpop.f32.mrb[15].mxu1  ;;  %v1806_v1 = vpop.f32.mrb[6].mxu0 }
 0x1ce   : > { %1921 = vpow2.f32 %v1655_v50  ;;  %v1657_v2 = vmul.f32 -1.442695, %v2328_v57  ;;  %v1670_v3 = vmul.f32 -1.442695, %v2331_v58  ;;  %v714_v4 = vpop.f32.mrb[7].mxu0  ;;  %v2348_v25 = vadd.f32 %v638_v0, %v2286_v23 }
 0x1cf   : > { %1923 = vpow2.f32 %v1656_v61  ;;  %v1659_v5 = vmul.f32 -1.442695, %v2335_v62  ;;  %v1664_v6 = vmul.f32 -1.442695, %v2338_v63  ;;  %v2351_v33 = vadd.f32 %v1806_v1, %v2290_v24 }
 0x1d0   : > { %1925 = vpow2.f32 %v1657_v2  ;;  %v2354_v38 = vadd.f32 %v714_v4, %v2290_v24  ;;  %v1660_v18 = vmul.f32 -1.442695, %v2348_v25 }
 0x1d1   : > { %v1908_v7 = vpop.eup %1907  ;;  %1927 = vpow2.f32 %v1670_v3  ;;  %v1673_v61 = vmul.f32 -1.442695, %v2351_v33 }
 0x1d2   : > { %v1910_v8 = vpop.eup %1909  ;;  %v1033_v9 = vadd.f32 1.0, %v1908_v7  ;;  %1929 = vpow2.f32 %v1659_v5  ;;  %v642_v10 = vpop.f32.mrb[16].mxu1  ;;  %v1667_v0 = vmul.f32 -1.442695, %v2354_v38 }
 0x1d3   : > { %v1912_v11 = vpop.eup %1911  ;;  %v1034_v12 = vadd.f32 1.0, %v1910_v8  ;;  %1931 = vpow2.f32 %v1664_v6  ;;  %v644_v13 = vpop.f32.mrb[17].mxu1  ;;  %v2365_v24 = vadd.f32 %v642_v10, %v2282_v22 }
 0x1d4   : > { %v857_v15 = vpop.f32.mrb[8].mxu0  ;;  %v1914_v16 = vpop.eup %1913  ;;  %1933 = vrcp.f32 %v1033_v9  ;;  %v1041_v19 = vadd.f32 1.0, %v1912_v11  ;;  %v2373_v59 = vadd.f32 %v644_v13, %v2286_v23 }
 0x1d5   : > { %v646_v27 = vpop.f32.mrb[18].mxu1  ;;  %v859_v28 = vpop.f32.mrb[9].mxu0  ;;  %1935 = vrcp.f32 %v1034_v12  ;;  %v1036_v32 = vadd.f32 1.0, %v1914_v16  ;;  %v858_v21 = vadd.f32 %v857_v15, %v2358_v45  ;;  %v1662_v6 = vmul.f32 -1.442695, %v2365_v24 }
 0x1d6   : > { %v1916_v31 = vpop.eup %1915  ;;  %v648_v39 = vpop.f32.mrb[19].mxu1  ;;  %1937 = vrcp.f32 %v1041_v19  ;;  %v2379_v2 = vadd.f32 %v646_v27, %v2282_v22  ;;  %v1663_v12 = vmul.f32 -1.442695, %v2373_v59  ;;  %v860_v13 = vadd.f32 %v859_v28, %v2362_v46 }
 0x1d7   : > { %v861_v40 = vpop.f32.mrb[10].mxu0  ;;  %v1918_v41 = vpop.eup %1917  ;;  %v1035_v44 = vadd.f32 1.0, %v1916_v31  ;;  %1939 = vrcp.f32 %v1036_v32  ;;  %v2383_v7 = vadd.f32 %v648_v39, %v2286_v23 }
 0x1d8   : > { %v863_v48 = vpop.f32.mrb[11].mxu0  ;;  %v1920_v49 = vpop.eup %1919  ;;  %v1037_v50 = vadd.f32 1.0, %v1918_v41  ;;  %v862_v28 = vadd.f32 %v861_v40, %v2358_v45 }
 0x1d9   : > { %v1922_v53 = vpop.eup %1921  ;;  %1941 = vrcp.f32 %v1035_v44  ;;  %v1044_v56 = vadd.f32 1.0, %v1920_v49  ;;  %v1665_v49 = vmul.f32 -1.442695, %v2379_v2 }
 0x1da   : > { %v1924_v20 = vpop.eup %1923  ;;  %1943 = vrcp.f32 %v1037_v50  ;;  %v1038_v60 = vadd.f32 1.0, %v1922_v53  ;;  %v652_v3 = vpop.f32.mrb[20].mxu1 }
 0x1db   : > { %v1926_v1 = vpop.eup %1925  ;;  %1945 = vrcp.f32 %v1044_v56  ;;  %v1039_v17 = vadd.f32 1.0, %v1924_v20  ;;  %v654_v8 = vpop.f32.mrb[21].mxu1  ;;  %v2388_v27 = vadd.f32 %v652_v3, %v2282_v22  ;;  %v1666_v20 = vmul.f32 -1.442695, %v2383_v7 }
 0x1dc   : > { %v1928_v4 = vpop.eup %1927  ;;  %1947 = vrcp.f32 %v1038_v60  ;;  %v1040_v5 = vadd.f32 1.0, %v1926_v1  ;;  %v867_v9 = vpop.f32.mrb[12].mxu0  ;;  %v2391_v31 = vadd.f32 %v654_v8, %v2286_v23  ;;  %v864_v60 = vadd.f32 %v863_v48, %v2362_v46 }
 0x1dd   : > { %v1930_v10 = vpop.eup %1929  ;;  %1949 = vrcp.f32 %v1039_v17  ;;  %v1053_v11 = vadd.f32 1.0, %v1928_v4  ;;  %v656_v14 = vpop.f32.mrb[22].mxu1  ;;  %v868_v3 = vadd.f32 %v867_v9, %v2358_v45 }
 0x1de   : > { %v869_v15 = vpop.f32.mrb[13].mxu0  ;;  %v1932_v16 = vpop.eup %1931  ;;  %1951 = vrcp.f32 %v1040_v5  ;;  %v1042_v19 = vadd.f32 1.0, %v1930_v10  ;;  %v2403_v4 = vadd.f32 %v656_v14, %v2282_v22  ;;  %v1669_v8 = vmul.f32 -1.442695, %v2391_v31 }
 0x1df   : > { %v658_v32 = vpop.f32.mrb[23].mxu1  ;;  %v871_v39 = vpop.f32.mrb[14].mxu0  ;;  %1953 = vrcp.f32 %v1053_v11  ;;  %v1047_v44 = vadd.f32 1.0, %v1932_v16 }
 0x1e0   : > { %v1934_v41 = vpop.eup %1933  ;;  %v2395_v50 = vpop.f32.mrb[15].mxu0  ;;  %1955 = vrcp.f32 %v1042_v19 }
 0x1e1   : > { %v1936_v53 = vpop.eup %1935  ;;  %v1105_v56 = vmul.f32 %v1934_v41, %v2293_v26  ;;  %1957 = vrcp.f32 %v1047_v44  ;;  %v1668_v26 = vmul.f32 -1.442695, %v2388_v27 }
 0x1e2   : > { %v1938_v1 = vpop.eup %1937  ;;  %v1106_v17 = vmul.f32 %v1936_v53, %v2296_v29  ;;  %1959 = vpow2.f32 %v1660_v18  ;;  %v870_v29 = vadd.f32 %v869_v15, %v2362_v46  ;;  %v1817_v9 = vpop.f32.mrb[24].mxu1  ;;  %v2415_v18 = vadd.f32 %v658_v32, %v2286_v23 }
 0x1e3   : > { %v1940_v40 = vpop.eup %1939  ;;  %v2405_v5 = vmul.f32 %v1105_v56, %v858_v21  ;;  %1961 = vpow2.f32 %v1673_v61  ;;  %v1113_v22 = vmul.f32 %v1938_v1, %v2299_v30  ;;  %v939_v21 = vadd.f32 %v1817_v9, %v2369_v51  ;;  %v2418_v14 = vpop.f32.mrb[16].mxu0 }
 0x1e4   : > { %v1942_v10 = vpop.eup %1941  ;;  %v1108_v48 = vmul.f32 %v1940_v40, %v2303_v36  ;;  %v2410_v11 = vmul.f32 %v1106_v17, %v860_v13  ;;  %1963 = vpow2.f32 %v1667_v0  ;;  %v930_v19 = vpop.f32.mrb[25].mxu1  ;;  %v1671_v13 = vmul.f32 -1.442695, %v2403_v4 }
 0x1e5   : > { %v1944_v16 = vpop.eup %1943  ;;  %1965 = vpow2.f32 %v1662_v6  ;;  %v2424_v15 = vpop.f32.mrb[17].mxu0  ;;  %v1107_v23 = vmul.f32 %v1942_v10, %v2306_v37  ;;  %v2427_v32 = vmul.f32 %v1113_v22, %v939_v21  ;;  %v931_v44 = vadd.f32 %v930_v19, %v2369_v51 }
 0x1e6   : > { %v1946_v41 = vpop.eup %1945  ;;  %v1109_v36 = vmul.f32 %v1944_v16, %v2311_v42  ;;  %v2421_v61 = vmul.f32 %v1108_v48, %v862_v28  ;;  %v1818_v30 = vpop.f32.mrb[26].mxu1  ;;  %1967 = vpow2.f32 %v1663_v12  ;;  %v872_v1 = vadd.f32 %v871_v39, %v2358_v45 }
 0x1e7   : > { %v1948_v0 = vpop.eup %1947  ;;  %v2430_v53 = vpop.f32.mrb[18].mxu0  ;;  %1969 = vpow2.f32 %v1665_v49  ;;  %v1672_v12 = vmul.f32 -1.442695, %v2415_v18  ;;  %v1131_v10 = vmul.f32 %v1107_v23, %v931_v44  ;;  %v1116_v9 = vmul.f32 %v1946_v41, %v2314_v43 }
 0x1e8   : > { %v933_v56 = vpop.f32.mrb[27].mxu1  ;;  %v1950_v42 = vpop.eup %1949  ;;  %v1153_v6 = vpack.c.bf16 %v2421_v61, %v2405_v5  ;;  %v1133_v28 = vmul.f32 %v1109_v36, %v864_v60  ;;  %1971 = vpow2.f32 %v1666_v20  ;;  %v942_v5 = vadd.f32 %v1818_v30, %v2369_v51 }
 0x1e9   : > { %v2435_v17 = vpop.f32.mrb[19].mxu0  ;;  %v1952_v40 = vpop.eup %1951  ;;  %v1111_v37 = vmul.f32 %v1950_v42, %v2325_v52  ;;  %1973 = vpow2.f32 %v1668_v26  ;;  %v1110_v39 = vmul.f32 %v1948_v0, %v2319_v47  ;;  %v934_v52 = vadd.f32 %v933_v56, %v2369_v51 }
 0x1ea   : > { %v1954_v48 = vpop.eup %1953  ;;  %v1112_v49 = vmul.f32 %v1952_v40, %v2328_v57  ;;  %1975 = vpow2.f32 %v1669_v8  ;;  %v1140_v43 = vmul.f32 %v1116_v9, %v942_v5  ;;  %v1821_v19 = vpop.f32.mrb[28].mxu1  ;;  %v1154_v30 = vpack.c.bf16 %v1133_v28, %v2410_v11 }
 0x1eb   : > { %v1956_v60 = vpop.eup %1955  ;;  %v2443_v16 = vmul.f32 %v1111_v37, %v868_v3  ;;  %1977 = vpow2.f32 %v1671_v13  ;;  %v1134_v26 = vmul.f32 %v1110_v39, %v934_v52  ;;  %v2449_v41 = vpop.f32.mrb[20].mxu0  ;;  %v1125_v0 = vmul.f32 %v1954_v48, %v2331_v58 }
 0x1ec   : > { %v1958_v20 = vpop.eup %1957  ;;  %v1114_v22 = vmul.f32 %v1956_v60, %v2335_v62  ;;  %v2447_v21 = vmul.f32 %v1112_v49, %v870_v29  ;;  %1979 = vpow2.f32 %v1672_v12  ;;  %v946_v36 = vpop.f32.mrb[29].mxu1  ;;  %v1158_v61 = vpack.c.bf16 %v1140_v43, %v2427_v32  ;;  %1376 = vmatprep.mubr.bf16.mxu0 %v1154_v30 }
 0x1ed   : > { %v1960_v57 = vpop.eup %1959  ;;  %v2455_v62 = vpop.f32.mrb[21].mxu0  ;;  %v1155_v44 = vpack.c.bf16 %v1134_v26, %v1131_v10  ;;  %v955_v56 = vadd.f32 %v1821_v19, %v2369_v51  ;;  %v947_v11 = vadd.f32 %v946_v36, %v2369_v51  ;;  %1377 = vmatmul.mubr.bf16.vlgmr.msra.gmra.mrb[24].mxu0 %v1153_v6 }
 0x1ee   : > { %v1962_v47 = vpop.eup %1961  ;;  %v1043_v8 = vadd.f32 1.0, %v1960_v57  ;;  %v2451_v3 = vmul.f32 %v1114_v22, %v872_v1  ;;  %v1822_v29 = vpop.f32.mrb[30].mxu1  ;;  %v1119_v1 = vmul.f32 %v1958_v20, %v2338_v63 }
 0x1ef   : > { %v1964_v13 = vpop.eup %1963  ;;  %v1056_v23 = vadd.f32 1.0, %v1962_v47  ;;  %v2459_v42 = vpop.f32.mrb[22].mxu0  ;;  %v2465_v10 = vmul.f32 %v1125_v0, %v955_v56  ;;  %1831 = vmatprep.mubr.msk.bf16.mxu1 %vm575_vm1, %v1155_v44  ;;  %v958_v47 = vadd.f32 %v1822_v29, %v2369_v51  ;;  %v878_v29 = vadd.f32 %v2418_v14, %v2358_v45 }
 0x1f0   : > { %v949_v40 = vpop.f32.mrb[31].mxu1  ;;  %v1966_v37 = vpop.eup %1965  ;;  %1981 = vrcp.f32 %v1043_v8  ;;  %v1050_v32 = vadd.f32 1.0, %v1964_v13  ;;  %v2468_v49 = vmul.f32 %v1119_v1, %v947_v11  ;;  %1832 = vmatmul.mubr.msk.bf16.vlgmr.msra.gmra.mrb[32].mxu1 %vm575_vm1, %v1158_v61  ;;  %v1156_v6 = vpack.c.bf16 %v2451_v3, %v2443_v16 }
 0x1f1   : > { %v2463_v28 = vpop.f32.mrb[23].mxu0  ;;  %v1968_v12 = vpop.eup %1967  ;;  %1983 = vrcp.f32 %v1056_v23  ;;  %v1045_v58 = vadd.f32 1.0, %v1966_v37  ;;  %v874_v16 = vadd.f32 %v2395_v50, %v2362_v46  ;;  %v950_v3 = vadd.f32 %v949_v40, %v2369_v51 }
 0x1f2   : > { %v1970_v48 = vpop.eup %1969  ;;  %1985 = vrcp.f32 %v1050_v32  ;;  %v1046_v9 = vadd.f32 1.0, %v1968_v12  ;;  %v880_v51 = vadd.f32 %v2424_v15, %v2362_v46 }
 0x1f3   : > { %v1972_v63 = vpop.eup %1971  ;;  %1987 = vrcp.f32 %v1045_v58  ;;  %v1048_v5 = vadd.f32 1.0, %v1970_v48 }
 0x1f4   : > { %v1974_v60 = vpop.eup %1973  ;;  %1989 = vrcp.f32 %v1046_v9  ;;  %v1049_v39 = vadd.f32 1.0, %v1972_v63  ;;  %v888_v63 = vadd.f32 %v2449_v41, %v2358_v45 }
 0x1f5   : > { %v1976_v52 = vpop.eup %1975  ;;  %1991 = vrcp.f32 %v1048_v5  ;;  %v1051_v20 = vadd.f32 1.0, %v1974_v60 }
 0x1f6   : > { %v1978_v22 = vpop.eup %1977  ;;  %1993 = vrcp.f32 %v1049_v39  ;;  %v1052_v43 = vadd.f32 1.0, %v1976_v52 }
 0x1f7   : > { %v1980_v19 = vpop.eup %1979  ;;  %1995 = vrcp.f32 %v1051_v20  ;;  %v1054_v57 = vadd.f32 1.0, %v1978_v22 }
 0x1f8   : > { %1997 = vrcp.f32 %v1052_v43  ;;  %v1055_v26 = vadd.f32 1.0, %v1980_v19 }
 0x1f9   : > { %1999 = vrcp.f32 %v1054_v57 }
 0x1fa   : > { %v1982_v36 = vpop.eup %1981  ;;  %2001 = vrcp.f32 %v1055_v26 }
 0x1fb   : > { %v1984_v8 = vpop.eup %1983  ;;  %v1115_v61 = vmul.f32 %v1982_v36, %v2348_v25 }
 0x1fc   : > { %v1986_v30 = vpop.eup %1985  ;;  %v1128_v13 = vmul.f32 %v1984_v8, %v2351_v33 }
 0x1fd   : > { %v1988_v0 = vpop.eup %1987  ;;  %v1122_v23 = vmul.f32 %v1986_v30, %v2354_v38  ;;  %v1139_v44 = vmul.f32 %v1115_v61, %v874_v16 }
 0x1fe   : > { %v1990_v56 = vpop.eup %1989  ;;  %v1117_v37 = vmul.f32 %v1988_v0, %v2365_v24  ;;  %v1152_v1 = vmul.f32 %v1128_v13, %v958_v47  ;;  %v882_v24 = vadd.f32 %v2430_v53, %v2358_v45 }
 0x1ff   : > { %v1992_v25 = vpop.eup %1991  ;;  %v1118_v32 = vmul.f32 %v1990_v56, %v2373_v59  ;;  %v1146_v50 = vmul.f32 %v1122_v23, %v950_v3  ;;  %v1157_v33 = vpack.c.bf16 %v1139_v44, %v2447_v21  ;;  %v884_v59 = vadd.f32 %v2435_v17, %v2362_v46 }
 0x200   : > { %v1994_v40 = vpop.eup %1993  ;;  %v1120_v38 = vmul.f32 %v1992_v25, %v2379_v2  ;;  %v1141_v11 = vmul.f32 %v1117_v37, %v878_v29  ;;  %v1164_v12 = vpack.c.bf16 %v1152_v1, %v2465_v10 }
 0x201   : > { %v1996_v14 = vpop.eup %1995  ;;  %v1121_v58 = vmul.f32 %v1994_v40, %v2383_v7  ;;  %v1142_v48 = vmul.f32 %v1118_v32, %v880_v51  ;;  %v1161_v15 = vpack.c.bf16 %v1146_v50, %v2468_v49  ;;  %1384 = vmatprep.mubr.bf16.mxu0 %v1157_v33  ;;  %v890_v7 = vadd.f32 %v2455_v62, %v2362_v46 }
 0x202   : > { %v1998_v21 = vpop.eup %1997  ;;  %v1123_v9 = vmul.f32 %v1996_v14, %v2388_v27  ;;  %v1144_v2 = vmul.f32 %v1120_v38, %v882_v24  ;;  %1385 = vmatmul.mubr.bf16.gmra.mrb[28].mxu0 %v1156_v6  ;;  %v892_v27 = vadd.f32 %v2459_v42, %v2358_v45 }
 0x203   : > { %v2000_v53 = vpop.eup %1999  ;;  %v1124_v10 = vmul.f32 %v1998_v21, %v2391_v31  ;;  %v1145_v5 = vmul.f32 %v1121_v58, %v884_v59  ;;  %1835 = vmatprep.mubr.msk.bf16.mxu1 %vm575_vm1, %v1161_v15  ;;  %v894_v31 = vadd.f32 %v2463_v28, %v2362_v46 }
 0x204   : > { %v2002_v17 = vpop.eup %2001  ;;  %v1126_v49 = vmul.f32 %v2000_v53, %v2403_v4  ;;  %v1147_v60 = vmul.f32 %v1123_v9, %v888_v63  ;;  %1836 = vmatmul.mubr.msk.bf16.gmra.mrb[36].mxu1 %vm575_vm1, %v1164_v12  ;;  %v1159_v41 = vpack.c.bf16 %v1144_v2, %v1141_v11 }
 0x205   : > { %v1127_v39 = vmul.f32 %v2002_v17, %v2415_v18  ;;  %v1148_v6 = vmul.f32 %v1124_v10, %v890_v7  ;;  %v1160_v52 = vpack.c.bf16 %v1145_v5, %v1142_v48  ;;  %v1674_v18 = vld [vmem:[%s2540_s8] ss:$0 sm:$0xff] }
 0x206   : > { %v1150_v62 = vmul.f32 %v1126_v49, %v892_v27 }
 0x207   : > { %v1151_v20 = vmul.f32 %v1127_v39, %v894_v31  ;;  %1392 = vmatprep.mubr.bf16.mxu0 %v1160_v52 }
 0x208   : > { %v1162_v22 = vpack.c.bf16 %v1150_v62, %v1147_v60 }
 0x209   : > { %v1163_v43 = vpack.c.bf16 %v1151_v20, %v1148_v6 }
 0x20a   : > { %1393 = vmatmul.mubr.bf16.gmra.mrb[32].mxu0 %v1159_v41 }
 0x20b   : > { %1400 = vmatprep.mubr.bf16.mxu0 %v1163_v43 }
 0x212   : > { %1401 = vmatmul.mubr.bf16.gmra.mrb[36].mxu0 %v1162_v22 }
 0x2c0   : > { %v1747_v4 = vpop.f32.mrb[24].mxu0 }
 0x2c1   : > { %v1748_v45 = vpop.f32.mrb[25].mxu0 }
 0x2c2   : > { %v1749_v19 = vadd.f32 %v1748_v45, %v1747_v4  ;;  %v1750_v57 = vpop.f32.mrb[26].mxu0 }
 0x2c3   : > { %v1833_v42 = vpop.f32.mrb[32].mxu1  ;;  %v1751_v46 = vpop.f32.mrb[27].mxu0 }
 0x2c4   : > { %v1443_v26 = vpop.f32.mrb[33].mxu1  ;;  %v1752_v36 = vadd.f32 %v1751_v46, %v1750_v57  ;;  %v1379_v47 = vadd.f32 %v1749_v19, %v1674_v18 }
 0x2c5   : > { %v1834_v28 = vpop.f32.mrb[34].mxu1 }
 0x2c6   : > { %v1446_v8 = vpop.f32.mrb[35].mxu1  ;;  %v1444_v61 = vadd.f32 %v1443_v26, %v1379_v47  ;;  %v1382_v16 = vadd.f32 %v1752_v36, %v1674_v18 }
 0x2c8   : > { %v1447_v3 = vadd.f32 %v1446_v8, %v1382_v16 }
 0x2ca   : > { %v1474_v30 = vpack.c.bf16 %v1447_v3, %v1444_v61 }
 0x2cc   : > { %1482 = vrot.lane.b32.xlu0 %v1474_v30, %s2012_s26 }
 0x2d5   : > { %v1753_v13 = vpop.f32.mrb[28].mxu0 }
 0x2d6   : > { %v1754_v0 = vpop.f32.mrb[29].mxu0 }
 0x2d7   : > { %v1755_v23 = vadd.f32 %v1754_v0, %v1753_v13  ;;  %v1756_v44 = vpop.f32.mrb[30].mxu0  ;;  %v1837_v56 = vpop.f32.mrb[36].mxu1 }
 0x2d8   : > { %v1757_v37 = vpop.f32.mrb[31].mxu0  ;;  %v1459_v29 = vpop.f32.mrb[37].mxu1 }
 0x2d9   : > { %v1387_v1 = vadd.f32 %v1755_v23, %v1674_v18  ;;  %v1758_v25 = vadd.f32 %v1757_v37, %v1756_v44  ;;  %v1838_v32 = vpop.f32.mrb[38].mxu1 }
 0x2da   : > { %v1462_v51 = vpop.f32.mrb[39].mxu1 }
 0x2db   : > { %v1452_v50 = vadd.f32 %v1833_v42, %v1387_v1  ;;  %v1390_v33 = vadd.f32 %v1758_v25, %v1674_v18 }
 0x2dd   : > { %v1455_v40 = vadd.f32 %v1834_v28, %v1390_v33  ;;  %v1759_v38 = vpop.f32.mrb[32].mxu0 }
 0x2de   : > { %v1760_v11 = vpop.f32.mrb[33].mxu0 }
 0x2df   : > { %v1761_v24 = vadd.f32 %v1760_v11, %v1759_v38  ;;  %v1762_v12 = vpop.f32.mrb[34].mxu0  ;;  %v1475_v14 = vpack.c.bf16 %v1455_v40, %v1452_v50 }
 0x2e0   : > { %v1763_v58 = vpop.f32.mrb[35].mxu0 }
 0x2e1   : > { %v1395_v48 = vadd.f32 %v1761_v24, %v1674_v18  ;;  %v1764_v59 = vadd.f32 %v1763_v58, %v1762_v12  ;;  %1484 = vrot.lane.b32.xlu0 %v1475_v14, %s2012_s26 }
 0x2e3   : > { %v1398_v15 = vadd.f32 %v1764_v59, %v1674_v18  ;;  %v1460_v21 = vadd.f32 %v1459_v29, %v1395_v48 }
 0x2e5   : > { %v1765_v9 = vpop.f32.mrb[36].mxu0  ;;  %v1463_v2 = vadd.f32 %v1462_v51, %v1398_v15 }
 0x2e6   : > { %v1766_v63 = vpop.f32.mrb[37].mxu0 }
 0x2e7   : > { %v1767_v53 = vadd.f32 %v1766_v63, %v1765_v9  ;;  %v1768_v10 = vpop.f32.mrb[38].mxu0  ;;  %v1476_v5 = vpack.c.bf16 %v1463_v2, %v1460_v21 }
 0x2e8   : > { %v1769_v7 = vpop.f32.mrb[39].mxu0 }
 0x2e9   : > { %v1403_v17 = vadd.f32 %v1767_v53, %v1674_v18  ;;  %v1770_v49 = vadd.f32 %v1769_v7, %v1768_v10  ;;  %1486 = vrot.lane.b32.xlu1 %v1476_v5, %s2012_s26 }
 0x2eb   : > { %v1468_v60 = vadd.f32 %v1837_v56, %v1403_v17  ;;  %v1406_v27 = vadd.f32 %v1770_v49, %v1674_v18 }
 0x2ed   : > { %v1471_v41 = vadd.f32 %v1838_v32, %v1406_v27 }
 0x2ef   : > { %v1477_v39 = vpack.c.bf16 %v1471_v41, %v1468_v60 }
 0x2f1   : > { %1488 = vrot.lane.b32.xlu1 %v1477_v39, %s2012_s26 }
 0x33e   : > { %v1483_v6 = vpop.permute.xlu0 %1482 }
 0x33f   : > { %v1491_v31 = vsel %vm575_vm1, %v2137_v35, %v1483_v6 }
 0x340   : > { %v1699_v52 = vcombine.low %v1491_v31, %v1491_v31  ;;  %v1700_v62 = vcombine.high %v1491_v31, %v1491_v31 }
 0x342   : > { %1526 = vst [vmem:[%s334_s29] sm:$0xf] %v1699_v52  ;;  %1527 = vst [vmem:[%s334_s29 + $0x4] sm:$0xf] %v1700_v62 }
 0x353   : > { %v1485_v20 = vpop.permute.xlu0 %1484 }
 0x354   : > { %v1493_v22 = vsel %vm575_vm1, %v2135_v34, %v1485_v20 }
 0x355   : > { %v1701_v43 = vcombine.low %v1493_v22, %v1493_v22  ;;  %v1702_v4 = vcombine.high %v1493_v22, %v1493_v22 }
 0x357   : > { %1528 = vst [vmem:[%s334_s29 + $0x8] sm:$0xf] %v1701_v43  ;;  %1529 = vst [vmem:[%s334_s29 + $0xc] sm:$0xf] %v1702_v4 }
 0x35b   : > { %v1487_v45 = vpop.permute.xlu1 %1486 }
 0x35c   : > { %v1495_v42 = vsel %vm575_vm1, %v2166_v55, %v1487_v45 }
 0x35d   : > { %v1703_v18 = vcombine.low %v1495_v42, %v1495_v42  ;;  %v1704_v19 = vcombine.high %v1495_v42, %v1495_v42 }
 0x35f   : > { %1530 = vst [vmem:[%s334_s29 + $0x10] sm:$0xf] %v1703_v18  ;;  %1531 = vst [vmem:[%s334_s29 + $0x14] sm:$0xf] %v1704_v19 }
 0x363   : > { %v1489_v35 = vpop.permute.xlu1 %1488 }
 0x364   : > { %v1497_v57 = vsel %vm575_vm1, %v2164_v54, %v1489_v35 }
 0x365   : > { %v1705_v26 = vcombine.low %v1497_v57, %v1497_v57  ;;  %v1706_v46 = vcombine.high %v1497_v57, %v1497_v57 }
 0x367   : > { %1532 = vst [vmem:[%s334_s29 + $0x18] sm:$0xf] %v1705_v26  ;;  %1533 = vst [vmem:[%s334_s29 + $0x1c] sm:$0xf] %v1706_v46 }
 0x368 PF: > { %s19_s30 = sadd.s32 1, %s2009_s30  }
 0x369   : > { %p16_p4 = scmp.ge.s32.totalorder %s19_s30, 4  }
 0x36b   :  { %18 = sbr.rel (!%p16_p4) target bundleno = 1 (0x1), region = 86 }

// kernel: cdlamba_forward.22
= control target key start
LH: loop header
LB: loop body
LE: loop exit
PB: predicated region body
PF: predicated region fallthrough
CT: control target
= control target key end

     0   :  { %s339_s9 = smov 0   ;;  %s359_s0 = inlined_call_operand.vmem [shape: bf16[2,8,256], index: 0, kind: input, shape index: {}]   ;;  %s360_s1 = inlined_call_operand.vmem [shape: bf16[16,8], index: 1, kind: input, shape index: {}]   ;;  %s361_s2 = inlined_call_operand.vmem [shape: bf16[2,16,256], index: 2, kind: output, shape index: {}]  }
   0x1 LB: > { %s281_s10 = sadd.s32 4294967295, %s321_s9   ;;  %p285_p0 = scmp.ge.s32.totalorder %s321_s9, 1  ;;  %s321_s9 = sphi %s339_s9, %s12_s9  }
   0x2   : > { %p112_p1 = scmp.lt.s32.totalorder %s321_s9, 3 }
   0x4   : > { %p113_p2 = pnand %p285_p0, %p112_p1 }
   0x5   : > { %p134_p3 = scmp.lt.s32.totalorder (!%p113_p2), %s281_s10, 1  ;;  %v323_v0 = vmov (!%p113_p2), 0   ;;  %vm162_vm0 = vcmask (!%p113_p2), 1043456   ;;  %v314_v5 = vld [vmem:[%s360_s1] sm:$0xff] (!%p113_p2)   ;;  %vm158_vm1 = vcmask (!%p113_p2), 64512  }
   0x6   : > { %116 = sbr.rel (%p113_p2) target bundleno = 241 (0xf1), region = 28  ;;  %201 = vmatprep.mubr.bf16.mxu0 (!%p113_p2), %v323_v0 }
   0xd   : > { %s363_s10 = smov (!%p134_p3, %s281_s10), 1 }
   0xe   : > { %s299_s11 = sshll.u32 %s363_s10, 3  ;;  %s300_s17 = sshll.u32 %s363_s10, 4 }
   0xf   : > { %s138_s14 = scalar_lea.vmem %s359_s0, %s299_s11  ;;  %s143_s20 = scalar_lea.vmem %s361_s2, %s300_s17 }
  0x10   : > { %v147_v1 = vld [vmem:[%s138_s14] sm:$0xff] }
  0x11   : > { %v292_v2 = vcombine.high %v147_v1, %v147_v1  ;;  %v291_v3 = vcombine.low %v147_v1, %v147_v1 }
  0x13   : > { %293 = vmatprep.subr.msk.bf16.mxu0 %vm162_vm0, %v292_v2  ;;  %v164_v4 = vsel %vm162_vm0, %v291_v3, 0 }
  0x14   : > { %170 = vmatpush1.bf16.msra.mxu0 %v164_v4 }
  0x17   : > { %294 = vmatmul.mubr.msk.bf16.vlgmr.msra.gmra.mrb[0].mxu0 %vm158_vm1, %v314_v5 }
  0xea   : > { %v203_v6 = vpop.f32.mrb[0].mxu0 }
  0xeb   : > { %v205_v7 = vpop.f32.mrb[1].mxu0 }
  0xec   : > { %v301_v8 = vpack.c.bf16 %v205_v7, %v203_v6  ;;  %v207_v9 = vpop.f32.mrb[2].mxu0 }
  0xed   : > { %v209_v10 = vpop.f32.mrb[3].mxu0 }
  0xee   : > { %224 = vst [vmem:[%s143_s20] sm:$0xff] %v301_v8  ;;  %v302_v11 = vpack.c.bf16 %v209_v10, %v207_v9 }
  0xf0   : > { %225 = vst [vmem:[%s143_s20 + $0x8] sm:$0xff] %v302_v11 }
  0xf1 PF: > { %s12_s9 = sadd.s32 1, %s321_s9  }
  0xf2   : > { %p9_p4 = scmp.ge.s32.totalorder %s12_s9, 4  }
  0xf4   :  { %11 = sbr.rel (!%p9_p4) target bundleno = 1 (0x1), region = 58 }

// kernel: cdlamba_forward.19
= control target key start
LH: loop header
LB: loop body
LE: loop exit
PB: predicated region body
PF: predicated region fallthrough
CT: control target
= control target key end

     0   :  { %s924_s24 = smov 0   ;;  %s1009_s0 = inlined_call_operand.vmem [shape: bf16[2,16,128], index: 0, kind: input, shape index: {}]   ;;  %s1010_s1 = inlined_call_operand.vmem [shape: bf16[64,64], index: 1, kind: input, shape index: {}]   ;;  %s1011_s2 = inlined_call_operand.vmem [shape: f32[1,64], index: 2, kind: input, shape index: {}]   ;;  %s1012_s3 = inlined_call_operand.vmem [shape: f32[1,64], index: 3, kind: input, shape index: {}]   ;;  %s1013_s4 = inlined_call_operand.vmem [shape: f32[1,64], index: 4, kind: input, shape index: {}]   ;;  %s1014_s5 = inlined_call_operand.vmem [shape: f32[64,64], index: 5, kind: input, shape index: {}]   ;;  %s1015_s6 = inlined_call_operand.vmem [shape: bf16[2,16,32], index: 6, kind: output, shape index: {0}]   ;;  %s1016_s7 = inlined_call_operand.vmem [shape: bf16[2,16,64], index: 7, kind: output, shape index: {1}]  }
   0x1 LB: > { %s718_s25 = sadd.s32 4294967295, %s877_s24   ;;  %p722_p0 = scmp.ge.s32.totalorder %s877_s24, 1  ;;  %s877_s24 = sphi %s924_s24, %s18_s24  }
   0x2   : > { %p240_p1 = scmp.lt.s32.totalorder %s877_s24, 3 }
   0x4   : > { %p241_p2 = pnand %p722_p0, %p240_p1 }
   0x5   : > { %p277_p3 = scmp.lt.s32.totalorder (!%p241_p2), %s718_s25, 1  ;;  %v864_v0 = vld [vmem:[%s1010_s1] sm:$0xff] (!%p241_p2)   ;;  %v879_v1 = vmov (!%p241_p2), 0.0   ;;  %v865_v2 = vld [vmem:[%s1010_s1 + $0x8] sm:$0xff] (!%p241_p2)   ;;  %vm880_vm0 = vmmov (!%p241_p2), 0   ;;  %v866_v4 = vld [vmem:[%s1010_s1 + $0x10] sm:$0xff] (!%p241_p2)   ;;  %v477_v36 = vlaneseq (!%p241_p2) }
   0x6   : > { %244 = sbr.rel (%p241_p2) target bundleno = 953 (0x3b9), region = 44  ;;  %776 = vmatprep.subr.bf16.mxu0 (!%p241_p2), %v879_v1  ;;  %784 = vmatprep.mubr.msk.bf16.mxu0 (!%p241_p2), %vm880_vm0, %v879_v1  ;;  %s881_s13 = smov (!%p241_p2), 64   ;;  %v867_v5 = vld [vmem:[%s1010_s1 + $0x18] sm:$0xff] (!%p241_p2)   ;;  %vm341_vm1 = vcmask (!%p241_p2), 523264   ;;  %v395_v7 = vld [vmem:[%s1014_s5] sm:$0xff] (!%p241_p2)  ;;  %v396_v8 = vld [vmem:[%s1014_s5 + $0x8] sm:$0xff] (!%p241_p2) }
   0x7   : > { %777 = vmatpush3.bf16.msra.mxu0 (!%p241_p2), %v864_v0  ;;  %804 = vmatprep.mubr.msk.f32.mxu1 (!%p241_p2), %vm880_vm0, %v879_v1  ;;  %v827_v9 = vpack.c.bf16 (!%p241_p2), %v396_v8, %v395_v7  ;;  %v882_v10 = vmov (!%p241_p2), 0.0|0.0   ;;  %v397_v11 = vld [vmem:[%s1014_s5 + $0x10] sm:$0xff] (!%p241_p2)  ;;  %v398_v12 = vld [vmem:[%s1014_s5 + $0x18] sm:$0xff] (!%p241_p2)  ;;  %v399_v14 = vld [vmem:[%s1014_s5 + $0x20] sm:$0xff] (!%p241_p2)  ;;  %v478_v37 = vshrl.u32 (!%p241_p2), %v477_v36, 7  ;;  %s883_s17 = smov (!%p241_p2), 96  }
   0x8   : > { %778 = vmatprep.subr.bf16.mxu0 (!%p241_p2), %v879_v1  ;;  %826 = vmatprep.subr.bf16.mxu1 (!%p241_p2), %v882_v10  ;;  %v830_v13 = vpack.c.bf16 (!%p241_p2), %v398_v12, %v397_v11  ;;  %v400_v15 = vld [vmem:[%s1014_s5 + $0x28] sm:$0xff] (!%p241_p2)  ;;  %v401_v17 = vld [vmem:[%s1014_s5 + $0x30] sm:$0xff] (!%p241_p2)  ;;  %v402_v18 = vld [vmem:[%s1014_s5 + $0x38] sm:$0xff] (!%p241_p2)  ;;  %vm606_vm2 = vcmask (!%p241_p2), 519168   ;;  %vm627_vm3 = vcmask (!%p241_p2), 257024  }
   0x9   : > { %828 = vmatpush3.bf16.msra.mxu1 (!%p241_p2), %v827_v9  ;;  %v833_v16 = vpack.c.bf16 (!%p241_p2), %v400_v15, %v399_v14  ;;  %v836_v19 = vpack.c.bf16 (!%p241_p2), %v402_v18, %v401_v17  ;;  %v729_v20 = vld [vmem:[%s1011_s2] ss:$0 sm:$0xff] (!%p241_p2)  ;;  %v479_v38 = vsub.s32 (!%p241_p2), 0, %v478_v37 }
   0xa   : > { %829 = vmatprep.subr.bf16.mxu1 (!%p241_p2), %v882_v10  ;;  %v738_v62 = vld [vmem:[%s1012_s3] ss:$0 sm:$0xff] (!%p241_p2) }
   0xb   : > { %779 = vmatpush3.bf16.msra.mxu0 (!%p241_p2), %v865_v2 }
   0xc   : > { %780 = vmatprep.subr.bf16.mxu0 (!%p241_p2), %v879_v1 }
   0xd   : > { %s1018_s25 = smov (!%p277_p3, %s718_s25), 1  ;;  %831 = vmatpush3.bf16.msra.mxu1 %v830_v13 }
   0xe   : > { %s938_s30 = sshll.u32 %s1018_s25, 3  ;;  %832 = vmatprep.subr.bf16.mxu1 %v882_v10 }
   0xf   : > { %s281_s10 = scalar_lea.vmem %s1009_s0, %s938_s30  ;;  %781 = vmatpush3.bf16.msra.mxu0 %v866_v4  ;;  %s291_s20 = scalar_lea.vmem %s1016_s7, %s938_s30 }
  0x10   : > { %v946_v3 = vld [vmem:[%s281_s10] sm:$0xff]   ;;  %782 = vmatprep.subr.bf16.mxu0 %v879_v1  ;;  %s286_s23 = scalar_lea.vmem %s1015_s6, %s938_s30 }
  0x11   : > { %315 = vrot.lane.b32.xlu0 %v946_v3, %s881_s13  ;;  %834 = vmatpush3.bf16.msra.mxu1 %v833_v16  ;;  %v594_v2 = vunpack.c.l.bf16 %v946_v3  ;;  %v595_v4 = vunpack.c.h.bf16 %v946_v3 }
  0x12   : > { %835 = vmatprep.subr.bf16.mxu1 %v882_v10 }
  0x13   : > { %783 = vmatpush3.bf16.msra.mxu0 %v867_v5 }
  0x14   : > { %838 = vmatprep.subr.bf16.mxu0 %v882_v10 }
  0x15   : > { %837 = vmatpush3.bf16.msra.mxu1 %v836_v19 }
  0x83   : > { %v316_v6 = vpop.permute.xlu0 %315 }
  0x84   : > { %785 = vmatmul.mubr.msk.bf16.vlgmr.msra.gmra.mrb[0].mxu0 %vm341_vm1, %v316_v6 }
  0x85   : > { %823 = vmatprep.mubr.msk.f32.mxu0 %vm880_vm0, %v879_v1  ;;  %840 = vmatpush3.bf16.msra.mxu0 %v827_v9  ;;  %v739_v1 = vld [vmem:[%s1013_s4] ss:$0 sm:$0xff] }
  0x86   : > { %841 = vmatprep.subr.bf16.mxu0 %v882_v10 }
  0x89   : > { %843 = vmatpush3.bf16.msra.mxu0 %v830_v13 }
  0x8a   : > { %844 = vmatprep.subr.bf16.mxu0 %v882_v10 }
  0x8d   : > { %846 = vmatpush3.bf16.msra.mxu0 %v833_v16 }
  0x8e   : > { %847 = vmatprep.subr.bf16.mxu0 %v882_v10 }
  0x91   : > { %849 = vmatpush3.bf16.msra.mxu0 %v836_v19 }
 0x157   : > { %v379_v21 = vpop.f32.mrb[0].mxu0 }
 0x158   : > { %v380_v22 = vadd.f32 %v729_v20, %v379_v21  ;;  %v786_v23 = vpop.f32.mrb[1].mxu0 }
 0x159   : > { %v382_v24 = vpop.f32.mrb[2].mxu0 }
 0x15a   : > { %v383_v25 = vadd.f32 %v729_v20, %v382_v24  ;;  %v787_v26 = vpop.f32.mrb[3].mxu0  ;;  %v386_v27 = vsel %vm341_vm1, %v380_v22, 0.0 }
 0x15c   : > { %v387_v28 = vsel %vm341_vm1, %v383_v25, 0.0 }
 0x15d   : > { %v388_v29 = vadd.f32 %v387_v28, %v386_v27 }
 0x15f   : > { %v389_v30 = vrot.slane %v388_v29, 4 }
 0x161   : > { %v390_v31 = vadd.f32 %v389_v30, %v388_v29 }
 0x163   : > { %v391_v32 = vrot.slane %v390_v31, 2 }
 0x165   : > { %v392_v33 = vadd.f32 %v391_v32, %v390_v31 }
 0x167   : > { %v393_v34 = vrot.slane %v392_v33, 1 }
 0x169   : > { %v394_v35 = vadd.f32 %v393_v34, %v392_v33 }
 0x16b   : > { %805 = vmatmul.mubr.msk.f32.vlgmr.msra.gmra.mrb[0].mxu1 %vm341_vm1, %v394_v35 }
 0x23e   : > { %v472_v39 = vpop.f32.mrb[0].mxu1 }
 0x23f   : > { %v476_v40 = vmul.f32 0.03125, %v472_v39  ;;  %v806_v41 = vpop.f32.mrb[1].mxu1 }
 0x241   : > { %v480_v42 = vrot.slane %v476_v40, %v479_v38 }
 0x243   : > { %v481_v43 = vsub.f32 %v380_v22, %v480_v42  ;;  %v482_v44 = vsub.f32 %v383_v25, %v480_v42 }
 0x245   : > { %v483_v45 = vmul.f32 %v481_v43, %v481_v43  ;;  %v484_v46 = vmul.f32 %v482_v44, %v482_v44 }
 0x247   : > { %v485_v47 = vsel %vm341_vm1, %v483_v45, 0.0  ;;  %v486_v48 = vsel %vm341_vm1, %v484_v46, 0.0 }
 0x248   : > { %v487_v49 = vadd.f32 %v486_v48, %v485_v47 }
 0x24a   : > { %v488_v50 = vrot.slane %v487_v49, 4 }
 0x24c   : > { %v489_v51 = vadd.f32 %v488_v50, %v487_v49 }
 0x24e   : > { %v490_v52 = vrot.slane %v489_v51, 2 }
 0x250   : > { %v491_v53 = vadd.f32 %v490_v52, %v489_v51 }
 0x252   : > { %v492_v54 = vrot.slane %v491_v53, 1 }
 0x254   : > { %v493_v55 = vadd.f32 %v492_v54, %v491_v53 }
 0x256   : > { %824 = vmatmul.mubr.msk.f32.vlgmr.msra.gmra.mrb[4].mxu0 %vm341_vm1, %v493_v55 }
 0x329   : > { %v563_v56 = vpop.f32.mrb[4].mxu0 }
 0x32a   : > { %v567_v57 = vmul.f32 0.03125, %v563_v56  ;;  %v825_v58 = vpop.f32.mrb[5].mxu0 }
 0x32c   : > { %v568_v59 = vadd.f32 1e-05, %v567_v57 }
 0x32e   : > { %869 = vrsqrt.f32 %v568_v59 }
 0x338   : > { %v870_v60 = vpop.eup %869 }
 0x339   : > { %v573_v61 = vrot.slane %v870_v60, %v479_v38 }
 0x33b   : > { %v575_v63 = vmul.f32 %v573_v61, %v482_v44  ;;  %v574_v0 = vmul.f32 %v573_v61, %v481_v43 }
 0x33d   : > { %v584_v5 = vmul.f32 %v738_v62, %v575_v63  ;;  %v583_v6 = vmul.f32 %v738_v62, %v574_v0 }
 0x33f   : > { %v593_v7 = vadd.f32 %v739_v1, %v584_v5  ;;  %v592_v8 = vadd.f32 %v739_v1, %v583_v6 }
 0x341   : > { %613 = vrot.lane.b32.xlu1 %v593_v7, %s883_s17  ;;  %v597_v9 = vadd.f32 %v595_v4, %v593_v7  ;;  %611 = vrot.lane.b32.xlu0 %v592_v8, %s883_s17  ;;  %v596_v10 = vadd.f32 %v594_v2, %v592_v8 }
 0x343   : > { %v750_v11 = vpack.c.bf16 %v597_v9, %v597_v9  ;;  %v749_v12 = vpack.c.bf16 %v596_v10, %v596_v10 }
 0x345   : > { %608 = vst.msk [vmem:[%s291_s20 + $0x4] sm:$0xf] %vm606_vm2, %v750_v11  ;;  %607 = vst.msk [vmem:[%s291_s20] sm:$0xf] %vm606_vm2, %v749_v12 }
 0x3b3   : > { %v614_v3 = vpop.permute.xlu1 %613  ;;  %v612_v13 = vpop.permute.xlu0 %611 }
 0x3b4   : > { %v618_v14 = vsub.f32 %v593_v7, %v614_v3  ;;  %v617_v15 = vsub.f32 %v592_v8, %v612_v13 }
 0x3b6   : > { %v752_v16 = vpack.c.bf16 %v618_v14, %v618_v14  ;;  %v751_v17 = vpack.c.bf16 %v617_v15, %v617_v15 }
 0x3b8   : > { %629 = vst.msk [vmem:[%s286_s23 + $0x4] sm:$0xf] %vm627_vm3, %v752_v16  ;;  %628 = vst.msk [vmem:[%s286_s23] sm:$0xf] %vm627_vm3, %v751_v17 }
 0x3b9 PF: > { %s18_s24 = sadd.s32 1, %s877_s24  }
 0x3ba   : > { %p15_p4 = scmp.ge.s32.totalorder %s18_s24, 4  }
 0x3bc   :  { %17 = sbr.rel (!%p15_p4) target bundleno = 1 (0x1), region = 86 }

// kernel: cdlamba_forward.18
= control target key start
LH: loop header
LB: loop body
LE: loop exit
PB: predicated region body
PF: predicated region fallthrough
CT: control target
= control target key end

     0   :  { %s1491_s30 = smov 0   ;;  %s1714_s0 = inlined_call_operand.vmem [shape: bf16[32,64], index: 0, kind: input, shape index: {}]   ;;  %s1715_s1 = inlined_call_operand.vmem [shape: bf16[64,64], index: 1, kind: input, shape index: {}]   ;;  %s1716_s2 = inlined_call_operand.vmem [shape: f32[1,64], index: 2, kind: input, shape index: {}]   ;;  %s1717_s3 = inlined_call_operand.vmem [shape: bf16[64,320], index: 3, kind: input, shape index: {}]   ;;  %s1718_s4 = inlined_call_operand.vmem [shape: f32[1,320], index: 4, kind: input, shape index: {}]   ;;  %s1719_s5 = inlined_call_operand.vmem [shape: bf16[64,320], index: 5, kind: input, shape index: {}]   ;;  %s1720_s6 = inlined_call_operand.vmem [shape: f32[1,320], index: 6, kind: input, shape index: {}]   ;;  %s1721_s7 = inlined_call_operand.vmem [shape: bf16[320,64], index: 7, kind: input, shape index: {}]   ;;  %s1722_s8 = inlined_call_operand.vmem [shape: f32[1,64], index: 8, kind: input, shape index: {}]   ;;  %s1723_s9 = inlined_call_operand.vmem [shape: bf16[32,128], index: 9, kind: output, shape index: {}]  }
   0x1 LB: > { %s1170_s10 = sadd.s32 4294967295, %s1435_s30   ;;  %p1174_p0 = scmp.ge.s32.totalorder %s1435_s30, 1  ;;  %s1435_s30 = sphi %s1491_s30, %s19_s30  }
   0x2   : > { %p288_p1 = scmp.lt.s32.totalorder %s1435_s30, 3 }
   0x4   : > { %p289_p2 = pnand %p1174_p0, %p288_p1 }
   0x5   : > { %v1348_v0 = vld [vmem:[%s1715_s1] sm:$0xff] (!%p289_p2)   ;;  %v1437_v1 = vmov (!%p289_p2), 0.0   ;;  %v1349_v2 = vld [vmem:[%s1715_s1 + $0x8] sm:$0xff] (!%p289_p2)   ;;  %vm1438_vm0 = vmmov (!%p289_p2), 0   ;;  %s1175_s15 = sshll.u32 (!%p289_p2), %s1170_s10, 1  ;;  %v1350_v5 = vld [vmem:[%s1715_s1 + $0x10] sm:$0xff] (!%p289_p2)   ;;  %v449_v61 = vlaneseq (!%p289_p2) }
   0x6   : > { %292 = sbr.rel (%p289_p2) target bundleno = 838 (0x346), region = 56  ;;  %1288 = vmatprep.subr.bf16.mxu0 (!%p289_p2), %v1437_v1  ;;  %1296 = vmatprep.mubr.msk.bf16.mxu0 (!%p289_p2), %vm1438_vm0, %v1437_v1  ;;  %p325_p3 = scmp.lt.s32.totalorder (!%p289_p2), %s1175_s15, 3  ;;  %v1353_v3 = vld [vmem:[%s1717_s3 + $0x4] ss:$12 sps:$4 sm:$0xff] (!%p289_p2)   ;;  %v1355_v4 = vld [vmem:[%s1717_s3] ss:$12 sps:$4 sm:$0xff] (!%p289_p2)  }
   0x7   : > { %1289 = vmatpush3.bf16.msra.mxu0 (!%p289_p2), %v1348_v0  ;;  %531 = vmatprep.subr.bf16.mxu1 (!%p289_p2), %v1353_v3  ;;  %v1357_v6 = vld [vmem:[%s1717_s3 + $0x1c] ss:$12 sps:$4 sm:$0xff] (!%p289_p2)   ;;  %v1359_v7 = vld [vmem:[%s1717_s3 + $0x18] ss:$12 sps:$4 sm:$0xff] (!%p289_p2)   ;;  %vm383_vm1 = vcmask (!%p289_p2), 523264   ;;  %v1439_v19 = vmov (!%p289_p2), 0  }
   0x8   : > { %1290 = vmatprep.subr.bf16.mxu0 (!%p289_p2), %v1437_v1  ;;  %532 = vmatpush1.bf16.msra.mxu1 (!%p289_p2), %v1355_v4  ;;  %v1351_v8 = vld [vmem:[%s1715_s1 + $0x18] sm:$0xff] (!%p289_p2)   ;;  %v1356_v10 = vld [vmem:[%s1717_s3 + $0x8] ss:$12 sps:$4 sm:$0xff] (!%p289_p2)   ;;  %v1360_v11 = vld [vmem:[%s1717_s3 + $0x20] ss:$12 sps:$4 sm:$0xff] (!%p289_p2)   ;;  %v1689_v62 = vshrl.u32 (!%p289_p2), %v449_v61, 7 }
   0x9   : > { %533 = vmatprep.subr.bf16.mxu1 (!%p289_p2), %v1357_v6  ;;  %v1361_v12 = vld [vmem:[%s1717_s3 + $0x34] ss:$12 sps:$4 sm:$0xff] (!%p289_p2)   ;;  %v1363_v13 = vld [vmem:[%s1717_s3 + $0x30] ss:$12 sps:$4 sm:$0xff] (!%p289_p2)   ;;  %v1364_v14 = vld [vmem:[%s1717_s3 + $0x38] ss:$12 sps:$4 sm:$0xff] (!%p289_p2)   ;;  %563 = vmatprep.mubr.bf16.mxu1 (!%p289_p2), %v1439_v19 }
   0xa   : > { %v1365_v15 = vld [vmem:[%s1717_s3 + $0x4c] ss:$12 sps:$4 sm:$0xff] (!%p289_p2)   ;;  %v1367_v16 = vld [vmem:[%s1717_s3 + $0x48] ss:$12 sps:$4 sm:$0xff] (!%p289_p2)   ;;  %v1368_v17 = vld [vmem:[%s1717_s3 + $0x50] ss:$12 sps:$4 sm:$0xff] (!%p289_p2)  }
   0xb   : > { %1291 = vmatpush3.bf16.msra.mxu0 (!%p289_p2), %v1349_v2  ;;  %v1371_v18 = vld [vmem:[%s1719_s5 + $0x4] ss:$12 sps:$4 sm:$0xff] (!%p289_p2)   ;;  %v1179_v20 = vld [vmem:[%s1716_s2] ss:$0 sm:$0xff] (!%p289_p2)  ;;  %v1372_v30 = vld [vmem:[%s1719_s5 + $0x8] ss:$12 sps:$4 sm:$0xff] (!%p289_p2)  }
   0xc   : > { %1292 = vmatprep.subr.bf16.mxu0 (!%p289_p2), %v1437_v1  ;;  %534 = vmatpush1.bf16.msra.mxu1 (!%p289_p2), %v1359_v7  ;;  %v1369_v29 = vld [vmem:[%s1719_s5] ss:$12 sps:$4 sm:$0xff] (!%p289_p2)   ;;  %v1375_v32 = vld [vmem:[%s1719_s5 + $0x1c] ss:$12 sps:$4 sm:$0xff] (!%p289_p2)   ;;  %v1373_v33 = vld [vmem:[%s1719_s5 + $0x18] ss:$12 sps:$4 sm:$0xff] (!%p289_p2)  }
   0xd   : > { %s1725_s15 = smov (!%p325_p3, %s1175_s15), 3  ;;  %535 = vmatprep.subr.bf16.mxu1 %v1361_v12  ;;  %v1376_v34 = vld [vmem:[%s1719_s5 + $0x20] ss:$12 sps:$4 sm:$0xff]   ;;  %v1377_v36 = vld [vmem:[%s1719_s5 + $0x30] ss:$12 sps:$4 sm:$0xff]   ;;  %v451_v63 = vsub.s32 0, %v1689_v62 }
   0xe   : > { %s1176_s22 = sshll.u32 %s1725_s15, 2  ;;  %v1379_v35 = vld [vmem:[%s1719_s5 + $0x34] ss:$12 sps:$4 sm:$0xff]   ;;  %v1380_v37 = vld [vmem:[%s1719_s5 + $0x38] ss:$12 sps:$4 sm:$0xff]   ;;  %v1387_v43 = vld [vmem:[%s1721_s7 + $0x48] sm:$0xff]  }
   0xf   : > { %s328_s29 = scalar_lea.vmem %s1714_s0, %s1176_s22  ;;  %1293 = vmatpush3.bf16.msra.mxu0 %v1350_v5  ;;  %v1383_v38 = vld [vmem:[%s1719_s5 + $0x4c] ss:$12 sps:$4 sm:$0xff]   ;;  %v1381_v39 = vld [vmem:[%s1719_s5 + $0x48] ss:$12 sps:$4 sm:$0xff]   ;;  %v1384_v40 = vld [vmem:[%s1719_s5 + $0x50] ss:$12 sps:$4 sm:$0xff]   ;;  %s334_s13 = scalar_lea.vmem %s1723_s9, %s1176_s22 }
  0x10   : > { %1294 = vmatprep.subr.bf16.mxu0 %v1437_v1  ;;  %v1352_v9 = vld [vmem:[%s328_s29] sm:$0xff]   ;;  %536 = vmatpush1.bf16.msra.mxu1 %v1363_v13  ;;  %v1388_v44 = vld [vmem:[%s1721_s7 + $0x8] sm:$0xff]   ;;  %v1389_v45 = vld [vmem:[%s1721_s7 + $0x50] sm:$0xff]   ;;  %v459_v0 = vsub.s32 2, %v1689_v62  ;;  %v455_v2 = vsub.s32 1, %v1689_v62  ;;  %s1440_s10 = smov 64  }
  0x11   : > { %537 = vmatprep.subr.bf16.mxu1 %v1365_v15  ;;  %v1385_v41 = vld [vmem:[%s1721_s7 + $0x40] sm:$0xff]   ;;  %v1390_v46 = vld [vmem:[%s1721_s7 + $0x10] sm:$0xff]   ;;  %v1391_v47 = vld [vmem:[%s1721_s7 + $0x58] sm:$0xff]  }
  0x12   : > { %v1386_v42 = vld [vmem:[%s1721_s7] sm:$0xff]   ;;  %v1392_v48 = vld [vmem:[%s1721_s7 + $0x18] sm:$0xff]   ;;  %v1396_v52 = vld [vmem:[%s1721_s7 + $0x88] sm:$0xff]  }
  0x13   : > { %1295 = vmatpush3.bf16.msra.mxu0 %v1351_v8  ;;  %v1393_v49 = vld [vmem:[%s1721_s7 + $0x80] sm:$0xff]   ;;  %v1397_v53 = vld [vmem:[%s1721_s7 + $0x68] sm:$0xff]   ;;  %v1399_v55 = vld [vmem:[%s1721_s7 + $0x90] sm:$0xff]  }
  0x14   : > { %1300 = vmatprep.subr.bf16.mxu0 %v1437_v1  ;;  %538 = vmatpush1.bf16.msra.mxu1 %v1367_v16  ;;  %v1394_v50 = vld [vmem:[%s1721_s7 + $0x60] sm:$0xff]   ;;  %v1398_v54 = vld [vmem:[%s1721_s7 + $0x28] sm:$0xff]   ;;  %v1400_v56 = vld [vmem:[%s1721_s7 + $0x70] sm:$0xff]  }
  0x15   : > { %712 = vmatprep.subr.bf16.mxu1 %v1371_v18  ;;  %v1395_v51 = vld [vmem:[%s1721_s7 + $0x20] sm:$0xff]   ;;  %v1401_v57 = vld [vmem:[%s1721_s7 + $0x30] sm:$0xff]   ;;  %v1402_v58 = vld [vmem:[%s1721_s7 + $0x98] sm:$0xff]  }
  0x16   : > { %1297 = vmatmul.mubr.msk.bf16.vlgmr.msra.gmra.mrb[0].mxu0 %vm383_vm1, %v1352_v9  ;;  %v1403_v59 = vld [vmem:[%s1721_s7 + $0x78] sm:$0xff]  }
  0x17   : > { %1301 = vmatpush3.bf16.msra.mxu0 %v1356_v10  ;;  %1308 = vmatprep.mubr.msk.bf16.mxu0 %vm1438_vm0, %v1437_v1  ;;  %v1404_v60 = vld [vmem:[%s1721_s7 + $0x38] sm:$0xff]  }
  0x18   : > { %1302 = vmatprep.subr.bf16.mxu0 %v1437_v1 }
  0x1b   : > { %1303 = vmatpush3.bf16.msra.mxu0 %v1360_v11 }
  0x1c   : > { %1304 = vmatprep.subr.bf16.mxu0 %v1437_v1 }
  0x1f   : > { %1305 = vmatpush3.bf16.msra.mxu0 %v1364_v14 }
  0x20   : > { %1306 = vmatprep.subr.bf16.mxu0 %v1437_v1 }
  0x23   : > { %1307 = vmatpush3.bf16.msra.mxu0 %v1368_v17 }
  0x24   : > { %1312 = vmatprep.subr.bf16.mxu0 %v1437_v1 }
  0xe9   : > { %v421_v21 = vpop.f32.mrb[0].mxu0 }
  0xea   : > { %v422_v22 = vadd.f32 %v1179_v20, %v421_v21  ;;  %v1298_v23 = vpop.f32.mrb[1].mxu0 }
  0xeb   : > { %v424_v24 = vpop.f32.mrb[2].mxu0 }
  0xec   : > { %v425_v25 = vadd.f32 %v1179_v20, %v424_v24  ;;  %v1299_v26 = vpop.f32.mrb[3].mxu0  ;;  %v428_v27 = vmax.f32 %v422_v22, 0.0 }
  0xee   : > { %v429_v28 = vmax.f32 %v425_v25, 0.0 }
  0xf0   : > { %v1581_v31 = vpack.c.bf16 %v429_v28, %v428_v27 }
  0xf2   : > { %1198 = vmatmul.mubr.msk.bf16.vlgmr.msra.gmra.mrb[0].mxu1 %vm383_vm1, %v1581_v31  ;;  %1309 = vmatmul.mubr.msk.bf16.vlgmr.msra.gmra.mrb[4].mxu0 %vm383_vm1, %v1581_v31 }
  0xf3   : > { %713 = vmatpush1.bf16.msra.mxu1 %v1369_v29  ;;  %1313 = vmatpush3.bf16.msra.mxu0 %v1372_v30 }
  0xf4   : > { %714 = vmatprep.subr.bf16.mxu1 %v1375_v32  ;;  %1314 = vmatprep.subr.bf16.mxu0 %v1437_v1 }
  0xf5   : > { %744 = vmatprep.mubr.bf16.mxu1 %v1439_v19  ;;  %1320 = vmatprep.mubr.msk.bf16.mxu0 %vm1438_vm0, %v1437_v1 }
  0xf7   : > { %715 = vmatpush1.bf16.msra.mxu1 %v1373_v33  ;;  %1315 = vmatpush3.bf16.msra.mxu0 %v1376_v34 }
  0xf8   : > { %716 = vmatprep.subr.bf16.mxu1 %v1379_v35  ;;  %1316 = vmatprep.subr.bf16.mxu0 %v1437_v1 }
  0xfb   : > { %717 = vmatpush1.bf16.msra.mxu1 %v1377_v36  ;;  %1317 = vmatpush3.bf16.msra.mxu0 %v1380_v37 }
  0xfc   : > { %718 = vmatprep.subr.bf16.mxu1 %v1383_v38  ;;  %1318 = vmatprep.subr.bf16.mxu0 %v1437_v1 }
  0xff   : > { %719 = vmatpush1.bf16.msra.mxu1 %v1381_v39  ;;  %1319 = vmatpush3.bf16.msra.mxu0 %v1384_v40 }
 0x100   : > { %1324 = vmatprep.subr.bf16.mxu0 %v1437_v1  ;;  %1261 = vmatprep.subr.bf16.mxu1 %v1385_v41 }
 0x102   : > { %1212 = vmatmul.mubr.msk.bf16.vlgmr.msra.gmra.mrb[4].mxu1 %vm383_vm1, %v1581_v31  ;;  %1321 = vmatmul.mubr.msk.bf16.vlgmr.msra.gmra.mrb[8].mxu0 %vm383_vm1, %v1581_v31 }
 0x103   : > { %1332 = vmatprep.mubr.msk.bf16.mxu0 %vm1438_vm0, %v1437_v1  ;;  %1262 = vmatpush3.bf16.msra.mxu1 %v1386_v42 }
 0x104   : > { %1263 = vmatprep.subr.bf16.mxu1 %v1387_v43  ;;  %1325 = vmatpush3.bf16.msra.mxu0 %v1393_v49 }
 0x105   : > { %1326 = vmatprep.subr.bf16.mxu0 %v1437_v1 }
 0x107   : > { %1264 = vmatpush3.bf16.msra.mxu1 %v1388_v44 }
 0x108   : > { %1265 = vmatprep.subr.bf16.mxu1 %v1389_v45  ;;  %1327 = vmatpush3.bf16.msra.mxu0 %v1396_v52 }
 0x109   : > { %1328 = vmatprep.subr.bf16.mxu0 %v1437_v1 }
 0x10b   : > { %1266 = vmatpush3.bf16.msra.mxu1 %v1390_v46 }
 0x10c   : > { %1267 = vmatprep.subr.bf16.mxu1 %v1391_v47  ;;  %1329 = vmatpush3.bf16.msra.mxu0 %v1399_v55  ;;  %v631_v47 = vld [vmem:[%s1720_s6] sm:$0x7] }
 0x10d   : > { %1330 = vmatprep.subr.bf16.mxu0 %v1437_v1  ;;  %v447_v1 = vld [vmem:[%s1718_s4] sm:$0x7]  ;;  %v644_v49 = vrot.slane %v631_v47, %v459_v0 }
 0x10e   : > { %v452_v3 = vrot.slane %v447_v1, %v451_v63  ;;  %v460_v4 = vrot.slane %v447_v1, %v459_v0  ;;  %v456_v5 = vrot.slane %v447_v1, %v455_v2 }
 0x10f   : > { %1268 = vmatpush3.bf16.msra.mxu1 %v1392_v48  ;;  %v636_v48 = vrot.slane %v631_v47, %v451_v63 }
 0x110   : > { %1269 = vmatprep.subr.bf16.mxu1 %v1394_v50  ;;  %1331 = vmatpush3.bf16.msra.mxu0 %v1402_v58  ;;  %v640_v50 = vrot.slane %v631_v47, %v455_v2 }
 0x113   : > { %1270 = vmatpush3.bf16.msra.mxu1 %v1395_v51 }
 0x114   : > { %1271 = vmatprep.subr.bf16.mxu1 %v1397_v53 }
 0x117   : > { %1272 = vmatpush3.bf16.msra.mxu1 %v1398_v54 }
 0x118   : > { %1273 = vmatprep.subr.bf16.mxu1 %v1400_v56 }
 0x11b   : > { %1274 = vmatpush3.bf16.msra.mxu1 %v1401_v57 }
 0x11c   : > { %1275 = vmatprep.subr.bf16.mxu1 %v1403_v59 }
 0x11f   : > { %1276 = vmatpush3.bf16.msra.mxu1 %v1404_v60 }
 0x1c5   : > { %v565_v6 = vpop.f32.mrb[0].mxu1  ;;  %v608_v7 = vpop.f32.mrb[4].mxu0 }
 0x1c6   : > { %v566_v8 = vadd.f32 %v565_v6, %v452_v3  ;;  %v609_v9 = vadd.f32 %v608_v7, %v460_v4  ;;  %v567_v10 = vpop.f32.mrb[1].mxu1  ;;  %v1310_v11 = vpop.f32.mrb[5].mxu0 }
 0x1c7   : > { %v568_v12 = vadd.f32 %v567_v10, %v456_v5  ;;  %v569_v13 = vpop.f32.mrb[2].mxu1  ;;  %v611_v14 = vpop.f32.mrb[6].mxu0 }
 0x1c8   : > { %v1214_v15 = vmul.f32 -1.442695, %v566_v8  ;;  %v1216_v16 = vmul.f32 -1.442695, %v609_v9  ;;  %v570_v17 = vadd.f32 %v569_v13, %v452_v3  ;;  %v612_v18 = vadd.f32 %v611_v14, %v460_v4  ;;  %v571_v19 = vpop.f32.mrb[3].mxu1  ;;  %v1311_v20 = vpop.f32.mrb[7].mxu0 }
 0x1c9   : > { %v1215_v21 = vmul.f32 -1.442695, %v568_v12  ;;  %v572_v22 = vadd.f32 %v571_v19, %v456_v5 }
 0x1ca   : > { %1405 = vpow2.f32 %v1214_v15  ;;  %v1217_v23 = vmul.f32 -1.442695, %v570_v17  ;;  %v1219_v24 = vmul.f32 -1.442695, %v612_v18 }
 0x1cb   : > { %1407 = vpow2.f32 %v1216_v16  ;;  %v1218_v25 = vmul.f32 -1.442695, %v572_v22 }
 0x1cc   : > { %1409 = vpow2.f32 %v1215_v21 }
 0x1cd   : > { %1411 = vpow2.f32 %v1217_v23 }
 0x1ce   : > { %1413 = vpow2.f32 %v1219_v24 }
 0x1cf   : > { %1415 = vpow2.f32 %v1218_v25 }
 0x1d4   : > { %v1406_v26 = vpop.eup %1405 }
 0x1d5   : > { %v1408_v27 = vpop.eup %1407  ;;  %v814_v28 = vadd.f32 1.0, %v1406_v26  ;;  %v746_v29 = vpop.f32.mrb[4].mxu1 }
 0x1d6   : > { %v789_v30 = vpop.f32.mrb[8].mxu0  ;;  %v1410_v32 = vpop.eup %1409  ;;  %v816_v33 = vadd.f32 1.0, %v1408_v27  ;;  %v747_v54 = vadd.f32 %v746_v29, %v636_v48 }
 0x1d7   : > { %v748_v34 = vpop.f32.mrb[5].mxu1  ;;  %v1322_v35 = vpop.f32.mrb[9].mxu0  ;;  %1417 = vrcp.f32 %v814_v28  ;;  %v815_v37 = vadd.f32 1.0, %v1410_v32  ;;  %v790_v57 = vadd.f32 %v789_v30, %v644_v49 }
 0x1d8   : > { %v1412_v36 = vpop.eup %1411  ;;  %v750_v38 = vpop.f32.mrb[6].mxu1  ;;  %1419 = vrcp.f32 %v816_v33  ;;  %v749_v61 = vadd.f32 %v748_v34, %v640_v50 }
 0x1d9   : > { %v792_v39 = vpop.f32.mrb[10].mxu0  ;;  %v1414_v40 = vpop.eup %1413  ;;  %v817_v41 = vadd.f32 1.0, %v1412_v36  ;;  %1421 = vrcp.f32 %v815_v37  ;;  %v751_v4 = vadd.f32 %v750_v38, %v636_v48 }
 0x1da   : > { %v752_v42 = vpop.f32.mrb[7].mxu1  ;;  %v1323_v43 = vpop.f32.mrb[11].mxu0  ;;  %v819_v45 = vadd.f32 1.0, %v1414_v40  ;;  %v793_v0 = vadd.f32 %v792_v39, %v644_v49 }
 0x1db   : > { %v1416_v44 = vpop.eup %1415  ;;  %1423 = vrcp.f32 %v817_v41  ;;  %v753_v10 = vadd.f32 %v752_v42, %v640_v50 }
 0x1dc   : > { %v818_v46 = vadd.f32 1.0, %v1416_v44  ;;  %1425 = vrcp.f32 %v819_v45 }
 0x1de   : > { %1427 = vrcp.f32 %v818_v46 }
 0x1e1   : > { %v1418_v51 = vpop.eup %1417 }
 0x1e2   : > { %v1420_v52 = vpop.eup %1419  ;;  %v832_v53 = vmul.f32 %v1418_v51, %v566_v8 }
 0x1e3   : > { %v1422_v55 = vpop.eup %1421  ;;  %v834_v56 = vmul.f32 %v1420_v52, %v609_v9 }
 0x1e4   : > { %v833_v59 = vmul.f32 %v1422_v55, %v568_v12  ;;  %v838_v60 = vmul.f32 %v832_v53, %v747_v54 }
 0x1e5   : > { %v1424_v58 = vpop.eup %1423  ;;  %v840_v3 = vmul.f32 %v834_v56, %v790_v57 }
 0x1e6   : > { %v1426_v62 = vpop.eup %1425  ;;  %v835_v1 = vmul.f32 %v1424_v58, %v570_v17  ;;  %v839_v63 = vmul.f32 %v833_v59, %v749_v61 }
 0x1e7   : > { %v837_v6 = vmul.f32 %v1426_v62, %v612_v18  ;;  %v1220_v18 = vld [vmem:[%s1722_s8] ss:$0 sm:$0xff] }
 0x1e8   : > { %v1428_v5 = vpop.eup %1427  ;;  %v841_v7 = vmul.f32 %v835_v1, %v751_v4 }
 0x1e9   : > { %v836_v2 = vmul.f32 %v1428_v5, %v572_v22  ;;  %v843_v8 = vmul.f32 %v837_v6, %v793_v0 }
 0x1ea   : > { %v844_v11 = vpack.c.bf16 %v841_v7, %v838_v60 }
 0x1eb   : > { %v842_v13 = vmul.f32 %v836_v2, %v753_v10  ;;  %v846_v9 = vpack.c.bf16 %v843_v8, %v840_v3 }
 0x1ed   : > { %v845_v14 = vpack.c.bf16 %v842_v13, %v839_v63  ;;  %1333 = vmatmul.mubr.msk.bf16.vlgmr.msra.gmra.mrb[12].mxu0 %vm383_vm1, %v846_v9 }
 0x1ef   : > { %1049 = vmatprep.mubr.bf16.mxu1 %v845_v14 }
 0x1f0   : > { %1050 = vmatmul.mubr.bf16.vlgmr.msra.gmra.mrb[8].mxu1 %v844_v11 }
 0x2c0   : > { %v1092_v12 = vpop.f32.mrb[12].mxu0 }
 0x2c1   : > { %v1334_v15 = vpop.f32.mrb[13].mxu0 }
 0x2c2   : > { %v1095_v17 = vpop.f32.mrb[14].mxu0 }
 0x2c3   : > { %v1277_v16 = vpop.f32.mrb[8].mxu1  ;;  %v1335_v20 = vpop.f32.mrb[15].mxu0 }
 0x2c4   : > { %v1278_v19 = vpop.f32.mrb[9].mxu1 }
 0x2c5   : > { %v1279_v21 = vadd.f32 %v1278_v19, %v1277_v16  ;;  %v1280_v22 = vpop.f32.mrb[10].mxu1 }
 0x2c6   : > { %v1281_v23 = vpop.f32.mrb[11].mxu1 }
 0x2c7   : > { %v1052_v24 = vadd.f32 %v1279_v21, %v1220_v18  ;;  %v1282_v25 = vadd.f32 %v1281_v23, %v1280_v22 }
 0x2c9   : > { %v1055_v26 = vadd.f32 %v1282_v25, %v1220_v18  ;;  %v1093_v27 = vadd.f32 %v1092_v12, %v1052_v24 }
 0x2cb   : > { %v1096_v28 = vadd.f32 %v1095_v17, %v1055_v26 }
 0x2cd   : > { %v1099_v29 = vpack.c.bf16 %v1096_v28, %v1093_v27 }
 0x2cf   : > { %1101 = vrot.lane.b32.xlu0 %v1099_v29, %s1440_s10 }
 0x341   : > { %v1102_v30 = vpop.permute.xlu0 %1101 }
 0x342   : > { %v1104_v32 = vsel %vm383_vm1, %v1581_v31, %v1102_v30 }
 0x343   : > { %v1242_v33 = vcombine.low %v1104_v32, %v1104_v32  ;;  %v1243_v34 = vcombine.high %v1104_v32, %v1104_v32 }
 0x345   : > { %1112 = vst [vmem:[%s334_s13] sm:$0xf] %v1242_v33  ;;  %1113 = vst [vmem:[%s334_s13 + $0x4] sm:$0xf] %v1243_v34 }
 0x346 PF: > { %s19_s30 = sadd.s32 1, %s1435_s30  }
 0x347   : > { %p16_p4 = scmp.ge.s32.totalorder %s19_s30, 4  }
 0x349   :  { %18 = sbr.rel (!%p16_p4) target bundleno = 1 (0x1), region = 86 }

// kernel: cdlamba_forward.24
= control target key start
LH: loop header
LB: loop body
LE: loop exit
PB: predicated region body
PF: predicated region fallthrough
CT: control target
= control target key end

     0   :  { %s330_s9 = smov 0   ;;  %s350_s0 = inlined_call_operand.vmem [shape: bf16[2,4,128], index: 0, kind: input, shape index: {}]   ;;  %s351_s1 = inlined_call_operand.vmem [shape: bf16[16,4], index: 1, kind: input, shape index: {}]   ;;  %s352_s2 = inlined_call_operand.vmem [shape: bf16[2,16,128], index: 2, kind: output, shape index: {}]  }
   0x1 LB: > { %s264_s10 = sadd.s32 4294967295, %s311_s9   ;;  %p268_p0 = scmp.ge.s32.totalorder %s311_s9, 1  ;;  %s311_s9 = sphi %s330_s9, %s12_s9  }
   0x2   : > { %p111_p1 = scmp.lt.s32.totalorder %s311_s9, 3 }
   0x4   : > { %p112_p2 = pnand %p268_p0, %p111_p1 }
   0x5   : > { %p132_p3 = scmp.lt.s32.totalorder (!%p112_p2), %s264_s10, 1  ;;  %v313_v0 = vmov (!%p112_p2), 0.0   ;;  %vm314_vm0 = vmmov (!%p112_p2), 0   ;;  %vm154_vm1 = vcmask (!%p112_p2), 1041408   ;;  %v304_v3 = vld [vmem:[%s351_s1] sm:$0xff] (!%p112_p2)   ;;  %vm150_vm2 = vcmask (!%p112_p2), 31744  }
   0x6   : > { %115 = sbr.rel (%p112_p2) target bundleno = 238 (0xee), region = 28  ;;  %288 = vmatprep.subr.bf16.mxu0 (!%p112_p2), %v313_v0  ;;  %290 = vmatprep.mubr.msk.bf16.mxu0 (!%p112_p2), %vm314_vm0, %v313_v0 }
   0xd   : > { %s354_s10 = smov (!%p132_p3, %s264_s10), 1 }
   0xe   : > { %s269_s11 = sshll.u32 %s354_s10, 1  ;;  %s278_s17 = sshll.u32 %s354_s10, 3 }
   0xf   : > { %s135_s14 = scalar_lea.vmem %s350_s0, %s269_s11  ;;  %s140_s20 = scalar_lea.vmem %s352_s2, %s278_s17 }
  0x10   : > { %v144_v1 = vld [vmem:[%s135_s14] sm:$0x3] }
  0x11   : > { %v156_v2 = vsel %vm154_vm1, %v144_v1, 0 }
  0x12   : > { %289 = vmatpush3.bf16.msra.mxu0 %v156_v2 }
  0x15   : > { %291 = vmatmul.mubr.msk.bf16.vlgmr.msra.gmra.mrb[0].mxu0 %vm150_vm2, %v304_v3 }
  0xe8   : > { %v192_v4 = vpop.f32.mrb[0].mxu0 }
  0xe9   : > { %v292_v5 = vpop.f32.mrb[1].mxu0 }
  0xea   : > { %v195_v6 = vpop.f32.mrb[2].mxu0 }
  0xeb   : > { %v284_v7 = vpack.c.bf16 %v195_v6, %v192_v4  ;;  %v293_v8 = vpop.f32.mrb[3].mxu0 }
  0xed   : > { %285 = vst [vmem:[%s140_s20] sm:$0xff] %v284_v7  }
  0xee PF: > { %s12_s9 = sadd.s32 1, %s311_s9  }
  0xef   : > { %p9_p4 = scmp.ge.s32.totalorder %s12_s9, 4  }
  0xf1   :  { %11 = sbr.rel (!%p9_p4) target bundleno = 1 (0x1), region = 58 }

// kernel: cdlamba_forward.26
= control target key start
LH: loop header
LB: loop body
LE: loop exit
PB: predicated region body
PF: predicated region fallthrough
CT: control target
= control target key end

     0   :  { %s323_s9 = smov 0   ;;  %s343_s0 = inlined_call_operand.vmem [shape: bf16[2,2,128], index: 0, kind: input, shape index: {}]   ;;  %s344_s1 = inlined_call_operand.vmem [shape: bf16[16,2], index: 1, kind: input, shape index: {}]   ;;  %s345_s2 = inlined_call_operand.vmem [shape: bf16[2,16,128], index: 2, kind: output, shape index: {}]  }
   0x1 LB: > { %s258_s10 = sadd.s32 4294967295, %s304_s9   ;;  %p262_p0 = scmp.ge.s32.totalorder %s304_s9, 1  ;;  %s304_s9 = sphi %s323_s9, %s12_s9  }
   0x2   : > { %p110_p1 = scmp.lt.s32.totalorder %s304_s9, 3 }
   0x4   : > { %p111_p2 = pnand %p262_p0, %p110_p1 }
   0x5   : > { %p130_p3 = scmp.lt.s32.totalorder (!%p111_p2), %s258_s10, 1  ;;  %v306_v0 = vmov (!%p111_p2), 0.0   ;;  %vm307_vm0 = vmmov (!%p111_p2), 0   ;;  %vm151_vm1 = vcmask (!%p111_p2), 1040384   ;;  %v297_v3 = vld [vmem:[%s344_s1] sm:$0xff] (!%p111_p2)   ;;  %vm147_vm2 = vcmask (!%p111_p2), 15360  }
   0x6   : > { %114 = sbr.rel (%p111_p2) target bundleno = 237 (0xed), region = 28  ;;  %281 = vmatprep.subr.bf16.mxu0 (!%p111_p2), %v306_v0  ;;  %283 = vmatprep.mubr.msk.bf16.mxu0 (!%p111_p2), %vm307_vm0, %v306_v0 }
   0xd   : > { %s347_s10 = smov (!%p130_p3, %s258_s10), 1 }
   0xe   : > { %s132_s13 = scalar_lea.vmem %s343_s0, %s347_s10  ;;  %s271_s16 = sshll.u32 %s347_s10, 3 }
   0xf   : > { %v141_v1 = vld [vmem:[%s132_s13] sm:$0x1]  ;;  %s137_s19 = scalar_lea.vmem %s345_s2, %s271_s16 }
  0x10   : > { %v153_v2 = vsel %vm151_vm1, %v141_v1, 0 }
  0x11   : > { %282 = vmatpush3.bf16.msra.mxu0 %v153_v2 }
  0x14   : > { %284 = vmatmul.mubr.msk.bf16.vlgmr.msra.gmra.mrb[0].mxu0 %vm147_vm2, %v297_v3 }
  0xe7   : > { %v189_v4 = vpop.f32.mrb[0].mxu0 }
  0xe8   : > { %v285_v5 = vpop.f32.mrb[1].mxu0 }
  0xe9   : > { %v192_v6 = vpop.f32.mrb[2].mxu0 }
  0xea   : > { %v277_v7 = vpack.c.bf16 %v192_v6, %v189_v4  ;;  %v286_v8 = vpop.f32.mrb[3].mxu0 }
  0xec   : > { %278 = vst [vmem:[%s137_s19] sm:$0xff] %v277_v7  }
  0xed PF: > { %s12_s9 = sadd.s32 1, %s304_s9  }
  0xee   : > { %p9_p4 = scmp.ge.s32.totalorder %s12_s9, 4  }
  0xf0   :  { %11 = sbr.rel (!%p9_p4) target bundleno = 1 (0x1), region = 58 }

// kernel: cdlamba_forward.21
= control target key start
LH: loop header
LB: loop body
LE: loop exit
PB: predicated region body
PF: predicated region fallthrough
CT: control target
= control target key end

     0   :  { %13 = vsyncpa [#allocation3], 0  ;;  %s1326_s0 = inlined_call_operand.vmem [shape: bf16[2,4,256], index: 0, kind: input, shape index: {}]   ;;  %s1327_s1 = inlined_call_operand.vmem [shape: bf16[128,128], index: 1, kind: input, shape index: {}]   ;;  %s1328_s2 = inlined_call_operand.vmem [shape: f32[1,128], index: 2, kind: input, shape index: {}]   ;;  %s1329_s3 = inlined_call_operand.vmem [shape: f32[1,128], index: 3, kind: input, shape index: {}]   ;;  %s1330_s4 = inlined_call_operand.vmem [shape: f32[1,128], index: 4, kind: input, shape index: {}]   ;;  %s1331_s5 = inlined_call_operand.vmem [shape: f32[128,128], index: 5, kind: input, shape index: {}]   ;;  %s1332_s6 = inlined_call_operand.vmem [shape: bf16[2,4,64], index: 6, kind: output, shape index: {0}]   ;;  %s1333_s7 = inlined_call_operand.hbm [shape: bf16[2,4,128], index: 7, kind: output, shape index: {1}]  }
   0x1   :  { %15 = vsyncpa [#allocation3 + $0x1], 0  ;;  %s1098_s24 = smov 0   ;;  %s1100_s25 = smov 0  }
   0x2   :  { %s1102_s26 = smov 0   ;;  %s1104_s27 = smov 0  }
   0x3 LB: > { %s1119_s28 = sadd.s32 4294967295, %s1050_s27   ;;  %s729_s29 = sadd.s32 4294967294, %s1050_s27   ;;  %s1050_s27 = sphi %s1104_s27, %s1339_s27   ;;  %s1046_s26 = sphi %s1102_s26, %s1338_s26   ;;  %s1042_s25 = sphi %s1100_s25, %s1337_s25   ;;  %s1038_s24 = sphi %s1098_s24, %s1336_s24  }
   0x4   : > { %s1123_s30 = sadd.s32 1, %s1050_s27   ;;  %s185_s8 = sadd.s32 1, %s1046_s26 }
   0x5   : > { %s182_s9 = ssub.s32 %s1050_s27, %s1123_s30  ;;  %p195_p0 = scmp.ne.s32.totalorder %s1046_s26, %s1042_s25 }
   0x6   : > { %p183_p1 = scmp.eq.s32.totalorder %s182_s9, 0  ;;  %p196_p2 = scmp.eq.s32.totalorder %s1119_s28, 1 }
   0x7   : > { %p201_p3 = scmp.ne.s32.totalorder %s1042_s25, %s1038_s24  ;;  %p202_p4 = scmp.eq.s32.totalorder %s729_s29, 1 }
   0x8   : > { %s1134_s10 = scalar_select %p183_p1, %s1046_s26, %s185_s8  }
   0x9   : > { %p1136_p5 = por %p196_p2, %p195_p0  ;;  %p1140_p6 = por %p202_p4, %p201_p3 }
   0xa   : > { %p732_p7 = scmp.ge.s32.totalorder %s1050_s27, 1  ;;  %p243_p8 = scmp.lt.s32.totalorder %s1050_s27, 3 }
   0xc   : > { %p244_p9 = pnand %p732_p7, %p243_p8 }
   0xd   : > { %v978_v0 = vld [vmem:[%s1327_s1] sm:$0xff] (!%p244_p9)   ;;  %v1052_v1 = vmov (!%p244_p9), 0.0   ;;  %v979_v2 = vld [vmem:[%s1327_s1 + $0x8] sm:$0xff] (!%p244_p9)   ;;  %vm1053_vm0 = vmmov (!%p244_p9), 0   ;;  %v980_v3 = vld [vmem:[%s1327_s1 + $0x10] sm:$0xff] (!%p244_p9)   ;;  %v1054_v4 = vmov (!%p244_p9), 0.0|0.0   ;;  %v317_v16 = vlaneseq (!%p244_p9) }
   0xe   : > { %247 = sbr.rel (%p244_p9) target bundleno = 861 (0x35d), region = 44  ;;  %796 = vmatprep.subr.bf16.mxu0 (!%p244_p9), %v1052_v1  ;;  %812 = vmatprep.mubr.msk.bf16.mxu0 (!%p244_p9), %vm1053_vm0, %v1052_v1  ;;  %p279_p10 = scmp.lt.s32.totalorder (!%p244_p9), %s1119_s28, 1  ;;  %v419_v5 = vld [vmem:[%s1331_s5] sm:$0xff] (!%p244_p9)  ;;  %v420_v6 = vld [vmem:[%s1331_s5 + $0x8] sm:$0xff] (!%p244_p9)  ;;  %v421_v8 = vld [vmem:[%s1331_s5 + $0x10] sm:$0xff] (!%p244_p9)  ;;  %vm411_vm1 = vcmask (!%p244_p9), 1043456  }
   0xf   : > { %797 = vmatpush3.bf16.msra.mxu0 (!%p244_p9), %v978_v0  ;;  %848 = vmatprep.mubr.msk.f32.mxu1 (!%p244_p9), %vm1053_vm0, %v1052_v1  ;;  %v887_v7 = vpack.c.bf16 (!%p244_p9), %v420_v6, %v419_v5  ;;  %v422_v9 = vld [vmem:[%s1331_s5 + $0x18] sm:$0xff] (!%p244_p9)  ;;  %v423_v12 = vld [vmem:[%s1331_s5 + $0x20] sm:$0xff] (!%p244_p9)  ;;  %v424_v13 = vld [vmem:[%s1331_s5 + $0x28] sm:$0xff] (!%p244_p9)  ;;  %v1055_v14 = vmov (!%p244_p9), 1983009808   ;;  %v1202_v22 = vshrl.u32 (!%p244_p9), %v317_v16, 7 }
  0x10   : > { %798 = vmatprep.subr.bf16.mxu0 (!%p244_p9), %v1052_v1  ;;  %886 = vmatprep.subr.bf16.mxu1 (!%p244_p9), %v1054_v4  ;;  %v981_v10 = vld [vmem:[%s1327_s1 + $0x18] sm:$0xff] (!%p244_p9)   ;;  %v890_v11 = vpack.c.bf16 (!%p244_p9), %v422_v9, %v421_v8  ;;  %v315_v15 = vunpack.c.l.s4 (!%p244_p9), %v1055_v14  ;;  %v982_v17 = vld [vmem:[%s1327_s1 + $0x20] sm:$0xff] (!%p244_p9)   ;;  %v893_v18 = vpack.c.bf16 (!%p244_p9), %v424_v13, %v423_v12  ;;  %v425_v19 = vld [vmem:[%s1331_s5 + $0x30] sm:$0xff] (!%p244_p9)  ;;  %s276_s14 = sand.u32 (!%p244_p9), 1, %s1042_s25   ;;  %s749_s21 = sshll.u32 (!%p244_p9), %s1119_s28, 5 }
  0x11   : > { %888 = vmatpush3.bf16.msra.mxu1 (!%p244_p9), %v887_v7  ;;  %v426_v20 = vld [vmem:[%s1331_s5 + $0x38] sm:$0xff] (!%p244_p9)  ;;  %v983_v23 = vld [vmem:[%s1327_s1 + $0x28] sm:$0xff] (!%p244_p9)   ;;  %v984_v26 = vld [vmem:[%s1327_s1 + $0x30] sm:$0xff] (!%p244_p9)   ;;  %v508_v56 = vsub.s32 (!%p244_p9), 0, %v1202_v22  ;;  %s733_s20 = sshll.u32 (!%p244_p9), %s276_s14, 1  ;;  %s1056_s29 = smov (!%p244_p9), 64  }
  0x12   : > { %889 = vmatprep.subr.bf16.mxu1 (!%p244_p9), %v1054_v4  ;;  %v316_v21 = vunpack.c.0.s8 (!%p244_p9), %v315_v15  ;;  %v896_v24 = vpack.c.bf16 (!%p244_p9), %v426_v20, %v425_v19  ;;  %v985_v29 = vld [vmem:[%s1327_s1 + $0x38] sm:$0xff] (!%p244_p9)   ;;  %v427_v31 = vld [vmem:[%s1331_s5 + $0x40] sm:$0xff] (!%p244_p9)  ;;  %v428_v32 = vld [vmem:[%s1331_s5 + $0x48] sm:$0xff] (!%p244_p9)  ;;  %s1280_s13 = scalar_lea.hbm (!%p244_p9), %s1333_s7, %s749_s21  ;;  %s630_s16 = scalar_lea.sflag (!%p244_p9), [#allocation3], %s276_s14 }
  0x13   : > { %799 = vmatpush3.bf16.msra.mxu0 (!%p244_p9), %v979_v2  ;;  %v899_v33 = vpack.c.bf16 (!%p244_p9), %v428_v32, %v427_v31  ;;  %v429_v34 = vld [vmem:[%s1331_s5 + $0x50] sm:$0xff] (!%p244_p9)  ;;  %v430_v35 = vld [vmem:[%s1331_s5 + $0x58] sm:$0xff] (!%p244_p9)  ;;  %v431_v37 = vld [vmem:[%s1331_s5 + $0x60] sm:$0xff] (!%p244_p9) }
  0x14   : > { %800 = vmatprep.subr.bf16.mxu0 (!%p244_p9), %v1052_v1  ;;  %v319_v25 = vsub.s32 (!%p244_p9), %v316_v21, %v1202_v22  ;;  %v902_v36 = vpack.c.bf16 (!%p244_p9), %v430_v35, %v429_v34  ;;  %v432_v38 = vld [vmem:[%s1331_s5 + $0x68] sm:$0xff] (!%p244_p9)  ;;  %v433_v40 = vld [vmem:[%s1331_s5 + $0x70] sm:$0xff] (!%p244_p9)  ;;  %v434_v41 = vld [vmem:[%s1331_s5 + $0x78] sm:$0xff] (!%p244_p9) }
  0x15   : > { %s1181_s15 = scalar_select %p279_p10, %s1119_s28, 1  ;;  %891 = vmatpush3.bf16.msra.mxu1 %v890_v11  ;;  %v905_v39 = vpack.c.bf16 %v432_v38, %v431_v37  ;;  %v908_v42 = vpack.c.bf16 %v434_v41, %v433_v40  ;;  %v737_v43 = vld [vmem:[%s1328_s2] ss:$0 sm:$0xff] }
  0x16   : > { %892 = vmatprep.subr.bf16.mxu1 %v1054_v4  ;;  %v746_v12 = vld [vmem:[%s1329_s3] ss:$0 sm:$0xff]  ;;  %s1057_s28 = smov [#allocation2]  }
  0x17   : > { %801 = vmatpush3.bf16.msra.mxu0 %v980_v3  ;;  %s752_s22 = sshll.u32 %s1181_s15, 2  ;;  %v747_v14 = vld [vmem:[%s1330_s4] ss:$0 sm:$0xff] }
  0x18   : > { %802 = vmatprep.subr.bf16.mxu0 %v1052_v1  ;;  %s283_s18 = scalar_lea.vmem %s1326_s0, %s752_s22  ;;  %s278_s22 = scalar_lea.vmem [#allocation2], %s733_s20 }
  0x19   : > { %894 = vmatpush3.bf16.msra.mxu1 %v893_v18  ;;  %v1216_v27 = vld [vmem:[%s283_s18] sm:$0xf]  ;;  %s646_s23 = sshll.u32 %s278_s22, 4  ;;  %s992_s18 = sshll.u32 %s1057_s28, 4  ;;  %s1282_s23 = int_to_ptr.vmem [resolvable:$true] %s646_s23  ;;  %s993_s18 = int_to_ptr.vmem [resolvable:$false] %s992_s18 }
  0x1a   : > { %895 = vmatprep.subr.bf16.mxu1 %v1054_v4  ;;  %v320_v28 = vrot.slane %v1216_v27, %v319_v25  ;;  %v613_v15 = vunpack.c.l.bf16 %v1216_v27  ;;  %s988_s17 = scalar_lea.vmem %s1282_s23, 32  ;;  %s994_s19 = scalar_lea.vmem %s993_s18, 64 }
  0x1b   : > { %803 = vmatpush3.bf16.msra.mxu0 %v981_v10  ;;  %p989_p11 = scmp.ne.s32.totalorder %s1282_s23, %s988_s17  ;;  %p995_p0 = scmp.lt.s32.totalorder %s1282_s23, %s993_s18 }
  0x1c   : > { %804 = vmatprep.subr.bf16.mxu0 %v1052_v1  ;;  %v321_v30 = vcombine.high %v320_v28, %v320_v28  ;;  %p996_p1 = scmp.lt.s32.totalorder %s994_s19, %s988_s17 }
  0x1d   : > { %897 = vmatpush3.bf16.msra.mxu1 %v896_v24  ;;  %p990_p12 = pnand %p989_p11, %p1136_p5 }
  0x1e   : > { %898 = vmatprep.subr.bf16.mxu1 %v1054_v4  ;;  %p997_p2 = por %p996_p1, %p995_p0 }
  0x1f   : > { %805 = vmatpush3.bf16.msra.mxu0 %v982_v17  ;;  %p991_p13 = pneg %p990_p12 }
  0x20   : > { %806 = vmatprep.subr.bf16.mxu0 %v1052_v1 }
  0x21   : > { %900 = vmatpush3.bf16.msra.mxu1 %v899_v33  ;;  %p998_p3 = pnand %p997_p2, %p991_p13 }
  0x22   : > { %901 = vmatprep.subr.bf16.mxu1 %v1054_v4 }
  0x23   : > { %807 = vmatpush3.bf16.msra.mxu0 %v983_v23 }
  0x24   : > { %808 = vmatprep.subr.bf16.mxu0 %v1052_v1 }
  0x25   : > { %903 = vmatpush3.bf16.msra.mxu1 %v902_v36 }
  0x26   : > { %904 = vmatprep.subr.bf16.mxu1 %v1054_v4 }
  0x27   : > { %809 = vmatpush3.bf16.msra.mxu0 %v984_v26 }
  0x28   : > { %810 = vmatprep.subr.bf16.mxu0 %v1052_v1 }
  0x29   : > { %906 = vmatpush3.bf16.msra.mxu1 %v905_v39 }
  0x2a   : > { %907 = vmatprep.subr.bf16.mxu1 %v1054_v4 }
  0x2b   : > { %811 = vmatpush3.bf16.msra.mxu0 %v985_v29 }
  0x2c   : > { %910 = vmatprep.subr.bf16.mxu0 %v1054_v4 }
  0x2d   : > { %909 = vmatpush3.bf16.msra.mxu1 %v908_v42 }
  0x2e   : > { %813 = vmatmul.mubr.bf16.vlgmr.msra.gmra.mrb[0].mxu0 %v321_v30 }
  0x2f   : > { %912 = vmatpush3.bf16.msra.mxu0 %v887_v7  ;;  %883 = vmatprep.mubr.msk.f32.mxu0 %vm1053_vm0, %v1052_v1 }
  0x30   : > { %913 = vmatprep.subr.bf16.mxu0 %v1054_v4 }
  0x33   : > { %915 = vmatpush3.bf16.msra.mxu0 %v890_v11 }
  0x34   : > { %916 = vmatprep.subr.bf16.mxu0 %v1054_v4 }
  0x37   : > { %918 = vmatpush3.bf16.msra.mxu0 %v893_v18 }
  0x38   : > { %919 = vmatprep.subr.bf16.mxu0 %v1054_v4 }
  0x3b   : > { %921 = vmatpush3.bf16.msra.mxu0 %v896_v24 }
  0x3c   : > { %922 = vmatprep.subr.bf16.mxu0 %v1054_v4 }
  0x3f   : > { %924 = vmatpush3.bf16.msra.mxu0 %v899_v33 }
  0x40   : > { %925 = vmatprep.subr.bf16.mxu0 %v1054_v4 }
  0x43   : > { %927 = vmatpush3.bf16.msra.mxu0 %v902_v36 }
  0x44   : > { %928 = vmatprep.subr.bf16.mxu0 %v1054_v4 }
  0x47   : > { %930 = vmatpush3.bf16.msra.mxu0 %v905_v39 }
  0x48   : > { %931 = vmatprep.subr.bf16.mxu0 %v1054_v4 }
  0x4b   : > { %933 = vmatpush3.bf16.msra.mxu0 %v908_v42 }
 0x101   : > { %v405_v44 = vpop.f32.mrb[0].mxu0 }
 0x102   : > { %v406_v45 = vadd.f32 %v737_v43, %v405_v44  ;;  %v814_v46 = vpop.f32.mrb[1].mxu0 }
 0x103   : > { %v408_v47 = vpop.f32.mrb[2].mxu0 }
 0x104   : > { %v412_v48 = vsel %vm411_vm1, %v406_v45, 0.0  ;;  %v815_v49 = vpop.f32.mrb[3].mxu0 }
 0x105   : > { %v413_v50 = vrot.slane %v412_v48, 4 }
 0x107   : > { %v414_v51 = vadd.f32 %v413_v50, %v412_v48 }
 0x109   : > { %v415_v52 = vrot.slane %v414_v51, 2 }
 0x10b   : > { %v416_v53 = vadd.f32 %v415_v52, %v414_v51 }
 0x10d   : > { %v417_v54 = vrot.slane %v416_v53, 1 }
 0x10f   : > { %v418_v55 = vadd.f32 %v417_v54, %v416_v53 }
 0x111   : > { %849 = vmatmul.mubr.f32.vlgmr.msra.gmra.mrb[0].mxu1 %v418_v55 }
 0x1e4   : > { %v501_v57 = vpop.f32.mrb[0].mxu1 }
 0x1e5   : > { %v505_v58 = vmul.f32 0.0625, %v501_v57  ;;  %v850_v59 = vpop.f32.mrb[1].mxu1 }
 0x1e7   : > { %v509_v60 = vrot.slane %v505_v58, %v508_v56 }
 0x1e9   : > { %v510_v61 = vsub.f32 %v406_v45, %v509_v60 }
 0x1eb   : > { %v511_v62 = vmul.f32 %v510_v61, %v510_v61 }
 0x1ed   : > { %v512_v63 = vsel %vm411_vm1, %v511_v62, 0.0 }
 0x1ee   : > { %v513_v0 = vrot.slane %v512_v63, 4 }
 0x1f0   : > { %v514_v1 = vadd.f32 %v513_v0, %v512_v63 }
 0x1f2   : > { %v515_v2 = vrot.slane %v514_v1, 2 }
 0x1f4   : > { %v516_v3 = vadd.f32 %v515_v2, %v514_v1 }
 0x1f6   : > { %v517_v4 = vrot.slane %v516_v3, 1 }
 0x1f8   : > { %v518_v5 = vadd.f32 %v517_v4, %v516_v3 }
 0x1fa   : > { %884 = vmatmul.mubr.f32.vlgmr.msra.gmra.mrb[4].mxu0 %v518_v5 }
 0x2cd   : > { %v585_v6 = vpop.f32.mrb[4].mxu0 }
 0x2ce   : > { %v589_v7 = vmul.f32 0.0625, %v585_v6  ;;  %v885_v8 = vpop.f32.mrb[5].mxu0 }
 0x2d0   : > { %v590_v9 = vadd.f32 1e-05, %v589_v7 }
 0x2d2   : > { %986 = vrsqrt.f32 %v590_v9 }
 0x2dc   : > { %v987_v10 = vpop.eup %986 }
 0x2dd   : > { %v595_v11 = vrot.slane %v987_v10, %v508_v56 }
 0x2df   : > { %v596_v13 = vmul.f32 %v595_v11, %v510_v61 }
 0x2e1   : > { %v604_v16 = vmul.f32 %v746_v12, %v596_v13 }
 0x2e3   : > { %v612_v17 = vadd.f32 %v747_v14, %v604_v16 }
 0x2e5   : > { %618 = vrot.lane.b32.xlu0 %v612_v17, %s1056_s29  ;;  %v614_v18 = vadd.f32 %v613_v15, %v612_v17 }
 0x2e7   : > { %v615_v19 = vpack.c.bf16 %v614_v18, %v614_v18 }
 0x2e9   : > { %616 = vst [vmem:[%s278_s22] sm:$0x3] %v615_v19 }
 0x2ea   : > { %1001 = shalt.err (!%p998_p3)
}
 0x2eb   : > { %s1002_s14 = scalar_lea.hbm %s1280_s13, 32  ;;  %s1006_s22 = scalar_lea.hbm %s1333_s7, 64 }
 0x2ec   : > { %p1003_p4 = scmp.ne.s32.totalorder %s1280_s13, %s1002_s14  ;;  %p1007_p9 = scmp.lt.u32.totalorder %s1280_s13, %s1333_s7 }
 0x2ed   : > { %p1008_p10 = scmp.lt.u32.totalorder %s1006_s22, %s1002_s14  ;;  %p1010_p12 = scmp.lt.u32.totalorder %s1002_s14, %s1280_s13 }
 0x2ee   : > { %p1004_p7 = pnand %p1003_p4, %p1136_p5 }
 0x2ef   : > { %p1009_p11 = por %p1008_p10, %p1007_p9 }
 0x2f0   : > { %p1005_p8 = pneg %p1004_p7 }
 0x2f1   : > { %p1011_p13 = por %p1010_p12, %p1009_p11 }
 0x2f3   : > { %p1012_p0 = pnand %p1011_p13, %p1005_p8 }
 0x2f5   : > { %1015 = shalt.err (!%p1012_p0)
}
 0x2f6   : > { %934 = dma.vmem_to_hbm [thread:$0]  (%p1136_p5), %s1282_s23, 32, %s1280_s13, %s630_s16   ;;  %vm623_vm2 = vcmask 517120  }
 0x2f7   : > { %s736_s9 = sshll.u32 %s1181_s15, 1 }
 0x2f8   : > { %s287_s18 = scalar_lea.vmem %s1332_s6, %s736_s9 }
 0x357   : > { %v619_v20 = vpop.permute.xlu0 %618 }
 0x358   : > { %v621_v21 = vsub.f32 %v612_v17, %v619_v20 }
 0x35a   : > { %v622_v22 = vpack.c.bf16 %v621_v21, %v621_v21 }
 0x35c   : > { %624 = vst.msk [vmem:[%s287_s18] sm:$0x3] %vm623_vm2, %v622_v22 }
 0x35d PF: > { %p940_p1 = scmp.ge.s32.totalorder %s1050_s27, 2  ;;  %s665_s11 = sand.u32 1, %s1038_s24  }
 0x35e   : > { %s666_s19 = scalar_lea.sflag [#allocation3], %s665_s11 }
 0x35f   : > { %p937_p2 = pnand %p940_p1, %p1140_p6 }
 0x361   : > { %1033 = dma.done.wait (!%p937_p2), %s666_s19, 32  }
 0x362   : > { %1035 = vsyncadd (!%p937_p2), %s666_s19, 4294967264  ;;  %p18_p5 = scmp.ge.s32.totalorder %s1123_s30, 4   ;;  %s1336_s24 = smov %s1042_s25 }
 0x363   : > { %s1337_s25 = smov %s1046_s26  ;;  %s1338_s26 = smov %s1134_s10 }
 0x364   : > { %s1339_s27 = smov %s1123_s30  ;;  %20 = sbr.rel (!%p18_p5) target bundleno = 3 (0x3), region = 91 }
 0x36b   :  { %671 = vsyncpa [#allocation3], 1 }
 0x36c   :  { %673 = vsyncpa [#allocation3 + $0x1], 1 }

// kernel: cdlamba_forward.20
= control target key start
LH: loop header
LB: loop body
LE: loop exit
PB: predicated region body
PF: predicated region fallthrough
CT: control target
= control target key end

     0   :  { %v1894_v0 = vmov 0.0   ;;  %vm1895_vm0 = vmmov 0   ;;  %vm73_vm1 = vcmask 523264   ;;  %v1896_v39 = vmov 0   ;;  %s2420_s1 = inlined_call_operand.vmem [shape: bf16[64,128], index: 1, kind: input, shape index: {}]   ;;  %s2421_s3 = inlined_call_operand.vmem [shape: bf16[128,640], index: 3, kind: input, shape index: {}]   ;;  %s2422_s0 = inlined_call_operand.vmem [shape: bf16[8,64], index: 0, kind: input, shape index: {}]   ;;  %s2423_s5 = inlined_call_operand.vmem [shape: bf16[128,640], index: 5, kind: input, shape index: {}]   ;;  %s2424_s2 = inlined_call_operand.vmem [shape: f32[1,128], index: 2, kind: input, shape index: {}]   ;;  %s2425_s7 = inlined_call_operand.vmem [shape: bf16[640,128], index: 7, kind: input, shape index: {}]   ;;  %s2426_s4 = inlined_call_operand.vmem [shape: f32[1,640], index: 4, kind: input, shape index: {}]   ;;  %s2427_s6 = inlined_call_operand.vmem [shape: f32[1,640], index: 6, kind: input, shape index: {}]   ;;  %s2428_s8 = inlined_call_operand.vmem [shape: f32[1,128], index: 8, kind: input, shape index: {}]   ;;  %s2429_s9 = inlined_call_operand.vmem [shape: bf16[8,256], index: 9, kind: output, shape index: {}]  }
   0x1   :  { %1643 = vmatprep.subr.bf16.mxu0 %v1894_v0  ;;  %v1718_v1 = vld [vmem:[%s2420_s1] sm:$0xff]   ;;  %1651 = vmatprep.mubr.msk.bf16.mxu0 %vm1895_vm0, %v1894_v0  ;;  %v1719_v2 = vld [vmem:[%s2420_s1 + $0x8] sm:$0xff]   ;;  %v1720_v4 = vld [vmem:[%s2420_s1 + $0x10] sm:$0xff]  }
   0x2   :  { %1644 = vmatpush3.bf16.msra.mxu0 %v1718_v1  ;;  %v1722_v3 = vld [vmem:[%s2421_s3 + $0x4] ss:$20 sps:$4 sm:$0xff]   ;;  %v1727_v5 = vld [vmem:[%s2421_s3] ss:$20 sps:$4 sm:$0xff]   ;;  %v1733_v8 = vld [vmem:[%s2421_s3 + $0x28] ss:$20 sps:$4 sm:$0xff]   ;;  %434 = vmatprep.mubr.bf16.mxu1 %v1896_v39 }
   0x3   :  { %1645 = vmatprep.subr.bf16.mxu0 %v1894_v0  ;;  %402 = vmatprep.subr.bf16.mxu1 %v1722_v3  ;;  %v1728_v6 = vld [vmem:[%s2421_s3 + $0x2c] ss:$20 sps:$4 sm:$0xff]   ;;  %v1721_v7 = vld [vmem:[%s2420_s1 + $0x18] sm:$0xff]   ;;  %v1734_v9 = vld [vmem:[%s2421_s3 + $0x54] ss:$20 sps:$4 sm:$0xff]  }
   0x4   :  { %403 = vmatpush1.bf16.msra.mxu1 %v1727_v5  ;;  %v1726_v10 = vld [vmem:[%s2421_s3 + $0xc] ss:$20 sps:$4 sm:$0xff]   ;;  %v1739_v11 = vld [vmem:[%s2421_s3 + $0x50] ss:$20 sps:$4 sm:$0xff]   ;;  %v1724_v14 = vld [vmem:[%s2421_s3 + $0x8] ss:$20 sps:$4 sm:$0xff]  }
   0x5   :  { %404 = vmatprep.subr.bf16.mxu1 %v1728_v6  ;;  %v1740_v12 = vld [vmem:[%s2421_s3 + $0x7c] ss:$20 sps:$4 sm:$0xff]   ;;  %v33_v13 = vld [vmem:[%s2422_s0] sm:$0xf]  ;;  %v1732_v15 = vld [vmem:[%s2421_s3 + $0x34] ss:$20 sps:$4 sm:$0xff]  }
   0x6   :  { %1646 = vmatpush3.bf16.msra.mxu0 %v1719_v2  ;;  %v1745_v16 = vld [vmem:[%s2421_s3 + $0x78] ss:$20 sps:$4 sm:$0xff]   ;;  %v1730_v18 = vld [vmem:[%s2421_s3 + $0x30] ss:$20 sps:$4 sm:$0xff]   ;;  %v1751_v20 = vld [vmem:[%s2421_s3 + $0xa0] ss:$20 sps:$4 sm:$0xff]  }
   0x7   :  { %1647 = vmatprep.subr.bf16.mxu0 %v1894_v0  ;;  %v1746_v17 = vld [vmem:[%s2421_s3 + $0xa4] ss:$20 sps:$4 sm:$0xff]   ;;  %v1738_v19 = vld [vmem:[%s2421_s3 + $0x5c] ss:$20 sps:$4 sm:$0xff]   ;;  %v1752_v21 = vld [vmem:[%s2421_s3 + $0xcc] ss:$20 sps:$4 sm:$0xff]  }
   0x8   :  { %405 = vmatpush1.bf16.msra.mxu1 %v1733_v8  ;;  %v1736_v22 = vld [vmem:[%s2421_s3 + $0x58] ss:$20 sps:$4 sm:$0xff]   ;;  %v1757_v24 = vld [vmem:[%s2421_s3 + $0xc8] ss:$20 sps:$4 sm:$0xff]   ;;  %v1742_v26 = vld [vmem:[%s2421_s3 + $0x80] ss:$20 sps:$4 sm:$0xff]  }
   0x9   :  { %406 = vmatprep.subr.bf16.mxu1 %v1734_v9  ;;  %v1744_v23 = vld [vmem:[%s2421_s3 + $0x84] ss:$20 sps:$4 sm:$0xff]   ;;  %v1758_v25 = vld [vmem:[%s2421_s3 + $0xf4] ss:$20 sps:$4 sm:$0xff]   ;;  %v1750_v27 = vld [vmem:[%s2421_s3 + $0xac] ss:$20 sps:$4 sm:$0xff]  }
   0xa   :  { %1648 = vmatpush3.bf16.msra.mxu0 %v1720_v4  ;;  %v1763_v28 = vld [vmem:[%s2421_s3 + $0xf0] ss:$20 sps:$4 sm:$0xff]   ;;  %v1748_v29 = vld [vmem:[%s2421_s3 + $0xa8] ss:$20 sps:$4 sm:$0xff]   ;;  %v1760_v33 = vld [vmem:[%s2421_s3 + $0xf8] ss:$20 sps:$4 sm:$0xff]  }
   0xb   :  { %1649 = vmatprep.subr.bf16.mxu0 %v1894_v0  ;;  %v1756_v30 = vld [vmem:[%s2421_s3 + $0xd4] ss:$20 sps:$4 sm:$0xff]   ;;  %v1754_v31 = vld [vmem:[%s2421_s3 + $0xd0] ss:$20 sps:$4 sm:$0xff]   ;;  %v1769_v37 = vld [vmem:[%s2421_s3 + $0x118] ss:$20 sps:$4 sm:$0xff]  }
   0xc   :  { %407 = vmatpush1.bf16.msra.mxu1 %v1739_v11  ;;  %v1762_v32 = vld [vmem:[%s2421_s3 + $0xfc] ss:$20 sps:$4 sm:$0xff]   ;;  %v1768_v35 = vld [vmem:[%s2421_s3 + $0x124] ss:$20 sps:$4 sm:$0xff]   ;;  %v1766_v36 = vld [vmem:[%s2421_s3 + $0x120] ss:$20 sps:$4 sm:$0xff]  }
   0xd   :  { %408 = vmatprep.subr.bf16.mxu1 %v1740_v12  ;;  %v1764_v34 = vld [vmem:[%s2421_s3 + $0x11c] ss:$20 sps:$4 sm:$0xff]   ;;  %v1772_v38 = vld [vmem:[%s2423_s5 + $0x4] ss:$20 sps:$4 sm:$0xff]   ;;  %v1433_v40 = vld [vmem:[%s2424_s2] ss:$0 sm:$0xff] }
   0xe   :  { %1650 = vmatpush3.bf16.msra.mxu0 %v1721_v7  ;;  %v1770_v47 = vld [vmem:[%s2423_s5] ss:$20 sps:$4 sm:$0xff]   ;;  %v1773_v48 = vld [vmem:[%s2421_s3 + $0x10] ss:$20 sps:$4 sm:$0xff]   ;;  %v1774_v51 = vld [vmem:[%s2423_s5 + $0x28] ss:$20 sps:$4 sm:$0xff]  }
   0xf   :  { %443 = vmatprep.subr.bf16.mxu0 %v1726_v10  ;;  %v1776_v50 = vld [vmem:[%s2423_s5 + $0x2c] ss:$20 sps:$4 sm:$0xff]   ;;  %v1780_v53 = vld [vmem:[%s2423_s5 + $0x54] ss:$20 sps:$4 sm:$0xff]   ;;  %v1778_v54 = vld [vmem:[%s2423_s5 + $0x50] ss:$20 sps:$4 sm:$0xff]  }
  0x10   :  { %409 = vmatpush1.bf16.msra.mxu1 %v1745_v16  ;;  %v1777_v52 = vld [vmem:[%s2421_s3 + $0x38] ss:$20 sps:$4 sm:$0xff]   ;;  %v1781_v55 = vld [vmem:[%s2421_s3 + $0x60] ss:$20 sps:$4 sm:$0xff]   ;;  %v1784_v56 = vld [vmem:[%s2423_s5 + $0x7c] ss:$20 sps:$4 sm:$0xff]  }
  0x11   :  { %1652 = vmatmul.mubr.msk.bf16.vlgmr.msra.gmra.mrb[0].mxu0 %vm73_vm1, %v33_v13  ;;  %410 = vmatprep.subr.bf16.mxu1 %v1746_v17  ;;  %v1782_v57 = vld [vmem:[%s2423_s5 + $0x78] ss:$20 sps:$4 sm:$0xff]   ;;  %v1785_v58 = vld [vmem:[%s2421_s3 + $0x88] ss:$20 sps:$4 sm:$0xff]   ;;  %v1786_v60 = vld [vmem:[%s2423_s5 + $0xa0] ss:$20 sps:$4 sm:$0xff]  }
  0x12   :  { %444 = vmatpush1.bf16.msra.mxu0 %v1724_v14  ;;  %475 = vmatprep.mubr.bf16.mxu0 %v1896_v39  ;;  %v1788_v59 = vld [vmem:[%s2423_s5 + $0xa4] ss:$20 sps:$4 sm:$0xff]   ;;  %v1792_v62 = vld [vmem:[%s2423_s5 + $0xcc] ss:$20 sps:$4 sm:$0xff]   ;;  %v1790_v63 = vld [vmem:[%s2423_s5 + $0xc8] ss:$20 sps:$4 sm:$0xff]  }
  0x13   :  { %445 = vmatprep.subr.bf16.mxu0 %v1732_v15  ;;  %v1789_v61 = vld [vmem:[%s2421_s3 + $0xb0] ss:$20 sps:$4 sm:$0xff]   ;;  %v1793_v1 = vld [vmem:[%s2421_s3 + $0xd8] ss:$20 sps:$4 sm:$0xff]   ;;  %v1796_v2 = vld [vmem:[%s2423_s5 + $0xf4] ss:$20 sps:$4 sm:$0xff]  }
  0x14   :  { %411 = vmatpush1.bf16.msra.mxu1 %v1751_v20  ;;  %v1794_v3 = vld [vmem:[%s2423_s5 + $0xf0] ss:$20 sps:$4 sm:$0xff]   ;;  %v1797_v4 = vld [vmem:[%s2421_s3 + $0x100] ss:$20 sps:$4 sm:$0xff]   ;;  %v1798_v6 = vld [vmem:[%s2423_s5 + $0x118] ss:$20 sps:$4 sm:$0xff]  }
  0x15   :  { %412 = vmatprep.subr.bf16.mxu1 %v1752_v21  ;;  %v1800_v5 = vld [vmem:[%s2423_s5 + $0x11c] ss:$20 sps:$4 sm:$0xff]   ;;  %v1804_v8 = vld [vmem:[%s2423_s5 + $0xc] ss:$20 sps:$4 sm:$0xff]   ;;  %v1808_v11 = vld [vmem:[%s2423_s5 + $0x34] ss:$20 sps:$4 sm:$0xff]  }
  0x16   :  { %446 = vmatpush1.bf16.msra.mxu0 %v1730_v18  ;;  %v1801_v7 = vld [vmem:[%s2421_s3 + $0x128] ss:$20 sps:$4 sm:$0xff]   ;;  %v1805_v10 = vld [vmem:[%s2423_s5 + $0x10] ss:$20 sps:$4 sm:$0xff]   ;;  %v1809_v13 = vld [vmem:[%s2423_s5 + $0x38] ss:$20 sps:$4 sm:$0xff]  }
  0x17   :  { %447 = vmatprep.subr.bf16.mxu0 %v1738_v19  ;;  %v1802_v9 = vld [vmem:[%s2423_s5 + $0x8] ss:$20 sps:$4 sm:$0xff]   ;;  %v1806_v12 = vld [vmem:[%s2423_s5 + $0x30] ss:$20 sps:$4 sm:$0xff]   ;;  %v1810_v15 = vld [vmem:[%s2423_s5 + $0x58] ss:$20 sps:$4 sm:$0xff]  }
  0x18   :  { %413 = vmatpush1.bf16.msra.mxu1 %v1757_v24  ;;  %v1812_v14 = vld [vmem:[%s2423_s5 + $0x5c] ss:$20 sps:$4 sm:$0xff]   ;;  %v1813_v16 = vld [vmem:[%s2423_s5 + $0x60] ss:$20 sps:$4 sm:$0xff]   ;;  %v1816_v17 = vld [vmem:[%s2423_s5 + $0x84] ss:$20 sps:$4 sm:$0xff]  }
  0x19   :  { %414 = vmatprep.subr.bf16.mxu1 %v1758_v25  ;;  %v1814_v18 = vld [vmem:[%s2423_s5 + $0x80] ss:$20 sps:$4 sm:$0xff]   ;;  %v1817_v19 = vld [vmem:[%s2423_s5 + $0x88] ss:$20 sps:$4 sm:$0xff]   ;;  %v1822_v24 = vld [vmem:[%s2423_s5 + $0xd0] ss:$20 sps:$4 sm:$0xff]  }
  0x1a   :  { %448 = vmatpush1.bf16.msra.mxu0 %v1736_v22  ;;  %v1820_v20 = vld [vmem:[%s2423_s5 + $0xac] ss:$20 sps:$4 sm:$0xff]   ;;  %v1818_v21 = vld [vmem:[%s2423_s5 + $0xa8] ss:$20 sps:$4 sm:$0xff]   ;;  %v1821_v22 = vld [vmem:[%s2423_s5 + $0xb0] ss:$20 sps:$4 sm:$0xff]  }
  0x1b   :  { %449 = vmatprep.subr.bf16.mxu0 %v1744_v23  ;;  %v1824_v23 = vld [vmem:[%s2423_s5 + $0xd4] ss:$20 sps:$4 sm:$0xff]   ;;  %v1825_v25 = vld [vmem:[%s2423_s5 + $0xd8] ss:$20 sps:$4 sm:$0xff]  }
  0x1c   :  { %415 = vmatpush1.bf16.msra.mxu1 %v1763_v28  ;;  %v1829_v28 = vld [vmem:[%s2423_s5 + $0x100] ss:$20 sps:$4 sm:$0xff]  }
  0x1d   :  { %416 = vmatprep.subr.bf16.mxu1 %v1764_v34  ;;  %v1836_v34 = vld [vmem:[%s2425_s7 + $0x48] sm:$0xff]  }
  0x1e   :  { %450 = vmatpush1.bf16.msra.mxu0 %v1742_v26  ;;  %v1828_v26 = vld [vmem:[%s2423_s5 + $0xfc] ss:$20 sps:$4 sm:$0xff]  }
  0x1f   :  { %451 = vmatprep.subr.bf16.mxu0 %v1750_v27  ;;  %v1826_v27 = vld [vmem:[%s2423_s5 + $0xf8] ss:$20 sps:$4 sm:$0xff]  }
  0x20   :  { %417 = vmatpush1.bf16.msra.mxu1 %v1769_v37  ;;  %v1839_v37 = vld [vmem:[%s2425_s7 + $0x10] sm:$0xff]  }
  0x21   :  { %1655 = vmatprep.subr.bf16.mxu1 %v1894_v0 }
  0x22   :  { %452 = vmatpush1.bf16.msra.mxu0 %v1748_v29  ;;  %v1832_v29 = vld [vmem:[%s2423_s5 + $0x124] ss:$20 sps:$4 sm:$0xff]  }
  0x23   :  { %453 = vmatprep.subr.bf16.mxu0 %v1756_v30  ;;  %v1830_v30 = vld [vmem:[%s2423_s5 + $0x120] ss:$20 sps:$4 sm:$0xff]  }
  0x26   :  { %454 = vmatpush1.bf16.msra.mxu0 %v1754_v31  ;;  %v1833_v31 = vld [vmem:[%s2423_s5 + $0x128] ss:$20 sps:$4 sm:$0xff]  }
  0x27   :  { %455 = vmatprep.subr.bf16.mxu0 %v1762_v32  ;;  %v1834_v32 = vld [vmem:[%s2425_s7 + $0x40] sm:$0xff]  }
  0x2a   :  { %456 = vmatpush1.bf16.msra.mxu0 %v1760_v33  ;;  %v1835_v33 = vld [vmem:[%s2425_s7] sm:$0xff]  }
  0x2b   :  { %457 = vmatprep.subr.bf16.mxu0 %v1768_v35  ;;  %v1837_v35 = vld [vmem:[%s2425_s7 + $0x8] sm:$0xff]  }
  0x2e   :  { %458 = vmatpush1.bf16.msra.mxu0 %v1766_v36  ;;  %v1838_v36 = vld [vmem:[%s2425_s7 + $0x50] sm:$0xff]  }
  0x2f   :  { %807 = vmatprep.subr.bf16.mxu0 %v1772_v38  ;;  %v1840_v38 = vld [vmem:[%s2425_s7 + $0x58] sm:$0xff]  }
  0xe4   :  { %v111_v41 = vpop.f32.mrb[0].mxu0 }
  0xe5   :  { %v112_v42 = vadd.f32 %v1433_v40, %v111_v41  ;;  %v1653_v43 = vpop.f32.mrb[1].mxu0  ;;  %v1842_v40 = vld [vmem:[%s2425_s7 + $0x60] sm:$0xff]  }
  0xe6   :  { %v114_v44 = vpop.f32.mrb[2].mxu0  ;;  %v1843_v41 = vld [vmem:[%s2425_s7 + $0x20] sm:$0xff]   ;;  %v1845_v43 = vld [vmem:[%s2425_s7 + $0x28] sm:$0xff]  }
  0xe7   :  { %v2073_v45 = vmax.f32 %v112_v42, 0.0  ;;  %v1654_v46 = vpop.f32.mrb[3].mxu0  ;;  %v1844_v42 = vld [vmem:[%s2425_s7 + $0x68] sm:$0xff]   ;;  %v1846_v44 = vld [vmem:[%s2425_s7 + $0x70] sm:$0xff]  }
  0xe8   :  { %v1847_v46 = vld [vmem:[%s2425_s7 + $0x30] sm:$0xff]  }
  0xe9   :  { %v2083_v49 = vpack.c.bf16 %v2073_v45, %v2073_v45 }
  0xeb   :  { %435 = vmatmul.mubr.bf16.vlgmr.msra.gmra.mrb[0].mxu1 %v2083_v49  ;;  %476 = vmatmul.mubr.bf16.vlgmr.msra.gmra.mrb[4].mxu0 %v2083_v49 }
  0xec   :  { %1656 = vmatpush3.bf16.msra.mxu1 %v1773_v48  ;;  %808 = vmatpush1.bf16.msra.mxu0 %v1770_v47  ;;  %v1848_v47 = vld [vmem:[%s2425_s7 + $0x78] sm:$0xff]  }
  0xed   :  { %1657 = vmatprep.subr.bf16.mxu1 %v1894_v0  ;;  %809 = vmatprep.subr.bf16.mxu0 %v1776_v50  ;;  %v1849_v48 = vld [vmem:[%s2425_s7 + $0x38] sm:$0xff]   ;;  %v1852_v50 = vld [vmem:[%s2425_s7 + $0x80] sm:$0xff]  }
  0xee   :  { %1671 = vmatprep.mubr.msk.bf16.mxu1 %vm1895_vm0, %v1894_v0  ;;  %839 = vmatprep.mubr.bf16.mxu0 %v1896_v39 }
  0xf0   :  { %1658 = vmatpush3.bf16.msra.mxu1 %v1777_v52  ;;  %810 = vmatpush1.bf16.msra.mxu0 %v1774_v51  ;;  %v1853_v51 = vld [vmem:[%s2425_s7 + $0xc8] sm:$0xff]  }
  0xf1   :  { %1659 = vmatprep.subr.bf16.mxu1 %v1894_v0  ;;  %811 = vmatprep.subr.bf16.mxu0 %v1780_v53  ;;  %v1855_v52 = vld [vmem:[%s2425_s7 + $0x88] sm:$0xff]   ;;  %v1856_v53 = vld [vmem:[%s2425_s7 + $0xd0] sm:$0xff]  }
  0xf4   :  { %1660 = vmatpush3.bf16.msra.mxu1 %v1781_v55  ;;  %812 = vmatpush1.bf16.msra.mxu0 %v1778_v54  ;;  %v1858_v54 = vld [vmem:[%s2425_s7 + $0x90] sm:$0xff]   ;;  %v1859_v55 = vld [vmem:[%s2425_s7 + $0xd8] sm:$0xff]  }
  0xf5   :  { %1661 = vmatprep.subr.bf16.mxu1 %v1894_v0  ;;  %813 = vmatprep.subr.bf16.mxu0 %v1784_v56  ;;  %v1861_v56 = vld [vmem:[%s2425_s7 + $0x98] sm:$0xff]  }
  0xf8   :  { %1662 = vmatpush3.bf16.msra.mxu1 %v1785_v58  ;;  %814 = vmatpush1.bf16.msra.mxu0 %v1782_v57  ;;  %v1862_v57 = vld [vmem:[%s2425_s7 + $0xe0] sm:$0xff]  }
  0xf9   :  { %1663 = vmatprep.subr.bf16.mxu1 %v1894_v0  ;;  %815 = vmatprep.subr.bf16.mxu0 %v1788_v59  ;;  %v1864_v58 = vld [vmem:[%s2425_s7 + $0xa0] sm:$0xff]   ;;  %v1865_v59 = vld [vmem:[%s2425_s7 + $0xe8] sm:$0xff]  }
  0xfc   :  { %1664 = vmatpush3.bf16.msra.mxu1 %v1789_v61  ;;  %816 = vmatpush1.bf16.msra.mxu0 %v1786_v60  ;;  %v1867_v60 = vld [vmem:[%s2425_s7 + $0xa8] sm:$0xff]   ;;  %v1868_v61 = vld [vmem:[%s2425_s7 + $0xf0] sm:$0xff]  }
  0xfd   :  { %1665 = vmatprep.subr.bf16.mxu1 %v1894_v0  ;;  %817 = vmatprep.subr.bf16.mxu0 %v1792_v62  ;;  %v1870_v62 = vld [vmem:[%s2425_s7 + $0xb0] sm:$0xff]  }
 0x100   :  { %1666 = vmatpush3.bf16.msra.mxu1 %v1793_v1  ;;  %818 = vmatpush1.bf16.msra.mxu0 %v1790_v63  ;;  %v1871_v63 = vld [vmem:[%s2425_s7 + $0xf8] sm:$0xff]  }
 0x101   :  { %1667 = vmatprep.subr.bf16.mxu1 %v1894_v0  ;;  %819 = vmatprep.subr.bf16.mxu0 %v1796_v2  ;;  %v1873_v1 = vld [vmem:[%s2425_s7 + $0xb8] sm:$0xff]   ;;  %v169_v2 = vlaneseq }
 0x104   :  { %1668 = vmatpush3.bf16.msra.mxu1 %v1797_v4  ;;  %820 = vmatpush1.bf16.msra.mxu0 %v1794_v3  ;;  %v2344_v3 = vshrl.u32 %v169_v2, 7 }
 0x105   :  { %1669 = vmatprep.subr.bf16.mxu1 %v1894_v0  ;;  %821 = vmatprep.subr.bf16.mxu0 %v1800_v5  ;;  %v167_v5 = vld [vmem:[%s2426_s4] sm:$0x1f] }
 0x106   :  { %v171_v4 = vsub.s32 0, %v2344_v3 }
 0x108   :  { %1670 = vmatpush3.bf16.msra.mxu1 %v1801_v7  ;;  %822 = vmatpush1.bf16.msra.mxu0 %v1798_v6  ;;  %v175_v6 = vsub.s32 1, %v2344_v3  ;;  %v172_v7 = vrot.slane %v167_v5, %v171_v4 }
 0x109   :  { %848 = vmatprep.subr.bf16.mxu1 %v1804_v8  ;;  %1675 = vmatprep.subr.bf16.mxu0 %v1894_v0 }
 0x10a   :  { %v176_v8 = vrot.slane %v167_v5, %v175_v6 }
 0x10b   :  { %1672 = vmatmul.mubr.bf16.vlgmr.msra.gmra.mrb[4].mxu1 %v2083_v49  ;;  %840 = vmatmul.mubr.bf16.vlgmr.msra.gmra.mrb[8].mxu0 %v2083_v49 }
 0x10c   :  { %849 = vmatpush1.bf16.msra.mxu1 %v1802_v9  ;;  %1676 = vmatpush3.bf16.msra.mxu0 %v1805_v10 }
 0x10d   :  { %850 = vmatprep.subr.bf16.mxu1 %v1808_v11  ;;  %1677 = vmatprep.subr.bf16.mxu0 %v1894_v0 }
 0x10e   :  { %880 = vmatprep.mubr.bf16.mxu1 %v1896_v39  ;;  %1691 = vmatprep.mubr.msk.bf16.mxu0 %vm1895_vm0, %v1894_v0  ;;  %v1841_v39 = vld [vmem:[%s2425_s7 + $0x18] sm:$0xff]  }
 0x110   :  { %851 = vmatpush1.bf16.msra.mxu1 %v1806_v12  ;;  %1678 = vmatpush3.bf16.msra.mxu0 %v1809_v13 }
 0x111   :  { %852 = vmatprep.subr.bf16.mxu1 %v1812_v14  ;;  %1679 = vmatprep.subr.bf16.mxu0 %v1894_v0 }
 0x114   :  { %853 = vmatpush1.bf16.msra.mxu1 %v1810_v15  ;;  %1680 = vmatpush3.bf16.msra.mxu0 %v1813_v16 }
 0x115   :  { %854 = vmatprep.subr.bf16.mxu1 %v1816_v17  ;;  %1681 = vmatprep.subr.bf16.mxu0 %v1894_v0 }
 0x118   :  { %855 = vmatpush1.bf16.msra.mxu1 %v1814_v18  ;;  %1682 = vmatpush3.bf16.msra.mxu0 %v1817_v19 }
 0x119   :  { %856 = vmatprep.subr.bf16.mxu1 %v1820_v20  ;;  %1683 = vmatprep.subr.bf16.mxu0 %v1894_v0 }
 0x11c   :  { %857 = vmatpush1.bf16.msra.mxu1 %v1818_v21  ;;  %1684 = vmatpush3.bf16.msra.mxu0 %v1821_v22 }
 0x11d   :  { %858 = vmatprep.subr.bf16.mxu1 %v1824_v23  ;;  %1685 = vmatprep.subr.bf16.mxu0 %v1894_v0 }
 0x120   :  { %859 = vmatpush1.bf16.msra.mxu1 %v1822_v24  ;;  %1686 = vmatpush3.bf16.msra.mxu0 %v1825_v25  ;;  %v179_v24 = vsub.s32 2, %v2344_v3 }
 0x121   :  { %860 = vmatprep.subr.bf16.mxu1 %v1828_v26  ;;  %1687 = vmatprep.subr.bf16.mxu0 %v1894_v0  ;;  %v183_v26 = vsub.s32 3, %v2344_v3 }
 0x124   :  { %861 = vmatpush1.bf16.msra.mxu1 %v1826_v27  ;;  %1688 = vmatpush3.bf16.msra.mxu0 %v1829_v28  ;;  %v180_v27 = vrot.slane %v167_v5, %v179_v24  ;;  %v184_v28 = vrot.slane %v167_v5, %v183_v26 }
 0x125   :  { %862 = vmatprep.subr.bf16.mxu1 %v1832_v29  ;;  %1689 = vmatprep.subr.bf16.mxu0 %v1894_v0  ;;  %v187_v29 = vsub.s32 4, %v2344_v3 }
 0x128   :  { %863 = vmatpush1.bf16.msra.mxu1 %v1830_v30  ;;  %1690 = vmatpush3.bf16.msra.mxu0 %v1833_v31  ;;  %v2363_v31 = vld [vmem:[%s2427_s6] sm:$0x1f] }
 0x129   :  { %1590 = vmatprep.subr.bf16.mxu1 %v1834_v32 }
 0x12b   :  { %881 = vmatmul.mubr.bf16.vlgmr.msra.gmra.mrb[8].mxu1 %v2083_v49  ;;  %1692 = vmatmul.mubr.bf16.vlgmr.msra.gmra.mrb[12].mxu0 %v2083_v49  ;;  %v1850_v49 = vld [vmem:[%s2425_s7 + $0xc0] sm:$0xff]  }
 0x12c   :  { %1591 = vmatpush3.bf16.msra.mxu1 %v1835_v33  ;;  %1612 = vmatprep.subr.bf16.mxu0 %v1850_v49  ;;  %v188_v33 = vrot.slane %v167_v5, %v187_v29 }
 0x12d   :  { %1592 = vmatprep.subr.bf16.mxu1 %v1836_v34  ;;  %1613 = vmatpush3.bf16.msra.mxu0 %v1852_v50  ;;  %v577_v34 = vrot.slane %v2363_v31, %v171_v4 }
 0x12e   :  { %1614 = vmatprep.subr.bf16.mxu0 %v1853_v51 }
 0x130   :  { %1593 = vmatpush3.bf16.msra.mxu1 %v1837_v35 }
 0x131   :  { %1594 = vmatprep.subr.bf16.mxu1 %v1838_v36  ;;  %1615 = vmatpush3.bf16.msra.mxu0 %v1855_v52 }
 0x132   :  { %1616 = vmatprep.subr.bf16.mxu0 %v1856_v53 }
 0x134   :  { %1595 = vmatpush3.bf16.msra.mxu1 %v1839_v37  ;;  %v581_v37 = vrot.slane %v2363_v31, %v175_v6  ;;  %v1860_v6 = vld [vmem:[%s2425_s7 + $0x118] sm:$0xff]  }
 0x135   :  { %1596 = vmatprep.subr.bf16.mxu1 %v1840_v38  ;;  %1617 = vmatpush3.bf16.msra.mxu0 %v1858_v54 }
 0x136   :  { %1618 = vmatprep.subr.bf16.mxu0 %v1859_v55 }
 0x138   :  { %1597 = vmatpush3.bf16.msra.mxu1 %v1841_v39 }
 0x139   :  { %1598 = vmatprep.subr.bf16.mxu1 %v1842_v40  ;;  %1619 = vmatpush3.bf16.msra.mxu0 %v1861_v56 }
 0x13a   :  { %1620 = vmatprep.subr.bf16.mxu0 %v1862_v57 }
 0x13c   :  { %1599 = vmatpush3.bf16.msra.mxu1 %v1843_v41 }
 0x13d   :  { %1600 = vmatprep.subr.bf16.mxu1 %v1844_v42  ;;  %1621 = vmatpush3.bf16.msra.mxu0 %v1864_v58  ;;  %v1851_v58 = vld [vmem:[%s2425_s7 + $0x100] sm:$0xff]  }
 0x13e   :  { %1622 = vmatprep.subr.bf16.mxu0 %v1865_v59 }
 0x140   :  { %1601 = vmatpush3.bf16.msra.mxu1 %v1845_v43 }
 0x141   :  { %1602 = vmatprep.subr.bf16.mxu1 %v1846_v44  ;;  %1623 = vmatpush3.bf16.msra.mxu0 %v1867_v60  ;;  %v1854_v60 = vld [vmem:[%s2425_s7 + $0x108] sm:$0xff]  }
 0x142   :  { %1624 = vmatprep.subr.bf16.mxu0 %v1868_v61 }
 0x144   :  { %1603 = vmatpush3.bf16.msra.mxu1 %v1847_v46 }
 0x145   :  { %1604 = vmatprep.subr.bf16.mxu1 %v1848_v47  ;;  %1625 = vmatpush3.bf16.msra.mxu0 %v1870_v62 }
 0x146   :  { %1626 = vmatprep.subr.bf16.mxu0 %v1871_v63  ;;  %v1857_v63 = vld [vmem:[%s2425_s7 + $0x110] sm:$0xff]  }
 0x148   :  { %1605 = vmatpush3.bf16.msra.mxu1 %v1849_v48 }
 0x149   :  { %1695 = vmatprep.subr.bf16.mxu1 %v1894_v0  ;;  %1627 = vmatpush3.bf16.msra.mxu0 %v1873_v1 }
 0x1be   :  { %v436_v9 = vpop.f32.mrb[0].mxu1  ;;  %v477_v10 = vpop.f32.mrb[4].mxu0 }
 0x1bf   :  { %v437_v11 = vadd.f32 %v436_v9, %v172_v7  ;;  %v438_v12 = vpop.f32.mrb[1].mxu1  ;;  %v479_v13 = vpop.f32.mrb[5].mxu0  ;;  %v2358_v30 = vadd.f32 %v477_v10, %v180_v27  ;;  %v1863_v7 = vld [vmem:[%s2425_s7 + $0x120] sm:$0xff]   ;;  %v585_v10 = vrot.slane %v2363_v31, %v179_v24  ;;  %v1872_v27 = vld [vmem:[%s2425_s7 + $0x138] sm:$0xff]  }
 0x1c0   :  { %v439_v14 = vadd.f32 %v438_v12, %v176_v8  ;;  %v440_v15 = vpop.f32.mrb[2].mxu1  ;;  %v481_v16 = vpop.f32.mrb[6].mxu0  ;;  %v2365_v32 = vadd.f32 %v479_v13, %v184_v28  ;;  %v1866_v8 = vld [vmem:[%s2425_s7 + $0x128] sm:$0xff]   ;;  %v589_v13 = vrot.slane %v2363_v31, %v183_v26 }
 0x1c1   :  { %v1519_v17 = vmul.f32 -1.442695, %v437_v11  ;;  %v441_v18 = vpop.f32.mrb[3].mxu1  ;;  %v482_v19 = vpop.f32.mrb[7].mxu0  ;;  %v1521_v36 = vmul.f32 -1.442695, %v2358_v30 }
 0x1c2   :  { %v1520_v20 = vmul.f32 -1.442695, %v439_v14  ;;  %v1522_v39 = vmul.f32 -1.442695, %v2365_v32 }
 0x1c3   :  { %1874 = vpow2.f32 %v1519_v17 }
 0x1c4   :  { %1876 = vpow2.f32 %v1520_v20 }
 0x1cd   :  { %v1875_v21 = vpop.eup %1874 }
 0x1ce   :  { %v944_v22 = vadd.f32 1.0, %v1875_v21  ;;  %v1877_v23 = vpop.eup %1876 }
 0x1cf   :  { %v945_v25 = vadd.f32 1.0, %v1877_v23 }
 0x1d0   :  { %1878 = vrcp.f32 %v944_v22 }
 0x1d1   :  { %1880 = vrcp.f32 %v945_v25 }
 0x1d2   :  { %1882 = vpow2.f32 %v1521_v36 }
 0x1d3   :  { %1884 = vpow2.f32 %v1522_v39 }
 0x1da   :  { %v1879_v35 = vpop.eup %1878 }
 0x1db   :  { %v1881_v38 = vpop.eup %1880  ;;  %v959_v42 = vmul.f32 %v1879_v35, %v437_v11  ;;  %v593_v11 = vrot.slane %v2363_v31, %v187_v29 }
 0x1dc   :  { %v960_v48 = vmul.f32 %v1881_v38, %v439_v14  ;;  %v1883_v61 = vpop.eup %1882  ;;  %v1869_v14 = vld [vmem:[%s2425_s7 + $0x130] sm:$0xff]  }
 0x1dd   :  { %v1885_v62 = vpop.eup %1884  ;;  %v946_v2 = vadd.f32 1.0, %v1883_v61 }
 0x1de   :  { %v518_v40 = vpop.f32.mrb[4].mxu1  ;;  %v841_v41 = vpop.f32.mrb[8].mxu0  ;;  %v947_v5 = vadd.f32 1.0, %v1885_v62 }
 0x1df   :  { %v519_v43 = vadd.f32 %v518_v40, %v188_v33  ;;  %v842_v44 = vadd.f32 %v841_v41, %v577_v34  ;;  %v1673_v46 = vpop.f32.mrb[5].mxu1  ;;  %v843_v47 = vpop.f32.mrb[9].mxu0  ;;  %v1524_v41 = vld [vmem:[%s2428_s8] ss:$0 sm:$0xff] }
 0x1e0   :  { %v844_v49 = vadd.f32 %v843_v47, %v581_v37  ;;  %v521_v50 = vpop.f32.mrb[6].mxu1  ;;  %v845_v51 = vpop.f32.mrb[10].mxu0 }
 0x1e1   :  { %v1523_v52 = vmul.f32 -1.442695, %v519_v43  ;;  %v964_v53 = vmul.f32 %v959_v42, %v842_v44  ;;  %v1674_v54 = vpop.f32.mrb[7].mxu1  ;;  %v846_v55 = vpop.f32.mrb[11].mxu0 }
 0x1e2   :  { %v965_v56 = vmul.f32 %v960_v48, %v844_v49 }
 0x1e3   :  { %1886 = vpow2.f32 %v1523_v52  ;;  %v969_v59 = vpack.c.bf16 %v964_v53, %v964_v53 }
 0x1e4   :  { %v970_v57 = vpack.c.bf16 %v965_v56, %v965_v56  ;;  %1888 = vrcp.f32 %v946_v2 }
 0x1e6   :  { %1333 = vmatprep.mubr.bf16.mxu1 %v970_v57 }
 0x1e7   :  { %1334 = vmatmul.mubr.bf16.vlgmr.msra.gmra.mrb[12].mxu1 %v969_v59 }
 0x1e8   :  { %1696 = vmatpush3.bf16.msra.mxu1 %v1851_v58  ;;  %1711 = vmatprep.mubr.msk.bf16.mxu1 %vm1895_vm0, %v1894_v0 }
 0x1e9   :  { %1697 = vmatprep.subr.bf16.mxu1 %v1894_v0 }
 0x1ec   :  { %1698 = vmatpush3.bf16.msra.mxu1 %v1854_v60 }
 0x1ed   :  { %v1887_v1 = vpop.eup %1886  ;;  %1699 = vmatprep.subr.bf16.mxu1 %v1894_v0 }
 0x1ee   :  { %v948_v4 = vadd.f32 1.0, %v1887_v1  ;;  %v1889_v9 = vpop.eup %1888 }
 0x1ef   :  { %v961_v18 = vmul.f32 %v1889_v9, %v2358_v30 }
 0x1f0   :  { %1700 = vmatpush3.bf16.msra.mxu1 %v1857_v63  ;;  %1890 = vrcp.f32 %v948_v4 }
 0x1f1   :  { %1701 = vmatprep.subr.bf16.mxu1 %v1894_v0  ;;  %1892 = vrcp.f32 %v947_v5 }
 0x1f4   :  { %1702 = vmatpush3.bf16.msra.mxu1 %v1860_v6 }
 0x1f5   :  { %1703 = vmatprep.subr.bf16.mxu1 %v1894_v0 }
 0x1f8   :  { %1704 = vmatpush3.bf16.msra.mxu1 %v1863_v7 }
 0x1f9   :  { %1705 = vmatprep.subr.bf16.mxu1 %v1894_v0 }
 0x1fa   :  { %v1891_v12 = vpop.eup %1890 }
 0x1fb   :  { %v1893_v15 = vpop.eup %1892  ;;  %v963_v19 = vmul.f32 %v1891_v12, %v519_v43 }
 0x1fc   :  { %1706 = vmatpush3.bf16.msra.mxu1 %v1866_v8  ;;  %v962_v3 = vmul.f32 %v1893_v15, %v2365_v32 }
 0x1fd   :  { %1707 = vmatprep.subr.bf16.mxu1 %v1894_v0 }
 0x1fe   :  { %v882_v16 = vpop.f32.mrb[8].mxu1  ;;  %v923_v17 = vpop.f32.mrb[12].mxu0 }
 0x1ff   :  { %v883_v20 = vadd.f32 %v882_v16, %v585_v10  ;;  %v924_v21 = vadd.f32 %v923_v17, %v593_v11  ;;  %v884_v22 = vpop.f32.mrb[9].mxu1  ;;  %v1693_v23 = vpop.f32.mrb[13].mxu0 }
 0x200   :  { %v885_v24 = vadd.f32 %v884_v22, %v589_v13  ;;  %1708 = vmatpush3.bf16.msra.mxu1 %v1869_v14  ;;  %v886_v25 = vpop.f32.mrb[10].mxu1  ;;  %v926_v26 = vpop.f32.mrb[14].mxu0 }
 0x201   :  { %v966_v28 = vmul.f32 %v961_v18, %v883_v20  ;;  %v968_v29 = vmul.f32 %v963_v19, %v924_v21  ;;  %v887_v31 = vpop.f32.mrb[11].mxu1  ;;  %v1694_v33 = vpop.f32.mrb[15].mxu0  ;;  %1709 = vmatprep.subr.bf16.mxu1 %v1894_v0 }
 0x202   :  { %v967_v30 = vmul.f32 %v962_v3, %v885_v24 }
 0x203   :  { %v973_v34 = vpack.c.bf16 %v968_v29, %v968_v29  ;;  %v971_v36 = vpack.c.bf16 %v966_v28, %v966_v28 }
 0x204   :  { %v972_v35 = vpack.c.bf16 %v967_v30, %v967_v30  ;;  %1710 = vmatpush3.bf16.msra.mxu1 %v1872_v27 }
 0x206   :  { %1373 = vmatprep.mubr.bf16.mxu0 %v972_v35 }
 0x207   :  { %1712 = vmatmul.mubr.bf16.vlgmr.msra.gmra.mrb[16].mxu1 %v973_v34  ;;  %1374 = vmatmul.mubr.bf16.vlgmr.msra.gmra.mrb[16].mxu0 %v971_v36 }
 0x2ba   :  { %v1606_v32 = vpop.f32.mrb[12].mxu1 }
 0x2bb   :  { %v1607_v37 = vpop.f32.mrb[13].mxu1 }
 0x2bc   :  { %v1608_v38 = vadd.f32 %v1607_v37, %v1606_v32  ;;  %v1609_v39 = vpop.f32.mrb[14].mxu1 }
 0x2bd   :  { %v1610_v40 = vpop.f32.mrb[15].mxu1 }
 0x2be   :  { %v1336_v46 = vadd.f32 %v1608_v38, %v1524_v41 }
 0x2da   :  { %v1415_v42 = vpop.f32.mrb[16].mxu1  ;;  %v1628_v43 = vpop.f32.mrb[16].mxu0 }
 0x2db   :  { %v1713_v0 = vpop.f32.mrb[17].mxu1  ;;  %v1629_v44 = vpop.f32.mrb[17].mxu0 }
 0x2dc   :  { %v1630_v47 = vadd.f32 %v1629_v44, %v1628_v43  ;;  %v1418_v48 = vpop.f32.mrb[18].mxu1  ;;  %v1631_v49 = vpop.f32.mrb[18].mxu0 }
 0x2dd   :  { %v1714_v50 = vpop.f32.mrb[19].mxu1  ;;  %v1632_v51 = vpop.f32.mrb[19].mxu0 }
 0x2de   :  { %v1376_v52 = vadd.f32 %v1630_v47, %v1336_v46 }
 0x2e0   :  { %v1416_v53 = vadd.f32 %v1415_v42, %v1376_v52 }
 0x2e2   :  { %v1566_v54 = vpack.c.bf16 %v1416_v53, %v2073_v45 }
 0x2e4   :  { %1428 = vst [vmem:[%s2429_s9] sm:$0xff] %v1566_v54 }

// kernel: cdlamba_forward.23
= control target key start
LH: loop header
LB: loop body
LE: loop exit
PB: predicated region body
PF: predicated region fallthrough
CT: control target
= control target key end

     0   :  { %s452_s9 = smov 0   ;;  %s454_s10 = smov 0   ;;  %s506_s0 = inlined_call_operand.vmem [shape: bf16[2,16,8,32], index: 0, kind: input, shape index: {}]   ;;  %s507_s1 = inlined_call_operand.vmem [shape: bf16[16,8], index: 1, kind: input, shape index: {}]   ;;  %s508_s2 = inlined_call_operand.vmem [shape: f32[2,16,16,32], index: 2, kind: output, shape index: {}]  }
   0x1   :  { %s456_s11 = smov 0   ;;  %s458_s12 = smov 0  }
   0x2   :  { %s460_s13 = smov 0  }
   0x3 LB: > { %s21_s14 = sadd.s32 1, %s425_s11  ;;  %s24_s15 = sadd.s32 1, %s429_s12  ;;  %s433_s13 = sphi %s460_s13, %s12_s13   ;;  %s429_s12 = sphi %s458_s12, %s512_s12   ;;  %s425_s11 = sphi %s456_s11, %s511_s11   ;;  %s421_s10 = sphi %s454_s10, %s510_s10   ;;  %s417_s9 = sphi %s452_s9, %s509_s9  }
   0x4   : > { %p22_p0 = scmp.ge.s32.totalorder %s21_s14, 16  ;;  %p334_p1 = scmp.ge.s32.totalorder %s433_s13, 1 }
   0x5   : > { %p131_p2 = scmp.lt.s32.totalorder %s433_s13, 33 }
   0x6   : > { %s514_s14 = smov (%p22_p0, %s21_s14), 0  ;;  %s516_s15 = smov (!%p22_p0, %s24_s15), %s429_s12 }
   0x7   : > { %p132_p3 = pnand %p334_p1, %p131_p2  ;;  %p26_p4 = scmp.ge.s32.totalorder %s516_s15, 2 }
   0x8   : > { %p160_p5 = scmp.lt.s32.totalorder (!%p132_p3), %s421_s10, 1  ;;  %p162_p6 = scmp.lt.s32.totalorder (!%p132_p3), %s417_s9, 15  ;;  %v435_v0 = vmov (!%p132_p3), 0.0   ;;  %vm436_vm0 = vmmov (!%p132_p3), 0   ;;  %vm190_vm1 = vcmask (!%p132_p3), 1043456   ;;  %v394_v3 = vld [vmem:[%s507_s1] sm:$0xff] (!%p132_p3)  }
   0x9   : > { %s518_s15 = smov (%p26_p4, %s516_s15), 0  ;;  %135 = sbr.rel (%p132_p3) target bundleno = 241 (0xf1), region = 28 }
   0xa   : > { %346 = vmatprep.subr.bf16.mxu0 (!%p132_p3), %v435_v0  ;;  %348 = vmatprep.mubr.msk.bf16.mxu0 (!%p132_p3), %vm436_vm0, %v435_v0  ;;  %vm186_vm2 = vcmask (!%p132_p3), 64512   ;;  %vm235_vm3 = vcmask (!%p132_p3), 261120  }
  0x10   : > { %s520_s10 = smov (!%p160_p5, %s421_s10), 1  ;;  %s522_s9 = smov (!%p162_p6, %s417_s9), 15 }
  0x11   : > { %s335_s16 = sshll.u32 %s520_s10, 4  ;;  %s338_s17 = sshll.u32 %s520_s10, 5 }
  0x12   : > { %s165_s18 = sadd.s32 %s335_s16, %s522_s9  ;;  %s337_s19 = sshll.u32 %s522_s9, 1 }
  0x13   : > { %s336_s20 = sshll.u32 %s165_s18, 2  ;;  %s174_s21 = sadd.s32 %s338_s17, %s337_s19 }
  0x14   : > { %s167_s24 = scalar_lea.vmem %s506_s0, %s336_s20  ;;  %s339_s27 = sshll.u32 %s174_s21, 3 }
  0x15   : > { %v180_v1 = vld [vmem:[%s167_s24] sm:$0xf]  ;;  %s176_s30 = scalar_lea.vmem %s508_s2, %s339_s27 }
  0x16   : > { %v192_v2 = vsel %vm190_vm1, %v180_v1, 0 }
  0x17   : > { %347 = vmatpush3.bf16.msra.mxu0 %v192_v2 }
  0x1a   : > { %349 = vmatmul.mubr.msk.bf16.vlgmr.msra.gmra.mrb[0].mxu0 %vm186_vm2, %v394_v3 }
  0xed   : > { %v228_v4 = vpop.f32.mrb[0].mxu0 }
  0xee   : > { %236 = vst.msk [vmem:[%s176_s30] sm:$0xff] %vm235_vm3, %v228_v4  ;;  %v350_v5 = vpop.f32.mrb[1].mxu0 }
  0xef   : > { %v231_v6 = vpop.f32.mrb[2].mxu0 }
  0xf0   : > { %237 = vst.msk [vmem:[%s176_s30 + $0x8] sm:$0xff] %vm235_vm3, %v231_v6  ;;  %v351_v7 = vpop.f32.mrb[3].mxu0 }
  0xf1 PF: > { %s12_s13 = sadd.s32 1, %s433_s13   ;;  %s509_s9 = smov %s425_s11 }
  0xf2   : > { %p9_p7 = scmp.ge.s32.totalorder %s12_s13, 34   ;;  %s510_s10 = smov %s429_s12 }
  0xf3   : > { %s511_s11 = smov %s514_s14  ;;  %s512_s12 = smov %s518_s15 }
  0xf4   :  { %11 = sbr.rel (!%p9_p7) target bundleno = 3 (0x3), region = 58 }

// kernel: cdlamba_forward.25
= control target key start
LH: loop header
LB: loop body
LE: loop exit
PB: predicated region body
PF: predicated region fallthrough
CT: control target
= control target key end

     0   :  { %s452_s9 = smov 0   ;;  %s454_s10 = smov 0   ;;  %s506_s0 = inlined_call_operand.vmem [shape: bf16[2,16,4,32], index: 0, kind: input, shape index: {}]   ;;  %s507_s1 = inlined_call_operand.vmem [shape: bf16[16,4], index: 1, kind: input, shape index: {}]   ;;  %s508_s2 = inlined_call_operand.vmem [shape: f32[2,16,16,32], index: 2, kind: output, shape index: {}]  }
   0x1   :  { %s456_s11 = smov 0   ;;  %s458_s12 = smov 0  }
   0x2   :  { %s460_s13 = smov 0  }
   0x3 LB: > { %s21_s14 = sadd.s32 1, %s425_s11  ;;  %s24_s15 = sadd.s32 1, %s429_s12  ;;  %s433_s13 = sphi %s460_s13, %s12_s13   ;;  %s429_s12 = sphi %s458_s12, %s512_s12   ;;  %s425_s11 = sphi %s456_s11, %s511_s11   ;;  %s421_s10 = sphi %s454_s10, %s510_s10   ;;  %s417_s9 = sphi %s452_s9, %s509_s9  }
   0x4   : > { %p22_p0 = scmp.ge.s32.totalorder %s21_s14, 16  ;;  %p334_p1 = scmp.ge.s32.totalorder %s433_s13, 1 }
   0x5   : > { %p131_p2 = scmp.lt.s32.totalorder %s433_s13, 33 }
   0x6   : > { %s514_s14 = smov (%p22_p0, %s21_s14), 0  ;;  %s516_s15 = smov (!%p22_p0, %s24_s15), %s429_s12 }
   0x7   : > { %p132_p3 = pnand %p334_p1, %p131_p2  ;;  %p26_p4 = scmp.ge.s32.totalorder %s516_s15, 2 }
   0x8   : > { %p160_p5 = scmp.lt.s32.totalorder (!%p132_p3), %s421_s10, 1  ;;  %p162_p6 = scmp.lt.s32.totalorder (!%p132_p3), %s417_s9, 15  ;;  %v435_v0 = vmov (!%p132_p3), 0.0   ;;  %vm436_vm0 = vmmov (!%p132_p3), 0   ;;  %vm190_vm1 = vcmask (!%p132_p3), 1041408   ;;  %v394_v3 = vld [vmem:[%s507_s1] sm:$0xff] (!%p132_p3)  }
   0x9   : > { %s518_s15 = smov (%p26_p4, %s516_s15), 0  ;;  %135 = sbr.rel (%p132_p3) target bundleno = 241 (0xf1), region = 28 }
   0xa   : > { %346 = vmatprep.subr.bf16.mxu0 (!%p132_p3), %v435_v0  ;;  %348 = vmatprep.mubr.msk.bf16.mxu0 (!%p132_p3), %vm436_vm0, %v435_v0  ;;  %vm186_vm2 = vcmask (!%p132_p3), 31744   ;;  %vm235_vm3 = vcmask (!%p132_p3), 261120  }
  0x10   : > { %s520_s10 = smov (!%p160_p5, %s421_s10), 1  ;;  %s522_s9 = smov (!%p162_p6, %s417_s9), 15 }
  0x11   : > { %s335_s16 = sshll.u32 %s520_s10, 4  ;;  %s338_s17 = sshll.u32 %s520_s10, 5 }
  0x12   : > { %s165_s18 = sadd.s32 %s335_s16, %s522_s9  ;;  %s337_s19 = sshll.u32 %s522_s9, 1 }
  0x13   : > { %s336_s20 = sshll.u32 %s165_s18, 1  ;;  %s174_s21 = sadd.s32 %s338_s17, %s337_s19 }
  0x14   : > { %s167_s24 = scalar_lea.vmem %s506_s0, %s336_s20  ;;  %s339_s27 = sshll.u32 %s174_s21, 3 }
  0x15   : > { %v180_v1 = vld [vmem:[%s167_s24] sm:$0x3]  ;;  %s176_s30 = scalar_lea.vmem %s508_s2, %s339_s27 }
  0x16   : > { %v192_v2 = vsel %vm190_vm1, %v180_v1, 0 }
  0x17   : > { %347 = vmatpush3.bf16.msra.mxu0 %v192_v2 }
  0x1a   : > { %349 = vmatmul.mubr.msk.bf16.vlgmr.msra.gmra.mrb[0].mxu0 %vm186_vm2, %v394_v3 }
  0xed   : > { %v228_v4 = vpop.f32.mrb[0].mxu0 }
  0xee   : > { %236 = vst.msk [vmem:[%s176_s30] sm:$0xff] %vm235_vm3, %v228_v4  ;;  %v350_v5 = vpop.f32.mrb[1].mxu0 }
  0xef   : > { %v231_v6 = vpop.f32.mrb[2].mxu0 }
  0xf0   : > { %237 = vst.msk [vmem:[%s176_s30 + $0x8] sm:$0xff] %vm235_vm3, %v231_v6  ;;  %v351_v7 = vpop.f32.mrb[3].mxu0 }
  0xf1 PF: > { %s12_s13 = sadd.s32 1, %s433_s13   ;;  %s509_s9 = smov %s425_s11 }
  0xf2   : > { %p9_p7 = scmp.ge.s32.totalorder %s12_s13, 34   ;;  %s510_s10 = smov %s429_s12 }
  0xf3   : > { %s511_s11 = smov %s514_s14  ;;  %s512_s12 = smov %s518_s15 }
  0xf4   :  { %11 = sbr.rel (!%p9_p7) target bundleno = 3 (0x3), region = 58 }

// kernel: cdlamba_forward.27
= control target key start
LH: loop header
LB: loop body
LE: loop exit
PB: predicated region body
PF: predicated region fallthrough
CT: control target
= control target key end

     0   :  { %s445_s9 = smov 0   ;;  %s447_s10 = smov 0   ;;  %s499_s0 = inlined_call_operand.vmem [shape: bf16[2,16,2,64], index: 0, kind: input, shape index: {}]   ;;  %s500_s1 = inlined_call_operand.vmem [shape: bf16[16,2], index: 1, kind: input, shape index: {}]   ;;  %s501_s2 = inlined_call_operand.vmem [shape: f32[2,16,16,64], index: 2, kind: output, shape index: {}]  }
   0x1   :  { %s449_s11 = smov 0   ;;  %s451_s12 = smov 0  }
   0x2   :  { %s453_s13 = smov 0  }
   0x3 LB: > { %s21_s14 = sadd.s32 1, %s418_s11  ;;  %s24_s15 = sadd.s32 1, %s422_s12  ;;  %s426_s13 = sphi %s453_s13, %s12_s13   ;;  %s422_s12 = sphi %s451_s12, %s505_s12   ;;  %s418_s11 = sphi %s449_s11, %s504_s11   ;;  %s414_s10 = sphi %s447_s10, %s503_s10   ;;  %s410_s9 = sphi %s445_s9, %s502_s9  }
   0x4   : > { %p22_p0 = scmp.ge.s32.totalorder %s21_s14, 16  ;;  %p328_p1 = scmp.ge.s32.totalorder %s426_s13, 1 }
   0x5   : > { %p130_p2 = scmp.lt.s32.totalorder %s426_s13, 33 }
   0x6   : > { %s507_s14 = smov (%p22_p0, %s21_s14), 0  ;;  %s509_s15 = smov (!%p22_p0, %s24_s15), %s422_s12 }
   0x7   : > { %p131_p3 = pnand %p328_p1, %p130_p2  ;;  %p26_p4 = scmp.ge.s32.totalorder %s509_s15, 2 }
   0x8   : > { %p158_p5 = scmp.lt.s32.totalorder (!%p131_p3), %s414_s10, 1  ;;  %p160_p6 = scmp.lt.s32.totalorder (!%p131_p3), %s410_s9, 15  ;;  %v428_v0 = vmov (!%p131_p3), 0.0   ;;  %vm429_vm0 = vmmov (!%p131_p3), 0   ;;  %vm187_vm1 = vcmask (!%p131_p3), 1040384   ;;  %v387_v3 = vld [vmem:[%s500_s1] sm:$0xff] (!%p131_p3)  }
   0x9   : > { %s511_s15 = smov (%p26_p4, %s509_s15), 0  ;;  %134 = sbr.rel (%p131_p3) target bundleno = 240 (0xf0), region = 28 }
   0xa   : > { %339 = vmatprep.subr.bf16.mxu0 (!%p131_p3), %v428_v0  ;;  %341 = vmatprep.mubr.msk.bf16.mxu0 (!%p131_p3), %vm429_vm0, %v428_v0  ;;  %vm183_vm2 = vcmask (!%p131_p3), 15360   ;;  %vm232_vm3 = vcmask (!%p131_p3), 523264  }
  0x10   : > { %s513_s10 = smov (!%p158_p5, %s414_s10), 1  ;;  %s515_s9 = smov (!%p160_p6, %s410_s9), 15 }
  0x11   : > { %s329_s16 = sshll.u32 %s513_s10, 4  ;;  %s331_s17 = sshll.u32 %s513_s10, 5 }
  0x12   : > { %s163_s18 = sadd.s32 %s329_s16, %s515_s9  ;;  %s330_s19 = sshll.u32 %s515_s9, 1 }
  0x13   : > { %s164_s22 = scalar_lea.vmem %s499_s0, %s163_s18  ;;  %s171_s23 = sadd.s32 %s331_s17, %s330_s19 }
  0x14   : > { %v177_v1 = vld [vmem:[%s164_s22] sm:$0x1]  ;;  %s332_s26 = sshll.u32 %s171_s23, 3 }
  0x15   : > { %v189_v2 = vsel %vm187_vm1, %v177_v1, 0  ;;  %s173_s29 = scalar_lea.vmem %s501_s2, %s332_s26 }
  0x16   : > { %340 = vmatpush3.bf16.msra.mxu0 %v189_v2 }
  0x19   : > { %342 = vmatmul.mubr.msk.bf16.vlgmr.msra.gmra.mrb[0].mxu0 %vm183_vm2, %v387_v3 }
  0xec   : > { %v225_v4 = vpop.f32.mrb[0].mxu0 }
  0xed   : > { %233 = vst.msk [vmem:[%s173_s29] sm:$0xff] %vm232_vm3, %v225_v4  ;;  %v343_v5 = vpop.f32.mrb[1].mxu0 }
  0xee   : > { %v228_v6 = vpop.f32.mrb[2].mxu0 }
  0xef   : > { %234 = vst.msk [vmem:[%s173_s29 + $0x8] sm:$0xff] %vm232_vm3, %v228_v6  ;;  %v344_v7 = vpop.f32.mrb[3].mxu0 }
  0xf0 PF: > { %s12_s13 = sadd.s32 1, %s426_s13   ;;  %s502_s9 = smov %s418_s11 }
  0xf1   : > { %p9_p7 = scmp.ge.s32.totalorder %s12_s13, 34   ;;  %s503_s10 = smov %s422_s12 }
  0xf2   : > { %s504_s11 = smov %s507_s14  ;;  %s505_s12 = smov %s511_s15 }
  0xf3   :  { %11 = sbr.rel (!%p9_p7) target bundleno = 3 (0x3), region = 58 }

</bundles_post_ra>
